<compile_context>
chip_gen: v7x
topology: tpu7x:2x2x1
jax: 0.10.0
libtpu: 0.0.40
codegen_flags: <defaults>
</compile_context>

<pallas_src>
import functools
import math

import jax
import jax.numpy as jnp
from jax.experimental import pallas as pl
from jax.experimental.pallas import tpu as pltpu


# ---------------------------------------------------------------------------
# In-kernel building blocks (operate on VMEM-resident values, shapes static)
# ---------------------------------------------------------------------------

def _conv_len(t_in, k, stride=1, dilation=1, padding=0):
    return (t_in + 2 * padding - dilation * (k - 1) - 1) // stride + 1


def _conv1d_val(x, w_ref, b_ref, *, stride=1, dilation=1, padding=0,
                pre_relu=False, post_relu=False):
    """Conv1d on a (T_in, Cin) value.  w_ref: (K, Cin, Cout), b_ref: (1, Cout).

    Each tap k contributes  S_k @ (x @ W_k)  where S_k[i, j] = 1 iff
    j == i*stride + k*dilation - padding (out-of-range rows are all-zero, which
    implements zero padding for free).  Everything stays in VMEM/vregs.
    """
    t_in = x.shape[0]
    ksize = w_ref.shape[0]
    cout = w_ref.shape[2]
    t_out = _conv_len(t_in, ksize, stride=stride, dilation=dilation, padding=padding)

    if pre_relu:
        x = jnp.maximum(x, 0.0)

    rows = jax.lax.broadcasted_iota(jnp.int32, (t_out, t_in), 0)
    cols = jax.lax.broadcasted_iota(jnp.int32, (t_out, t_in), 1)

    acc = jnp.zeros((t_out, cout), jnp.float32)
    for k in range(ksize):                      # static, unrolled at trace time
        xw = jnp.dot(x, w_ref[k], preferred_element_type=jnp.float32)     # (t_in, cout)
        shift = k * dilation - padding
        sel = (cols == rows * stride + shift).astype(jnp.float32)         # (t_out, t_in)
        acc = acc + jnp.dot(sel, xw, preferred_element_type=jnp.float32)  # (t_out, cout)

    y = acc + b_ref[...]
    if post_relu:
        y = jnp.maximum(y, 0.0)
    return y


def _upsample2_val(x):
    """nn.Upsample(scale_factor=2, mode='nearest') along time: (T, C) -> (2T, C).

    Done as a selection matmul (U[i, j] = 1 iff j == i // 2) so the doubled
    activation never round-trips through HBM.
    """
    t = x.shape[0]
    rows = jax.lax.broadcasted_iota(jnp.int32, (2 * t, t), 0)
    cols = jax.lax.broadcasted_iota(jnp.int32, (2 * t, t), 1)
    up = ((rows >= 2 * cols) & (rows < 2 * cols + 2)).astype(jnp.float32)
    return jnp.dot(up, x, preferred_element_type=jnp.float32)


def _resnet1d_val(x, res_refs, dilation_growth_rate, reverse_dilation=True):
    """Resnet1D of ResConv1DBlock(norm=None, relu): x + conv1x1(relu(conv3_dil(relu(x))))."""
    depth = len(res_refs)
    dilations = [dilation_growth_rate ** i for i in range(depth)]
    if reverse_dilation:
        dilations = dilations[::-1]
    for p, dil in zip(res_refs, dilations):
        h = _conv1d_val(x, p["conv1"]["w"], p["conv1"]["b"],
                        dilation=dil, padding=dil, pre_relu=True)
        h = _conv1d_val(h, p["conv2"]["w"], p["conv2"]["b"], pre_relu=True)
        x = x + h
    return x


# ---------------------------------------------------------------------------
# Fused encoder / decoder kernels (one pallas_call each, grid over batch)
# ---------------------------------------------------------------------------

def _encoder_kernel(x_ref, *rest, treedef, cfg):
    o_ref = rest[-1]
    p = jax.tree_util.tree_unflatten(treedef, rest[:-1])
    st, dgr = cfg["stride_t"], cfg["dilation_growth_rate"]

    x = x_ref[0]                                                   # (T, 3)
    x = _conv1d_val(x, p["conv_in"]["w"], p["conv_in"]["b"], padding=1, post_relu=True)
    for blk in p["down"]:
        x = _conv1d_val(x, blk["conv"]["w"], blk["conv"]["b"],
                        stride=st, padding=st // 2)
        x = _resnet1d_val(x, blk["res"], dgr)
    x = _conv1d_val(x, p["conv_out"]["w"], p["conv_out"]["b"], padding=1)
    o_ref[0] = x                                                   # (T', E)


def _decoder_kernel(x_ref, *rest, treedef, cfg):
    o_ref = rest[-1]
    p = jax.tree_util.tree_unflatten(treedef, rest[:-1])
    dgr = cfg["dilation_growth_rate"]

    x = x_ref[0]                                                   # (T', E)
    x = _conv1d_val(x, p["conv_in"]["w"], p["conv_in"]["b"], padding=1, post_relu=True)
    for blk in p["up"]:
        x = _resnet1d_val(x, blk["res"], dgr)
        x = _upsample2_val(x)
        x = _conv1d_val(x, blk["conv"]["w"], blk["conv"]["b"], padding=1)
    x = _conv1d_val(x, p["conv_mid"]["w"], p["conv_mid"]["b"], padding=1, post_relu=True)
    x = _conv1d_val(x, p["conv_out"]["w"], p["conv_out"]["b"], padding=1)
    o_ref[0] = x                                                   # (T, 3)


def _const_index_map(*grid_idx, ndim):
    return (0,) * ndim


def _fused_call(kernel_fn, params_tree, x, out_t, out_c, cfg):
    """Run a fused per-batch-element kernel over grid=(N,), weights VMEM-resident."""
    n, t, c = x.shape
    leaves, treedef = jax.tree_util.tree_flatten(params_tree)
    in_specs = [pl.BlockSpec((1, t, c), lambda b: (b, 0, 0))]
    in_specs += [pl.BlockSpec(leaf.shape,
                              functools.partial(_const_index_map, ndim=leaf.ndim))
                 for leaf in leaves]
    return pl.pallas_call(
        functools.partial(kernel_fn, treedef=treedef, cfg=cfg),
        out_shape=jax.ShapeDtypeStruct((n, out_t, out_c), jnp.float32),
        grid=(n,),
        in_specs=in_specs,
        out_specs=pl.BlockSpec((1, out_t, out_c), lambda b: (b, 0, 0)),
        compiler_params=pltpu.CompilerParams(dimension_semantics=("parallel",)),
    )(x, *leaves)


def encoder_pallas(params_enc, x, cfg):
    _, t, _ = x.shape
    st, dt = cfg["stride_t"], cfg["down_t"]
    t_q = t
    for _ in range(dt):
        t_q = _conv_len(t_q, 2 * st, stride=st, padding=st // 2)
    return _fused_call(_encoder_kernel, params_enc, x, t_q, cfg["output_emb_width"], cfg)


def decoder_pallas(params_dec, x_q, cfg):
    _, t_q, _ = x_q.shape
    t_out = t_q * (2 ** cfg["down_t"])
    return _fused_call(_decoder_kernel, params_dec, x_q, t_out, 3, cfg)


# ---------------------------------------------------------------------------
# QuantizeEMAReset forward (eval semantics) as a single Pallas kernel
# ---------------------------------------------------------------------------

def _vq_kernel(x_ref, cb_ref, xd_ref, loss_ref, ppl_ref):
    x = x_ref[...]                       # (M, D)
    cb = cb_ref[...]                     # (K, D)
    m, d = x.shape
    k = cb.shape[0]

    # ||x||^2 - 2 x.cb + ||cb||^2, all without any in-kernel transpose:
    x2 = jnp.sum(x * x, axis=-1, keepdims=True)                                  # (M, 1)
    xc = jax.lax.dot_general(x, cb, (((1,), (1,)), ((), ())),
                             preferred_element_type=jnp.float32)                 # (M, K)
    c2 = jax.lax.dot_general(jnp.ones((1, d), jnp.float32), cb * cb,
                             (((1,), (1,)), ((), ())),
                             preferred_element_type=jnp.float32)                 # (1, K)
    dist = x2 - 2.0 * xc + c2                                                    # (M, K)

    # argmin with first-index tie-breaking (matches torch.min), no 1-D iota.
    col = jax.lax.broadcasted_iota(jnp.int32, (m, k), 1)
    min_d = jnp.min(dist, axis=-1, keepdims=True)
    idx = jnp.min(jnp.where(dist <= min_d, col, k), axis=-1, keepdims=True)      # (M, 1)
    onehot = (col == idx).astype(jnp.float32)                                    # (M, K)

    # dequantize via one-hot matmul (MXU) instead of a gather.
    x_d = jnp.dot(onehot, cb, preferred_element_type=jnp.float32)                # (M, D)
    xd_ref[...] = x_d

    # commit loss = F.mse_loss(x, x_d.detach())
    diff = x - x_d
    loss = jnp.sum(jnp.sum(diff * diff, axis=-1, keepdims=True), axis=0, keepdims=True)
    loss_ref[...] = loss / float(m * d)

    # perplexity = exp(-sum(p * log(p + 1e-7))), p = code usage histogram.
    counts = jnp.sum(onehot, axis=0, keepdims=True)                              # (1, K)
    total = jnp.sum(counts, axis=-1, keepdims=True)
    prob = counts / total
    ent = jnp.sum(prob * jnp.log(prob + 1e-7), axis=-1, keepdims=True)
    ppl_ref[...] = jnp.exp(-ent)


def vq_pallas(x_flat, codebook):
    m, d = x_flat.shape
    x_d, loss, ppl = pl.pallas_call(
        _vq_kernel,
        out_shape=(
            jax.ShapeDtypeStruct((m, d), jnp.float32),
            jax.ShapeDtypeStruct((1, 1), jnp.float32),
            jax.ShapeDtypeStruct((1, 1), jnp.float32),
        ),
        in_specs=[pl.BlockSpec(memory_space=pltpu.MemorySpace.VMEM)] * 2,
        out_specs=(
            pl.BlockSpec(memory_space=pltpu.MemorySpace.VMEM),
            pl.BlockSpec(memory_space=pltpu.MemorySpace.VMEM),
            pl.BlockSpec(memory_space=pltpu.MemorySpace.VMEM),
        ),
    )(x_flat, codebook)
    return x_d, loss[0, 0], ppl[0, 0]


# ---------------------------------------------------------------------------
# Full forward:  encoder kernel -> VQ kernel -> decoder kernel (3 pallas_calls)
# ---------------------------------------------------------------------------

def pose_vqvae_forward(params, x, cfg):
    # x: (N, T, 3). PyTorch's postprocess() permute to NCW is a layout change
    # only; the channels-last conv path here is numerically equivalent.
    h = encoder_pallas(params["encoder"], x, cfg)            # (N, T', E)
    n, tq, c = h.shape
    x_flat = h.reshape(n * tq, c)                            # quantizer preprocess
    x_d, loss, ppl = vq_pallas(x_flat, params["codebook"])
    x_q = x_d.reshape(n, tq, c)                              # straight-through forward value
    # TODO(synk): training-time EMA codebook update / data-dependent codebook
    # init of QuantizeEMAReset is stateful and not implemented (eval semantics).
    out = decoder_pallas(params["decoder"], x_q, cfg)        # (N, T, 3)
    return out, loss, ppl


# ---------------------------------------------------------------------------
# Deterministic parameter init (mimics PyTorch Conv1d default uniform init).
# Weights are stored pre-transposed as (K, Cin, Cout) and biases as (1, Cout)
# so the jitted forward contains no layout-fixup HLOs.
# ---------------------------------------------------------------------------

def _conv_params(key, cin, cout, ksize):
    kw, kb = jax.random.split(key)
    bound = 1.0 / math.sqrt(cin * ksize)
    return {
        "w": jax.random.uniform(kw, (ksize, cin, cout), jnp.float32, -bound, bound),
        "b": jax.random.uniform(kb, (1, cout), jnp.float32, -bound, bound),
    }


def init_params(key, cfg):
    keys = iter(jax.random.split(key, 256))
    W, E = cfg["width"], cfg["output_emb_width"]
    st, dt, depth = cfg["stride_t"], cfg["down_t"], cfg["depth"]

    def res_params():
        return [{"conv1": _conv_params(next(keys), W, W, 3),
                 "conv2": _conv_params(next(keys), W, W, 1)} for _ in range(depth)]

    enc = {"conv_in": _conv_params(next(keys), 3, W, 3),
           "down": [{"conv": _conv_params(next(keys), W, W, 2 * st), "res": res_params()}
                    for _ in range(dt)],
           "conv_out": _conv_params(next(keys), W, E, 3)}
    dec = {"conv_in": _conv_params(next(keys), E, W, 3),
           "up": [{"res": res_params(), "conv": _conv_params(next(keys), W, W, 3)}
                  for _ in range(dt)],
           "conv_mid": _conv_params(next(keys), W, W, 3),
           "conv_out": _conv_params(next(keys), W, 3, 3)}
    codebook = 0.02 * jax.random.normal(next(keys), (cfg["nb_code"], cfg["code_dim"]), jnp.float32)
    return {"encoder": enc, "decoder": dec, "codebook": codebook}


class PoseVQVAEPallas:
    def __init__(self, key, nb_code=64, code_dim=32, output_emb_width=32,
                 down_t=2, stride_t=2, width=32, depth=2, dilation_growth_rate=3):
        assert code_dim == output_emb_width
        self.nb_joints = 14
        self.cfg = dict(nb_code=nb_code, code_dim=code_dim,
                        output_emb_width=output_emb_width, down_t=down_t,
                        stride_t=stride_t, width=width, depth=depth,
                        dilation_growth_rate=dilation_growth_rate)
        self.params = init_params(key, self.cfg)
        self._fwd = jax.jit(functools.partial(pose_vqvae_forward, cfg=self.cfg))

    def __call__(self, x):
        return self._fwd(self.params, x)


if __name__ == "__main__":
    key = jax.random.PRNGKey(0)
    pkey, xkey = jax.random.split(key)
    model = PoseVQVAEPallas(pkey)

    # (batch=2, seq=16, channels=3) pose sequence; T divisible by stride_t**down_t.
    x = jax.random.normal(xkey, (2, 16, 3), jnp.float32)

    x_out, loss, perplexity = model(x)
    jax.block_until_ready((x_out, loss, perplexity))

    assert x_out.shape == (2, 16, 3), x_out.shape
    assert loss.shape == () and perplexity.shape == ()
    assert bool(jnp.isfinite(loss)) and bool(jnp.isfinite(perplexity))
    print("KERNEL_OK")
</pallas_src>

<mosaic_0001>
module attributes {stable_mosaic.version = 11 : i64} {
  func.func @_vq_kernel(%arg0: memref<8x32xf32, #tpu.memory_space<vmem>>, %arg1: memref<64x32xf32, #tpu.memory_space<vmem>>, %arg2: memref<8x32xf32, #tpu.memory_space<vmem>>, %arg3: memref<1x1xf32, #tpu.memory_space<vmem>>, %arg4: memref<1x1xf32, #tpu.memory_space<vmem>>) attributes {dimension_semantics = [], scalar_prefetch = 0 : i64, scratch_operands = 0 : i64, tpu.core_type = #tpu.core_type<tc>} {
    %c0 = arith.constant 0 : index
    %c0_0 = arith.constant 0 : index
    %0 = vector.load %arg0[%c0, %c0_0] : memref<8x32xf32, #tpu.memory_space<vmem>>, vector<8x32xf32>
    %c0_1 = arith.constant 0 : index
    %c0_2 = arith.constant 0 : index
    %1 = vector.load %arg1[%c0_1, %c0_2] : memref<64x32xf32, #tpu.memory_space<vmem>>, vector<64x32xf32>
    %2 = arith.mulf %0, %0 : vector<8x32xf32>
    %cst = arith.constant dense<0.000000e+00> : vector<8xf32>
    %3 = vector.multi_reduction <add>, %2, %cst [1] : vector<8x32xf32> to vector<8xf32>
    %4 = vector.shape_cast %3 : vector<8xf32> to vector<8x1xf32>
    %cst_3 = arith.constant dense<0.000000e+00> : vector<8x64xf32>
    %5 = tpu.matmul %0, %1, %cst_3 {dimension_numbers = #tpu.dot_dimension_numbers<[1], [1], [0], [0], [0, 0, 1, 0], [], []>} : vector<8x32xf32>, vector<64x32xf32>, vector<8x64xf32> -> vector<8x64xf32>
    %cst_4 = arith.constant 1.000000e+00 : f32
    %6 = vector.broadcast %cst_4 : f32 to vector<1x32xf32>
    %7 = arith.mulf %1, %1 : vector<64x32xf32>
    %cst_5 = arith.constant dense<0.000000e+00> : vector<1x64xf32>
    %8 = tpu.matmul %6, %7, %cst_5 {dimension_numbers = #tpu.dot_dimension_numbers<[1], [1], [0], [0], [0, 0, 1, 0], [], []>} : vector<1x32xf32>, vector<64x32xf32>, vector<1x64xf32> -> vector<1x64xf32>
    %cst_6 = arith.constant 2.000000e+00 : f32
    %9 = vector.broadcast %cst_6 : f32 to vector<8x64xf32>
    %10 = arith.mulf %9, %5 : vector<8x64xf32>
    %11 = vector.broadcast %4 : vector<8x1xf32> to vector<8x64xf32>
    %12 = arith.subf %11, %10 : vector<8x64xf32>
    %13 = vector.broadcast %8 : vector<1x64xf32> to vector<8x64xf32>
    %14 = arith.addf %12, %13 : vector<8x64xf32>
    %15 = tpu.iota {dimensions = array<i32: 1>} : vector<8x64xi32>
    %cst_7 = arith.constant dense<0x7F800000> : vector<8xf32>
    %16 = vector.multi_reduction <minimumf>, %14, %cst_7 [1] : vector<8x64xf32> to vector<8xf32>
    %17 = vector.shape_cast %16 : vector<8xf32> to vector<8x1xf32>
    %18 = vector.broadcast %17 : vector<8x1xf32> to vector<8x64xf32>
    %19 = arith.cmpf ole, %14, %18 : vector<8x64xf32>
    %c64_i32 = arith.constant 64 : i32
    %20 = vector.broadcast %c64_i32 : i32 to vector<8x64xi32>
    %21 = arith.select %19, %15, %20 : vector<8x64xi1>, vector<8x64xi32>
    %cst_8 = arith.constant dense<2147483647> : vector<8xi32>
    %22 = vector.multi_reduction <minsi>, %21, %cst_8 [1] : vector<8x64xi32> to vector<8xi32>
    %23 = vector.shape_cast %22 : vector<8xi32> to vector<8x1xi32>
    %24 = vector.broadcast %23 : vector<8x1xi32> to vector<8x64xi32>
    %25 = arith.cmpi eq, %15, %24 : vector<8x64xi32>
    %26 = arith.extui %25 : vector<8x64xi1> to vector<8x64xi32>
    %27 = arith.sitofp %26 : vector<8x64xi32> to vector<8x64xf32>
    %cst_9 = arith.constant dense<0.000000e+00> : vector<8x32xf32>
    %28 = tpu.matmul %27, %1, %cst_9 {dimension_numbers = #tpu.dot_dimension_numbers<[1], [0], [0], [1], [0, 0, 1, 1], [], []>} : vector<8x64xf32>, vector<64x32xf32>, vector<8x32xf32> -> vector<8x32xf32>
    %c0_10 = arith.constant 0 : index
    %c0_11 = arith.constant 0 : index
    %29 = vector.load %arg2[%c0_10, %c0_11] : memref<8x32xf32, #tpu.memory_space<vmem>>, vector<8x32xf32>
    tpu.vector_store %arg2[%c0_10, %c0_11], %28 {strides = array<i32>} : memref<8x32xf32, #tpu.memory_space<vmem>>, vector<8x32xf32>,
    %30 = arith.subf %0, %28 : vector<8x32xf32>
    %31 = arith.mulf %30, %30 : vector<8x32xf32>
    %cst_12 = arith.constant dense<0.000000e+00> : vector<8xf32>
    %32 = vector.multi_reduction <add>, %31, %cst_12 [1] : vector<8x32xf32> to vector<8xf32>
    %33 = vector.shape_cast %32 : vector<8xf32> to vector<8x1xf32>
    %cst_13 = arith.constant dense<0.000000e+00> : vector<1xf32>
    %34 = vector.multi_reduction <add>, %33, %cst_13 [0] : vector<8x1xf32> to vector<1xf32>
    %35 = vector.shape_cast %34 : vector<1xf32> to vector<1x1xf32>
    %cst_14 = arith.constant 2.560000e+02 : f32
    %36 = vector.broadcast %cst_14 : f32 to vector<1x1xf32>
    %37 = arith.divf %35, %36 : vector<1x1xf32>
    %c0_15 = arith.constant 0 : index
    %c0_16 = arith.constant 0 : index
    %38 = vector.load %arg3[%c0_15, %c0_16] : memref<1x1xf32, #tpu.memory_space<vmem>>, vector<1x1xf32>
    tpu.vector_store %arg3[%c0_15, %c0_16], %37 {strides = array<i32>} : memref<1x1xf32, #tpu.memory_space<vmem>>, vector<1x1xf32>,
    %cst_17 = arith.constant dense<0.000000e+00> : vector<64xf32>
    %39 = vector.multi_reduction <add>, %27, %cst_17 [0] : vector<8x64xf32> to vector<64xf32>
    %40 = vector.shape_cast %39 : vector<64xf32> to vector<1x64xf32>
    %cst_18 = arith.constant dense<0.000000e+00> : vector<1xf32>
    %41 = vector.multi_reduction <add>, %40, %cst_18 [1] : vector<1x64xf32> to vector<1xf32>
    %42 = vector.shape_cast %41 : vector<1xf32> to vector<1x1xf32>
    %43 = vector.broadcast %42 : vector<1x1xf32> to vector<1x64xf32>
    %44 = arith.divf %40, %43 : vector<1x64xf32>
    %cst_19 = arith.constant 1.000000e-07 : f32
    %45 = vector.broadcast %cst_19 : f32 to vector<1x64xf32>
    %46 = arith.addf %44, %45 : vector<1x64xf32>
    %47 = math.log %46 : vector<1x64xf32>
    %48 = arith.mulf %44, %47 : vector<1x64xf32>
    %cst_20 = arith.constant dense<0.000000e+00> : vector<1xf32>
    %49 = vector.multi_reduction <add>, %48, %cst_20 [1] : vector<1x64xf32> to vector<1xf32>
    %50 = vector.shape_cast %49 : vector<1xf32> to vector<1x1xf32>
    %cst_21 = arith.constant 0.000000e+00 : f32
    %51 = vector.broadcast %cst_21 : f32 to vector<1x1xf32>
    %52 = arith.subf %51, %50 : vector<1x1xf32>
    %53 = math.exp %52 : vector<1x1xf32>
    %c0_22 = arith.constant 0 : index
    %c0_23 = arith.constant 0 : index
    %54 = vector.load %arg4[%c0_22, %c0_23] : memref<1x1xf32, #tpu.memory_space<vmem>>, vector<1x1xf32>
    tpu.vector_store %arg4[%c0_22, %c0_23], %53 {strides = array<i32>} : memref<1x1xf32, #tpu.memory_space<vmem>>, vector<1x1xf32>,
    return
  }
}

module attributes {stable_mosaic.version = 11 : i64} {
  func.func @_encoder_kernel(%arg0: i32, %arg1: memref<1x16x3xf32, #tpu.memory_space<vmem>>, %arg2: memref<1x32xf32, #tpu.memory_space<vmem>>, %arg3: memref<3x3x32xf32, #tpu.memory_space<vmem>>, %arg4: memref<1x32xf32, #tpu.memory_space<vmem>>, %arg5: memref<3x32x32xf32, #tpu.memory_space<vmem>>, %arg6: memref<1x32xf32, #tpu.memory_space<vmem>>, %arg7: memref<4x32x32xf32, #tpu.memory_space<vmem>>, %arg8: memref<1x32xf32, #tpu.memory_space<vmem>>, %arg9: memref<3x32x32xf32, #tpu.memory_space<vmem>>, %arg10: memref<1x32xf32, #tpu.memory_space<vmem>>, %arg11: memref<1x32x32xf32, #tpu.memory_space<vmem>>, %arg12: memref<1x32xf32, #tpu.memory_space<vmem>>, %arg13: memref<3x32x32xf32, #tpu.memory_space<vmem>>, %arg14: memref<1x32xf32, #tpu.memory_space<vmem>>, %arg15: memref<1x32x32xf32, #tpu.memory_space<vmem>>, %arg16: memref<1x32xf32, #tpu.memory_space<vmem>>, %arg17: memref<4x32x32xf32, #tpu.memory_space<vmem>>, %arg18: memref<1x32xf32, #tpu.memory_space<vmem>>, %arg19: memref<3x32x32xf32, #tpu.memory_space<vmem>>, %arg20: memref<1x32xf32, #tpu.memory_space<vmem>>, %arg21: memref<1x32x32xf32, #tpu.memory_space<vmem>>, %arg22: memref<1x32xf32, #tpu.memory_space<vmem>>, %arg23: memref<3x32x32xf32, #tpu.memory_space<vmem>>, %arg24: memref<1x32xf32, #tpu.memory_space<vmem>>, %arg25: memref<1x32x32xf32, #tpu.memory_space<vmem>>, %arg26: memref<1x4x32xf32, #tpu.memory_space<vmem>>) attributes {dimension_semantics = [#tpu.dimension_semantics<parallel>], iteration_bounds = array<i64: 2>, scalar_prefetch = 0 : i64, scratch_operands = 0 : i64, tpu.core_type = #tpu.core_type<tc>, window_params = [{transform_indices = @transform_0, window_bounds = array<i64: 1, 16, 3>}, {pipeline_mode = #tpu.pipeline_mode<synchronous>, transform_indices = @transform_1, window_bounds = array<i64: 1, 32>}, {pipeline_mode = #tpu.pipeline_mode<synchronous>, transform_indices = @transform_2, window_bounds = array<i64: 3, 3, 32>}, {pipeline_mode = #tpu.pipeline_mode<synchronous>, transform_indices = @transform_3, window_bounds = array<i64: 1, 32>}, {pipeline_mode = #tpu.pipeline_mode<synchronous>, transform_indices = @transform_4, window_bounds = array<i64: 3, 32, 32>}, {pipeline_mode = #tpu.pipeline_mode<synchronous>, transform_indices = @transform_5, window_bounds = array<i64: 1, 32>}, {pipeline_mode = #tpu.pipeline_mode<synchronous>, transform_indices = @transform_6, window_bounds = array<i64: 4, 32, 32>}, {pipeline_mode = #tpu.pipeline_mode<synchronous>, transform_indices = @transform_7, window_bounds = array<i64: 1, 32>}, {pipeline_mode = #tpu.pipeline_mode<synchronous>, transform_indices = @transform_8, window_bounds = array<i64: 3, 32, 32>}, {pipeline_mode = #tpu.pipeline_mode<synchronous>, transform_indices = @transform_9, window_bounds = array<i64: 1, 32>}, {pipeline_mode = #tpu.pipeline_mode<synchronous>, transform_indices = @transform_10, window_bounds = array<i64: 1, 32, 32>}, {pipeline_mode = #tpu.pipeline_mode<synchronous>, transform_indices = @transform_11, window_bounds = array<i64: 1, 32>}, {pipeline_mode = #tpu.pipeline_mode<synchronous>, transform_indices = @transform_12, window_bounds = array<i64: 3, 32, 32>}, {pipeline_mode = #tpu.pipeline_mode<synchronous>, transform_indices = @transform_13, window_bounds = array<i64: 1, 32>}, {pipeline_mode = #tpu.pipeline_mode<synchronous>, transform_indices = @transform_14, window_bounds = array<i64: 1, 32, 32>}, {pipeline_mode = #tpu.pipeline_mode<synchronous>, transform_indices = @transform_15, window_bounds = array<i64: 1, 32>}, {pipeline_mode = #tpu.pipeline_mode<synchronous>, transform_indices = @transform_16, window_bounds = array<i64: 4, 32, 32>}, {pipeline_mode = #tpu.pipeline_mode<synchronous>, transform_indices = @transform_17, window_bounds = array<i64: 1, 32>}, {pipeline_mode = #tpu.pipeline_mode<synchronous>, transform_indices = @transform_18, window_bounds = array<i64: 3, 32, 32>}, {pipeline_mode = #tpu.pipeline_mode<synchronous>, transform_indices = @transform_19, window_bounds = array<i64: 1, 32>}, {pipeline_mode = #tpu.pipeline_mode<synchronous>, transform_indices = @transform_20, window_bounds = array<i64: 1, 32, 32>}, {pipeline_mode = #tpu.pipeline_mode<synchronous>, transform_indices = @transform_21, window_bounds = array<i64: 1, 32>}, {pipeline_mode = #tpu.pipeline_mode<synchronous>, transform_indices = @transform_22, window_bounds = array<i64: 3, 32, 32>}, {pipeline_mode = #tpu.pipeline_mode<synchronous>, transform_indices = @transform_23, window_bounds = array<i64: 1, 32>}, {pipeline_mode = #tpu.pipeline_mode<synchronous>, transform_indices = @transform_24, window_bounds = array<i64: 1, 32, 32>}, {transform_indices = @transform_25, window_bounds = array<i64: 1, 4, 32>}]} {
    %c0 = arith.constant 0 : index
    %c0_0 = arith.constant 0 : index
    %c0_1 = arith.constant 0 : index
    %0 = vector.load %arg1[%c0, %c0_0, %c0_1] : memref<1x16x3xf32, #tpu.memory_space<vmem>>, vector<1x16x3xf32>
    %1 = vector.shape_cast %0 : vector<1x16x3xf32> to vector<16x3xf32>
    %2 = tpu.iota {dimensions = array<i32: 0>} : vector<16x16xi32>
    %3 = tpu.iota {dimensions = array<i32: 1>} : vector<16x16xi32>
    %cst = arith.constant 0.000000e+00 : f32
    %4 = vector.broadcast %cst : f32 to vector<16x32xf32>
    %c0_2 = arith.constant 0 : index
    %c0_3 = arith.constant 0 : index
    %c0_4 = arith.constant 0 : index
    %5 = vector.load %arg3[%c0_2, %c0_3, %c0_4] : memref<3x3x32xf32, #tpu.memory_space<vmem>>, vector<1x3x32xf32>
    %6 = vector.shape_cast %5 : vector<1x3x32xf32> to vector<3x32xf32>
    %cst_5 = arith.constant dense<0.000000e+00> : vector<16x32xf32>
    %7 = tpu.matmul %1, %6, %cst_5 {dimension_numbers = #tpu.dot_dimension_numbers<[1], [0], [0], [1], [0, 0, 1, 1], [], []>} : vector<16x3xf32>, vector<3x32xf32>, vector<16x32xf32> -> vector<16x32xf32>
    %c1_i32 = arith.constant 1 : i32
    %8 = vector.broadcast %c1_i32 : i32 to vector<16x16xi32>
    %9 = arith.muli %2, %8 : vector<16x16xi32>
    %c-1_i32 = arith.constant -1 : i32
    %10 = vector.broadcast %c-1_i32 : i32 to vector<16x16xi32>
    %11 = arith.addi %9, %10 : vector<16x16xi32>
    %12 = arith.cmpi eq, %3, %11 : vector<16x16xi32>
    %13 = arith.extui %12 : vector<16x16xi1> to vector<16x16xi32>
    %14 = arith.sitofp %13 : vector<16x16xi32> to vector<16x16xf32>
    %cst_6 = arith.constant dense<0.000000e+00> : vector<16x32xf32>
    %15 = tpu.matmul %14, %7, %cst_6 {dimension_numbers = #tpu.dot_dimension_numbers<[1], [0], [0], [1], [0, 0, 1, 1], [], []>} : vector<16x16xf32>, vector<16x32xf32>, vector<16x32xf32> -> vector<16x32xf32>
    %16 = arith.addf %4, %15 : vector<16x32xf32>
    %c1 = arith.constant 1 : index
    %c0_7 = arith.constant 0 : index
    %c0_8 = arith.constant 0 : index
    %17 = vector.load %arg3[%c1, %c0_7, %c0_8] : memref<3x3x32xf32, #tpu.memory_space<vmem>>, vector<1x3x32xf32>
    %18 = vector.shape_cast %17 : vector<1x3x32xf32> to vector<3x32xf32>
    %cst_9 = arith.constant dense<0.000000e+00> : vector<16x32xf32>
    %19 = tpu.matmul %1, %18, %cst_9 {dimension_numbers = #tpu.dot_dimension_numbers<[1], [0], [0], [1], [0, 0, 1, 1], [], []>} : vector<16x3xf32>, vector<3x32xf32>, vector<16x32xf32> -> vector<16x32xf32>
    %c1_i32_10 = arith.constant 1 : i32
    %20 = vector.broadcast %c1_i32_10 : i32 to vector<16x16xi32>
    %21 = arith.muli %2, %20 : vector<16x16xi32>
    %c0_i32 = arith.constant 0 : i32
    %22 = vector.broadcast %c0_i32 : i32 to vector<16x16xi32>
    %23 = arith.addi %21, %22 : vector<16x16xi32>
    %24 = arith.cmpi eq, %3, %23 : vector<16x16xi32>
    %25 = arith.extui %24 : vector<16x16xi1> to vector<16x16xi32>
    %26 = arith.sitofp %25 : vector<16x16xi32> to vector<16x16xf32>
    %cst_11 = arith.constant dense<0.000000e+00> : vector<16x32xf32>
    %27 = tpu.matmul %26, %19, %cst_11 {dimension_numbers = #tpu.dot_dimension_numbers<[1], [0], [0], [1], [0, 0, 1, 1], [], []>} : vector<16x16xf32>, vector<16x32xf32>, vector<16x32xf32> -> vector<16x32xf32>
    %28 = arith.addf %16, %27 : vector<16x32xf32>
    %c2 = arith.constant 2 : index
    %c0_12 = arith.constant 0 : index
    %c0_13 = arith.constant 0 : index
    %29 = vector.load %arg3[%c2, %c0_12, %c0_13] : memref<3x3x32xf32, #tpu.memory_space<vmem>>, vector<1x3x32xf32>
    %30 = vector.shape_cast %29 : vector<1x3x32xf32> to vector<3x32xf32>
    %cst_14 = arith.constant dense<0.000000e+00> : vector<16x32xf32>
    %31 = tpu.matmul %1, %30, %cst_14 {dimension_numbers = #tpu.dot_dimension_numbers<[1], [0], [0], [1], [0, 0, 1, 1], [], []>} : vector<16x3xf32>, vector<3x32xf32>, vector<16x32xf32> -> vector<16x32xf32>
    %c1_i32_15 = arith.constant 1 : i32
    %32 = vector.broadcast %c1_i32_15 : i32 to vector<16x16xi32>
    %33 = arith.muli %2, %32 : vector<16x16xi32>
    %c1_i32_16 = arith.constant 1 : i32
    %34 = vector.broadcast %c1_i32_16 : i32 to vector<16x16xi32>
    %35 = arith.addi %33, %34 : vector<16x16xi32>
    %36 = arith.cmpi eq, %3, %35 : vector<16x16xi32>
    %37 = arith.extui %36 : vector<16x16xi1> to vector<16x16xi32>
    %38 = arith.sitofp %37 : vector<16x16xi32> to vector<16x16xf32>
    %cst_17 = arith.constant dense<0.000000e+00> : vector<16x32xf32>
    %39 = tpu.matmul %38, %31, %cst_17 {dimension_numbers = #tpu.dot_dimension_numbers<[1], [0], [0], [1], [0, 0, 1, 1], [], []>} : vector<16x16xf32>, vector<16x32xf32>, vector<16x32xf32> -> vector<16x32xf32>
    %40 = arith.addf %28, %39 : vector<16x32xf32>
    %c0_18 = arith.constant 0 : index
    %c0_19 = arith.constant 0 : index
    %41 = vector.load %arg2[%c0_18, %c0_19] : memref<1x32xf32, #tpu.memory_space<vmem>>, vector<1x32xf32>
    %42 = vector.broadcast %41 : vector<1x32xf32> to vector<16x32xf32>
    %43 = arith.addf %40, %42 : vector<16x32xf32>
    %cst_20 = arith.constant 0.000000e+00 : f32
    %44 = vector.broadcast %cst_20 : f32 to vector<16x32xf32>
    %45 = arith.maximumf %43, %44 : vector<16x32xf32>
    %46 = tpu.iota {dimensions = array<i32: 0>} : vector<8x16xi32>
    %47 = tpu.iota {dimensions = array<i32: 1>} : vector<8x16xi32>
    %cst_21 = arith.constant 0.000000e+00 : f32
    %48 = vector.broadcast %cst_21 : f32 to vector<8x32xf32>
    %c0_22 = arith.constant 0 : index
    %c0_23 = arith.constant 0 : index
    %c0_24 = arith.constant 0 : index
    %49 = vector.load %arg7[%c0_22, %c0_23, %c0_24] : memref<4x32x32xf32, #tpu.memory_space<vmem>>, vector<1x32x32xf32>
    %50 = vector.shape_cast %49 : vector<1x32x32xf32> to vector<32x32xf32>
    %cst_25 = arith.constant dense<0.000000e+00> : vector<16x32xf32>
    %51 = tpu.matmul %45, %50, %cst_25 {dimension_numbers = #tpu.dot_dimension_numbers<[1], [0], [0], [1], [0, 0, 1, 1], [], []>} : vector<16x32xf32>, vector<32x32xf32>, vector<16x32xf32> -> vector<16x32xf32>
    %c2_i32 = arith.constant 2 : i32
    %52 = vector.broadcast %c2_i32 : i32 to vector<8x16xi32>
    %53 = arith.muli %46, %52 : vector<8x16xi32>
    %c-1_i32_26 = arith.constant -1 : i32
    %54 = vector.broadcast %c-1_i32_26 : i32 to vector<8x16xi32>
    %55 = arith.addi %53, %54 : vector<8x16xi32>
    %56 = arith.cmpi eq, %47, %55 : vector<8x16xi32>
    %57 = arith.extui %56 : vector<8x16xi1> to vector<8x16xi32>
    %58 = arith.sitofp %57 : vector<8x16xi32> to vector<8x16xf32>
    %cst_27 = arith.constant dense<0.000000e+00> : vector<8x32xf32>
    %59 = tpu.matmul %58, %51, %cst_27 {dimension_numbers = #tpu.dot_dimension_numbers<[1], [0], [0], [1], [0, 0, 1, 1], [], []>} : vector<8x16xf32>, vector<16x32xf32>, vector<8x32xf32> -> vector<8x32xf32>
    %60 = arith.addf %48, %59 : vector<8x32xf32>
    %c1_28 = arith.constant 1 : index
    %c0_29 = arith.constant 0 : index
    %c0_30 = arith.constant 0 : index
    %61 = vector.load %arg7[%c1_28, %c0_29, %c0_30] : memref<4x32x32xf32, #tpu.memory_space<vmem>>, vector<1x32x32xf32>
    %62 = vector.shape_cast %61 : vector<1x32x32xf32> to vector<32x32xf32>
    %cst_31 = arith.constant dense<0.000000e+00> : vector<16x32xf32>
    %63 = tpu.matmul %45, %62, %cst_31 {dimension_numbers = #tpu.dot_dimension_numbers<[1], [0], [0], [1], [0, 0, 1, 1], [], []>} : vector<16x32xf32>, vector<32x32xf32>, vector<16x32xf32> -> vector<16x32xf32>
    %c2_i32_32 = arith.constant 2 : i32
    %64 = vector.broadcast %c2_i32_32 : i32 to vector<8x16xi32>
    %65 = arith.muli %46, %64 : vector<8x16xi32>
    %c0_i32_33 = arith.constant 0 : i32
    %66 = vector.broadcast %c0_i32_33 : i32 to vector<8x16xi32>
    %67 = arith.addi %65, %66 : vector<8x16xi32>
    %68 = arith.cmpi eq, %47, %67 : vector<8x16xi32>
    %69 = arith.extui %68 : vector<8x16xi1> to vector<8x16xi32>
    %70 = arith.sitofp %69 : vector<8x16xi32> to vector<8x16xf32>
    %cst_34 = arith.constant dense<0.000000e+00> : vector<8x32xf32>
    %71 = tpu.matmul %70, %63, %cst_34 {dimension_numbers = #tpu.dot_dimension_numbers<[1], [0], [0], [1], [0, 0, 1, 1], [], []>} : vector<8x16xf32>, vector<16x32xf32>, vector<8x32xf32> -> vector<8x32xf32>
    %72 = arith.addf %60, %71 : vector<8x32xf32>
    %c2_35 = arith.constant 2 : index
    %c0_36 = arith.constant 0 : index
    %c0_37 = arith.constant 0 : index
    %73 = vector.load %arg7[%c2_35, %c0_36, %c0_37] : memref<4x32x32xf32, #tpu.memory_space<vmem>>, vector<1x32x32xf32>
    %74 = vector.shape_cast %73 : vector<1x32x32xf32> to vector<32x32xf32>
    %cst_38 = arith.constant dense<0.000000e+00> : vector<16x32xf32>
    %75 = tpu.matmul %45, %74, %cst_38 {dimension_numbers = #tpu.dot_dimension_numbers<[1], [0], [0], [1], [0, 0, 1, 1], [], []>} : vector<16x32xf32>, vector<32x32xf32>, vector<16x32xf32> -> vector<16x32xf32>
    %c2_i32_39 = arith.constant 2 : i32
    %76 = vector.broadcast %c2_i32_39 : i32 to vector<8x16xi32>
    %77 = arith.muli %46, %76 : vector<8x16xi32>
    %c1_i32_40 = arith.constant 1 : i32
    %78 = vector.broadcast %c1_i32_40 : i32 to vector<8x16xi32>
    %79 = arith.addi %77, %78 : vector<8x16xi32>
    %80 = arith.cmpi eq, %47, %79 : vector<8x16xi32>
    %81 = arith.extui %80 : vector<8x16xi1> to vector<8x16xi32>
    %82 = arith.sitofp %81 : vector<8x16xi32> to vector<8x16xf32>
    %cst_41 = arith.constant dense<0.000000e+00> : vector<8x32xf32>
    %83 = tpu.matmul %82, %75, %cst_41 {dimension_numbers = #tpu.dot_dimension_numbers<[1], [0], [0], [1], [0, 0, 1, 1], [], []>} : vector<8x16xf32>, vector<16x32xf32>, vector<8x32xf32> -> vector<8x32xf32>
    %84 = arith.addf %72, %83 : vector<8x32xf32>
    %c3 = arith.constant 3 : index
    %c0_42 = arith.constant 0 : index
    %c0_43 = arith.constant 0 : index
    %85 = vector.load %arg7[%c3, %c0_42, %c0_43] : memref<4x32x32xf32, #tpu.memory_space<vmem>>, vector<1x32x32xf32>
    %86 = vector.shape_cast %85 : vector<1x32x32xf32> to vector<32x32xf32>
    %cst_44 = arith.constant dense<0.000000e+00> : vector<16x32xf32>
    %87 = tpu.matmul %45, %86, %cst_44 {dimension_numbers = #tpu.dot_dimension_numbers<[1], [0], [0], [1], [0, 0, 1, 1], [], []>} : vector<16x32xf32>, vector<32x32xf32>, vector<16x32xf32> -> vector<16x32xf32>
    %c2_i32_45 = arith.constant 2 : i32
    %88 = vector.broadcast %c2_i32_45 : i32 to vector<8x16xi32>
    %89 = arith.muli %46, %88 : vector<8x16xi32>
    %c2_i32_46 = arith.constant 2 : i32
    %90 = vector.broadcast %c2_i32_46 : i32 to vector<8x16xi32>
    %91 = arith.addi %89, %90 : vector<8x16xi32>
    %92 = arith.cmpi eq, %47, %91 : vector<8x16xi32>
    %93 = arith.extui %92 : vector<8x16xi1> to vector<8x16xi32>
    %94 = arith.sitofp %93 : vector<8x16xi32> to vector<8x16xf32>
    %cst_47 = arith.constant dense<0.000000e+00> : vector<8x32xf32>
    %95 = tpu.matmul %94, %87, %cst_47 {dimension_numbers = #tpu.dot_dimension_numbers<[1], [0], [0], [1], [0, 0, 1, 1], [], []>} : vector<8x16xf32>, vector<16x32xf32>, vector<8x32xf32> -> vector<8x32xf32>
    %96 = arith.addf %84, %95 : vector<8x32xf32>
    %c0_48 = arith.constant 0 : index
    %c0_49 = arith.constant 0 : index
    %97 = vector.load %arg6[%c0_48, %c0_49] : memref<1x32xf32, #tpu.memory_space<vmem>>, vector<1x32xf32>
    %98 = vector.broadcast %97 : vector<1x32xf32> to vector<8x32xf32>
    %99 = arith.addf %96, %98 : vector<8x32xf32>
    %cst_50 = arith.constant 0.000000e+00 : f32
    %100 = vector.broadcast %cst_50 : f32 to vector<8x32xf32>
    %101 = arith.maximumf %99, %100 : vector<8x32xf32>
    %102 = tpu.iota {dimensions = array<i32: 0>} : vector<8x8xi32>
    %103 = tpu.iota {dimensions = array<i32: 1>} : vector<8x8xi32>
    %cst_51 = arith.constant 0.000000e+00 : f32
    %104 = vector.broadcast %cst_51 : f32 to vector<8x32xf32>
    %c0_52 = arith.constant 0 : index
    %c0_53 = arith.constant 0 : index
    %c0_54 = arith.constant 0 : index
    %105 = vector.load %arg9[%c0_52, %c0_53, %c0_54] : memref<3x32x32xf32, #tpu.memory_space<vmem>>, vector<1x32x32xf32>
    %106 = vector.shape_cast %105 : vector<1x32x32xf32> to vector<32x32xf32>
    %cst_55 = arith.constant dense<0.000000e+00> : vector<8x32xf32>
    %107 = tpu.matmul %101, %106, %cst_55 {dimension_numbers = #tpu.dot_dimension_numbers<[1], [0], [0], [1], [0, 0, 1, 1], [], []>} : vector<8x32xf32>, vector<32x32xf32>, vector<8x32xf32> -> vector<8x32xf32>
    %c1_i32_56 = arith.constant 1 : i32
    %108 = vector.broadcast %c1_i32_56 : i32 to vector<8x8xi32>
    %109 = arith.muli %102, %108 : vector<8x8xi32>
    %c-3_i32 = arith.constant -3 : i32
    %110 = vector.broadcast %c-3_i32 : i32 to vector<8x8xi32>
    %111 = arith.addi %109, %110 : vector<8x8xi32>
    %112 = arith.cmpi eq, %103, %111 : vector<8x8xi32>
    %113 = arith.extui %112 : vector<8x8xi1> to vector<8x8xi32>
    %114 = arith.sitofp %113 : vector<8x8xi32> to vector<8x8xf32>
    %cst_57 = arith.constant dense<0.000000e+00> : vector<8x32xf32>
    %115 = tpu.matmul %114, %107, %cst_57 {dimension_numbers = #tpu.dot_dimension_numbers<[1], [0], [0], [1], [0, 0, 1, 1], [], []>} : vector<8x8xf32>, vector<8x32xf32>, vector<8x32xf32> -> vector<8x32xf32>
    %116 = arith.addf %104, %115 : vector<8x32xf32>
    %c1_58 = arith.constant 1 : index
    %c0_59 = arith.constant 0 : index
    %c0_60 = arith.constant 0 : index
    %117 = vector.load %arg9[%c1_58, %c0_59, %c0_60] : memref<3x32x32xf32, #tpu.memory_space<vmem>>, vector<1x32x32xf32>
    %118 = vector.shape_cast %117 : vector<1x32x32xf32> to vector<32x32xf32>
    %cst_61 = arith.constant dense<0.000000e+00> : vector<8x32xf32>
    %119 = tpu.matmul %101, %118, %cst_61 {dimension_numbers = #tpu.dot_dimension_numbers<[1], [0], [0], [1], [0, 0, 1, 1], [], []>} : vector<8x32xf32>, vector<32x32xf32>, vector<8x32xf32> -> vector<8x32xf32>
    %c1_i32_62 = arith.constant 1 : i32
    %120 = vector.broadcast %c1_i32_62 : i32 to vector<8x8xi32>
    %121 = arith.muli %102, %120 : vector<8x8xi32>
    %c0_i32_63 = arith.constant 0 : i32
    %122 = vector.broadcast %c0_i32_63 : i32 to vector<8x8xi32>
    %123 = arith.addi %121, %122 : vector<8x8xi32>
    %124 = arith.cmpi eq, %103, %123 : vector<8x8xi32>
    %125 = arith.extui %124 : vector<8x8xi1> to vector<8x8xi32>
    %126 = arith.sitofp %125 : vector<8x8xi32> to vector<8x8xf32>
    %cst_64 = arith.constant dense<0.000000e+00> : vector<8x32xf32>
    %127 = tpu.matmul %126, %119, %cst_64 {dimension_numbers = #tpu.dot_dimension_numbers<[1], [0], [0], [1], [0, 0, 1, 1], [], []>} : vector<8x8xf32>, vector<8x32xf32>, vector<8x32xf32> -> vector<8x32xf32>
    %128 = arith.addf %116, %127 : vector<8x32xf32>
    %c2_65 = arith.constant 2 : index
    %c0_66 = arith.constant 0 : index
    %c0_67 = arith.constant 0 : index
    %129 = vector.load %arg9[%c2_65, %c0_66, %c0_67] : memref<3x32x32xf32, #tpu.memory_space<vmem>>, vector<1x32x32xf32>
    %130 = vector.shape_cast %129 : vector<1x32x32xf32> to vector<32x32xf32>
    %cst_68 = arith.constant dense<0.000000e+00> : vector<8x32xf32>
    %131 = tpu.matmul %101, %130, %cst_68 {dimension_numbers = #tpu.dot_dimension_numbers<[1], [0], [0], [1], [0, 0, 1, 1], [], []>} : vector<8x32xf32>, vector<32x32xf32>, vector<8x32xf32> -> vector<8x32xf32>
    %c1_i32_69 = arith.constant 1 : i32
    %132 = vector.broadcast %c1_i32_69 : i32 to vector<8x8xi32>
    %133 = arith.muli %102, %132 : vector<8x8xi32>
    %c3_i32 = arith.constant 3 : i32
    %134 = vector.broadcast %c3_i32 : i32 to vector<8x8xi32>
    %135 = arith.addi %133, %134 : vector<8x8xi32>
    %136 = arith.cmpi eq, %103, %135 : vector<8x8xi32>
    %137 = arith.extui %136 : vector<8x8xi1> to vector<8x8xi32>
    %138 = arith.sitofp %137 : vector<8x8xi32> to vector<8x8xf32>
    %cst_70 = arith.constant dense<0.000000e+00> : vector<8x32xf32>
    %139 = tpu.matmul %138, %131, %cst_70 {dimension_numbers = #tpu.dot_dimension_numbers<[1], [0], [0], [1], [0, 0, 1, 1], [], []>} : vector<8x8xf32>, vector<8x32xf32>, vector<8x32xf32> -> vector<8x32xf32>
    %140 = arith.addf %128, %139 : vector<8x32xf32>
    %c0_71 = arith.constant 0 : index
    %c0_72 = arith.constant 0 : index
    %141 = vector.load %arg8[%c0_71, %c0_72] : memref<1x32xf32, #tpu.memory_space<vmem>>, vector<1x32xf32>
    %142 = vector.broadcast %141 : vector<1x32xf32> to vector<8x32xf32>
    %143 = arith.addf %140, %142 : vector<8x32xf32>
    %cst_73 = arith.constant 0.000000e+00 : f32
    %144 = vector.broadcast %cst_73 : f32 to vector<8x32xf32>
    %145 = arith.maximumf %143, %144 : vector<8x32xf32>
    %146 = tpu.iota {dimensions = array<i32: 0>} : vector<8x8xi32>
    %147 = tpu.iota {dimensions = array<i32: 1>} : vector<8x8xi32>
    %cst_74 = arith.constant 0.000000e+00 : f32
    %148 = vector.broadcast %cst_74 : f32 to vector<8x32xf32>
    %c0_75 = arith.constant 0 : index
    %c0_76 = arith.constant 0 : index
    %c0_77 = arith.constant 0 : index
    %149 = vector.load %arg11[%c0_75, %c0_76, %c0_77] : memref<1x32x32xf32, #tpu.memory_space<vmem>>, vector<1x32x32xf32>
    %150 = vector.shape_cast %149 : vector<1x32x32xf32> to vector<32x32xf32>
    %cst_78 = arith.constant dense<0.000000e+00> : vector<8x32xf32>
    %151 = tpu.matmul %145, %150, %cst_78 {dimension_numbers = #tpu.dot_dimension_numbers<[1], [0], [0], [1], [0, 0, 1, 1], [], []>} : vector<8x32xf32>, vector<32x32xf32>, vector<8x32xf32> -> vector<8x32xf32>
    %c1_i32_79 = arith.constant 1 : i32
    %152 = vector.broadcast %c1_i32_79 : i32 to vector<8x8xi32>
    %153 = arith.muli %146, %152 : vector<8x8xi32>
    %c0_i32_80 = arith.constant 0 : i32
    %154 = vector.broadcast %c0_i32_80 : i32 to vector<8x8xi32>
    %155 = arith.addi %153, %154 : vector<8x8xi32>
    %156 = arith.cmpi eq, %147, %155 : vector<8x8xi32>
    %157 = arith.extui %156 : vector<8x8xi1> to vector<8x8xi32>
    %158 = arith.sitofp %157 : vector<8x8xi32> to vector<8x8xf32>
    %cst_81 = arith.constant dense<0.000000e+00> : vector<8x32xf32>
    %159 = tpu.matmul %158, %151, %cst_81 {dimension_numbers = #tpu.dot_dimension_numbers<[1], [0], [0], [1], [0, 0, 1, 1], [], []>} : vector<8x8xf32>, vector<8x32xf32>, vector<8x32xf32> -> vector<8x32xf32>
    %160 = arith.addf %148, %159 : vector<8x32xf32>
    %c0_82 = arith.constant 0 : index
    %c0_83 = arith.constant 0 : index
    %161 = vector.load %arg10[%c0_82, %c0_83] : memref<1x32xf32, #tpu.memory_space<vmem>>, vector<1x32xf32>
    %162 = vector.broadcast %161 : vector<1x32xf32> to vector<8x32xf32>
    %163 = arith.addf %160, %162 : vector<8x32xf32>
    %164 = arith.addf %99, %163 : vector<8x32xf32>
    %cst_84 = arith.constant 0.000000e+00 : f32
    %165 = vector.broadcast %cst_84 : f32 to vector<8x32xf32>
    %166 = arith.maximumf %164, %165 : vector<8x32xf32>
    %167 = tpu.iota {dimensions = array<i32: 0>} : vector<8x8xi32>
    %168 = tpu.iota {dimensions = array<i32: 1>} : vector<8x8xi32>
    %cst_85 = arith.constant 0.000000e+00 : f32
    %169 = vector.broadcast %cst_85 : f32 to vector<8x32xf32>
    %c0_86 = arith.constant 0 : index
    %c0_87 = arith.constant 0 : index
    %c0_88 = arith.constant 0 : index
    %170 = vector.load %arg13[%c0_86, %c0_87, %c0_88] : memref<3x32x32xf32, #tpu.memory_space<vmem>>, vector<1x32x32xf32>
    %171 = vector.shape_cast %170 : vector<1x32x32xf32> to vector<32x32xf32>
    %cst_89 = arith.constant dense<0.000000e+00> : vector<8x32xf32>
    %172 = tpu.matmul %166, %171, %cst_89 {dimension_numbers = #tpu.dot_dimension_numbers<[1], [0], [0], [1], [0, 0, 1, 1], [], []>} : vector<8x32xf32>, vector<32x32xf32>, vector<8x32xf32> -> vector<8x32xf32>
    %c1_i32_90 = arith.constant 1 : i32
    %173 = vector.broadcast %c1_i32_90 : i32 to vector<8x8xi32>
    %174 = arith.muli %167, %173 : vector<8x8xi32>
    %c-1_i32_91 = arith.constant -1 : i32
    %175 = vector.broadcast %c-1_i32_91 : i32 to vector<8x8xi32>
    %176 = arith.addi %174, %175 : vector<8x8xi32>
    %177 = arith.cmpi eq, %168, %176 : vector<8x8xi32>
    %178 = arith.extui %177 : vector<8x8xi1> to vector<8x8xi32>
    %179 = arith.sitofp %178 : vector<8x8xi32> to vector<8x8xf32>
    %cst_92 = arith.constant dense<0.000000e+00> : vector<8x32xf32>
    %180 = tpu.matmul %179, %172, %cst_92 {dimension_numbers = #tpu.dot_dimension_numbers<[1], [0], [0], [1], [0, 0, 1, 1], [], []>} : vector<8x8xf32>, vector<8x32xf32>, vector<8x32xf32> -> vector<8x32xf32>
    %181 = arith.addf %169, %180 : vector<8x32xf32>
    %c1_93 = arith.constant 1 : index
    %c0_94 = arith.constant 0 : index
    %c0_95 = arith.constant 0 : index
    %182 = vector.load %arg13[%c1_93, %c0_94, %c0_95] : memref<3x32x32xf32, #tpu.memory_space<vmem>>, vector<1x32x32xf32>
    %183 = vector.shape_cast %182 : vector<1x32x32xf32> to vector<32x32xf32>
    %cst_96 = arith.constant dense<0.000000e+00> : vector<8x32xf32>
    %184 = tpu.matmul %166, %183, %cst_96 {dimension_numbers = #tpu.dot_dimension_numbers<[1], [0], [0], [1], [0, 0, 1, 1], [], []>} : vector<8x32xf32>, vector<32x32xf32>, vector<8x32xf32> -> vector<8x32xf32>
    %c1_i32_97 = arith.constant 1 : i32
    %185 = vector.broadcast %c1_i32_97 : i32 to vector<8x8xi32>
    %186 = arith.muli %167, %185 : vector<8x8xi32>
    %c0_i32_98 = arith.constant 0 : i32
    %187 = vector.broadcast %c0_i32_98 : i32 to vector<8x8xi32>
    %188 = arith.addi %186, %187 : vector<8x8xi32>
    %189 = arith.cmpi eq, %168, %188 : vector<8x8xi32>
    %190 = arith.extui %189 : vector<8x8xi1> to vector<8x8xi32>
    %191 = arith.sitofp %190 : vector<8x8xi32> to vector<8x8xf32>
    %cst_99 = arith.constant dense<0.000000e+00> : vector<8x32xf32>
    %192 = tpu.matmul %191, %184, %cst_99 {dimension_numbers = #tpu.dot_dimension_numbers<[1], [0], [0], [1], [0, 0, 1, 1], [], []>} : vector<8x8xf32>, vector<8x32xf32>, vector<8x32xf32> -> vector<8x32xf32>
    %193 = arith.addf %181, %192 : vector<8x32xf32>
    %c2_100 = arith.constant 2 : index
    %c0_101 = arith.constant 0 : index
    %c0_102 = arith.constant 0 : index
    %194 = vector.load %arg13[%c2_100, %c0_101, %c0_102] : memref<3x32x32xf32, #tpu.memory_space<vmem>>, vector<1x32x32xf32>
    %195 = vector.shape_cast %194 : vector<1x32x32xf32> to vector<32x32xf32>
    %cst_103 = arith.constant dense<0.000000e+00> : vector<8x32xf32>
    %196 = tpu.matmul %166, %195, %cst_103 {dimension_numbers = #tpu.dot_dimension_numbers<[1], [0], [0], [1], [0, 0, 1, 1], [], []>} : vector<8x32xf32>, vector<32x32xf32>, vector<8x32xf32> -> vector<8x32xf32>
    %c1_i32_104 = arith.constant 1 : i32
    %197 = vector.broadcast %c1_i32_104 : i32 to vector<8x8xi32>
    %198 = arith.muli %167, %197 : vector<8x8xi32>
    %c1_i32_105 = arith.constant 1 : i32
    %199 = vector.broadcast %c1_i32_105 : i32 to vector<8x8xi32>
    %200 = arith.addi %198, %199 : vector<8x8xi32>
    %201 = arith.cmpi eq, %168, %200 : vector<8x8xi32>
    %202 = arith.extui %201 : vector<8x8xi1> to vector<8x8xi32>
    %203 = arith.sitofp %202 : vector<8x8xi32> to vector<8x8xf32>
    %cst_106 = arith.constant dense<0.000000e+00> : vector<8x32xf32>
    %204 = tpu.matmul %203, %196, %cst_106 {dimension_numbers = #tpu.dot_dimension_numbers<[1], [0], [0], [1], [0, 0, 1, 1], [], []>} : vector<8x8xf32>, vector<8x32xf32>, vector<8x32xf32> -> vector<8x32xf32>
    %205 = arith.addf %193, %204 : vector<8x32xf32>
    %c0_107 = arith.constant 0 : index
    %c0_108 = arith.constant 0 : index
    %206 = vector.load %arg12[%c0_107, %c0_108] : memref<1x32xf32, #tpu.memory_space<vmem>>, vector<1x32xf32>
    %207 = vector.broadcast %206 : vector<1x32xf32> to vector<8x32xf32>
    %208 = arith.addf %205, %207 : vector<8x32xf32>
    %cst_109 = arith.constant 0.000000e+00 : f32
    %209 = vector.broadcast %cst_109 : f32 to vector<8x32xf32>
    %210 = arith.maximumf %208, %209 : vector<8x32xf32>
    %211 = tpu.iota {dimensions = array<i32: 0>} : vector<8x8xi32>
    %212 = tpu.iota {dimensions = array<i32: 1>} : vector<8x8xi32>
    %cst_110 = arith.constant 0.000000e+00 : f32
    %213 = vector.broadcast %cst_110 : f32 to vector<8x32xf32>
    %c0_111 = arith.constant 0 : index
    %c0_112 = arith.constant 0 : index
    %c0_113 = arith.constant 0 : index
    %214 = vector.load %arg15[%c0_111, %c0_112, %c0_113] : memref<1x32x32xf32, #tpu.memory_space<vmem>>, vector<1x32x32xf32>
    %215 = vector.shape_cast %214 : vector<1x32x32xf32> to vector<32x32xf32>
    %cst_114 = arith.constant dense<0.000000e+00> : vector<8x32xf32>
    %216 = tpu.matmul %210, %215, %cst_114 {dimension_numbers = #tpu.dot_dimension_numbers<[1], [0], [0], [1], [0, 0, 1, 1], [], []>} : vector<8x32xf32>, vector<32x32xf32>, vector<8x32xf32> -> vector<8x32xf32>
    %c1_i32_115 = arith.constant 1 : i32
    %217 = vector.broadcast %c1_i32_115 : i32 to vector<8x8xi32>
    %218 = arith.muli %211, %217 : vector<8x8xi32>
    %c0_i32_116 = arith.constant 0 : i32
    %219 = vector.broadcast %c0_i32_116 : i32 to vector<8x8xi32>
    %220 = arith.addi %218, %219 : vector<8x8xi32>
    %221 = arith.cmpi eq, %212, %220 : vector<8x8xi32>
    %222 = arith.extui %221 : vector<8x8xi1> to vector<8x8xi32>
    %223 = arith.sitofp %222 : vector<8x8xi32> to vector<8x8xf32>
    %cst_117 = arith.constant dense<0.000000e+00> : vector<8x32xf32>
    %224 = tpu.matmul %223, %216, %cst_117 {dimension_numbers = #tpu.dot_dimension_numbers<[1], [0], [0], [1], [0, 0, 1, 1], [], []>} : vector<8x8xf32>, vector<8x32xf32>, vector<8x32xf32> -> vector<8x32xf32>
    %225 = arith.addf %213, %224 : vector<8x32xf32>
    %c0_118 = arith.constant 0 : index
    %c0_119 = arith.constant 0 : index
    %226 = vector.load %arg14[%c0_118, %c0_119] : memref<1x32xf32, #tpu.memory_space<vmem>>, vector<1x32xf32>
    %227 = vector.broadcast %226 : vector<1x32xf32> to vector<8x32xf32>
    %228 = arith.addf %225, %227 : vector<8x32xf32>
    %229 = arith.addf %164, %228 : vector<8x32xf32>
    %230 = tpu.iota {dimensions = array<i32: 0>} : vector<4x8xi32>
    %231 = tpu.iota {dimensions = array<i32: 1>} : vector<4x8xi32>
    %cst_120 = arith.constant 0.000000e+00 : f32
    %232 = vector.broadcast %cst_120 : f32 to vector<4x32xf32>
    %c0_121 = arith.constant 0 : index
    %c0_122 = arith.constant 0 : index
    %c0_123 = arith.constant 0 : index
    %233 = vector.load %arg17[%c0_121, %c0_122, %c0_123] : memref<4x32x32xf32, #tpu.memory_space<vmem>>, vector<1x32x32xf32>
    %234 = vector.shape_cast %233 : vector<1x32x32xf32> to vector<32x32xf32>
    %cst_124 = arith.constant dense<0.000000e+00> : vector<8x32xf32>
    %235 = tpu.matmul %229, %234, %cst_124 {dimension_numbers = #tpu.dot_dimension_numbers<[1], [0], [0], [1], [0, 0, 1, 1], [], []>} : vector<8x32xf32>, vector<32x32xf32>, vector<8x32xf32> -> vector<8x32xf32>
    %c2_i32_125 = arith.constant 2 : i32
    %236 = vector.broadcast %c2_i32_125 : i32 to vector<4x8xi32>
    %237 = arith.muli %230, %236 : vector<4x8xi32>
    %c-1_i32_126 = arith.constant -1 : i32
    %238 = vector.broadcast %c-1_i32_126 : i32 to vector<4x8xi32>
    %239 = arith.addi %237, %238 : vector<4x8xi32>
    %240 = arith.cmpi eq, %231, %239 : vector<4x8xi32>
    %241 = arith.extui %240 : vector<4x8xi1> to vector<4x8xi32>
    %242 = arith.sitofp %241 : vector<4x8xi32> to vector<4x8xf32>
    %cst_127 = arith.constant dense<0.000000e+00> : vector<4x32xf32>
    %243 = tpu.matmul %242, %235, %cst_127 {dimension_numbers = #tpu.dot_dimension_numbers<[1], [0], [0], [1], [0, 0, 1, 1], [], []>} : vector<4x8xf32>, vector<8x32xf32>, vector<4x32xf32> -> vector<4x32xf32>
    %244 = arith.addf %232, %243 : vector<4x32xf32>
    %c1_128 = arith.constant 1 : index
    %c0_129 = arith.constant 0 : index
    %c0_130 = arith.constant 0 : index
    %245 = vector.load %arg17[%c1_128, %c0_129, %c0_130] : memref<4x32x32xf32, #tpu.memory_space<vmem>>, vector<1x32x32xf32>
    %246 = vector.shape_cast %245 : vector<1x32x32xf32> to vector<32x32xf32>
    %cst_131 = arith.constant dense<0.000000e+00> : vector<8x32xf32>
    %247 = tpu.matmul %229, %246, %cst_131 {dimension_numbers = #tpu.dot_dimension_numbers<[1], [0], [0], [1], [0, 0, 1, 1], [], []>} : vector<8x32xf32>, vector<32x32xf32>, vector<8x32xf32> -> vector<8x32xf32>
    %c2_i32_132 = arith.constant 2 : i32
    %248 = vector.broadcast %c2_i32_132 : i32 to vector<4x8xi32>
    %249 = arith.muli %230, %248 : vector<4x8xi32>
    %c0_i32_133 = arith.constant 0 : i32
    %250 = vector.broadcast %c0_i32_133 : i32 to vector<4x8xi32>
    %251 = arith.addi %249, %250 : vector<4x8xi32>
    %252 = arith.cmpi eq, %231, %251 : vector<4x8xi32>
    %253 = arith.extui %252 : vector<4x8xi1> to vector<4x8xi32>
    %254 = arith.sitofp %253 : vector<4x8xi32> to vector<4x8xf32>
    %cst_134 = arith.constant dense<0.000000e+00> : vector<4x32xf32>
    %255 = tpu.matmul %254, %247, %cst_134 {dimension_numbers = #tpu.dot_dimension_numbers<[1], [0], [0], [1], [0, 0, 1, 1], [], []>} : vector<4x8xf32>, vector<8x32xf32>, vector<4x32xf32> -> vector<4x32xf32>
    %256 = arith.addf %244, %255 : vector<4x32xf32>
    %c2_135 = arith.constant 2 : index
    %c0_136 = arith.constant 0 : index
    %c0_137 = arith.constant 0 : index
    %257 = vector.load %arg17[%c2_135, %c0_136, %c0_137] : memref<4x32x32xf32, #tpu.memory_space<vmem>>, vector<1x32x32xf32>
    %258 = vector.shape_cast %257 : vector<1x32x32xf32> to vector<32x32xf32>
    %cst_138 = arith.constant dense<0.000000e+00> : vector<8x32xf32>
    %259 = tpu.matmul %229, %258, %cst_138 {dimension_numbers = #tpu.dot_dimension_numbers<[1], [0], [0], [1], [0, 0, 1, 1], [], []>} : vector<8x32xf32>, vector<32x32xf32>, vector<8x32xf32> -> vector<8x32xf32>
    %c2_i32_139 = arith.constant 2 : i32
    %260 = vector.broadcast %c2_i32_139 : i32 to vector<4x8xi32>
    %261 = arith.muli %230, %260 : vector<4x8xi32>
    %c1_i32_140 = arith.constant 1 : i32
    %262 = vector.broadcast %c1_i32_140 : i32 to vector<4x8xi32>
    %263 = arith.addi %261, %262 : vector<4x8xi32>
    %264 = arith.cmpi eq, %231, %263 : vector<4x8xi32>
    %265 = arith.extui %264 : vector<4x8xi1> to vector<4x8xi32>
    %266 = arith.sitofp %265 : vector<4x8xi32> to vector<4x8xf32>
    %cst_141 = arith.constant dense<0.000000e+00> : vector<4x32xf32>
    %267 = tpu.matmul %266, %259, %cst_141 {dimension_numbers = #tpu.dot_dimension_numbers<[1], [0], [0], [1], [0, 0, 1, 1], [], []>} : vector<4x8xf32>, vector<8x32xf32>, vector<4x32xf32> -> vector<4x32xf32>
    %268 = arith.addf %256, %267 : vector<4x32xf32>
    %c3_142 = arith.constant 3 : index
    %c0_143 = arith.constant 0 : index
    %c0_144 = arith.constant 0 : index
    %269 = vector.load %arg17[%c3_142, %c0_143, %c0_144] : memref<4x32x32xf32, #tpu.memory_space<vmem>>, vector<1x32x32xf32>
    %270 = vector.shape_cast %269 : vector<1x32x32xf32> to vector<32x32xf32>
    %cst_145 = arith.constant dense<0.000000e+00> : vector<8x32xf32>
    %271 = tpu.matmul %229, %270, %cst_145 {dimension_numbers = #tpu.dot_dimension_numbers<[1], [0], [0], [1], [0, 0, 1, 1], [], []>} : vector<8x32xf32>, vector<32x32xf32>, vector<8x32xf32> -> vector<8x32xf32>
    %c2_i32_146 = arith.constant 2 : i32
    %272 = vector.broadcast %c2_i32_146 : i32 to vector<4x8xi32>
    %273 = arith.muli %230, %272 : vector<4x8xi32>
    %c2_i32_147 = arith.constant 2 : i32
    %274 = vector.broadcast %c2_i32_147 : i32 to vector<4x8xi32>
    %275 = arith.addi %273, %274 : vector<4x8xi32>
    %276 = arith.cmpi eq, %231, %275 : vector<4x8xi32>
    %277 = arith.extui %276 : vector<4x8xi1> to vector<4x8xi32>
    %278 = arith.sitofp %277 : vector<4x8xi32> to vector<4x8xf32>
    %cst_148 = arith.constant dense<0.000000e+00> : vector<4x32xf32>
    %279 = tpu.matmul %278, %271, %cst_148 {dimension_numbers = #tpu.dot_dimension_numbers<[1], [0], [0], [1], [0, 0, 1, 1], [], []>} : vector<4x8xf32>, vector<8x32xf32>, vector<4x32xf32> -> vector<4x32xf32>
    %280 = arith.addf %268, %279 : vector<4x32xf32>
    %c0_149 = arith.constant 0 : index
    %c0_150 = arith.constant 0 : index
    %281 = vector.load %arg16[%c0_149, %c0_150] : memref<1x32xf32, #tpu.memory_space<vmem>>, vector<1x32xf32>
    %282 = vector.broadcast %281 : vector<1x32xf32> to vector<4x32xf32>
    %283 = arith.addf %280, %282 : vector<4x32xf32>
    %cst_151 = arith.constant 0.000000e+00 : f32
    %284 = vector.broadcast %cst_151 : f32 to vector<4x32xf32>
    %285 = arith.maximumf %283, %284 : vector<4x32xf32>
    %286 = tpu.iota {dimensions = array<i32: 0>} : vector<4x4xi32>
    %287 = tpu.iota {dimensions = array<i32: 1>} : vector<4x4xi32>
    %cst_152 = arith.constant 0.000000e+00 : f32
    %288 = vector.broadcast %cst_152 : f32 to vector<4x32xf32>
    %c0_153 = arith.constant 0 : index
    %c0_154 = arith.constant 0 : index
    %c0_155 = arith.constant 0 : index
    %289 = vector.load %arg19[%c0_153, %c0_154, %c0_155] : memref<3x32x32xf32, #tpu.memory_space<vmem>>, vector<1x32x32xf32>
    %290 = vector.shape_cast %289 : vector<1x32x32xf32> to vector<32x32xf32>
    %cst_156 = arith.constant dense<0.000000e+00> : vector<4x32xf32>
    %291 = tpu.matmul %285, %290, %cst_156 {dimension_numbers = #tpu.dot_dimension_numbers<[1], [0], [0], [1], [0, 0, 1, 1], [], []>} : vector<4x32xf32>, vector<32x32xf32>, vector<4x32xf32> -> vector<4x32xf32>
    %c1_i32_157 = arith.constant 1 : i32
    %292 = vector.broadcast %c1_i32_157 : i32 to vector<4x4xi32>
    %293 = arith.muli %286, %292 : vector<4x4xi32>
    %c-3_i32_158 = arith.constant -3 : i32
    %294 = vector.broadcast %c-3_i32_158 : i32 to vector<4x4xi32>
    %295 = arith.addi %293, %294 : vector<4x4xi32>
    %296 = arith.cmpi eq, %287, %295 : vector<4x4xi32>
    %297 = arith.extui %296 : vector<4x4xi1> to vector<4x4xi32>
    %298 = arith.sitofp %297 : vector<4x4xi32> to vector<4x4xf32>
    %cst_159 = arith.constant dense<0.000000e+00> : vector<4x32xf32>
    %299 = tpu.matmul %298, %291, %cst_159 {dimension_numbers = #tpu.dot_dimension_numbers<[1], [0], [0], [1], [0, 0, 1, 1], [], []>} : vector<4x4xf32>, vector<4x32xf32>, vector<4x32xf32> -> vector<4x32xf32>
    %300 = arith.addf %288, %299 : vector<4x32xf32>
    %c1_160 = arith.constant 1 : index
    %c0_161 = arith.constant 0 : index
    %c0_162 = arith.constant 0 : index
    %301 = vector.load %arg19[%c1_160, %c0_161, %c0_162] : memref<3x32x32xf32, #tpu.memory_space<vmem>>, vector<1x32x32xf32>
    %302 = vector.shape_cast %301 : vector<1x32x32xf32> to vector<32x32xf32>
    %cst_163 = arith.constant dense<0.000000e+00> : vector<4x32xf32>
    %303 = tpu.matmul %285, %302, %cst_163 {dimension_numbers = #tpu.dot_dimension_numbers<[1], [0], [0], [1], [0, 0, 1, 1], [], []>} : vector<4x32xf32>, vector<32x32xf32>, vector<4x32xf32> -> vector<4x32xf32>
    %c1_i32_164 = arith.constant 1 : i32
    %304 = vector.broadcast %c1_i32_164 : i32 to vector<4x4xi32>
    %305 = arith.muli %286, %304 : vector<4x4xi32>
    %c0_i32_165 = arith.constant 0 : i32
    %306 = vector.broadcast %c0_i32_165 : i32 to vector<4x4xi32>
    %307 = arith.addi %305, %306 : vector<4x4xi32>
    %308 = arith.cmpi eq, %287, %307 : vector<4x4xi32>
    %309 = arith.extui %308 : vector<4x4xi1> to vector<4x4xi32>
    %310 = arith.sitofp %309 : vector<4x4xi32> to vector<4x4xf32>
    %cst_166 = arith.constant dense<0.000000e+00> : vector<4x32xf32>
    %311 = tpu.matmul %310, %303, %cst_166 {dimension_numbers = #tpu.dot_dimension_numbers<[1], [0], [0], [1], [0, 0, 1, 1], [], []>} : vector<4x4xf32>, vector<4x32xf32>, vector<4x32xf32> -> vector<4x32xf32>
    %312 = arith.addf %300, %311 : vector<4x32xf32>
    %c2_167 = arith.constant 2 : index
    %c0_168 = arith.constant 0 : index
    %c0_169 = arith.constant 0 : index
    %313 = vector.load %arg19[%c2_167, %c0_168, %c0_169] : memref<3x32x32xf32, #tpu.memory_space<vmem>>, vector<1x32x32xf32>
    %314 = vector.shape_cast %313 : vector<1x32x32xf32> to vector<32x32xf32>
    %cst_170 = arith.constant dense<0.000000e+00> : vector<4x32xf32>
    %315 = tpu.matmul %285, %314, %cst_170 {dimension_numbers = #tpu.dot_dimension_numbers<[1], [0], [0], [1], [0, 0, 1, 1], [], []>} : vector<4x32xf32>, vector<32x32xf32>, vector<4x32xf32> -> vector<4x32xf32>
    %c1_i32_171 = arith.constant 1 : i32
    %316 = vector.broadcast %c1_i32_171 : i32 to vector<4x4xi32>
    %317 = arith.muli %286, %316 : vector<4x4xi32>
    %c3_i32_172 = arith.constant 3 : i32
    %318 = vector.broadcast %c3_i32_172 : i32 to vector<4x4xi32>
    %319 = arith.addi %317, %318 : vector<4x4xi32>
    %320 = arith.cmpi eq, %287, %319 : vector<4x4xi32>
    %321 = arith.extui %320 : vector<4x4xi1> to vector<4x4xi32>
    %322 = arith.sitofp %321 : vector<4x4xi32> to vector<4x4xf32>
    %cst_173 = arith.constant dense<0.000000e+00> : vector<4x32xf32>
    %323 = tpu.matmul %322, %315, %cst_173 {dimension_numbers = #tpu.dot_dimension_numbers<[1], [0], [0], [1], [0, 0, 1, 1], [], []>} : vector<4x4xf32>, vector<4x32xf32>, vector<4x32xf32> -> vector<4x32xf32>
    %324 = arith.addf %312, %323 : vector<4x32xf32>
    %c0_174 = arith.constant 0 : index
    %c0_175 = arith.constant 0 : index
    %325 = vector.load %arg18[%c0_174, %c0_175] : memref<1x32xf32, #tpu.memory_space<vmem>>, vector<1x32xf32>
    %326 = vector.broadcast %325 : vector<1x32xf32> to vector<4x32xf32>
    %327 = arith.addf %324, %326 : vector<4x32xf32>
    %cst_176 = arith.constant 0.000000e+00 : f32
    %328 = vector.broadcast %cst_176 : f32 to vector<4x32xf32>
    %329 = arith.maximumf %327, %328 : vector<4x32xf32>
    %330 = tpu.iota {dimensions = array<i32: 0>} : vector<4x4xi32>
    %331 = tpu.iota {dimensions = array<i32: 1>} : vector<4x4xi32>
    %cst_177 = arith.constant 0.000000e+00 : f32
    %332 = vector.broadcast %cst_177 : f32 to vector<4x32xf32>
    %c0_178 = arith.constant 0 : index
    %c0_179 = arith.constant 0 : index
    %c0_180 = arith.constant 0 : index
    %333 = vector.load %arg21[%c0_178, %c0_179, %c0_180] : memref<1x32x32xf32, #tpu.memory_space<vmem>>, vector<1x32x32xf32>
    %334 = vector.shape_cast %333 : vector<1x32x32xf32> to vector<32x32xf32>
    %cst_181 = arith.constant dense<0.000000e+00> : vector<4x32xf32>
    %335 = tpu.matmul %329, %334, %cst_181 {dimension_numbers = #tpu.dot_dimension_numbers<[1], [0], [0], [1], [0, 0, 1, 1], [], []>} : vector<4x32xf32>, vector<32x32xf32>, vector<4x32xf32> -> vector<4x32xf32>
    %c1_i32_182 = arith.constant 1 : i32
    %336 = vector.broadcast %c1_i32_182 : i32 to vector<4x4xi32>
    %337 = arith.muli %330, %336 : vector<4x4xi32>
    %c0_i32_183 = arith.constant 0 : i32
    %338 = vector.broadcast %c0_i32_183 : i32 to vector<4x4xi32>
    %339 = arith.addi %337, %338 : vector<4x4xi32>
    %340 = arith.cmpi eq, %331, %339 : vector<4x4xi32>
    %341 = arith.extui %340 : vector<4x4xi1> to vector<4x4xi32>
    %342 = arith.sitofp %341 : vector<4x4xi32> to vector<4x4xf32>
    %cst_184 = arith.constant dense<0.000000e+00> : vector<4x32xf32>
    %343 = tpu.matmul %342, %335, %cst_184 {dimension_numbers = #tpu.dot_dimension_numbers<[1], [0], [0], [1], [0, 0, 1, 1], [], []>} : vector<4x4xf32>, vector<4x32xf32>, vector<4x32xf32> -> vector<4x32xf32>
    %344 = arith.addf %332, %343 : vector<4x32xf32>
    %c0_185 = arith.constant 0 : index
    %c0_186 = arith.constant 0 : index
    %345 = vector.load %arg20[%c0_185, %c0_186] : memref<1x32xf32, #tpu.memory_space<vmem>>, vector<1x32xf32>
    %346 = vector.broadcast %345 : vector<1x32xf32> to vector<4x32xf32>
    %347 = arith.addf %344, %346 : vector<4x32xf32>
    %348 = arith.addf %283, %347 : vector<4x32xf32>
    %cst_187 = arith.constant 0.000000e+00 : f32
    %349 = vector.broadcast %cst_187 : f32 to vector<4x32xf32>
    %350 = arith.maximumf %348, %349 : vector<4x32xf32>
    %351 = tpu.iota {dimensions = array<i32: 0>} : vector<4x4xi32>
    %352 = tpu.iota {dimensions = array<i32: 1>} : vector<4x4xi32>
    %cst_188 = arith.constant 0.000000e+00 : f32
    %353 = vector.broadcast %cst_188 : f32 to vector<4x32xf32>
    %c0_189 = arith.constant 0 : index
    %c0_190 = arith.constant 0 : index
    %c0_191 = arith.constant 0 : index
    %354 = vector.load %arg23[%c0_189, %c0_190, %c0_191] : memref<3x32x32xf32, #tpu.memory_space<vmem>>, vector<1x32x32xf32>
    %355 = vector.shape_cast %354 : vector<1x32x32xf32> to vector<32x32xf32>
    %cst_192 = arith.constant dense<0.000000e+00> : vector<4x32xf32>
    %356 = tpu.matmul %350, %355, %cst_192 {dimension_numbers = #tpu.dot_dimension_numbers<[1], [0], [0], [1], [0, 0, 1, 1], [], []>} : vector<4x32xf32>, vector<32x32xf32>, vector<4x32xf32> -> vector<4x32xf32>
    %c1_i32_193 = arith.constant 1 : i32
    %357 = vector.broadcast %c1_i32_193 : i32 to vector<4x4xi32>
    %358 = arith.muli %351, %357 : vector<4x4xi32>
    %c-1_i32_194 = arith.constant -1 : i32
    %359 = vector.broadcast %c-1_i32_194 : i32 to vector<4x4xi32>
    %360 = arith.addi %358, %359 : vector<4x4xi32>
    %361 = arith.cmpi eq, %352, %360 : vector<4x4xi32>
    %362 = arith.extui %361 : vector<4x4xi1> to vector<4x4xi32>
    %363 = arith.sitofp %362 : vector<4x4xi32> to vector<4x4xf32>
    %cst_195 = arith.constant dense<0.000000e+00> : vector<4x32xf32>
    %364 = tpu.matmul %363, %356, %cst_195 {dimension_numbers = #tpu.dot_dimension_numbers<[1], [0], [0], [1], [0, 0, 1, 1], [], []>} : vector<4x4xf32>, vector<4x32xf32>, vector<4x32xf32> -> vector<4x32xf32>
    %365 = arith.addf %353, %364 : vector<4x32xf32>
    %c1_196 = arith.constant 1 : index
    %c0_197 = arith.constant 0 : index
    %c0_198 = arith.constant 0 : index
    %366 = vector.load %arg23[%c1_196, %c0_197, %c0_198] : memref<3x32x32xf32, #tpu.memory_space<vmem>>, vector<1x32x32xf32>
    %367 = vector.shape_cast %366 : vector<1x32x32xf32> to vector<32x32xf32>
    %cst_199 = arith.constant dense<0.000000e+00> : vector<4x32xf32>
    %368 = tpu.matmul %350, %367, %cst_199 {dimension_numbers = #tpu.dot_dimension_numbers<[1], [0], [0], [1], [0, 0, 1, 1], [], []>} : vector<4x32xf32>, vector<32x32xf32>, vector<4x32xf32> -> vector<4x32xf32>
    %c1_i32_200 = arith.constant 1 : i32
    %369 = vector.broadcast %c1_i32_200 : i32 to vector<4x4xi32>
    %370 = arith.muli %351, %369 : vector<4x4xi32>
    %c0_i32_201 = arith.constant 0 : i32
    %371 = vector.broadcast %c0_i32_201 : i32 to vector<4x4xi32>
    %372 = arith.addi %370, %371 : vector<4x4xi32>
    %373 = arith.cmpi eq, %352, %372 : vector<4x4xi32>
    %374 = arith.extui %373 : vector<4x4xi1> to vector<4x4xi32>
    %375 = arith.sitofp %374 : vector<4x4xi32> to vector<4x4xf32>
    %cst_202 = arith.constant dense<0.000000e+00> : vector<4x32xf32>
    %376 = tpu.matmul %375, %368, %cst_202 {dimension_numbers = #tpu.dot_dimension_numbers<[1], [0], [0], [1], [0, 0, 1, 1], [], []>} : vector<4x4xf32>, vector<4x32xf32>, vector<4x32xf32> -> vector<4x32xf32>
    %377 = arith.addf %365, %376 : vector<4x32xf32>
    %c2_203 = arith.constant 2 : index
    %c0_204 = arith.constant 0 : index
    %c0_205 = arith.constant 0 : index
    %378 = vector.load %arg23[%c2_203, %c0_204, %c0_205] : memref<3x32x32xf32, #tpu.memory_space<vmem>>, vector<1x32x32xf32>
    %379 = vector.shape_cast %378 : vector<1x32x32xf32> to vector<32x32xf32>
    %cst_206 = arith.constant dense<0.000000e+00> : vector<4x32xf32>
    %380 = tpu.matmul %350, %379, %cst_206 {dimension_numbers = #tpu.dot_dimension_numbers<[1], [0], [0], [1], [0, 0, 1, 1], [], []>} : vector<4x32xf32>, vector<32x32xf32>, vector<4x32xf32> -> vector<4x32xf32>
    %c1_i32_207 = arith.constant 1 : i32
    %381 = vector.broadcast %c1_i32_207 : i32 to vector<4x4xi32>
    %382 = arith.muli %351, %381 : vector<4x4xi32>
    %c1_i32_208 = arith.constant 1 : i32
    %383 = vector.broadcast %c1_i32_208 : i32 to vector<4x4xi32>
    %384 = arith.addi %382, %383 : vector<4x4xi32>
    %385 = arith.cmpi eq, %352, %384 : vector<4x4xi32>
    %386 = arith.extui %385 : vector<4x4xi1> to vector<4x4xi32>
    %387 = arith.sitofp %386 : vector<4x4xi32> to vector<4x4xf32>
    %cst_209 = arith.constant dense<0.000000e+00> : vector<4x32xf32>
    %388 = tpu.matmul %387, %380, %cst_209 {dimension_numbers = #tpu.dot_dimension_numbers<[1], [0], [0], [1], [0, 0, 1, 1], [], []>} : vector<4x4xf32>, vector<4x32xf32>, vector<4x32xf32> -> vector<4x32xf32>
    %389 = arith.addf %377, %388 : vector<4x32xf32>
    %c0_210 = arith.constant 0 : index
    %c0_211 = arith.constant 0 : index
    %390 = vector.load %arg22[%c0_210, %c0_211] : memref<1x32xf32, #tpu.memory_space<vmem>>, vector<1x32xf32>
    %391 = vector.broadcast %390 : vector<1x32xf32> to vector<4x32xf32>
    %392 = arith.addf %389, %391 : vector<4x32xf32>
    %cst_212 = arith.constant 0.000000e+00 : f32
    %393 = vector.broadcast %cst_212 : f32 to vector<4x32xf32>
    %394 = arith.maximumf %392, %393 : vector<4x32xf32>
    %395 = tpu.iota {dimensions = array<i32: 0>} : vector<4x4xi32>
    %396 = tpu.iota {dimensions = array<i32: 1>} : vector<4x4xi32>
    %cst_213 = arith.constant 0.000000e+00 : f32
    %397 = vector.broadcast %cst_213 : f32 to vector<4x32xf32>
    %c0_214 = arith.constant 0 : index
    %c0_215 = arith.constant 0 : index
    %c0_216 = arith.constant 0 : index
    %398 = vector.load %arg25[%c0_214, %c0_215, %c0_216] : memref<1x32x32xf32, #tpu.memory_space<vmem>>, vector<1x32x32xf32>
    %399 = vector.shape_cast %398 : vector<1x32x32xf32> to vector<32x32xf32>
    %cst_217 = arith.constant dense<0.000000e+00> : vector<4x32xf32>
    %400 = tpu.matmul %394, %399, %cst_217 {dimension_numbers = #tpu.dot_dimension_numbers<[1], [0], [0], [1], [0, 0, 1, 1], [], []>} : vector<4x32xf32>, vector<32x32xf32>, vector<4x32xf32> -> vector<4x32xf32>
    %c1_i32_218 = arith.constant 1 : i32
    %401 = vector.broadcast %c1_i32_218 : i32 to vector<4x4xi32>
    %402 = arith.muli %395, %401 : vector<4x4xi32>
    %c0_i32_219 = arith.constant 0 : i32
    %403 = vector.broadcast %c0_i32_219 : i32 to vector<4x4xi32>
    %404 = arith.addi %402, %403 : vector<4x4xi32>
    %405 = arith.cmpi eq, %396, %404 : vector<4x4xi32>
    %406 = arith.extui %405 : vector<4x4xi1> to vector<4x4xi32>
    %407 = arith.sitofp %406 : vector<4x4xi32> to vector<4x4xf32>
    %cst_220 = arith.constant dense<0.000000e+00> : vector<4x32xf32>
    %408 = tpu.matmul %407, %400, %cst_220 {dimension_numbers = #tpu.dot_dimension_numbers<[1], [0], [0], [1], [0, 0, 1, 1], [], []>} : vector<4x4xf32>, vector<4x32xf32>, vector<4x32xf32> -> vector<4x32xf32>
    %409 = arith.addf %397, %408 : vector<4x32xf32>
    %c0_221 = arith.constant 0 : index
    %c0_222 = arith.constant 0 : index
    %410 = vector.load %arg24[%c0_221, %c0_222] : memref<1x32xf32, #tpu.memory_space<vmem>>, vector<1x32xf32>
    %411 = vector.broadcast %410 : vector<1x32xf32> to vector<4x32xf32>
    %412 = arith.addf %409, %411 : vector<4x32xf32>
    %413 = arith.addf %348, %412 : vector<4x32xf32>
    %414 = tpu.iota {dimensions = array<i32: 0>} : vector<4x4xi32>
    %415 = tpu.iota {dimensions = array<i32: 1>} : vector<4x4xi32>
    %cst_223 = arith.constant 0.000000e+00 : f32
    %416 = vector.broadcast %cst_223 : f32 to vector<4x32xf32>
    %c0_224 = arith.constant 0 : index
    %c0_225 = arith.constant 0 : index
    %c0_226 = arith.constant 0 : index
    %417 = vector.load %arg5[%c0_224, %c0_225, %c0_226] : memref<3x32x32xf32, #tpu.memory_space<vmem>>, vector<1x32x32xf32>
    %418 = vector.shape_cast %417 : vector<1x32x32xf32> to vector<32x32xf32>
    %cst_227 = arith.constant dense<0.000000e+00> : vector<4x32xf32>
    %419 = tpu.matmul %413, %418, %cst_227 {dimension_numbers = #tpu.dot_dimension_numbers<[1], [0], [0], [1], [0, 0, 1, 1], [], []>} : vector<4x32xf32>, vector<32x32xf32>, vector<4x32xf32> -> vector<4x32xf32>
    %c1_i32_228 = arith.constant 1 : i32
    %420 = vector.broadcast %c1_i32_228 : i32 to vector<4x4xi32>
    %421 = arith.muli %414, %420 : vector<4x4xi32>
    %c-1_i32_229 = arith.constant -1 : i32
    %422 = vector.broadcast %c-1_i32_229 : i32 to vector<4x4xi32>
    %423 = arith.addi %421, %422 : vector<4x4xi32>
    %424 = arith.cmpi eq, %415, %423 : vector<4x4xi32>
    %425 = arith.extui %424 : vector<4x4xi1> to vector<4x4xi32>
    %426 = arith.sitofp %425 : vector<4x4xi32> to vector<4x4xf32>
    %cst_230 = arith.constant dense<0.000000e+00> : vector<4x32xf32>
    %427 = tpu.matmul %426, %419, %cst_230 {dimension_numbers = #tpu.dot_dimension_numbers<[1], [0], [0], [1], [0, 0, 1, 1], [], []>} : vector<4x4xf32>, vector<4x32xf32>, vector<4x32xf32> -> vector<4x32xf32>
    %428 = arith.addf %416, %427 : vector<4x32xf32>
    %c1_231 = arith.constant 1 : index
    %c0_232 = arith.constant 0 : index
    %c0_233 = arith.constant 0 : index
    %429 = vector.load %arg5[%c1_231, %c0_232, %c0_233] : memref<3x32x32xf32, #tpu.memory_space<vmem>>, vector<1x32x32xf32>
    %430 = vector.shape_cast %429 : vector<1x32x32xf32> to vector<32x32xf32>
    %cst_234 = arith.constant dense<0.000000e+00> : vector<4x32xf32>
    %431 = tpu.matmul %413, %430, %cst_234 {dimension_numbers = #tpu.dot_dimension_numbers<[1], [0], [0], [1], [0, 0, 1, 1], [], []>} : vector<4x32xf32>, vector<32x32xf32>, vector<4x32xf32> -> vector<4x32xf32>
    %c1_i32_235 = arith.constant 1 : i32
    %432 = vector.broadcast %c1_i32_235 : i32 to vector<4x4xi32>
    %433 = arith.muli %414, %432 : vector<4x4xi32>
    %c0_i32_236 = arith.constant 0 : i32
    %434 = vector.broadcast %c0_i32_236 : i32 to vector<4x4xi32>
    %435 = arith.addi %433, %434 : vector<4x4xi32>
    %436 = arith.cmpi eq, %415, %435 : vector<4x4xi32>
    %437 = arith.extui %436 : vector<4x4xi1> to vector<4x4xi32>
    %438 = arith.sitofp %437 : vector<4x4xi32> to vector<4x4xf32>
    %cst_237 = arith.constant dense<0.000000e+00> : vector<4x32xf32>
    %439 = tpu.matmul %438, %431, %cst_237 {dimension_numbers = #tpu.dot_dimension_numbers<[1], [0], [0], [1], [0, 0, 1, 1], [], []>} : vector<4x4xf32>, vector<4x32xf32>, vector<4x32xf32> -> vector<4x32xf32>
    %440 = arith.addf %428, %439 : vector<4x32xf32>
    %c2_238 = arith.constant 2 : index
    %c0_239 = arith.constant 0 : index
    %c0_240 = arith.constant 0 : index
    %441 = vector.load %arg5[%c2_238, %c0_239, %c0_240] : memref<3x32x32xf32, #tpu.memory_space<vmem>>, vector<1x32x32xf32>
    %442 = vector.shape_cast %441 : vector<1x32x32xf32> to vector<32x32xf32>
    %cst_241 = arith.constant dense<0.000000e+00> : vector<4x32xf32>
    %443 = tpu.matmul %413, %442, %cst_241 {dimension_numbers = #tpu.dot_dimension_numbers<[1], [0], [0], [1], [0, 0, 1, 1], [], []>} : vector<4x32xf32>, vector<32x32xf32>, vector<4x32xf32> -> vector<4x32xf32>
    %c1_i32_242 = arith.constant 1 : i32
    %444 = vector.broadcast %c1_i32_242 : i32 to vector<4x4xi32>
    %445 = arith.muli %414, %444 : vector<4x4xi32>
    %c1_i32_243 = arith.constant 1 : i32
    %446 = vector.broadcast %c1_i32_243 : i32 to vector<4x4xi32>
    %447 = arith.addi %445, %446 : vector<4x4xi32>
    %448 = arith.cmpi eq, %415, %447 : vector<4x4xi32>
    %449 = arith.extui %448 : vector<4x4xi1> to vector<4x4xi32>
    %450 = arith.sitofp %449 : vector<4x4xi32> to vector<4x4xf32>
    %cst_244 = arith.constant dense<0.000000e+00> : vector<4x32xf32>
    %451 = tpu.matmul %450, %443, %cst_244 {dimension_numbers = #tpu.dot_dimension_numbers<[1], [0], [0], [1], [0, 0, 1, 1], [], []>} : vector<4x4xf32>, vector<4x32xf32>, vector<4x32xf32> -> vector<4x32xf32>
    %452 = arith.addf %440, %451 : vector<4x32xf32>
    %c0_245 = arith.constant 0 : index
    %c0_246 = arith.constant 0 : index
    %453 = vector.load %arg4[%c0_245, %c0_246] : memref<1x32xf32, #tpu.memory_space<vmem>>, vector<1x32xf32>
    %454 = vector.broadcast %453 : vector<1x32xf32> to vector<4x32xf32>
    %455 = arith.addf %452, %454 : vector<4x32xf32>
    %c0_247 = arith.constant 0 : index
    %c0_248 = arith.constant 0 : index
    %c0_249 = arith.constant 0 : index
    %456 = vector.load %arg26[%c0_247, %c0_248, %c0_249] : memref<1x4x32xf32, #tpu.memory_space<vmem>>, vector<1x4x32xf32>
    %457 = vector.shape_cast %456 : vector<1x4x32xf32> to vector<4x32xf32>
    %458 = vector.shape_cast %455 : vector<4x32xf32> to vector<1x4x32xf32>
    tpu.vector_store %arg26[%c0_247, %c0_248, %c0_249], %458 {strides = array<i32>} : memref<1x4x32xf32, #tpu.memory_space<vmem>>, vector<1x4x32xf32>,
    return
  }
  func.func @transform_0(%arg0: i32) -> (i32, i32, i32) {
    %c0_i32 = arith.constant 0 : i32
    %c0_i32_0 = arith.constant 0 : i32
    %c0_i32_1 = arith.constant 0 : i32
    return %arg0, %c0_i32, %c0_i32_0 : i32, i32, i32
  }
  func.func @transform_1(%arg0: i32) -> (i32, i32) {
    %c0_i32 = arith.constant 0 : i32
    %c0_i32_0 = arith.constant 0 : i32
    %c0_i32_1 = arith.constant 0 : i32
    return %c0_i32, %c0_i32_0 : i32, i32
  }
  func.func @transform_2(%arg0: i32) -> (i32, i32, i32) {
    %c0_i32 = arith.constant 0 : i32
    %c0_i32_0 = arith.constant 0 : i32
    %c0_i32_1 = arith.constant 0 : i32
    %c0_i32_2 = arith.constant 0 : i32
    return %c0_i32, %c0_i32_0, %c0_i32_1 : i32, i32, i32
  }
  func.func @transform_3(%arg0: i32) -> (i32, i32) {
    %c0_i32 = arith.constant 0 : i32
    %c0_i32_0 = arith.constant 0 : i32
    %c0_i32_1 = arith.constant 0 : i32
    return %c0_i32, %c0_i32_0 : i32, i32
  }
  func.func @transform_4(%arg0: i32) -> (i32, i32, i32) {
    %c0_i32 = arith.constant 0 : i32
    %c0_i32_0 = arith.constant 0 : i32
    %c0_i32_1 = arith.constant 0 : i32
    %c0_i32_2 = arith.constant 0 : i32
    return %c0_i32, %c0_i32_0, %c0_i32_1 : i32, i32, i32
  }
  func.func @transform_5(%arg0: i32) -> (i32, i32) {
    %c0_i32 = arith.constant 0 : i32
    %c0_i32_0 = arith.constant 0 : i32
    %c0_i32_1 = arith.constant 0 : i32
    return %c0_i32, %c0_i32_0 : i32, i32
  }
  func.func @transform_6(%arg0: i32) -> (i32, i32, i32) {
    %c0_i32 = arith.constant 0 : i32
    %c0_i32_0 = arith.constant 0 : i32
    %c0_i32_1 = arith.constant 0 : i32
    %c0_i32_2 = arith.constant 0 : i32
    return %c0_i32, %c0_i32_0, %c0_i32_1 : i32, i32, i32
  }
  func.func @transform_7(%arg0: i32) -> (i32, i32) {
    %c0_i32 = arith.constant 0 : i32
    %c0_i32_0 = arith.constant 0 : i32
    %c0_i32_1 = arith.constant 0 : i32
    return %c0_i32, %c0_i32_0 : i32, i32
  }
  func.func @transform_8(%arg0: i32) -> (i32, i32, i32) {
    %c0_i32 = arith.constant 0 : i32
    %c0_i32_0 = arith.constant 0 : i32
    %c0_i32_1 = arith.constant 0 : i32
    %c0_i32_2 = arith.constant 0 : i32
    return %c0_i32, %c0_i32_0, %c0_i32_1 : i32, i32, i32
  }
  func.func @transform_9(%arg0: i32) -> (i32, i32) {
    %c0_i32 = arith.constant 0 : i32
    %c0_i32_0 = arith.constant 0 : i32
    %c0_i32_1 = arith.constant 0 : i32
    return %c0_i32, %c0_i32_0 : i32, i32
  }
  func.func @transform_10(%arg0: i32) -> (i32, i32, i32) {
    %c0_i32 = arith.constant 0 : i32
    %c0_i32_0 = arith.constant 0 : i32
    %c0_i32_1 = arith.constant 0 : i32
    %c0_i32_2 = arith.constant 0 : i32
    return %c0_i32, %c0_i32_0, %c0_i32_1 : i32, i32, i32
  }
  func.func @transform_11(%arg0: i32) -> (i32, i32) {
    %c0_i32 = arith.constant 0 : i32
    %c0_i32_0 = arith.constant 0 : i32
    %c0_i32_1 = arith.constant 0 : i32
    return %c0_i32, %c0_i32_0 : i32, i32
  }
  func.func @transform_12(%arg0: i32) -> (i32, i32, i32) {
    %c0_i32 = arith.constant 0 : i32
    %c0_i32_0 = arith.constant 0 : i32
    %c0_i32_1 = arith.constant 0 : i32
    %c0_i32_2 = arith.constant 0 : i32
    return %c0_i32, %c0_i32_0, %c0_i32_1 : i32, i32, i32
  }
  func.func @transform_13(%arg0: i32) -> (i32, i32) {
    %c0_i32 = arith.constant 0 : i32
    %c0_i32_0 = arith.constant 0 : i32
    %c0_i32_1 = arith.constant 0 : i32
    return %c0_i32, %c0_i32_0 : i32, i32
  }
  func.func @transform_14(%arg0: i32) -> (i32, i32, i32) {
    %c0_i32 = arith.constant 0 : i32
    %c0_i32_0 = arith.constant 0 : i32
    %c0_i32_1 = arith.constant 0 : i32
    %c0_i32_2 = arith.constant 0 : i32
    return %c0_i32, %c0_i32_0, %c0_i32_1 : i32, i32, i32
  }
  func.func @transform_15(%arg0: i32) -> (i32, i32) {
    %c0_i32 = arith.constant 0 : i32
    %c0_i32_0 = arith.constant 0 : i32
    %c0_i32_1 = arith.constant 0 : i32
    return %c0_i32, %c0_i32_0 : i32, i32
  }
  func.func @transform_16(%arg0: i32) -> (i32, i32, i32) {
    %c0_i32 = arith.constant 0 : i32
    %c0_i32_0 = arith.constant 0 : i32
    %c0_i32_1 = arith.constant 0 : i32
    %c0_i32_2 = arith.constant 0 : i32
    return %c0_i32, %c0_i32_0, %c0_i32_1 : i32, i32, i32
  }
  func.func @transform_17(%arg0: i32) -> (i32, i32) {
    %c0_i32 = arith.constant 0 : i32
    %c0_i32_0 = arith.constant 0 : i32
    %c0_i32_1 = arith.constant 0 : i32
    return %c0_i32, %c0_i32_0 : i32, i32
  }
  func.func @transform_18(%arg0: i32) -> (i32, i32, i32) {
    %c0_i32 = arith.constant 0 : i32
    %c0_i32_0 = arith.constant 0 : i32
    %c0_i32_1 = arith.constant 0 : i32
    %c0_i32_2 = arith.constant 0 : i32
    return %c0_i32, %c0_i32_0, %c0_i32_1 : i32, i32, i32
  }
  func.func @transform_19(%arg0: i32) -> (i32, i32) {
    %c0_i32 = arith.constant 0 : i32
    %c0_i32_0 = arith.constant 0 : i32
    %c0_i32_1 = arith.constant 0 : i32
    return %c0_i32, %c0_i32_0 : i32, i32
  }
  func.func @transform_20(%arg0: i32) -> (i32, i32, i32) {
    %c0_i32 = arith.constant 0 : i32
    %c0_i32_0 = arith.constant 0 : i32
    %c0_i32_1 = arith.constant 0 : i32
    %c0_i32_2 = arith.constant 0 : i32
    return %c0_i32, %c0_i32_0, %c0_i32_1 : i32, i32, i32
  }
  func.func @transform_21(%arg0: i32) -> (i32, i32) {
    %c0_i32 = arith.constant 0 : i32
    %c0_i32_0 = arith.constant 0 : i32
    %c0_i32_1 = arith.constant 0 : i32
    return %c0_i32, %c0_i32_0 : i32, i32
  }
  func.func @transform_22(%arg0: i32) -> (i32, i32, i32) {
    %c0_i32 = arith.constant 0 : i32
    %c0_i32_0 = arith.constant 0 : i32
    %c0_i32_1 = arith.constant 0 : i32
    %c0_i32_2 = arith.constant 0 : i32
    return %c0_i32, %c0_i32_0, %c0_i32_1 : i32, i32, i32
  }
  func.func @transform_23(%arg0: i32) -> (i32, i32) {
    %c0_i32 = arith.constant 0 : i32
    %c0_i32_0 = arith.constant 0 : i32
    %c0_i32_1 = arith.constant 0 : i32
    return %c0_i32, %c0_i32_0 : i32, i32
  }
  func.func @transform_24(%arg0: i32) -> (i32, i32, i32) {
    %c0_i32 = arith.constant 0 : i32
    %c0_i32_0 = arith.constant 0 : i32
    %c0_i32_1 = arith.constant 0 : i32
    %c0_i32_2 = arith.constant 0 : i32
    return %c0_i32, %c0_i32_0, %c0_i32_1 : i32, i32, i32
  }
  func.func @transform_25(%arg0: i32) -> (i32, i32, i32) {
    %c0_i32 = arith.constant 0 : i32
    %c0_i32_0 = arith.constant 0 : i32
    %c0_i32_1 = arith.constant 0 : i32
    return %arg0, %c0_i32, %c0_i32_0 : i32, i32, i32
  }
}

module attributes {stable_mosaic.version = 11 : i64} {
  func.func @_decoder_kernel(%arg0: i32, %arg1: memref<1x4x32xf32, #tpu.memory_space<vmem>>, %arg2: memref<1x32xf32, #tpu.memory_space<vmem>>, %arg3: memref<3x32x32xf32, #tpu.memory_space<vmem>>, %arg4: memref<1x32xf32, #tpu.memory_space<vmem>>, %arg5: memref<3x32x32xf32, #tpu.memory_space<vmem>>, %arg6: memref<1x3xf32, #tpu.memory_space<vmem>>, %arg7: memref<3x32x3xf32, #tpu.memory_space<vmem>>, %arg8: memref<1x32xf32, #tpu.memory_space<vmem>>, %arg9: memref<3x32x32xf32, #tpu.memory_space<vmem>>, %arg10: memref<1x32xf32, #tpu.memory_space<vmem>>, %arg11: memref<3x32x32xf32, #tpu.memory_space<vmem>>, %arg12: memref<1x32xf32, #tpu.memory_space<vmem>>, %arg13: memref<1x32x32xf32, #tpu.memory_space<vmem>>, %arg14: memref<1x32xf32, #tpu.memory_space<vmem>>, %arg15: memref<3x32x32xf32, #tpu.memory_space<vmem>>, %arg16: memref<1x32xf32, #tpu.memory_space<vmem>>, %arg17: memref<1x32x32xf32, #tpu.memory_space<vmem>>, %arg18: memref<1x32xf32, #tpu.memory_space<vmem>>, %arg19: memref<3x32x32xf32, #tpu.memory_space<vmem>>, %arg20: memref<1x32xf32, #tpu.memory_space<vmem>>, %arg21: memref<3x32x32xf32, #tpu.memory_space<vmem>>, %arg22: memref<1x32xf32, #tpu.memory_space<vmem>>, %arg23: memref<1x32x32xf32, #tpu.memory_space<vmem>>, %arg24: memref<1x32xf32, #tpu.memory_space<vmem>>, %arg25: memref<3x32x32xf32, #tpu.memory_space<vmem>>, %arg26: memref<1x32xf32, #tpu.memory_space<vmem>>, %arg27: memref<1x32x32xf32, #tpu.memory_space<vmem>>, %arg28: memref<1x16x3xf32, #tpu.memory_space<vmem>>) attributes {dimension_semantics = [#tpu.dimension_semantics<parallel>], iteration_bounds = array<i64: 2>, scalar_prefetch = 0 : i64, scratch_operands = 0 : i64, tpu.core_type = #tpu.core_type<tc>, window_params = [{transform_indices = @transform_0, window_bounds = array<i64: 1, 4, 32>}, {pipeline_mode = #tpu.pipeline_mode<synchronous>, transform_indices = @transform_1, window_bounds = array<i64: 1, 32>}, {pipeline_mode = #tpu.pipeline_mode<synchronous>, transform_indices = @transform_2, window_bounds = array<i64: 3, 32, 32>}, {pipeline_mode = #tpu.pipeline_mode<synchronous>, transform_indices = @transform_3, window_bounds = array<i64: 1, 32>}, {pipeline_mode = #tpu.pipeline_mode<synchronous>, transform_indices = @transform_4, window_bounds = array<i64: 3, 32, 32>}, {pipeline_mode = #tpu.pipeline_mode<synchronous>, transform_indices = @transform_5, window_bounds = array<i64: 1, 3>}, {pipeline_mode = #tpu.pipeline_mode<synchronous>, transform_indices = @transform_6, window_bounds = array<i64: 3, 32, 3>}, {pipeline_mode = #tpu.pipeline_mode<synchronous>, transform_indices = @transform_7, window_bounds = array<i64: 1, 32>}, {pipeline_mode = #tpu.pipeline_mode<synchronous>, transform_indices = @transform_8, window_bounds = array<i64: 3, 32, 32>}, {pipeline_mode = #tpu.pipeline_mode<synchronous>, transform_indices = @transform_9, window_bounds = array<i64: 1, 32>}, {pipeline_mode = #tpu.pipeline_mode<synchronous>, transform_indices = @transform_10, window_bounds = array<i64: 3, 32, 32>}, {pipeline_mode = #tpu.pipeline_mode<synchronous>, transform_indices = @transform_11, window_bounds = array<i64: 1, 32>}, {pipeline_mode = #tpu.pipeline_mode<synchronous>, transform_indices = @transform_12, window_bounds = array<i64: 1, 32, 32>}, {pipeline_mode = #tpu.pipeline_mode<synchronous>, transform_indices = @transform_13, window_bounds = array<i64: 1, 32>}, {pipeline_mode = #tpu.pipeline_mode<synchronous>, transform_indices = @transform_14, window_bounds = array<i64: 3, 32, 32>}, {pipeline_mode = #tpu.pipeline_mode<synchronous>, transform_indices = @transform_15, window_bounds = array<i64: 1, 32>}, {pipeline_mode = #tpu.pipeline_mode<synchronous>, transform_indices = @transform_16, window_bounds = array<i64: 1, 32, 32>}, {pipeline_mode = #tpu.pipeline_mode<synchronous>, transform_indices = @transform_17, window_bounds = array<i64: 1, 32>}, {pipeline_mode = #tpu.pipeline_mode<synchronous>, transform_indices = @transform_18, window_bounds = array<i64: 3, 32, 32>}, {pipeline_mode = #tpu.pipeline_mode<synchronous>, transform_indices = @transform_19, window_bounds = array<i64: 1, 32>}, {pipeline_mode = #tpu.pipeline_mode<synchronous>, transform_indices = @transform_20, window_bounds = array<i64: 3, 32, 32>}, {pipeline_mode = #tpu.pipeline_mode<synchronous>, transform_indices = @transform_21, window_bounds = array<i64: 1, 32>}, {pipeline_mode = #tpu.pipeline_mode<synchronous>, transform_indices = @transform_22, window_bounds = array<i64: 1, 32, 32>}, {pipeline_mode = #tpu.pipeline_mode<synchronous>, transform_indices = @transform_23, window_bounds = array<i64: 1, 32>}, {pipeline_mode = #tpu.pipeline_mode<synchronous>, transform_indices = @transform_24, window_bounds = array<i64: 3, 32, 32>}, {pipeline_mode = #tpu.pipeline_mode<synchronous>, transform_indices = @transform_25, window_bounds = array<i64: 1, 32>}, {pipeline_mode = #tpu.pipeline_mode<synchronous>, transform_indices = @transform_26, window_bounds = array<i64: 1, 32, 32>}, {transform_indices = @transform_27, window_bounds = array<i64: 1, 16, 3>}]} {
    %c0 = arith.constant 0 : index
    %c0_0 = arith.constant 0 : index
    %c0_1 = arith.constant 0 : index
    %0 = vector.load %arg1[%c0, %c0_0, %c0_1] : memref<1x4x32xf32, #tpu.memory_space<vmem>>, vector<1x4x32xf32>
    %1 = vector.shape_cast %0 : vector<1x4x32xf32> to vector<4x32xf32>
    %2 = tpu.iota {dimensions = array<i32: 0>} : vector<4x4xi32>
    %3 = tpu.iota {dimensions = array<i32: 1>} : vector<4x4xi32>
    %cst = arith.constant 0.000000e+00 : f32
    %4 = vector.broadcast %cst : f32 to vector<4x32xf32>
    %c0_2 = arith.constant 0 : index
    %c0_3 = arith.constant 0 : index
    %c0_4 = arith.constant 0 : index
    %5 = vector.load %arg3[%c0_2, %c0_3, %c0_4] : memref<3x32x32xf32, #tpu.memory_space<vmem>>, vector<1x32x32xf32>
    %6 = vector.shape_cast %5 : vector<1x32x32xf32> to vector<32x32xf32>
    %cst_5 = arith.constant dense<0.000000e+00> : vector<4x32xf32>
    %7 = tpu.matmul %1, %6, %cst_5 {dimension_numbers = #tpu.dot_dimension_numbers<[1], [0], [0], [1], [0, 0, 1, 1], [], []>} : vector<4x32xf32>, vector<32x32xf32>, vector<4x32xf32> -> vector<4x32xf32>
    %c1_i32 = arith.constant 1 : i32
    %8 = vector.broadcast %c1_i32 : i32 to vector<4x4xi32>
    %9 = arith.muli %2, %8 : vector<4x4xi32>
    %c-1_i32 = arith.constant -1 : i32
    %10 = vector.broadcast %c-1_i32 : i32 to vector<4x4xi32>
    %11 = arith.addi %9, %10 : vector<4x4xi32>
    %12 = arith.cmpi eq, %3, %11 : vector<4x4xi32>
    %13 = arith.extui %12 : vector<4x4xi1> to vector<4x4xi32>
    %14 = arith.sitofp %13 : vector<4x4xi32> to vector<4x4xf32>
    %cst_6 = arith.constant dense<0.000000e+00> : vector<4x32xf32>
    %15 = tpu.matmul %14, %7, %cst_6 {dimension_numbers = #tpu.dot_dimension_numbers<[1], [0], [0], [1], [0, 0, 1, 1], [], []>} : vector<4x4xf32>, vector<4x32xf32>, vector<4x32xf32> -> vector<4x32xf32>
    %16 = arith.addf %4, %15 : vector<4x32xf32>
    %c1 = arith.constant 1 : index
    %c0_7 = arith.constant 0 : index
    %c0_8 = arith.constant 0 : index
    %17 = vector.load %arg3[%c1, %c0_7, %c0_8] : memref<3x32x32xf32, #tpu.memory_space<vmem>>, vector<1x32x32xf32>
    %18 = vector.shape_cast %17 : vector<1x32x32xf32> to vector<32x32xf32>
    %cst_9 = arith.constant dense<0.000000e+00> : vector<4x32xf32>
    %19 = tpu.matmul %1, %18, %cst_9 {dimension_numbers = #tpu.dot_dimension_numbers<[1], [0], [0], [1], [0, 0, 1, 1], [], []>} : vector<4x32xf32>, vector<32x32xf32>, vector<4x32xf32> -> vector<4x32xf32>
    %c1_i32_10 = arith.constant 1 : i32
    %20 = vector.broadcast %c1_i32_10 : i32 to vector<4x4xi32>
    %21 = arith.muli %2, %20 : vector<4x4xi32>
    %c0_i32 = arith.constant 0 : i32
    %22 = vector.broadcast %c0_i32 : i32 to vector<4x4xi32>
    %23 = arith.addi %21, %22 : vector<4x4xi32>
    %24 = arith.cmpi eq, %3, %23 : vector<4x4xi32>
    %25 = arith.extui %24 : vector<4x4xi1> to vector<4x4xi32>
    %26 = arith.sitofp %25 : vector<4x4xi32> to vector<4x4xf32>
    %cst_11 = arith.constant dense<0.000000e+00> : vector<4x32xf32>
    %27 = tpu.matmul %26, %19, %cst_11 {dimension_numbers = #tpu.dot_dimension_numbers<[1], [0], [0], [1], [0, 0, 1, 1], [], []>} : vector<4x4xf32>, vector<4x32xf32>, vector<4x32xf32> -> vector<4x32xf32>
    %28 = arith.addf %16, %27 : vector<4x32xf32>
    %c2 = arith.constant 2 : index
    %c0_12 = arith.constant 0 : index
    %c0_13 = arith.constant 0 : index
    %29 = vector.load %arg3[%c2, %c0_12, %c0_13] : memref<3x32x32xf32, #tpu.memory_space<vmem>>, vector<1x32x32xf32>
    %30 = vector.shape_cast %29 : vector<1x32x32xf32> to vector<32x32xf32>
    %cst_14 = arith.constant dense<0.000000e+00> : vector<4x32xf32>
    %31 = tpu.matmul %1, %30, %cst_14 {dimension_numbers = #tpu.dot_dimension_numbers<[1], [0], [0], [1], [0, 0, 1, 1], [], []>} : vector<4x32xf32>, vector<32x32xf32>, vector<4x32xf32> -> vector<4x32xf32>
    %c1_i32_15 = arith.constant 1 : i32
    %32 = vector.broadcast %c1_i32_15 : i32 to vector<4x4xi32>
    %33 = arith.muli %2, %32 : vector<4x4xi32>
    %c1_i32_16 = arith.constant 1 : i32
    %34 = vector.broadcast %c1_i32_16 : i32 to vector<4x4xi32>
    %35 = arith.addi %33, %34 : vector<4x4xi32>
    %36 = arith.cmpi eq, %3, %35 : vector<4x4xi32>
    %37 = arith.extui %36 : vector<4x4xi1> to vector<4x4xi32>
    %38 = arith.sitofp %37 : vector<4x4xi32> to vector<4x4xf32>
    %cst_17 = arith.constant dense<0.000000e+00> : vector<4x32xf32>
    %39 = tpu.matmul %38, %31, %cst_17 {dimension_numbers = #tpu.dot_dimension_numbers<[1], [0], [0], [1], [0, 0, 1, 1], [], []>} : vector<4x4xf32>, vector<4x32xf32>, vector<4x32xf32> -> vector<4x32xf32>
    %40 = arith.addf %28, %39 : vector<4x32xf32>
    %c0_18 = arith.constant 0 : index
    %c0_19 = arith.constant 0 : index
    %41 = vector.load %arg2[%c0_18, %c0_19] : memref<1x32xf32, #tpu.memory_space<vmem>>, vector<1x32xf32>
    %42 = vector.broadcast %41 : vector<1x32xf32> to vector<4x32xf32>
    %43 = arith.addf %40, %42 : vector<4x32xf32>
    %cst_20 = arith.constant 0.000000e+00 : f32
    %44 = vector.broadcast %cst_20 : f32 to vector<4x32xf32>
    %45 = arith.maximumf %43, %44 : vector<4x32xf32>
    %cst_21 = arith.constant 0.000000e+00 : f32
    %46 = vector.broadcast %cst_21 : f32 to vector<4x32xf32>
    %47 = arith.maximumf %45, %46 : vector<4x32xf32>
    %48 = tpu.iota {dimensions = array<i32: 0>} : vector<4x4xi32>
    %49 = tpu.iota {dimensions = array<i32: 1>} : vector<4x4xi32>
    %cst_22 = arith.constant 0.000000e+00 : f32
    %50 = vector.broadcast %cst_22 : f32 to vector<4x32xf32>
    %c0_23 = arith.constant 0 : index
    %c0_24 = arith.constant 0 : index
    %c0_25 = arith.constant 0 : index
    %51 = vector.load %arg11[%c0_23, %c0_24, %c0_25] : memref<3x32x32xf32, #tpu.memory_space<vmem>>, vector<1x32x32xf32>
    %52 = vector.shape_cast %51 : vector<1x32x32xf32> to vector<32x32xf32>
    %cst_26 = arith.constant dense<0.000000e+00> : vector<4x32xf32>
    %53 = tpu.matmul %47, %52, %cst_26 {dimension_numbers = #tpu.dot_dimension_numbers<[1], [0], [0], [1], [0, 0, 1, 1], [], []>} : vector<4x32xf32>, vector<32x32xf32>, vector<4x32xf32> -> vector<4x32xf32>
    %c1_i32_27 = arith.constant 1 : i32
    %54 = vector.broadcast %c1_i32_27 : i32 to vector<4x4xi32>
    %55 = arith.muli %48, %54 : vector<4x4xi32>
    %c-3_i32 = arith.constant -3 : i32
    %56 = vector.broadcast %c-3_i32 : i32 to vector<4x4xi32>
    %57 = arith.addi %55, %56 : vector<4x4xi32>
    %58 = arith.cmpi eq, %49, %57 : vector<4x4xi32>
    %59 = arith.extui %58 : vector<4x4xi1> to vector<4x4xi32>
    %60 = arith.sitofp %59 : vector<4x4xi32> to vector<4x4xf32>
    %cst_28 = arith.constant dense<0.000000e+00> : vector<4x32xf32>
    %61 = tpu.matmul %60, %53, %cst_28 {dimension_numbers = #tpu.dot_dimension_numbers<[1], [0], [0], [1], [0, 0, 1, 1], [], []>} : vector<4x4xf32>, vector<4x32xf32>, vector<4x32xf32> -> vector<4x32xf32>
    %62 = arith.addf %50, %61 : vector<4x32xf32>
    %c1_29 = arith.constant 1 : index
    %c0_30 = arith.constant 0 : index
    %c0_31 = arith.constant 0 : index
    %63 = vector.load %arg11[%c1_29, %c0_30, %c0_31] : memref<3x32x32xf32, #tpu.memory_space<vmem>>, vector<1x32x32xf32>
    %64 = vector.shape_cast %63 : vector<1x32x32xf32> to vector<32x32xf32>
    %cst_32 = arith.constant dense<0.000000e+00> : vector<4x32xf32>
    %65 = tpu.matmul %47, %64, %cst_32 {dimension_numbers = #tpu.dot_dimension_numbers<[1], [0], [0], [1], [0, 0, 1, 1], [], []>} : vector<4x32xf32>, vector<32x32xf32>, vector<4x32xf32> -> vector<4x32xf32>
    %c1_i32_33 = arith.constant 1 : i32
    %66 = vector.broadcast %c1_i32_33 : i32 to vector<4x4xi32>
    %67 = arith.muli %48, %66 : vector<4x4xi32>
    %c0_i32_34 = arith.constant 0 : i32
    %68 = vector.broadcast %c0_i32_34 : i32 to vector<4x4xi32>
    %69 = arith.addi %67, %68 : vector<4x4xi32>
    %70 = arith.cmpi eq, %49, %69 : vector<4x4xi32>
    %71 = arith.extui %70 : vector<4x4xi1> to vector<4x4xi32>
    %72 = arith.sitofp %71 : vector<4x4xi32> to vector<4x4xf32>
    %cst_35 = arith.constant dense<0.000000e+00> : vector<4x32xf32>
    %73 = tpu.matmul %72, %65, %cst_35 {dimension_numbers = #tpu.dot_dimension_numbers<[1], [0], [0], [1], [0, 0, 1, 1], [], []>} : vector<4x4xf32>, vector<4x32xf32>, vector<4x32xf32> -> vector<4x32xf32>
    %74 = arith.addf %62, %73 : vector<4x32xf32>
    %c2_36 = arith.constant 2 : index
    %c0_37 = arith.constant 0 : index
    %c0_38 = arith.constant 0 : index
    %75 = vector.load %arg11[%c2_36, %c0_37, %c0_38] : memref<3x32x32xf32, #tpu.memory_space<vmem>>, vector<1x32x32xf32>
    %76 = vector.shape_cast %75 : vector<1x32x32xf32> to vector<32x32xf32>
    %cst_39 = arith.constant dense<0.000000e+00> : vector<4x32xf32>
    %77 = tpu.matmul %47, %76, %cst_39 {dimension_numbers = #tpu.dot_dimension_numbers<[1], [0], [0], [1], [0, 0, 1, 1], [], []>} : vector<4x32xf32>, vector<32x32xf32>, vector<4x32xf32> -> vector<4x32xf32>
    %c1_i32_40 = arith.constant 1 : i32
    %78 = vector.broadcast %c1_i32_40 : i32 to vector<4x4xi32>
    %79 = arith.muli %48, %78 : vector<4x4xi32>
    %c3_i32 = arith.constant 3 : i32
    %80 = vector.broadcast %c3_i32 : i32 to vector<4x4xi32>
    %81 = arith.addi %79, %80 : vector<4x4xi32>
    %82 = arith.cmpi eq, %49, %81 : vector<4x4xi32>
    %83 = arith.extui %82 : vector<4x4xi1> to vector<4x4xi32>
    %84 = arith.sitofp %83 : vector<4x4xi32> to vector<4x4xf32>
    %cst_41 = arith.constant dense<0.000000e+00> : vector<4x32xf32>
    %85 = tpu.matmul %84, %77, %cst_41 {dimension_numbers = #tpu.dot_dimension_numbers<[1], [0], [0], [1], [0, 0, 1, 1], [], []>} : vector<4x4xf32>, vector<4x32xf32>, vector<4x32xf32> -> vector<4x32xf32>
    %86 = arith.addf %74, %85 : vector<4x32xf32>
    %c0_42 = arith.constant 0 : index
    %c0_43 = arith.constant 0 : index
    %87 = vector.load %arg10[%c0_42, %c0_43] : memref<1x32xf32, #tpu.memory_space<vmem>>, vector<1x32xf32>
    %88 = vector.broadcast %87 : vector<1x32xf32> to vector<4x32xf32>
    %89 = arith.addf %86, %88 : vector<4x32xf32>
    %cst_44 = arith.constant 0.000000e+00 : f32
    %90 = vector.broadcast %cst_44 : f32 to vector<4x32xf32>
    %91 = arith.maximumf %89, %90 : vector<4x32xf32>
    %92 = tpu.iota {dimensions = array<i32: 0>} : vector<4x4xi32>
    %93 = tpu.iota {dimensions = array<i32: 1>} : vector<4x4xi32>
    %cst_45 = arith.constant 0.000000e+00 : f32
    %94 = vector.broadcast %cst_45 : f32 to vector<4x32xf32>
    %c0_46 = arith.constant 0 : index
    %c0_47 = arith.constant 0 : index
    %c0_48 = arith.constant 0 : index
    %95 = vector.load %arg13[%c0_46, %c0_47, %c0_48] : memref<1x32x32xf32, #tpu.memory_space<vmem>>, vector<1x32x32xf32>
    %96 = vector.shape_cast %95 : vector<1x32x32xf32> to vector<32x32xf32>
    %cst_49 = arith.constant dense<0.000000e+00> : vector<4x32xf32>
    %97 = tpu.matmul %91, %96, %cst_49 {dimension_numbers = #tpu.dot_dimension_numbers<[1], [0], [0], [1], [0, 0, 1, 1], [], []>} : vector<4x32xf32>, vector<32x32xf32>, vector<4x32xf32> -> vector<4x32xf32>
    %c1_i32_50 = arith.constant 1 : i32
    %98 = vector.broadcast %c1_i32_50 : i32 to vector<4x4xi32>
    %99 = arith.muli %92, %98 : vector<4x4xi32>
    %c0_i32_51 = arith.constant 0 : i32
    %100 = vector.broadcast %c0_i32_51 : i32 to vector<4x4xi32>
    %101 = arith.addi %99, %100 : vector<4x4xi32>
    %102 = arith.cmpi eq, %93, %101 : vector<4x4xi32>
    %103 = arith.extui %102 : vector<4x4xi1> to vector<4x4xi32>
    %104 = arith.sitofp %103 : vector<4x4xi32> to vector<4x4xf32>
    %cst_52 = arith.constant dense<0.000000e+00> : vector<4x32xf32>
    %105 = tpu.matmul %104, %97, %cst_52 {dimension_numbers = #tpu.dot_dimension_numbers<[1], [0], [0], [1], [0, 0, 1, 1], [], []>} : vector<4x4xf32>, vector<4x32xf32>, vector<4x32xf32> -> vector<4x32xf32>
    %106 = arith.addf %94, %105 : vector<4x32xf32>
    %c0_53 = arith.constant 0 : index
    %c0_54 = arith.constant 0 : index
    %107 = vector.load %arg12[%c0_53, %c0_54] : memref<1x32xf32, #tpu.memory_space<vmem>>, vector<1x32xf32>
    %108 = vector.broadcast %107 : vector<1x32xf32> to vector<4x32xf32>
    %109 = arith.addf %106, %108 : vector<4x32xf32>
    %110 = arith.addf %45, %109 : vector<4x32xf32>
    %cst_55 = arith.constant 0.000000e+00 : f32
    %111 = vector.broadcast %cst_55 : f32 to vector<4x32xf32>
    %112 = arith.maximumf %110, %111 : vector<4x32xf32>
    %113 = tpu.iota {dimensions = array<i32: 0>} : vector<4x4xi32>
    %114 = tpu.iota {dimensions = array<i32: 1>} : vector<4x4xi32>
    %cst_56 = arith.constant 0.000000e+00 : f32
    %115 = vector.broadcast %cst_56 : f32 to vector<4x32xf32>
    %c0_57 = arith.constant 0 : index
    %c0_58 = arith.constant 0 : index
    %c0_59 = arith.constant 0 : index
    %116 = vector.load %arg15[%c0_57, %c0_58, %c0_59] : memref<3x32x32xf32, #tpu.memory_space<vmem>>, vector<1x32x32xf32>
    %117 = vector.shape_cast %116 : vector<1x32x32xf32> to vector<32x32xf32>
    %cst_60 = arith.constant dense<0.000000e+00> : vector<4x32xf32>
    %118 = tpu.matmul %112, %117, %cst_60 {dimension_numbers = #tpu.dot_dimension_numbers<[1], [0], [0], [1], [0, 0, 1, 1], [], []>} : vector<4x32xf32>, vector<32x32xf32>, vector<4x32xf32> -> vector<4x32xf32>
    %c1_i32_61 = arith.constant 1 : i32
    %119 = vector.broadcast %c1_i32_61 : i32 to vector<4x4xi32>
    %120 = arith.muli %113, %119 : vector<4x4xi32>
    %c-1_i32_62 = arith.constant -1 : i32
    %121 = vector.broadcast %c-1_i32_62 : i32 to vector<4x4xi32>
    %122 = arith.addi %120, %121 : vector<4x4xi32>
    %123 = arith.cmpi eq, %114, %122 : vector<4x4xi32>
    %124 = arith.extui %123 : vector<4x4xi1> to vector<4x4xi32>
    %125 = arith.sitofp %124 : vector<4x4xi32> to vector<4x4xf32>
    %cst_63 = arith.constant dense<0.000000e+00> : vector<4x32xf32>
    %126 = tpu.matmul %125, %118, %cst_63 {dimension_numbers = #tpu.dot_dimension_numbers<[1], [0], [0], [1], [0, 0, 1, 1], [], []>} : vector<4x4xf32>, vector<4x32xf32>, vector<4x32xf32> -> vector<4x32xf32>
    %127 = arith.addf %115, %126 : vector<4x32xf32>
    %c1_64 = arith.constant 1 : index
    %c0_65 = arith.constant 0 : index
    %c0_66 = arith.constant 0 : index
    %128 = vector.load %arg15[%c1_64, %c0_65, %c0_66] : memref<3x32x32xf32, #tpu.memory_space<vmem>>, vector<1x32x32xf32>
    %129 = vector.shape_cast %128 : vector<1x32x32xf32> to vector<32x32xf32>
    %cst_67 = arith.constant dense<0.000000e+00> : vector<4x32xf32>
    %130 = tpu.matmul %112, %129, %cst_67 {dimension_numbers = #tpu.dot_dimension_numbers<[1], [0], [0], [1], [0, 0, 1, 1], [], []>} : vector<4x32xf32>, vector<32x32xf32>, vector<4x32xf32> -> vector<4x32xf32>
    %c1_i32_68 = arith.constant 1 : i32
    %131 = vector.broadcast %c1_i32_68 : i32 to vector<4x4xi32>
    %132 = arith.muli %113, %131 : vector<4x4xi32>
    %c0_i32_69 = arith.constant 0 : i32
    %133 = vector.broadcast %c0_i32_69 : i32 to vector<4x4xi32>
    %134 = arith.addi %132, %133 : vector<4x4xi32>
    %135 = arith.cmpi eq, %114, %134 : vector<4x4xi32>
    %136 = arith.extui %135 : vector<4x4xi1> to vector<4x4xi32>
    %137 = arith.sitofp %136 : vector<4x4xi32> to vector<4x4xf32>
    %cst_70 = arith.constant dense<0.000000e+00> : vector<4x32xf32>
    %138 = tpu.matmul %137, %130, %cst_70 {dimension_numbers = #tpu.dot_dimension_numbers<[1], [0], [0], [1], [0, 0, 1, 1], [], []>} : vector<4x4xf32>, vector<4x32xf32>, vector<4x32xf32> -> vector<4x32xf32>
    %139 = arith.addf %127, %138 : vector<4x32xf32>
    %c2_71 = arith.constant 2 : index
    %c0_72 = arith.constant 0 : index
    %c0_73 = arith.constant 0 : index
    %140 = vector.load %arg15[%c2_71, %c0_72, %c0_73] : memref<3x32x32xf32, #tpu.memory_space<vmem>>, vector<1x32x32xf32>
    %141 = vector.shape_cast %140 : vector<1x32x32xf32> to vector<32x32xf32>
    %cst_74 = arith.constant dense<0.000000e+00> : vector<4x32xf32>
    %142 = tpu.matmul %112, %141, %cst_74 {dimension_numbers = #tpu.dot_dimension_numbers<[1], [0], [0], [1], [0, 0, 1, 1], [], []>} : vector<4x32xf32>, vector<32x32xf32>, vector<4x32xf32> -> vector<4x32xf32>
    %c1_i32_75 = arith.constant 1 : i32
    %143 = vector.broadcast %c1_i32_75 : i32 to vector<4x4xi32>
    %144 = arith.muli %113, %143 : vector<4x4xi32>
    %c1_i32_76 = arith.constant 1 : i32
    %145 = vector.broadcast %c1_i32_76 : i32 to vector<4x4xi32>
    %146 = arith.addi %144, %145 : vector<4x4xi32>
    %147 = arith.cmpi eq, %114, %146 : vector<4x4xi32>
    %148 = arith.extui %147 : vector<4x4xi1> to vector<4x4xi32>
    %149 = arith.sitofp %148 : vector<4x4xi32> to vector<4x4xf32>
    %cst_77 = arith.constant dense<0.000000e+00> : vector<4x32xf32>
    %150 = tpu.matmul %149, %142, %cst_77 {dimension_numbers = #tpu.dot_dimension_numbers<[1], [0], [0], [1], [0, 0, 1, 1], [], []>} : vector<4x4xf32>, vector<4x32xf32>, vector<4x32xf32> -> vector<4x32xf32>
    %151 = arith.addf %139, %150 : vector<4x32xf32>
    %c0_78 = arith.constant 0 : index
    %c0_79 = arith.constant 0 : index
    %152 = vector.load %arg14[%c0_78, %c0_79] : memref<1x32xf32, #tpu.memory_space<vmem>>, vector<1x32xf32>
    %153 = vector.broadcast %152 : vector<1x32xf32> to vector<4x32xf32>
    %154 = arith.addf %151, %153 : vector<4x32xf32>
    %cst_80 = arith.constant 0.000000e+00 : f32
    %155 = vector.broadcast %cst_80 : f32 to vector<4x32xf32>
    %156 = arith.maximumf %154, %155 : vector<4x32xf32>
    %157 = tpu.iota {dimensions = array<i32: 0>} : vector<4x4xi32>
    %158 = tpu.iota {dimensions = array<i32: 1>} : vector<4x4xi32>
    %cst_81 = arith.constant 0.000000e+00 : f32
    %159 = vector.broadcast %cst_81 : f32 to vector<4x32xf32>
    %c0_82 = arith.constant 0 : index
    %c0_83 = arith.constant 0 : index
    %c0_84 = arith.constant 0 : index
    %160 = vector.load %arg17[%c0_82, %c0_83, %c0_84] : memref<1x32x32xf32, #tpu.memory_space<vmem>>, vector<1x32x32xf32>
    %161 = vector.shape_cast %160 : vector<1x32x32xf32> to vector<32x32xf32>
    %cst_85 = arith.constant dense<0.000000e+00> : vector<4x32xf32>
    %162 = tpu.matmul %156, %161, %cst_85 {dimension_numbers = #tpu.dot_dimension_numbers<[1], [0], [0], [1], [0, 0, 1, 1], [], []>} : vector<4x32xf32>, vector<32x32xf32>, vector<4x32xf32> -> vector<4x32xf32>
    %c1_i32_86 = arith.constant 1 : i32
    %163 = vector.broadcast %c1_i32_86 : i32 to vector<4x4xi32>
    %164 = arith.muli %157, %163 : vector<4x4xi32>
    %c0_i32_87 = arith.constant 0 : i32
    %165 = vector.broadcast %c0_i32_87 : i32 to vector<4x4xi32>
    %166 = arith.addi %164, %165 : vector<4x4xi32>
    %167 = arith.cmpi eq, %158, %166 : vector<4x4xi32>
    %168 = arith.extui %167 : vector<4x4xi1> to vector<4x4xi32>
    %169 = arith.sitofp %168 : vector<4x4xi32> to vector<4x4xf32>
    %cst_88 = arith.constant dense<0.000000e+00> : vector<4x32xf32>
    %170 = tpu.matmul %169, %162, %cst_88 {dimension_numbers = #tpu.dot_dimension_numbers<[1], [0], [0], [1], [0, 0, 1, 1], [], []>} : vector<4x4xf32>, vector<4x32xf32>, vector<4x32xf32> -> vector<4x32xf32>
    %171 = arith.addf %159, %170 : vector<4x32xf32>
    %c0_89 = arith.constant 0 : index
    %c0_90 = arith.constant 0 : index
    %172 = vector.load %arg16[%c0_89, %c0_90] : memref<1x32xf32, #tpu.memory_space<vmem>>, vector<1x32xf32>
    %173 = vector.broadcast %172 : vector<1x32xf32> to vector<4x32xf32>
    %174 = arith.addf %171, %173 : vector<4x32xf32>
    %175 = arith.addf %110, %174 : vector<4x32xf32>
    %176 = tpu.iota {dimensions = array<i32: 0>} : vector<8x4xi32>
    %177 = tpu.iota {dimensions = array<i32: 1>} : vector<8x4xi32>
    %c2_i32 = arith.constant 2 : i32
    %178 = vector.broadcast %c2_i32 : i32 to vector<8x4xi32>
    %179 = arith.muli %178, %177 : vector<8x4xi32>
    %180 = arith.cmpi sge, %176, %179 : vector<8x4xi32>
    %c2_i32_91 = arith.constant 2 : i32
    %181 = vector.broadcast %c2_i32_91 : i32 to vector<8x4xi32>
    %182 = arith.muli %181, %177 : vector<8x4xi32>
    %c2_i32_92 = arith.constant 2 : i32
    %183 = vector.broadcast %c2_i32_92 : i32 to vector<8x4xi32>
    %184 = arith.addi %182, %183 : vector<8x4xi32>
    %185 = arith.cmpi slt, %176, %184 : vector<8x4xi32>
    %186 = arith.andi %180, %185 : vector<8x4xi1>
    %187 = arith.extui %186 : vector<8x4xi1> to vector<8x4xi32>
    %188 = arith.sitofp %187 : vector<8x4xi32> to vector<8x4xf32>
    %cst_93 = arith.constant dense<0.000000e+00> : vector<8x32xf32>
    %189 = tpu.matmul %188, %175, %cst_93 {dimension_numbers = #tpu.dot_dimension_numbers<[1], [0], [0], [1], [0, 0, 1, 1], [], []>} : vector<8x4xf32>, vector<4x32xf32>, vector<8x32xf32> -> vector<8x32xf32>
    %190 = tpu.iota {dimensions = array<i32: 0>} : vector<8x8xi32>
    %191 = tpu.iota {dimensions = array<i32: 1>} : vector<8x8xi32>
    %cst_94 = arith.constant 0.000000e+00 : f32
    %192 = vector.broadcast %cst_94 : f32 to vector<8x32xf32>
    %c0_95 = arith.constant 0 : index
    %c0_96 = arith.constant 0 : index
    %c0_97 = arith.constant 0 : index
    %193 = vector.load %arg9[%c0_95, %c0_96, %c0_97] : memref<3x32x32xf32, #tpu.memory_space<vmem>>, vector<1x32x32xf32>
    %194 = vector.shape_cast %193 : vector<1x32x32xf32> to vector<32x32xf32>
    %cst_98 = arith.constant dense<0.000000e+00> : vector<8x32xf32>
    %195 = tpu.matmul %189, %194, %cst_98 {dimension_numbers = #tpu.dot_dimension_numbers<[1], [0], [0], [1], [0, 0, 1, 1], [], []>} : vector<8x32xf32>, vector<32x32xf32>, vector<8x32xf32> -> vector<8x32xf32>
    %c1_i32_99 = arith.constant 1 : i32
    %196 = vector.broadcast %c1_i32_99 : i32 to vector<8x8xi32>
    %197 = arith.muli %190, %196 : vector<8x8xi32>
    %c-1_i32_100 = arith.constant -1 : i32
    %198 = vector.broadcast %c-1_i32_100 : i32 to vector<8x8xi32>
    %199 = arith.addi %197, %198 : vector<8x8xi32>
    %200 = arith.cmpi eq, %191, %199 : vector<8x8xi32>
    %201 = arith.extui %200 : vector<8x8xi1> to vector<8x8xi32>
    %202 = arith.sitofp %201 : vector<8x8xi32> to vector<8x8xf32>
    %cst_101 = arith.constant dense<0.000000e+00> : vector<8x32xf32>
    %203 = tpu.matmul %202, %195, %cst_101 {dimension_numbers = #tpu.dot_dimension_numbers<[1], [0], [0], [1], [0, 0, 1, 1], [], []>} : vector<8x8xf32>, vector<8x32xf32>, vector<8x32xf32> -> vector<8x32xf32>
    %204 = arith.addf %192, %203 : vector<8x32xf32>
    %c1_102 = arith.constant 1 : index
    %c0_103 = arith.constant 0 : index
    %c0_104 = arith.constant 0 : index
    %205 = vector.load %arg9[%c1_102, %c0_103, %c0_104] : memref<3x32x32xf32, #tpu.memory_space<vmem>>, vector<1x32x32xf32>
    %206 = vector.shape_cast %205 : vector<1x32x32xf32> to vector<32x32xf32>
    %cst_105 = arith.constant dense<0.000000e+00> : vector<8x32xf32>
    %207 = tpu.matmul %189, %206, %cst_105 {dimension_numbers = #tpu.dot_dimension_numbers<[1], [0], [0], [1], [0, 0, 1, 1], [], []>} : vector<8x32xf32>, vector<32x32xf32>, vector<8x32xf32> -> vector<8x32xf32>
    %c1_i32_106 = arith.constant 1 : i32
    %208 = vector.broadcast %c1_i32_106 : i32 to vector<8x8xi32>
    %209 = arith.muli %190, %208 : vector<8x8xi32>
    %c0_i32_107 = arith.constant 0 : i32
    %210 = vector.broadcast %c0_i32_107 : i32 to vector<8x8xi32>
    %211 = arith.addi %209, %210 : vector<8x8xi32>
    %212 = arith.cmpi eq, %191, %211 : vector<8x8xi32>
    %213 = arith.extui %212 : vector<8x8xi1> to vector<8x8xi32>
    %214 = arith.sitofp %213 : vector<8x8xi32> to vector<8x8xf32>
    %cst_108 = arith.constant dense<0.000000e+00> : vector<8x32xf32>
    %215 = tpu.matmul %214, %207, %cst_108 {dimension_numbers = #tpu.dot_dimension_numbers<[1], [0], [0], [1], [0, 0, 1, 1], [], []>} : vector<8x8xf32>, vector<8x32xf32>, vector<8x32xf32> -> vector<8x32xf32>
    %216 = arith.addf %204, %215 : vector<8x32xf32>
    %c2_109 = arith.constant 2 : index
    %c0_110 = arith.constant 0 : index
    %c0_111 = arith.constant 0 : index
    %217 = vector.load %arg9[%c2_109, %c0_110, %c0_111] : memref<3x32x32xf32, #tpu.memory_space<vmem>>, vector<1x32x32xf32>
    %218 = vector.shape_cast %217 : vector<1x32x32xf32> to vector<32x32xf32>
    %cst_112 = arith.constant dense<0.000000e+00> : vector<8x32xf32>
    %219 = tpu.matmul %189, %218, %cst_112 {dimension_numbers = #tpu.dot_dimension_numbers<[1], [0], [0], [1], [0, 0, 1, 1], [], []>} : vector<8x32xf32>, vector<32x32xf32>, vector<8x32xf32> -> vector<8x32xf32>
    %c1_i32_113 = arith.constant 1 : i32
    %220 = vector.broadcast %c1_i32_113 : i32 to vector<8x8xi32>
    %221 = arith.muli %190, %220 : vector<8x8xi32>
    %c1_i32_114 = arith.constant 1 : i32
    %222 = vector.broadcast %c1_i32_114 : i32 to vector<8x8xi32>
    %223 = arith.addi %221, %222 : vector<8x8xi32>
    %224 = arith.cmpi eq, %191, %223 : vector<8x8xi32>
    %225 = arith.extui %224 : vector<8x8xi1> to vector<8x8xi32>
    %226 = arith.sitofp %225 : vector<8x8xi32> to vector<8x8xf32>
    %cst_115 = arith.constant dense<0.000000e+00> : vector<8x32xf32>
    %227 = tpu.matmul %226, %219, %cst_115 {dimension_numbers = #tpu.dot_dimension_numbers<[1], [0], [0], [1], [0, 0, 1, 1], [], []>} : vector<8x8xf32>, vector<8x32xf32>, vector<8x32xf32> -> vector<8x32xf32>
    %228 = arith.addf %216, %227 : vector<8x32xf32>
    %c0_116 = arith.constant 0 : index
    %c0_117 = arith.constant 0 : index
    %229 = vector.load %arg8[%c0_116, %c0_117] : memref<1x32xf32, #tpu.memory_space<vmem>>, vector<1x32xf32>
    %230 = vector.broadcast %229 : vector<1x32xf32> to vector<8x32xf32>
    %231 = arith.addf %228, %230 : vector<8x32xf32>
    %cst_118 = arith.constant 0.000000e+00 : f32
    %232 = vector.broadcast %cst_118 : f32 to vector<8x32xf32>
    %233 = arith.maximumf %231, %232 : vector<8x32xf32>
    %234 = tpu.iota {dimensions = array<i32: 0>} : vector<8x8xi32>
    %235 = tpu.iota {dimensions = array<i32: 1>} : vector<8x8xi32>
    %cst_119 = arith.constant 0.000000e+00 : f32
    %236 = vector.broadcast %cst_119 : f32 to vector<8x32xf32>
    %c0_120 = arith.constant 0 : index
    %c0_121 = arith.constant 0 : index
    %c0_122 = arith.constant 0 : index
    %237 = vector.load %arg21[%c0_120, %c0_121, %c0_122] : memref<3x32x32xf32, #tpu.memory_space<vmem>>, vector<1x32x32xf32>
    %238 = vector.shape_cast %237 : vector<1x32x32xf32> to vector<32x32xf32>
    %cst_123 = arith.constant dense<0.000000e+00> : vector<8x32xf32>
    %239 = tpu.matmul %233, %238, %cst_123 {dimension_numbers = #tpu.dot_dimension_numbers<[1], [0], [0], [1], [0, 0, 1, 1], [], []>} : vector<8x32xf32>, vector<32x32xf32>, vector<8x32xf32> -> vector<8x32xf32>
    %c1_i32_124 = arith.constant 1 : i32
    %240 = vector.broadcast %c1_i32_124 : i32 to vector<8x8xi32>
    %241 = arith.muli %234, %240 : vector<8x8xi32>
    %c-3_i32_125 = arith.constant -3 : i32
    %242 = vector.broadcast %c-3_i32_125 : i32 to vector<8x8xi32>
    %243 = arith.addi %241, %242 : vector<8x8xi32>
    %244 = arith.cmpi eq, %235, %243 : vector<8x8xi32>
    %245 = arith.extui %244 : vector<8x8xi1> to vector<8x8xi32>
    %246 = arith.sitofp %245 : vector<8x8xi32> to vector<8x8xf32>
    %cst_126 = arith.constant dense<0.000000e+00> : vector<8x32xf32>
    %247 = tpu.matmul %246, %239, %cst_126 {dimension_numbers = #tpu.dot_dimension_numbers<[1], [0], [0], [1], [0, 0, 1, 1], [], []>} : vector<8x8xf32>, vector<8x32xf32>, vector<8x32xf32> -> vector<8x32xf32>
    %248 = arith.addf %236, %247 : vector<8x32xf32>
    %c1_127 = arith.constant 1 : index
    %c0_128 = arith.constant 0 : index
    %c0_129 = arith.constant 0 : index
    %249 = vector.load %arg21[%c1_127, %c0_128, %c0_129] : memref<3x32x32xf32, #tpu.memory_space<vmem>>, vector<1x32x32xf32>
    %250 = vector.shape_cast %249 : vector<1x32x32xf32> to vector<32x32xf32>
    %cst_130 = arith.constant dense<0.000000e+00> : vector<8x32xf32>
    %251 = tpu.matmul %233, %250, %cst_130 {dimension_numbers = #tpu.dot_dimension_numbers<[1], [0], [0], [1], [0, 0, 1, 1], [], []>} : vector<8x32xf32>, vector<32x32xf32>, vector<8x32xf32> -> vector<8x32xf32>
    %c1_i32_131 = arith.constant 1 : i32
    %252 = vector.broadcast %c1_i32_131 : i32 to vector<8x8xi32>
    %253 = arith.muli %234, %252 : vector<8x8xi32>
    %c0_i32_132 = arith.constant 0 : i32
    %254 = vector.broadcast %c0_i32_132 : i32 to vector<8x8xi32>
    %255 = arith.addi %253, %254 : vector<8x8xi32>
    %256 = arith.cmpi eq, %235, %255 : vector<8x8xi32>
    %257 = arith.extui %256 : vector<8x8xi1> to vector<8x8xi32>
    %258 = arith.sitofp %257 : vector<8x8xi32> to vector<8x8xf32>
    %cst_133 = arith.constant dense<0.000000e+00> : vector<8x32xf32>
    %259 = tpu.matmul %258, %251, %cst_133 {dimension_numbers = #tpu.dot_dimension_numbers<[1], [0], [0], [1], [0, 0, 1, 1], [], []>} : vector<8x8xf32>, vector<8x32xf32>, vector<8x32xf32> -> vector<8x32xf32>
    %260 = arith.addf %248, %259 : vector<8x32xf32>
    %c2_134 = arith.constant 2 : index
    %c0_135 = arith.constant 0 : index
    %c0_136 = arith.constant 0 : index
    %261 = vector.load %arg21[%c2_134, %c0_135, %c0_136] : memref<3x32x32xf32, #tpu.memory_space<vmem>>, vector<1x32x32xf32>
    %262 = vector.shape_cast %261 : vector<1x32x32xf32> to vector<32x32xf32>
    %cst_137 = arith.constant dense<0.000000e+00> : vector<8x32xf32>
    %263 = tpu.matmul %233, %262, %cst_137 {dimension_numbers = #tpu.dot_dimension_numbers<[1], [0], [0], [1], [0, 0, 1, 1], [], []>} : vector<8x32xf32>, vector<32x32xf32>, vector<8x32xf32> -> vector<8x32xf32>
    %c1_i32_138 = arith.constant 1 : i32
    %264 = vector.broadcast %c1_i32_138 : i32 to vector<8x8xi32>
    %265 = arith.muli %234, %264 : vector<8x8xi32>
    %c3_i32_139 = arith.constant 3 : i32
    %266 = vector.broadcast %c3_i32_139 : i32 to vector<8x8xi32>
    %267 = arith.addi %265, %266 : vector<8x8xi32>
    %268 = arith.cmpi eq, %235, %267 : vector<8x8xi32>
    %269 = arith.extui %268 : vector<8x8xi1> to vector<8x8xi32>
    %270 = arith.sitofp %269 : vector<8x8xi32> to vector<8x8xf32>
    %cst_140 = arith.constant dense<0.000000e+00> : vector<8x32xf32>
    %271 = tpu.matmul %270, %263, %cst_140 {dimension_numbers = #tpu.dot_dimension_numbers<[1], [0], [0], [1], [0, 0, 1, 1], [], []>} : vector<8x8xf32>, vector<8x32xf32>, vector<8x32xf32> -> vector<8x32xf32>
    %272 = arith.addf %260, %271 : vector<8x32xf32>
    %c0_141 = arith.constant 0 : index
    %c0_142 = arith.constant 0 : index
    %273 = vector.load %arg20[%c0_141, %c0_142] : memref<1x32xf32, #tpu.memory_space<vmem>>, vector<1x32xf32>
    %274 = vector.broadcast %273 : vector<1x32xf32> to vector<8x32xf32>
    %275 = arith.addf %272, %274 : vector<8x32xf32>
    %cst_143 = arith.constant 0.000000e+00 : f32
    %276 = vector.broadcast %cst_143 : f32 to vector<8x32xf32>
    %277 = arith.maximumf %275, %276 : vector<8x32xf32>
    %278 = tpu.iota {dimensions = array<i32: 0>} : vector<8x8xi32>
    %279 = tpu.iota {dimensions = array<i32: 1>} : vector<8x8xi32>
    %cst_144 = arith.constant 0.000000e+00 : f32
    %280 = vector.broadcast %cst_144 : f32 to vector<8x32xf32>
    %c0_145 = arith.constant 0 : index
    %c0_146 = arith.constant 0 : index
    %c0_147 = arith.constant 0 : index
    %281 = vector.load %arg23[%c0_145, %c0_146, %c0_147] : memref<1x32x32xf32, #tpu.memory_space<vmem>>, vector<1x32x32xf32>
    %282 = vector.shape_cast %281 : vector<1x32x32xf32> to vector<32x32xf32>
    %cst_148 = arith.constant dense<0.000000e+00> : vector<8x32xf32>
    %283 = tpu.matmul %277, %282, %cst_148 {dimension_numbers = #tpu.dot_dimension_numbers<[1], [0], [0], [1], [0, 0, 1, 1], [], []>} : vector<8x32xf32>, vector<32x32xf32>, vector<8x32xf32> -> vector<8x32xf32>
    %c1_i32_149 = arith.constant 1 : i32
    %284 = vector.broadcast %c1_i32_149 : i32 to vector<8x8xi32>
    %285 = arith.muli %278, %284 : vector<8x8xi32>
    %c0_i32_150 = arith.constant 0 : i32
    %286 = vector.broadcast %c0_i32_150 : i32 to vector<8x8xi32>
    %287 = arith.addi %285, %286 : vector<8x8xi32>
    %288 = arith.cmpi eq, %279, %287 : vector<8x8xi32>
    %289 = arith.extui %288 : vector<8x8xi1> to vector<8x8xi32>
    %290 = arith.sitofp %289 : vector<8x8xi32> to vector<8x8xf32>
    %cst_151 = arith.constant dense<0.000000e+00> : vector<8x32xf32>
    %291 = tpu.matmul %290, %283, %cst_151 {dimension_numbers = #tpu.dot_dimension_numbers<[1], [0], [0], [1], [0, 0, 1, 1], [], []>} : vector<8x8xf32>, vector<8x32xf32>, vector<8x32xf32> -> vector<8x32xf32>
    %292 = arith.addf %280, %291 : vector<8x32xf32>
    %c0_152 = arith.constant 0 : index
    %c0_153 = arith.constant 0 : index
    %293 = vector.load %arg22[%c0_152, %c0_153] : memref<1x32xf32, #tpu.memory_space<vmem>>, vector<1x32xf32>
    %294 = vector.broadcast %293 : vector<1x32xf32> to vector<8x32xf32>
    %295 = arith.addf %292, %294 : vector<8x32xf32>
    %296 = arith.addf %231, %295 : vector<8x32xf32>
    %cst_154 = arith.constant 0.000000e+00 : f32
    %297 = vector.broadcast %cst_154 : f32 to vector<8x32xf32>
    %298 = arith.maximumf %296, %297 : vector<8x32xf32>
    %299 = tpu.iota {dimensions = array<i32: 0>} : vector<8x8xi32>
    %300 = tpu.iota {dimensions = array<i32: 1>} : vector<8x8xi32>
    %cst_155 = arith.constant 0.000000e+00 : f32
    %301 = vector.broadcast %cst_155 : f32 to vector<8x32xf32>
    %c0_156 = arith.constant 0 : index
    %c0_157 = arith.constant 0 : index
    %c0_158 = arith.constant 0 : index
    %302 = vector.load %arg25[%c0_156, %c0_157, %c0_158] : memref<3x32x32xf32, #tpu.memory_space<vmem>>, vector<1x32x32xf32>
    %303 = vector.shape_cast %302 : vector<1x32x32xf32> to vector<32x32xf32>
    %cst_159 = arith.constant dense<0.000000e+00> : vector<8x32xf32>
    %304 = tpu.matmul %298, %303, %cst_159 {dimension_numbers = #tpu.dot_dimension_numbers<[1], [0], [0], [1], [0, 0, 1, 1], [], []>} : vector<8x32xf32>, vector<32x32xf32>, vector<8x32xf32> -> vector<8x32xf32>
    %c1_i32_160 = arith.constant 1 : i32
    %305 = vector.broadcast %c1_i32_160 : i32 to vector<8x8xi32>
    %306 = arith.muli %299, %305 : vector<8x8xi32>
    %c-1_i32_161 = arith.constant -1 : i32
    %307 = vector.broadcast %c-1_i32_161 : i32 to vector<8x8xi32>
    %308 = arith.addi %306, %307 : vector<8x8xi32>
    %309 = arith.cmpi eq, %300, %308 : vector<8x8xi32>
    %310 = arith.extui %309 : vector<8x8xi1> to vector<8x8xi32>
    %311 = arith.sitofp %310 : vector<8x8xi32> to vector<8x8xf32>
    %cst_162 = arith.constant dense<0.000000e+00> : vector<8x32xf32>
    %312 = tpu.matmul %311, %304, %cst_162 {dimension_numbers = #tpu.dot_dimension_numbers<[1], [0], [0], [1], [0, 0, 1, 1], [], []>} : vector<8x8xf32>, vector<8x32xf32>, vector<8x32xf32> -> vector<8x32xf32>
    %313 = arith.addf %301, %312 : vector<8x32xf32>
    %c1_163 = arith.constant 1 : index
    %c0_164 = arith.constant 0 : index
    %c0_165 = arith.constant 0 : index
    %314 = vector.load %arg25[%c1_163, %c0_164, %c0_165] : memref<3x32x32xf32, #tpu.memory_space<vmem>>, vector<1x32x32xf32>
    %315 = vector.shape_cast %314 : vector<1x32x32xf32> to vector<32x32xf32>
    %cst_166 = arith.constant dense<0.000000e+00> : vector<8x32xf32>
    %316 = tpu.matmul %298, %315, %cst_166 {dimension_numbers = #tpu.dot_dimension_numbers<[1], [0], [0], [1], [0, 0, 1, 1], [], []>} : vector<8x32xf32>, vector<32x32xf32>, vector<8x32xf32> -> vector<8x32xf32>
    %c1_i32_167 = arith.constant 1 : i32
    %317 = vector.broadcast %c1_i32_167 : i32 to vector<8x8xi32>
    %318 = arith.muli %299, %317 : vector<8x8xi32>
    %c0_i32_168 = arith.constant 0 : i32
    %319 = vector.broadcast %c0_i32_168 : i32 to vector<8x8xi32>
    %320 = arith.addi %318, %319 : vector<8x8xi32>
    %321 = arith.cmpi eq, %300, %320 : vector<8x8xi32>
    %322 = arith.extui %321 : vector<8x8xi1> to vector<8x8xi32>
    %323 = arith.sitofp %322 : vector<8x8xi32> to vector<8x8xf32>
    %cst_169 = arith.constant dense<0.000000e+00> : vector<8x32xf32>
    %324 = tpu.matmul %323, %316, %cst_169 {dimension_numbers = #tpu.dot_dimension_numbers<[1], [0], [0], [1], [0, 0, 1, 1], [], []>} : vector<8x8xf32>, vector<8x32xf32>, vector<8x32xf32> -> vector<8x32xf32>
    %325 = arith.addf %313, %324 : vector<8x32xf32>
    %c2_170 = arith.constant 2 : index
    %c0_171 = arith.constant 0 : index
    %c0_172 = arith.constant 0 : index
    %326 = vector.load %arg25[%c2_170, %c0_171, %c0_172] : memref<3x32x32xf32, #tpu.memory_space<vmem>>, vector<1x32x32xf32>
    %327 = vector.shape_cast %326 : vector<1x32x32xf32> to vector<32x32xf32>
    %cst_173 = arith.constant dense<0.000000e+00> : vector<8x32xf32>
    %328 = tpu.matmul %298, %327, %cst_173 {dimension_numbers = #tpu.dot_dimension_numbers<[1], [0], [0], [1], [0, 0, 1, 1], [], []>} : vector<8x32xf32>, vector<32x32xf32>, vector<8x32xf32> -> vector<8x32xf32>
    %c1_i32_174 = arith.constant 1 : i32
    %329 = vector.broadcast %c1_i32_174 : i32 to vector<8x8xi32>
    %330 = arith.muli %299, %329 : vector<8x8xi32>
    %c1_i32_175 = arith.constant 1 : i32
    %331 = vector.broadcast %c1_i32_175 : i32 to vector<8x8xi32>
    %332 = arith.addi %330, %331 : vector<8x8xi32>
    %333 = arith.cmpi eq, %300, %332 : vector<8x8xi32>
    %334 = arith.extui %333 : vector<8x8xi1> to vector<8x8xi32>
    %335 = arith.sitofp %334 : vector<8x8xi32> to vector<8x8xf32>
    %cst_176 = arith.constant dense<0.000000e+00> : vector<8x32xf32>
    %336 = tpu.matmul %335, %328, %cst_176 {dimension_numbers = #tpu.dot_dimension_numbers<[1], [0], [0], [1], [0, 0, 1, 1], [], []>} : vector<8x8xf32>, vector<8x32xf32>, vector<8x32xf32> -> vector<8x32xf32>
    %337 = arith.addf %325, %336 : vector<8x32xf32>
    %c0_177 = arith.constant 0 : index
    %c0_178 = arith.constant 0 : index
    %338 = vector.load %arg24[%c0_177, %c0_178] : memref<1x32xf32, #tpu.memory_space<vmem>>, vector<1x32xf32>
    %339 = vector.broadcast %338 : vector<1x32xf32> to vector<8x32xf32>
    %340 = arith.addf %337, %339 : vector<8x32xf32>
    %cst_179 = arith.constant 0.000000e+00 : f32
    %341 = vector.broadcast %cst_179 : f32 to vector<8x32xf32>
    %342 = arith.maximumf %340, %341 : vector<8x32xf32>
    %343 = tpu.iota {dimensions = array<i32: 0>} : vector<8x8xi32>
    %344 = tpu.iota {dimensions = array<i32: 1>} : vector<8x8xi32>
    %cst_180 = arith.constant 0.000000e+00 : f32
    %345 = vector.broadcast %cst_180 : f32 to vector<8x32xf32>
    %c0_181 = arith.constant 0 : index
    %c0_182 = arith.constant 0 : index
    %c0_183 = arith.constant 0 : index
    %346 = vector.load %arg27[%c0_181, %c0_182, %c0_183] : memref<1x32x32xf32, #tpu.memory_space<vmem>>, vector<1x32x32xf32>
    %347 = vector.shape_cast %346 : vector<1x32x32xf32> to vector<32x32xf32>
    %cst_184 = arith.constant dense<0.000000e+00> : vector<8x32xf32>
    %348 = tpu.matmul %342, %347, %cst_184 {dimension_numbers = #tpu.dot_dimension_numbers<[1], [0], [0], [1], [0, 0, 1, 1], [], []>} : vector<8x32xf32>, vector<32x32xf32>, vector<8x32xf32> -> vector<8x32xf32>
    %c1_i32_185 = arith.constant 1 : i32
    %349 = vector.broadcast %c1_i32_185 : i32 to vector<8x8xi32>
    %350 = arith.muli %343, %349 : vector<8x8xi32>
    %c0_i32_186 = arith.constant 0 : i32
    %351 = vector.broadcast %c0_i32_186 : i32 to vector<8x8xi32>
    %352 = arith.addi %350, %351 : vector<8x8xi32>
    %353 = arith.cmpi eq, %344, %352 : vector<8x8xi32>
    %354 = arith.extui %353 : vector<8x8xi1> to vector<8x8xi32>
    %355 = arith.sitofp %354 : vector<8x8xi32> to vector<8x8xf32>
    %cst_187 = arith.constant dense<0.000000e+00> : vector<8x32xf32>
    %356 = tpu.matmul %355, %348, %cst_187 {dimension_numbers = #tpu.dot_dimension_numbers<[1], [0], [0], [1], [0, 0, 1, 1], [], []>} : vector<8x8xf32>, vector<8x32xf32>, vector<8x32xf32> -> vector<8x32xf32>
    %357 = arith.addf %345, %356 : vector<8x32xf32>
    %c0_188 = arith.constant 0 : index
    %c0_189 = arith.constant 0 : index
    %358 = vector.load %arg26[%c0_188, %c0_189] : memref<1x32xf32, #tpu.memory_space<vmem>>, vector<1x32xf32>
    %359 = vector.broadcast %358 : vector<1x32xf32> to vector<8x32xf32>
    %360 = arith.addf %357, %359 : vector<8x32xf32>
    %361 = arith.addf %296, %360 : vector<8x32xf32>
    %362 = tpu.iota {dimensions = array<i32: 0>} : vector<16x8xi32>
    %363 = tpu.iota {dimensions = array<i32: 1>} : vector<16x8xi32>
    %c2_i32_190 = arith.constant 2 : i32
    %364 = vector.broadcast %c2_i32_190 : i32 to vector<16x8xi32>
    %365 = arith.muli %364, %363 : vector<16x8xi32>
    %366 = arith.cmpi sge, %362, %365 : vector<16x8xi32>
    %c2_i32_191 = arith.constant 2 : i32
    %367 = vector.broadcast %c2_i32_191 : i32 to vector<16x8xi32>
    %368 = arith.muli %367, %363 : vector<16x8xi32>
    %c2_i32_192 = arith.constant 2 : i32
    %369 = vector.broadcast %c2_i32_192 : i32 to vector<16x8xi32>
    %370 = arith.addi %368, %369 : vector<16x8xi32>
    %371 = arith.cmpi slt, %362, %370 : vector<16x8xi32>
    %372 = arith.andi %366, %371 : vector<16x8xi1>
    %373 = arith.extui %372 : vector<16x8xi1> to vector<16x8xi32>
    %374 = arith.sitofp %373 : vector<16x8xi32> to vector<16x8xf32>
    %cst_193 = arith.constant dense<0.000000e+00> : vector<16x32xf32>
    %375 = tpu.matmul %374, %361, %cst_193 {dimension_numbers = #tpu.dot_dimension_numbers<[1], [0], [0], [1], [0, 0, 1, 1], [], []>} : vector<16x8xf32>, vector<8x32xf32>, vector<16x32xf32> -> vector<16x32xf32>
    %376 = tpu.iota {dimensions = array<i32: 0>} : vector<16x16xi32>
    %377 = tpu.iota {dimensions = array<i32: 1>} : vector<16x16xi32>
    %cst_194 = arith.constant 0.000000e+00 : f32
    %378 = vector.broadcast %cst_194 : f32 to vector<16x32xf32>
    %c0_195 = arith.constant 0 : index
    %c0_196 = arith.constant 0 : index
    %c0_197 = arith.constant 0 : index
    %379 = vector.load %arg19[%c0_195, %c0_196, %c0_197] : memref<3x32x32xf32, #tpu.memory_space<vmem>>, vector<1x32x32xf32>
    %380 = vector.shape_cast %379 : vector<1x32x32xf32> to vector<32x32xf32>
    %cst_198 = arith.constant dense<0.000000e+00> : vector<16x32xf32>
    %381 = tpu.matmul %375, %380, %cst_198 {dimension_numbers = #tpu.dot_dimension_numbers<[1], [0], [0], [1], [0, 0, 1, 1], [], []>} : vector<16x32xf32>, vector<32x32xf32>, vector<16x32xf32> -> vector<16x32xf32>
    %c1_i32_199 = arith.constant 1 : i32
    %382 = vector.broadcast %c1_i32_199 : i32 to vector<16x16xi32>
    %383 = arith.muli %376, %382 : vector<16x16xi32>
    %c-1_i32_200 = arith.constant -1 : i32
    %384 = vector.broadcast %c-1_i32_200 : i32 to vector<16x16xi32>
    %385 = arith.addi %383, %384 : vector<16x16xi32>
    %386 = arith.cmpi eq, %377, %385 : vector<16x16xi32>
    %387 = arith.extui %386 : vector<16x16xi1> to vector<16x16xi32>
    %388 = arith.sitofp %387 : vector<16x16xi32> to vector<16x16xf32>
    %cst_201 = arith.constant dense<0.000000e+00> : vector<16x32xf32>
    %389 = tpu.matmul %388, %381, %cst_201 {dimension_numbers = #tpu.dot_dimension_numbers<[1], [0], [0], [1], [0, 0, 1, 1], [], []>} : vector<16x16xf32>, vector<16x32xf32>, vector<16x32xf32> -> vector<16x32xf32>
    %390 = arith.addf %378, %389 : vector<16x32xf32>
    %c1_202 = arith.constant 1 : index
    %c0_203 = arith.constant 0 : index
    %c0_204 = arith.constant 0 : index
    %391 = vector.load %arg19[%c1_202, %c0_203, %c0_204] : memref<3x32x32xf32, #tpu.memory_space<vmem>>, vector<1x32x32xf32>
    %392 = vector.shape_cast %391 : vector<1x32x32xf32> to vector<32x32xf32>
    %cst_205 = arith.constant dense<0.000000e+00> : vector<16x32xf32>
    %393 = tpu.matmul %375, %392, %cst_205 {dimension_numbers = #tpu.dot_dimension_numbers<[1], [0], [0], [1], [0, 0, 1, 1], [], []>} : vector<16x32xf32>, vector<32x32xf32>, vector<16x32xf32> -> vector<16x32xf32>
    %c1_i32_206 = arith.constant 1 : i32
    %394 = vector.broadcast %c1_i32_206 : i32 to vector<16x16xi32>
    %395 = arith.muli %376, %394 : vector<16x16xi32>
    %c0_i32_207 = arith.constant 0 : i32
    %396 = vector.broadcast %c0_i32_207 : i32 to vector<16x16xi32>
    %397 = arith.addi %395, %396 : vector<16x16xi32>
    %398 = arith.cmpi eq, %377, %397 : vector<16x16xi32>
    %399 = arith.extui %398 : vector<16x16xi1> to vector<16x16xi32>
    %400 = arith.sitofp %399 : vector<16x16xi32> to vector<16x16xf32>
    %cst_208 = arith.constant dense<0.000000e+00> : vector<16x32xf32>
    %401 = tpu.matmul %400, %393, %cst_208 {dimension_numbers = #tpu.dot_dimension_numbers<[1], [0], [0], [1], [0, 0, 1, 1], [], []>} : vector<16x16xf32>, vector<16x32xf32>, vector<16x32xf32> -> vector<16x32xf32>
    %402 = arith.addf %390, %401 : vector<16x32xf32>
    %c2_209 = arith.constant 2 : index
    %c0_210 = arith.constant 0 : index
    %c0_211 = arith.constant 0 : index
    %403 = vector.load %arg19[%c2_209, %c0_210, %c0_211] : memref<3x32x32xf32, #tpu.memory_space<vmem>>, vector<1x32x32xf32>
    %404 = vector.shape_cast %403 : vector<1x32x32xf32> to vector<32x32xf32>
    %cst_212 = arith.constant dense<0.000000e+00> : vector<16x32xf32>
    %405 = tpu.matmul %375, %404, %cst_212 {dimension_numbers = #tpu.dot_dimension_numbers<[1], [0], [0], [1], [0, 0, 1, 1], [], []>} : vector<16x32xf32>, vector<32x32xf32>, vector<16x32xf32> -> vector<16x32xf32>
    %c1_i32_213 = arith.constant 1 : i32
    %406 = vector.broadcast %c1_i32_213 : i32 to vector<16x16xi32>
    %407 = arith.muli %376, %406 : vector<16x16xi32>
    %c1_i32_214 = arith.constant 1 : i32
    %408 = vector.broadcast %c1_i32_214 : i32 to vector<16x16xi32>
    %409 = arith.addi %407, %408 : vector<16x16xi32>
    %410 = arith.cmpi eq, %377, %409 : vector<16x16xi32>
    %411 = arith.extui %410 : vector<16x16xi1> to vector<16x16xi32>
    %412 = arith.sitofp %411 : vector<16x16xi32> to vector<16x16xf32>
    %cst_215 = arith.constant dense<0.000000e+00> : vector<16x32xf32>
    %413 = tpu.matmul %412, %405, %cst_215 {dimension_numbers = #tpu.dot_dimension_numbers<[1], [0], [0], [1], [0, 0, 1, 1], [], []>} : vector<16x16xf32>, vector<16x32xf32>, vector<16x32xf32> -> vector<16x32xf32>
    %414 = arith.addf %402, %413 : vector<16x32xf32>
    %c0_216 = arith.constant 0 : index
    %c0_217 = arith.constant 0 : index
    %415 = vector.load %arg18[%c0_216, %c0_217] : memref<1x32xf32, #tpu.memory_space<vmem>>, vector<1x32xf32>
    %416 = vector.broadcast %415 : vector<1x32xf32> to vector<16x32xf32>
    %417 = arith.addf %414, %416 : vector<16x32xf32>
    %418 = tpu.iota {dimensions = array<i32: 0>} : vector<16x16xi32>
    %419 = tpu.iota {dimensions = array<i32: 1>} : vector<16x16xi32>
    %cst_218 = arith.constant 0.000000e+00 : f32
    %420 = vector.broadcast %cst_218 : f32 to vector<16x32xf32>
    %c0_219 = arith.constant 0 : index
    %c0_220 = arith.constant 0 : index
    %c0_221 = arith.constant 0 : index
    %421 = vector.load %arg5[%c0_219, %c0_220, %c0_221] : memref<3x32x32xf32, #tpu.memory_space<vmem>>, vector<1x32x32xf32>
    %422 = vector.shape_cast %421 : vector<1x32x32xf32> to vector<32x32xf32>
    %cst_222 = arith.constant dense<0.000000e+00> : vector<16x32xf32>
    %423 = tpu.matmul %417, %422, %cst_222 {dimension_numbers = #tpu.dot_dimension_numbers<[1], [0], [0], [1], [0, 0, 1, 1], [], []>} : vector<16x32xf32>, vector<32x32xf32>, vector<16x32xf32> -> vector<16x32xf32>
    %c1_i32_223 = arith.constant 1 : i32
    %424 = vector.broadcast %c1_i32_223 : i32 to vector<16x16xi32>
    %425 = arith.muli %418, %424 : vector<16x16xi32>
    %c-1_i32_224 = arith.constant -1 : i32
    %426 = vector.broadcast %c-1_i32_224 : i32 to vector<16x16xi32>
    %427 = arith.addi %425, %426 : vector<16x16xi32>
    %428 = arith.cmpi eq, %419, %427 : vector<16x16xi32>
    %429 = arith.extui %428 : vector<16x16xi1> to vector<16x16xi32>
    %430 = arith.sitofp %429 : vector<16x16xi32> to vector<16x16xf32>
    %cst_225 = arith.constant dense<0.000000e+00> : vector<16x32xf32>
    %431 = tpu.matmul %430, %423, %cst_225 {dimension_numbers = #tpu.dot_dimension_numbers<[1], [0], [0], [1], [0, 0, 1, 1], [], []>} : vector<16x16xf32>, vector<16x32xf32>, vector<16x32xf32> -> vector<16x32xf32>
    %432 = arith.addf %420, %431 : vector<16x32xf32>
    %c1_226 = arith.constant 1 : index
    %c0_227 = arith.constant 0 : index
    %c0_228 = arith.constant 0 : index
    %433 = vector.load %arg5[%c1_226, %c0_227, %c0_228] : memref<3x32x32xf32, #tpu.memory_space<vmem>>, vector<1x32x32xf32>
    %434 = vector.shape_cast %433 : vector<1x32x32xf32> to vector<32x32xf32>
    %cst_229 = arith.constant dense<0.000000e+00> : vector<16x32xf32>
    %435 = tpu.matmul %417, %434, %cst_229 {dimension_numbers = #tpu.dot_dimension_numbers<[1], [0], [0], [1], [0, 0, 1, 1], [], []>} : vector<16x32xf32>, vector<32x32xf32>, vector<16x32xf32> -> vector<16x32xf32>
    %c1_i32_230 = arith.constant 1 : i32
    %436 = vector.broadcast %c1_i32_230 : i32 to vector<16x16xi32>
    %437 = arith.muli %418, %436 : vector<16x16xi32>
    %c0_i32_231 = arith.constant 0 : i32
    %438 = vector.broadcast %c0_i32_231 : i32 to vector<16x16xi32>
    %439 = arith.addi %437, %438 : vector<16x16xi32>
    %440 = arith.cmpi eq, %419, %439 : vector<16x16xi32>
    %441 = arith.extui %440 : vector<16x16xi1> to vector<16x16xi32>
    %442 = arith.sitofp %441 : vector<16x16xi32> to vector<16x16xf32>
    %cst_232 = arith.constant dense<0.000000e+00> : vector<16x32xf32>
    %443 = tpu.matmul %442, %435, %cst_232 {dimension_numbers = #tpu.dot_dimension_numbers<[1], [0], [0], [1], [0, 0, 1, 1], [], []>} : vector<16x16xf32>, vector<16x32xf32>, vector<16x32xf32> -> vector<16x32xf32>
    %444 = arith.addf %432, %443 : vector<16x32xf32>
    %c2_233 = arith.constant 2 : index
    %c0_234 = arith.constant 0 : index
    %c0_235 = arith.constant 0 : index
    %445 = vector.load %arg5[%c2_233, %c0_234, %c0_235] : memref<3x32x32xf32, #tpu.memory_space<vmem>>, vector<1x32x32xf32>
    %446 = vector.shape_cast %445 : vector<1x32x32xf32> to vector<32x32xf32>
    %cst_236 = arith.constant dense<0.000000e+00> : vector<16x32xf32>
    %447 = tpu.matmul %417, %446, %cst_236 {dimension_numbers = #tpu.dot_dimension_numbers<[1], [0], [0], [1], [0, 0, 1, 1], [], []>} : vector<16x32xf32>, vector<32x32xf32>, vector<16x32xf32> -> vector<16x32xf32>
    %c1_i32_237 = arith.constant 1 : i32
    %448 = vector.broadcast %c1_i32_237 : i32 to vector<16x16xi32>
    %449 = arith.muli %418, %448 : vector<16x16xi32>
    %c1_i32_238 = arith.constant 1 : i32
    %450 = vector.broadcast %c1_i32_238 : i32 to vector<16x16xi32>
    %451 = arith.addi %449, %450 : vector<16x16xi32>
    %452 = arith.cmpi eq, %419, %451 : vector<16x16xi32>
    %453 = arith.extui %452 : vector<16x16xi1> to vector<16x16xi32>
    %454 = arith.sitofp %453 : vector<16x16xi32> to vector<16x16xf32>
    %cst_239 = arith.constant dense<0.000000e+00> : vector<16x32xf32>
    %455 = tpu.matmul %454, %447, %cst_239 {dimension_numbers = #tpu.dot_dimension_numbers<[1], [0], [0], [1], [0, 0, 1, 1], [], []>} : vector<16x16xf32>, vector<16x32xf32>, vector<16x32xf32> -> vector<16x32xf32>
    %456 = arith.addf %444, %455 : vector<16x32xf32>
    %c0_240 = arith.constant 0 : index
    %c0_241 = arith.constant 0 : index
    %457 = vector.load %arg4[%c0_240, %c0_241] : memref<1x32xf32, #tpu.memory_space<vmem>>, vector<1x32xf32>
    %458 = vector.broadcast %457 : vector<1x32xf32> to vector<16x32xf32>
    %459 = arith.addf %456, %458 : vector<16x32xf32>
    %cst_242 = arith.constant 0.000000e+00 : f32
    %460 = vector.broadcast %cst_242 : f32 to vector<16x32xf32>
    %461 = arith.maximumf %459, %460 : vector<16x32xf32>
    %462 = tpu.iota {dimensions = array<i32: 0>} : vector<16x16xi32>
    %463 = tpu.iota {dimensions = array<i32: 1>} : vector<16x16xi32>
    %cst_243 = arith.constant 0.000000e+00 : f32
    %464 = vector.broadcast %cst_243 : f32 to vector<16x3xf32>
    %c0_244 = arith.constant 0 : index
    %c0_245 = arith.constant 0 : index
    %c0_246 = arith.constant 0 : index
    %465 = vector.load %arg7[%c0_244, %c0_245, %c0_246] : memref<3x32x3xf32, #tpu.memory_space<vmem>>, vector<1x32x3xf32>
    %466 = vector.shape_cast %465 : vector<1x32x3xf32> to vector<32x3xf32>
    %cst_247 = arith.constant dense<0.000000e+00> : vector<16x3xf32>
    %467 = tpu.matmul %461, %466, %cst_247 {dimension_numbers = #tpu.dot_dimension_numbers<[1], [0], [0], [1], [0, 0, 1, 1], [], []>} : vector<16x32xf32>, vector<32x3xf32>, vector<16x3xf32> -> vector<16x3xf32>
    %c1_i32_248 = arith.constant 1 : i32
    %468 = vector.broadcast %c1_i32_248 : i32 to vector<16x16xi32>
    %469 = arith.muli %462, %468 : vector<16x16xi32>
    %c-1_i32_249 = arith.constant -1 : i32
    %470 = vector.broadcast %c-1_i32_249 : i32 to vector<16x16xi32>
    %471 = arith.addi %469, %470 : vector<16x16xi32>
    %472 = arith.cmpi eq, %463, %471 : vector<16x16xi32>
    %473 = arith.extui %472 : vector<16x16xi1> to vector<16x16xi32>
    %474 = arith.sitofp %473 : vector<16x16xi32> to vector<16x16xf32>
    %cst_250 = arith.constant dense<0.000000e+00> : vector<16x3xf32>
    %475 = tpu.matmul %474, %467, %cst_250 {dimension_numbers = #tpu.dot_dimension_numbers<[1], [0], [0], [1], [0, 0, 1, 1], [], []>} : vector<16x16xf32>, vector<16x3xf32>, vector<16x3xf32> -> vector<16x3xf32>
    %476 = arith.addf %464, %475 : vector<16x3xf32>
    %c1_251 = arith.constant 1 : index
    %c0_252 = arith.constant 0 : index
    %c0_253 = arith.constant 0 : index
    %477 = vector.load %arg7[%c1_251, %c0_252, %c0_253] : memref<3x32x3xf32, #tpu.memory_space<vmem>>, vector<1x32x3xf32>
    %478 = vector.shape_cast %477 : vector<1x32x3xf32> to vector<32x3xf32>
    %cst_254 = arith.constant dense<0.000000e+00> : vector<16x3xf32>
    %479 = tpu.matmul %461, %478, %cst_254 {dimension_numbers = #tpu.dot_dimension_numbers<[1], [0], [0], [1], [0, 0, 1, 1], [], []>} : vector<16x32xf32>, vector<32x3xf32>, vector<16x3xf32> -> vector<16x3xf32>
    %c1_i32_255 = arith.constant 1 : i32
    %480 = vector.broadcast %c1_i32_255 : i32 to vector<16x16xi32>
    %481 = arith.muli %462, %480 : vector<16x16xi32>
    %c0_i32_256 = arith.constant 0 : i32
    %482 = vector.broadcast %c0_i32_256 : i32 to vector<16x16xi32>
    %483 = arith.addi %481, %482 : vector<16x16xi32>
    %484 = arith.cmpi eq, %463, %483 : vector<16x16xi32>
    %485 = arith.extui %484 : vector<16x16xi1> to vector<16x16xi32>
    %486 = arith.sitofp %485 : vector<16x16xi32> to vector<16x16xf32>
    %cst_257 = arith.constant dense<0.000000e+00> : vector<16x3xf32>
    %487 = tpu.matmul %486, %479, %cst_257 {dimension_numbers = #tpu.dot_dimension_numbers<[1], [0], [0], [1], [0, 0, 1, 1], [], []>} : vector<16x16xf32>, vector<16x3xf32>, vector<16x3xf32> -> vector<16x3xf32>
    %488 = arith.addf %476, %487 : vector<16x3xf32>
    %c2_258 = arith.constant 2 : index
    %c0_259 = arith.constant 0 : index
    %c0_260 = arith.constant 0 : index
    %489 = vector.load %arg7[%c2_258, %c0_259, %c0_260] : memref<3x32x3xf32, #tpu.memory_space<vmem>>, vector<1x32x3xf32>
    %490 = vector.shape_cast %489 : vector<1x32x3xf32> to vector<32x3xf32>
    %cst_261 = arith.constant dense<0.000000e+00> : vector<16x3xf32>
    %491 = tpu.matmul %461, %490, %cst_261 {dimension_numbers = #tpu.dot_dimension_numbers<[1], [0], [0], [1], [0, 0, 1, 1], [], []>} : vector<16x32xf32>, vector<32x3xf32>, vector<16x3xf32> -> vector<16x3xf32>
    %c1_i32_262 = arith.constant 1 : i32
    %492 = vector.broadcast %c1_i32_262 : i32 to vector<16x16xi32>
    %493 = arith.muli %462, %492 : vector<16x16xi32>
    %c1_i32_263 = arith.constant 1 : i32
    %494 = vector.broadcast %c1_i32_263 : i32 to vector<16x16xi32>
    %495 = arith.addi %493, %494 : vector<16x16xi32>
    %496 = arith.cmpi eq, %463, %495 : vector<16x16xi32>
    %497 = arith.extui %496 : vector<16x16xi1> to vector<16x16xi32>
    %498 = arith.sitofp %497 : vector<16x16xi32> to vector<16x16xf32>
    %cst_264 = arith.constant dense<0.000000e+00> : vector<16x3xf32>
    %499 = tpu.matmul %498, %491, %cst_264 {dimension_numbers = #tpu.dot_dimension_numbers<[1], [0], [0], [1], [0, 0, 1, 1], [], []>} : vector<16x16xf32>, vector<16x3xf32>, vector<16x3xf32> -> vector<16x3xf32>
    %500 = arith.addf %488, %499 : vector<16x3xf32>
    %c0_265 = arith.constant 0 : index
    %c0_266 = arith.constant 0 : index
    %501 = vector.load %arg6[%c0_265, %c0_266] : memref<1x3xf32, #tpu.memory_space<vmem>>, vector<1x3xf32>
    %502 = vector.broadcast %501 : vector<1x3xf32> to vector<16x3xf32>
    %503 = arith.addf %500, %502 : vector<16x3xf32>
    %c0_267 = arith.constant 0 : index
    %c0_268 = arith.constant 0 : index
    %c0_269 = arith.constant 0 : index
    %504 = vector.load %arg28[%c0_267, %c0_268, %c0_269] : memref<1x16x3xf32, #tpu.memory_space<vmem>>, vector<1x16x3xf32>
    %505 = vector.shape_cast %504 : vector<1x16x3xf32> to vector<16x3xf32>
    %506 = vector.shape_cast %503 : vector<16x3xf32> to vector<1x16x3xf32>
    tpu.vector_store %arg28[%c0_267, %c0_268, %c0_269], %506 {strides = array<i32>} : memref<1x16x3xf32, #tpu.memory_space<vmem>>, vector<1x16x3xf32>,
    return
  }
  func.func @transform_0(%arg0: i32) -> (i32, i32, i32) {
    %c0_i32 = arith.constant 0 : i32
    %c0_i32_0 = arith.constant 0 : i32
    %c0_i32_1 = arith.constant 0 : i32
    return %arg0, %c0_i32, %c0_i32_0 : i32, i32, i32
  }
  func.func @transform_1(%arg0: i32) -> (i32, i32) {
    %c0_i32 = arith.constant 0 : i32
    %c0_i32_0 = arith.constant 0 : i32
    %c0_i32_1 = arith.constant 0 : i32
    return %c0_i32, %c0_i32_0 : i32, i32
  }
  func.func @transform_2(%arg0: i32) -> (i32, i32, i32) {
    %c0_i32 = arith.constant 0 : i32
    %c0_i32_0 = arith.constant 0 : i32
    %c0_i32_1 = arith.constant 0 : i32
    %c0_i32_2 = arith.constant 0 : i32
    return %c0_i32, %c0_i32_0, %c0_i32_1 : i32, i32, i32
  }
  func.func @transform_3(%arg0: i32) -> (i32, i32) {
    %c0_i32 = arith.constant 0 : i32
    %c0_i32_0 = arith.constant 0 : i32
    %c0_i32_1 = arith.constant 0 : i32
    return %c0_i32, %c0_i32_0 : i32, i32
  }
  func.func @transform_4(%arg0: i32) -> (i32, i32, i32) {
    %c0_i32 = arith.constant 0 : i32
    %c0_i32_0 = arith.constant 0 : i32
    %c0_i32_1 = arith.constant 0 : i32
    %c0_i32_2 = arith.constant 0 : i32
    return %c0_i32, %c0_i32_0, %c0_i32_1 : i32, i32, i32
  }
  func.func @transform_5(%arg0: i32) -> (i32, i32) {
    %c0_i32 = arith.constant 0 : i32
    %c0_i32_0 = arith.constant 0 : i32
    %c0_i32_1 = arith.constant 0 : i32
    return %c0_i32, %c0_i32_0 : i32, i32
  }
  func.func @transform_6(%arg0: i32) -> (i32, i32, i32) {
    %c0_i32 = arith.constant 0 : i32
    %c0_i32_0 = arith.constant 0 : i32
    %c0_i32_1 = arith.constant 0 : i32
    %c0_i32_2 = arith.constant 0 : i32
    return %c0_i32, %c0_i32_0, %c0_i32_1 : i32, i32, i32
  }
  func.func @transform_7(%arg0: i32) -> (i32, i32) {
    %c0_i32 = arith.constant 0 : i32
    %c0_i32_0 = arith.constant 0 : i32
    %c0_i32_1 = arith.constant 0 : i32
    return %c0_i32, %c0_i32_0 : i32, i32
  }
  func.func @transform_8(%arg0: i32) -> (i32, i32, i32) {
    %c0_i32 = arith.constant 0 : i32
    %c0_i32_0 = arith.constant 0 : i32
    %c0_i32_1 = arith.constant 0 : i32
    %c0_i32_2 = arith.constant 0 : i32
    return %c0_i32, %c0_i32_0, %c0_i32_1 : i32, i32, i32
  }
  func.func @transform_9(%arg0: i32) -> (i32, i32) {
    %c0_i32 = arith.constant 0 : i32
    %c0_i32_0 = arith.constant 0 : i32
    %c0_i32_1 = arith.constant 0 : i32
    return %c0_i32, %c0_i32_0 : i32, i32
  }
  func.func @transform_10(%arg0: i32) -> (i32, i32, i32) {
    %c0_i32 = arith.constant 0 : i32
    %c0_i32_0 = arith.constant 0 : i32
    %c0_i32_1 = arith.constant 0 : i32
    %c0_i32_2 = arith.constant 0 : i32
    return %c0_i32, %c0_i32_0, %c0_i32_1 : i32, i32, i32
  }
  func.func @transform_11(%arg0: i32) -> (i32, i32) {
    %c0_i32 = arith.constant 0 : i32
    %c0_i32_0 = arith.constant 0 : i32
    %c0_i32_1 = arith.constant 0 : i32
    return %c0_i32, %c0_i32_0 : i32, i32
  }
  func.func @transform_12(%arg0: i32) -> (i32, i32, i32) {
    %c0_i32 = arith.constant 0 : i32
    %c0_i32_0 = arith.constant 0 : i32
    %c0_i32_1 = arith.constant 0 : i32
    %c0_i32_2 = arith.constant 0 : i32
    return %c0_i32, %c0_i32_0, %c0_i32_1 : i32, i32, i32
  }
  func.func @transform_13(%arg0: i32) -> (i32, i32) {
    %c0_i32 = arith.constant 0 : i32
    %c0_i32_0 = arith.constant 0 : i32
    %c0_i32_1 = arith.constant 0 : i32
    return %c0_i32, %c0_i32_0 : i32, i32
  }
  func.func @transform_14(%arg0: i32) -> (i32, i32, i32) {
    %c0_i32 = arith.constant 0 : i32
    %c0_i32_0 = arith.constant 0 : i32
    %c0_i32_1 = arith.constant 0 : i32
    %c0_i32_2 = arith.constant 0 : i32
    return %c0_i32, %c0_i32_0, %c0_i32_1 : i32, i32, i32
  }
  func.func @transform_15(%arg0: i32) -> (i32, i32) {
    %c0_i32 = arith.constant 0 : i32
    %c0_i32_0 = arith.constant 0 : i32
    %c0_i32_1 = arith.constant 0 : i32
    return %c0_i32, %c0_i32_0 : i32, i32
  }
  func.func @transform_16(%arg0: i32) -> (i32, i32, i32) {
    %c0_i32 = arith.constant 0 : i32
    %c0_i32_0 = arith.constant 0 : i32
    %c0_i32_1 = arith.constant 0 : i32
    %c0_i32_2 = arith.constant 0 : i32
    return %c0_i32, %c0_i32_0, %c0_i32_1 : i32, i32, i32
  }
  func.func @transform_17(%arg0: i32) -> (i32, i32) {
    %c0_i32 = arith.constant 0 : i32
    %c0_i32_0 = arith.constant 0 : i32
    %c0_i32_1 = arith.constant 0 : i32
    return %c0_i32, %c0_i32_0 : i32, i32
  }
  func.func @transform_18(%arg0: i32) -> (i32, i32, i32) {
    %c0_i32 = arith.constant 0 : i32
    %c0_i32_0 = arith.constant 0 : i32
    %c0_i32_1 = arith.constant 0 : i32
    %c0_i32_2 = arith.constant 0 : i32
    return %c0_i32, %c0_i32_0, %c0_i32_1 : i32, i32, i32
  }
  func.func @transform_19(%arg0: i32) -> (i32, i32) {
    %c0_i32 = arith.constant 0 : i32
    %c0_i32_0 = arith.constant 0 : i32
    %c0_i32_1 = arith.constant 0 : i32
    return %c0_i32, %c0_i32_0 : i32, i32
  }
  func.func @transform_20(%arg0: i32) -> (i32, i32, i32) {
    %c0_i32 = arith.constant 0 : i32
    %c0_i32_0 = arith.constant 0 : i32
    %c0_i32_1 = arith.constant 0 : i32
    %c0_i32_2 = arith.constant 0 : i32
    return %c0_i32, %c0_i32_0, %c0_i32_1 : i32, i32, i32
  }
  func.func @transform_21(%arg0: i32) -> (i32, i32) {
    %c0_i32 = arith.constant 0 : i32
    %c0_i32_0 = arith.constant 0 : i32
    %c0_i32_1 = arith.constant 0 : i32
    return %c0_i32, %c0_i32_0 : i32, i32
  }
  func.func @transform_22(%arg0: i32) -> (i32, i32, i32) {
    %c0_i32 = arith.constant 0 : i32
    %c0_i32_0 = arith.constant 0 : i32
    %c0_i32_1 = arith.constant 0 : i32
    %c0_i32_2 = arith.constant 0 : i32
    return %c0_i32, %c0_i32_0, %c0_i32_1 : i32, i32, i32
  }
  func.func @transform_23(%arg0: i32) -> (i32, i32) {
    %c0_i32 = arith.constant 0 : i32
    %c0_i32_0 = arith.constant 0 : i32
    %c0_i32_1 = arith.constant 0 : i32
    return %c0_i32, %c0_i32_0 : i32, i32
  }
  func.func @transform_24(%arg0: i32) -> (i32, i32, i32) {
    %c0_i32 = arith.constant 0 : i32
    %c0_i32_0 = arith.constant 0 : i32
    %c0_i32_1 = arith.constant 0 : i32
    %c0_i32_2 = arith.constant 0 : i32
    return %c0_i32, %c0_i32_0, %c0_i32_1 : i32, i32, i32
  }
  func.func @transform_25(%arg0: i32) -> (i32, i32) {
    %c0_i32 = arith.constant 0 : i32
    %c0_i32_0 = arith.constant 0 : i32
    %c0_i32_1 = arith.constant 0 : i32
    return %c0_i32, %c0_i32_0 : i32, i32
  }
  func.func @transform_26(%arg0: i32) -> (i32, i32, i32) {
    %c0_i32 = arith.constant 0 : i32
    %c0_i32_0 = arith.constant 0 : i32
    %c0_i32_1 = arith.constant 0 : i32
    %c0_i32_2 = arith.constant 0 : i32
    return %c0_i32, %c0_i32_0, %c0_i32_1 : i32, i32, i32
  }
  func.func @transform_27(%arg0: i32) -> (i32, i32, i32) {
    %c0_i32 = arith.constant 0 : i32
    %c0_i32_0 = arith.constant 0 : i32
    %c0_i32_1 = arith.constant 0 : i32
    return %arg0, %c0_i32, %c0_i32_0 : i32, i32, i32
  }
}

</mosaic_0001>

<bundles_post_ra>
// kernel: pose_vqvae_forward.4
= control target key start
LH: loop header
LB: loop body
LE: loop exit
PB: predicated region body
PF: predicated region fallthrough
CT: control target
= control target key end

     0   :  { %10 = vsyncpa [#allocation3], 0  ;;  %vm26_vm0 = vcmask 261120   ;;  %v617_v2 = vmov 0.0|0.0   ;;  %vm618_vm2 = vmmov 0   ;;  %v619_v9 = vmov 0.0   ;;  %s750_s0 = inlined_call_operand.vmem [shape: f32[8,32], index: 0, kind: input, shape index: {}]   ;;  %s751_s1 = inlined_call_operand.vmem [shape: f32[64,32], index: 1, kind: input, shape index: {}]   ;;  %s752_s2 = inlined_call_operand.vmem [shape: f32[8,32], index: 2, kind: output, shape index: {0}]   ;;  %s753_s3 = inlined_call_operand.hbm [shape: f32[1,1], index: 3, kind: output, shape index: {1}]   ;;  %s754_s4 = inlined_call_operand.hbm [shape: f32[1,1], index: 4, kind: output, shape index: {2}]  }
   0x1   :  { %v17_v0 = vld [vmem:[%s751_s1] sm:$0xff]  ;;  %v18_v1 = vld [vmem:[%s751_s1 + $0x8] sm:$0xff]  ;;  %513 = vmatprep.subr.bf16.mxu0 %v617_v2  ;;  %vm656_vm1 = vmpackc.low %vm26_vm0, %vm26_vm0  ;;  %529 = vmatprep.subr.bf16.mxu1 %v617_v2 }
   0x2   :  { %v514_v3 = vpack.c.bf16 %v18_v1, %v17_v0  ;;  %v127_v5 = vmul.f32 %v17_v0, %v17_v0  ;;  %v128_v6 = vmul.f32 %v18_v1, %v18_v1  ;;  %v19_v7 = vld [vmem:[%s751_s1 + $0x10] sm:$0xff]  ;;  %v20_v8 = vld [vmem:[%s751_s1 + $0x18] sm:$0xff]  ;;  %472 = vmatprep.mubr.msk.f32.mxu0 %vm618_vm2, %v619_v9 }
   0x4   :  { %516 = vmatpush3.bf16.xpose.msk.msra.mxu0 %vm656_vm1, %v514_v3  ;;  %v530_v10 = vpack.c.bf16 %v128_v6, %v127_v5 }
   0x5   :  { %11 = vsyncpa [#allocation5], 0  ;;  %517 = vmatprep.subr.bf16.mxu0 %v617_v2  ;;  %v673_v11 = vld [vmem:[%s750_s0] sm:$0xff]  ;;  %491 = vmatprep.mubr.msk.f32.mxu1 %vm618_vm2, %v619_v9  ;;  %v129_v12 = vmul.f32 %v19_v7, %v19_v7  ;;  %v130_v13 = vmul.f32 %v20_v8, %v20_v8  ;;  %v518_v15 = vpack.c.bf16 %v20_v8, %v19_v7  ;;  %v22_v19 = vld [vmem:[%s751_s1 + $0x28] sm:$0xff]  ;;  %v620_v30 = vmov 1.0   ;;  %s621_s7 = smov [#allocation4]  }
   0x6   :  { %532 = vmatpush3.bf16.xpose.msk.msra.mxu1 %vm656_vm1, %v530_v10  ;;  %v25_v14 = vmul.f32 %v673_v11, %v673_v11  ;;  %v21_v18 = vld [vmem:[%s751_s1 + $0x20] sm:$0xff]  ;;  %v132_v21 = vmul.f32 %v22_v19, %v22_v19  ;;  %v23_v24 = vld [vmem:[%s751_s1 + $0x30] sm:$0xff]  ;;  %v24_v25 = vld [vmem:[%s751_s1 + $0x38] sm:$0xff]  ;;  %v234_v31 = vlaneseq  ;;  %vm241_vm3 = vcmask 523264   ;;  %s395_s8 = sshll.u32 %s621_s7, 4  ;;  %s396_s8 = int_to_ptr.vmem [resolvable:$true] %s395_s8 }
   0x7   :  { %533 = vmatprep.subr.bf16.mxu1 %v617_v2  ;;  %v534_v17 = vpack.c.bf16 %v130_v13, %v129_v12  ;;  %v131_v20 = vmul.f32 %v21_v18, %v21_v18  ;;  %v522_v22 = vpack.c.bf16 %v22_v19, %v21_v18  ;;  %v133_v26 = vmul.f32 %v23_v24, %v23_v24  ;;  %s569_s9 = scalar_lea.vmem %s396_s8, 16  ;;  %p574_p1 = scmp.lt.s32.totalorder %s396_s8, %s396_s8 }
   0x8   :  { %v27_v16 = vsel %vm26_vm0, %v25_v14, 0.0  ;;  %v134_v27 = vmul.f32 %v24_v25, %v24_v25  ;;  %v526_v28 = vpack.c.bf16 %v24_v25, %v23_v24  ;;  %v235_v32 = vshrl.u32 %v234_v31, 7  ;;  %p570_p0 = scmp.ne.s32.totalorder %s396_s8, %s569_s9 }
   0x9   :  { %28 = vadd.xlane.f32.xlu0 %v27_v16  ;;  %v538_v23 = vpack.c.bf16 %v132_v21, %v131_v20  ;;  %v240_v44 = vand.u32 127, %v234_v31  ;;  %vm352_vm7 = vcmask 0  }
   0xa   :  { %v542_v29 = vpack.c.bf16 %v134_v27, %v133_v26  ;;  %v236_v33 = vsub.s32 0, %v235_v32 }
   0xc   :  { %520 = vmatpush3.bf16.xpose.msk.msra.mxu0 %vm656_vm1, %v518_v15 }
   0xd   :  { %521 = vmatprep.subr.bf16.mxu0 %v617_v2 }
   0xe   :  { %536 = vmatpush3.bf16.xpose.msk.msra.mxu1 %vm656_vm1, %v534_v17 }
   0xf   :  { %537 = vmatprep.subr.bf16.mxu1 %v617_v2 }
  0x14   :  { %524 = vmatpush3.bf16.xpose.msk.msra.mxu0 %vm656_vm1, %v522_v22 }
  0x15   :  { %525 = vmatprep.subr.bf16.mxu0 %v617_v2 }
  0x16   :  { %540 = vmatpush3.bf16.xpose.msk.msra.mxu1 %vm656_vm1, %v538_v23 }
  0x17   :  { %541 = vmatprep.subr.bf16.mxu1 %v617_v2 }
  0x1c   :  { %528 = vmatpush3.bf16.xpose.msk.msra.mxu0 %vm656_vm1, %v526_v28 }
  0x1d   :  { %545 = vmatprep.subr.bf16.mxu0 %v617_v2 }
  0x1e   :  { %544 = vmatpush3.bf16.xpose.msk.msra.mxu1 %vm656_vm1, %v542_v29 }
  0x23   :  { %473 = vmatmul.mubr.msk.f32.vlgmr.msra.gmra.mrb[0].mxu0 %vm26_vm0, %v673_v11 }
  0x24   :  { %547 = vmatpush3.bf16.msra.mxu0 %v514_v3  ;;  %510 = vmatprep.mubr.msk.f32.mxu0 %vm618_vm2, %v619_v9 }
  0x25   :  { %492 = vmatmul.mubr.msk.f32.vlgmr.msra.gmra.mrb[0].mxu1 %vm26_vm0, %v620_v30  ;;  %548 = vmatprep.subr.bf16.mxu0 %v617_v2 }
  0x28   :  { %550 = vmatpush3.bf16.msra.mxu0 %v518_v15 }
  0x29   :  { %551 = vmatprep.subr.bf16.mxu0 %v617_v2 }
  0x2c   :  { %553 = vmatpush3.bf16.msra.mxu0 %v522_v22 }
  0x2d   :  { %554 = vmatprep.subr.bf16.mxu0 %v617_v2 }
  0x30   :  { %556 = vmatpush3.bf16.msra.mxu0 %v526_v28 }
  0x96   :  { %v29_v35 = vpop.xlane.xlu0 %28 }
  0xf6   :  { %v123_v34 = vpop.f32.mrb[0].mxu0 }
  0xf7   :  { %v232_v36 = vmul.f32 2.0, %v123_v34  ;;  %v474_v37 = vpop.f32.mrb[1].mxu0 }
  0xf8   :  { %v228_v38 = vpop.f32.mrb[0].mxu1 }
  0xf9   :  { %v237_v39 = vrot.slane %v228_v38, %v236_v33  ;;  %v233_v40 = vsub.f32 %v29_v35, %v232_v36  ;;  %v493_v41 = vpop.f32.mrb[1].mxu1 }
  0xfb   :  { %v238_v42 = vadd.f32 %v237_v39, %v233_v40 }
  0xfd   :  { %v242_v43 = vsel %vm241_vm3, %v238_v42, inf }
  0xfe   :  { %243 = vmin.xlane.f32.xlu0 %v242_v43 }
 0x18b   :  { %v244_v45 = vpop.xlane.xlu0 %243 }
 0x18c   :  { %vm245_vm4 = vcmp.le.f32.partialorder %v238_v42, %v244_v45 }
 0x18d   :  { %v246_v46 = vsel %vm245_vm4, %v240_v44, 64 }
 0x18e   :  { %v247_v47 = vsel %vm241_vm3, %v246_v46, 2147483647 }
 0x18f   :  { %v249_v48 = vshra.s32 %v247_v47, 16  ;;  %v248_v50 = vand.u32 65535, %v247_v47 }
 0x191   :  { %v251_v49 = vcvt.s32.f32 %v249_v48  ;;  %v250_v52 = vcvt.s32.f32 %v248_v50 }
 0x193   :  { %252 = vmin.xlane.f32.xlu1 %v251_v49 }
 0x220   :  { %v253_v51 = vpop.xlane.xlu1 %252 }
 0x221   :  { %vm254_vm5 = vcmp.eq.f32.partialorder %v251_v49, %v253_v51  ;;  %v259_v54 = vcvt.f32.s32 %v253_v51 }
 0x222   :  { %v255_v53 = vsel %vm254_vm5, %v250_v52, inf }
 0x223   :  { %256 = vmin.xlane.f32.xlu1 %v255_v53  ;;  %v260_v56 = vshll.u32 %v259_v54, 16 }
 0x2b0   :  { %v257_v55 = vpop.xlane.xlu1 %256 }
 0x2b1   :  { %v258_v57 = vcvt.f32.s32 %v257_v55 }
 0x2b3   :  { %v261_v58 = vadd.s32 %v260_v56, %v258_v57 }
 0x2b5   :  { %vm262_vm6 = vcmp.eq.s32.totalorder %v240_v44, %v261_v58 }
 0x2b6   :  { %v427_v59 = vsel %vm262_vm6, 1.0, %v619_v9 }
 0x2b7   :  { %v354_v60 = vsel %vm241_vm3, %v427_v59, 0.0  ;;  %511 = vmatmul.mubr.msk.f32.vlgmr.msra.gmra.mrb[2].mxu0 %vm241_vm3, %v427_v59 }
 0x2b8   :  { %v355_v61 = vrot.slane %v354_v60, 4 }
 0x2ba   :  { %v356_v62 = vadd.f32 %v355_v61, %v354_v60 }
 0x2bc   :  { %v357_v63 = vrot.slane %v356_v62, 2 }
 0x2be   :  { %v358_v0 = vadd.f32 %v357_v63, %v356_v62 }
 0x2c0   :  { %v359_v1 = vrot.slane %v358_v0, 1 }
 0x2c2   :  { %v360_v2 = vadd.f32 %v359_v1, %v358_v0 }
 0x2c4   :  { %v361_v3 = vsel %vm241_vm3, %v360_v2, 0.0 }
 0x2c5   :  { %362 = vadd.xlane.f32.xlu0 %v361_v3 }
 0x352   :  { %v363_v4 = vpop.xlane.xlu0 %362 }
 0x353   :  { %563 = vrcp.f32 %v363_v4 }
 0x35d   :  { %v564_v5 = vpop.eup %563 }
 0x35e   :  { %v365_v6 = vmul.f32 %v564_v5, %v360_v2 }
 0x360   :  { %v366_v7 = vadd.f32 1e-07, %v365_v6 }
 0x362   :  { %565 = vlog2.f32 %v366_v7 }
 0x36c   :  { %v566_v8 = vpop.eup %565 }
 0x36d   :  { %v368_v9 = vmul.f32 0.6931472, %v566_v8 }
 0x36f   :  { %v369_v10 = vmul.f32 %v368_v9, %v365_v6 }
 0x371   :  { %v370_v12 = vsel %vm241_vm3, %v369_v10, 0.0 }
 0x372   :  { %371 = vadd.xlane.f32.xlu1 %v370_v12 }
 0x38a   :  { %v334_v13 = vpop.f32.mrb[2].mxu0 }
 0x38b   :  { %338 = vst.msk [vmem:[%s752_s2] sm:$0xff] %vm26_vm0, %v334_v13  ;;  %v339_v14 = vsub.f32 %v673_v11, %v334_v13  ;;  %v512_v15 = vpop.f32.mrb[3].mxu0  ;;  %s573_s2 = scalar_lea.vmem %s396_s8, 32 }
 0x38c   :  { %p575_p2 = scmp.lt.s32.totalorder %s573_s2, %s569_s9 }
 0x38d   :  { %v340_v16 = vmul.f32 %v339_v14, %v339_v14 }
 0x38e   :  { %p576_p3 = por %p575_p2, %p574_p1 }
 0x38f   :  { %v341_v17 = vsel %vm26_vm0, %v340_v16, 0.0 }
 0x390   :  { %342 = vadd.xlane.f32.xlu0 %v341_v17  ;;  %p577_p4 = pnand %p576_p3, %p570_p0 }
 0x3ff   :  { %v372_v18 = vpop.xlane.xlu1 %371 }
 0x400   :  { %v373_v19 = vsub.f32 0.0, %v372_v18 }
 0x402   :  { %v374_v20 = vmul.f32 1.442695, %v373_v19 }
 0x404   :  { %567 = vpow2.f32 %v374_v20 }
 0x40e   :  { %v568_v21 = vpop.eup %567 }
 0x40f   :  { %376 = vst.msk [vmem:[#allocation4] sm:$0x1] %vm352_vm7, %v568_v21 }
 0x410   :  { %580 = shalt.err (!%p577_p4)
}
 0x411   :  { %s581_s12 = scalar_lea.hbm %s754_s4, 16 }
 0x412   :  { %p582_p5 = scmp.ne.s32.totalorder %s754_s4, %s581_s12  ;;  %p585_p6 = scmp.lt.u32.totalorder %s581_s12, %s754_s4 }
 0x414   :  { %p587_p7 = pnand %p585_p6, %p582_p5 }
 0x416   :  { %590 = shalt.err (!%p587_p7)
}
 0x417   :  { %398 = dma.vmem_to_hbm [thread:$0]  %s396_s8, 16, %s754_s4, [#allocation5]  }
 0x418   :  { %s622_s19 = smov [#allocation2]  }
 0x419   :  { %s385_s20 = sshll.u32 %s622_s19, 4  ;;  %s386_s20 = int_to_ptr.vmem [resolvable:$true] %s385_s20 }
 0x41a   :  { %s591_s21 = scalar_lea.vmem %s386_s20, 16  ;;  %s595_s22 = scalar_lea.vmem %s386_s20, 32 }
 0x41b   :  { %p592_p8 = scmp.ne.s32.totalorder %s386_s20, %s591_s21  ;;  %p596_p9 = scmp.lt.s32.totalorder %s386_s20, %s386_s20 }
 0x41c   :  { %p597_p10 = scmp.lt.s32.totalorder %s595_s22, %s591_s21 }
 0x41d   :  { %v343_v11 = vpop.xlane.xlu0 %342 }
 0x41e   :  { %v344_v22 = vrot.slane %v343_v11, 4  ;;  %p598_p11 = por %p597_p10, %p596_p9 }
 0x420   :  { %v345_v23 = vadd.f32 %v344_v22, %v343_v11  ;;  %p599_p12 = pnand %p598_p11, %p592_p8 }
 0x422   :  { %v346_v24 = vrot.slane %v345_v23, 2 }
 0x424   :  { %v347_v25 = vadd.f32 %v346_v24, %v345_v23 }
 0x426   :  { %v348_v26 = vrot.slane %v347_v25, 1 }
 0x428   :  { %v349_v27 = vadd.f32 %v348_v26, %v347_v25 }
 0x42a   :  { %v351_v28 = vmul.f32 0.00390625, %v349_v27 }
 0x42c   :  { %353 = vst.msk [vmem:[#allocation2] sm:$0x1] %vm352_vm7, %v351_v28 }
 0x42d   :  { %602 = shalt.err (!%p599_p12)
}
 0x42e   :  { %s603_s24 = scalar_lea.hbm %s753_s3, 16 }
 0x42f   :  { %p604_p13 = scmp.ne.s32.totalorder %s753_s3, %s603_s24  ;;  %p607_p0 = scmp.lt.u32.totalorder %s603_s24, %s753_s3 }
 0x431   :  { %p609_p1 = pnand %p607_p0, %p604_p13 }
 0x433   :  { %612 = shalt.err (!%p609_p1)
}
 0x434   :  { %388 = dma.vmem_to_hbm [thread:$0]  %s386_s20, 16, %s753_s3, [#allocation3]  }
 0x435   :  { %613 = dma.done.wait [#allocation3], 16  }
 0x436   :  { %614 = vsyncadd [#allocation3], 4294967280 }
 0x437   :  { %615 = dma.done.wait [#allocation5], 16  }
 0x438   :  { %616 = vsyncadd [#allocation5], 4294967280 }
 0x439   :  { %407 = vsyncpa [#allocation3], 1 }
 0x43a   :  { %408 = vsyncpa [#allocation5], 1 }

// kernel: pose_vqvae_forward.3
= control target key start
LH: loop header
LB: loop body
LE: loop exit
PB: predicated region body
PF: predicated region fallthrough
CT: control target
= control target key end

     0   :  { %s8880_s0 = inlined_call_operand.vmem [shape: f32[2,16,3], index: 0, kind: input, shape index: {}]   ;;  %s8881_s1 = inlined_call_operand.vmem [shape: f32[1,32], index: 1, kind: input, shape index: {}]   ;;  %s8882_s2 = inlined_call_operand.hbm [shape: f32[3,3,32], index: 2, kind: input, shape index: {}]   ;;  %s8883_s3 = inlined_call_operand.hbm [shape: f32[1,32], index: 3, kind: input, shape index: {}]   ;;  %s8884_s4 = inlined_call_operand.hbm [shape: f32[3,32,32], index: 4, kind: input, shape index: {}]   ;;  %s8885_s5 = inlined_call_operand.hbm [shape: f32[1,32], index: 5, kind: input, shape index: {}]   ;;  %s8886_s6 = inlined_call_operand.vmem [shape: f32[4,32,32], index: 6, kind: input, shape index: {}]   ;;  %s8887_s7 = inlined_call_operand.hbm [shape: f32[1,32], index: 7, kind: input, shape index: {}]   ;;  %s8888_s8 = inlined_call_operand.hbm [shape: f32[3,32,32], index: 8, kind: input, shape index: {}]   ;;  %s8889_s9 = inlined_call_operand.hbm [shape: f32[1,32], index: 9, kind: input, shape index: {}]   ;;  %s8890_s10 = inlined_call_operand.vmem [shape: f32[1,32,32], index: 10, kind: input, shape index: {}]   ;;  %s8891_s11 = inlined_call_operand.hbm [shape: f32[1,32], index: 11, kind: input, shape index: {}]   ;;  %s8892_s12 = inlined_call_operand.hbm [shape: f32[3,32,32], index: 12, kind: input, shape index: {}]   ;;  %s8893_s13 = inlined_call_operand.hbm [shape: f32[1,32], index: 13, kind: input, shape index: {}]   ;;  %s8894_s14 = inlined_call_operand.hbm [shape: f32[1,32,32], index: 14, kind: input, shape index: {}]   ;;  %s8895_s15 = inlined_call_operand.hbm [shape: f32[1,32], index: 15, kind: input, shape index: {}]   ;;  %s8896_s16 = inlined_call_operand.hbm [shape: f32[4,32,32], index: 16, kind: input, shape index: {}]   ;;  %s8897_s17 = inlined_call_operand.hbm [shape: f32[1,32], index: 17, kind: input, shape index: {}]   ;;  %s8898_s18 = inlined_call_operand.hbm [shape: f32[3,32,32], index: 18, kind: input, shape index: {}]   ;;  %s8899_s19 = inlined_call_operand.hbm [shape: f32[1,32], index: 19, kind: input, shape index: {}]   ;;  %s8900_s20 = inlined_call_operand.vmem [shape: f32[1,32,32], index: 20, kind: input, shape index: {}]   ;;  %s8901_s21 = inlined_call_operand.hbm [shape: f32[1,32], index: 21, kind: input, shape index: {}]   ;;  %s8902_s22 = inlined_call_operand.hbm [shape: f32[3,32,32], index: 22, kind: input, shape index: {}]   ;;  %s8903_s23 = inlined_call_operand.hbm [shape: f32[1,32], index: 23, kind: input, shape index: {}]   ;;  %s8904_s24 = inlined_call_operand.vmem [shape: f32[1,32,32], index: 24, kind: input, shape index: {}]   ;;  %s8905_s25 = inlined_call_operand.vmem [shape: f32[2,4,32], index: 25, kind: output, shape index: {}]  }
   0x1   :  { %8927 = sst [smem:[#allocation42_spill]] %s8880_s0 }
   0x2   :  { %8928 = sst [smem:[#allocation43_spill]] %s8881_s1 }
   0x3   :  { %8929 = sst [smem:[#allocation44_spill]] %s8882_s2 }
   0x4   :  { %8930 = sst [smem:[#allocation45_spill]] %s8883_s3 }
   0x5   :  { %8931 = sst [smem:[#allocation46_spill]] %s8884_s4 }
   0x6   :  { %8932 = sst [smem:[#allocation47_spill]] %s8885_s5 }
   0x7   :  { %8933 = sst [smem:[#allocation48_spill]] %s8886_s6 }
   0x8   :  { %8934 = sst [smem:[#allocation49_spill]] %s8887_s7 }
   0x9   :  { %8935 = sst [smem:[#allocation50_spill]] %s8888_s8 }
   0xa   :  { %8936 = sst [smem:[#allocation51_spill]] %s8889_s9 }
   0xb   :  { %8937 = sst [smem:[#allocation52_spill]] %s8890_s10 }
   0xc   :  { %8938 = sst [smem:[#allocation53_spill]] %s8891_s11 }
   0xd   :  { %8939 = sst [smem:[#allocation54_spill]] %s8893_s13 }
   0xe   :  { %8940 = sst [smem:[#allocation55_spill]] %s8895_s15 }
   0xf   :  { %8941 = sst [smem:[#allocation56_spill]] %s8897_s17 }
  0x10   :  { %8942 = sst [smem:[#allocation57_spill]] %s8899_s19 }
  0x11   :  { %8943 = sst [smem:[#allocation58_spill]] %s8900_s20 }
  0x12   :  { %8944 = sst [smem:[#allocation59_spill]] %s8904_s24 }
  0x13   :  { %8945 = sst [smem:[#allocation60_spill]] %s8905_s25 }
  0x14   :  { %30 = vsyncpa [#allocation3], 0 }
  0x15   :  { %31 = vsyncpa [#allocation5], 0 }
  0x16   :  { %32 = vsyncpa [#allocation8], 0 }
  0x17   :  { %33 = vsyncpa [#allocation11], 0 }
  0x18   :  { %34 = vsyncpa [#allocation14], 0 }
  0x19   :  { %35 = vsyncpa [#allocation17], 0 }
  0x1a   :  { %36 = vsyncpa [#allocation20], 0 }
  0x1b   :  { %37 = vsyncpa [#allocation23], 0 }
  0x1c   :  { %38 = vsyncpa [#allocation26], 0 }
  0x1d   :  { %39 = vsyncpa [#allocation29], 0  ;;  %s7959_s29 = smov 0  }
  0x1e LB: > { %8946 = sst [smem:[#allocation41_spill]] %s7801_s29  ;;  %s7803_s2 = smov [#allocation4]   ;;  %s7801_s29 = sphi %s7959_s29, %s45_s29  }
  0x1f   : > { %s635_s6 = sshll.u32 %s7803_s2, 4  ;;  %s7965_s30 = sadd.s32 4294967295, %s7801_s29   ;;  %s7970_s6 = int_to_ptr.vmem [resolvable:$true] %s635_s6 }
  0x20   : > { %p5958_p0 = scmp.ge.s32.totalorder %s7801_s29, 1  ;;  %p606_p1 = scmp.lt.s32.totalorder %s7801_s29, 3 }
  0x21   : > { %p8919_p2 = scmp.eq.s32.totalorder %s7965_s30, 0  ;;  %s7804_s3 = smov [#allocation7]  }
  0x22   : > { %p7972_p3 = pnand %p5958_p0, %p606_p1  ;;  %s659_s26 = sshll.u32 %s7804_s3, 4  ;;  %s7978_s26 = int_to_ptr.vmem [resolvable:$true] %s659_s26 }
  0x23   : > { %s7805_s8 = smov [#allocation10]   ;;  %s7806_s4 = smov [#allocation13]  }
  0x24   : > { %s8947_s7 = scalar_select %p7972_p3, 1, 0 }
  0x25   : > { %p7093_p4 = pneg %p7972_p3  ;;  %s683_s27 = sshll.u32 %s7805_s8, 4  ;;  %s7986_s27 = int_to_ptr.vmem [resolvable:$true] %s683_s27 }
  0x26   : > { %s7988_s28 = sshll.u32 %s7806_s4, 4  ;;  %s8949_s0 = sld [smem:[#allocation45_spill]]  ;;  %s712_s28 = int_to_ptr.vmem [resolvable:$true] %s7988_s28 }
  0x27   : > { %p7982_p5 = pnand %p8919_p2, %p7093_p4 }
  0x29   : > { %p7998_p7 = pneg %p7982_p5 }
  0x2c   : > { %s7223_s2 = scalar_lea.hbm %s8949_s0, 16 }
  0x2d   : > { %p7224_p6 = scmp.ne.s32.totalorder %s8949_s0, %s7223_s2  ;;  %p7230_p10 = scmp.lt.u32.totalorder %s7223_s2, %s8949_s0 }
  0x2f   : > { %p7226_p8 = pnand %p7998_p7, %p7224_p6 }
  0x31   : > { %p7227_p9 = pneg %p7226_p8 }
  0x33   : > { %p7232_p11 = pnand %p7230_p10, %p7227_p9 }
  0x35   : > { %7235 = shalt.err (!%p7232_p11)
}
  0x36   : > { %s7236_s29 = scalar_lea.vmem %s7970_s6, 16  ;;  %s7243_s9 = scalar_lea.vmem %s7970_s6, 32 }
  0x37   : > { %p7237_p12 = scmp.ne.s32.totalorder %s7970_s6, %s7236_s29  ;;  %p7244_p1 = scmp.lt.s32.totalorder %s7970_s6, %s7970_s6 }
  0x38   : > { %p7245_p4 = scmp.lt.s32.totalorder %s7243_s9, %s7236_s29 }
  0x39   : > { %p7239_p13 = pnand %p7237_p12, %p7998_p7 }
  0x3a   : > { %p7246_p6 = por %p7245_p4, %p7244_p1 }
  0x3b   : > { %p7240_p0 = pneg %p7239_p13 }
  0x3d   : > { %p7247_p8 = pnand %p7246_p6, %p7240_p0 }
  0x3f   : > { %7250 = shalt.err (!%p7247_p8)
}
  0x40   : > { %7099 = dma.hbm_to_vmem [thread:$0]  (!%p7982_p5), %s8949_s0, 16, %s7970_s6, [#allocation5]  }
  0x41   : > { %s8951_s4 = sld [smem:[#allocation47_spill]] }
  0x47   : > { %s7251_s24 = scalar_lea.hbm %s8951_s4, 16 }
  0x48   : > { %p7252_p9 = scmp.ne.s32.totalorder %s8951_s4, %s7251_s24  ;;  %p7258_p12 = scmp.lt.u32.totalorder %s7251_s24, %s8951_s4 }
  0x4a   : > { %p7254_p10 = pnand %p7252_p9, %p7998_p7 }
  0x4c   : > { %p7255_p11 = pneg %p7254_p10 }
  0x4e   : > { %p7260_p13 = pnand %p7258_p12, %p7255_p11 }
  0x50   : > { %7263 = shalt.err (!%p7260_p13)
}
  0x51   : > { %s7264_s6 = scalar_lea.vmem %s7978_s26, 16  ;;  %s7271_s10 = scalar_lea.vmem %s7978_s26, 32 }
  0x52   : > { %p7265_p0 = scmp.ne.s32.totalorder %s7978_s26, %s7264_s6  ;;  %p7272_p6 = scmp.lt.s32.totalorder %s7978_s26, %s7978_s26 }
  0x53   : > { %p7273_p8 = scmp.lt.s32.totalorder %s7271_s10, %s7264_s6 }
  0x54   : > { %p7267_p1 = pnand %p7265_p0, %p7998_p7 }
  0x55   : > { %p7274_p9 = por %p7273_p8, %p7272_p6 }
  0x56   : > { %p7268_p4 = pneg %p7267_p1 }
  0x58   : > { %p7275_p10 = pnand %p7274_p9, %p7268_p4 }
  0x5a   : > { %7278 = shalt.err (!%p7275_p10)
}
  0x5b   : > { %7105 = dma.hbm_to_vmem [thread:$0]  (!%p7982_p5), %s8951_s4, 16, %s7978_s26, [#allocation8]  }
  0x5c   : > { %s8952_s3 = sld [smem:[#allocation50_spill]] }
  0x62   : > { %s7279_s8 = scalar_lea.hbm %s8952_s3, 1536 }
  0x63   : > { %p7280_p11 = scmp.ne.s32.totalorder %s8952_s3, %s7279_s8  ;;  %p7286_p0 = scmp.lt.u32.totalorder %s7279_s8, %s8952_s3 }
  0x65   : > { %p7282_p12 = pnand %p7280_p11, %p7998_p7 }
  0x67   : > { %p7283_p13 = pneg %p7282_p12 }
  0x69   : > { %p7288_p1 = pnand %p7286_p0, %p7283_p13 }
  0x6b   : > { %7291 = shalt.err (!%p7288_p1)
}
  0x6c   : > { %s7292_s26 = scalar_lea.vmem %s7986_s27, 1536  ;;  %p7300_p9 = scmp.lt.s32.totalorder %s7986_s27, %s7986_s27 }
  0x6d   : > { %p7293_p4 = scmp.ne.s32.totalorder %s7986_s27, %s7292_s26  ;;  %p7301_p10 = scmp.lt.s32.totalorder %s7292_s26, %s7292_s26 }
  0x6f   : > { %p7295_p6 = pnand %p7293_p4, %p7998_p7  ;;  %p7302_p11 = por %p7301_p10, %p7300_p9 }
  0x71   : > { %p7296_p8 = pneg %p7295_p6 }
  0x73   : > { %p7303_p12 = pnand %p7302_p11, %p7296_p8 }
  0x75   : > { %7306 = shalt.err (!%p7303_p12)
}
  0x76   : > { %s8921_s20 = smov 128   ;;  %s8923_s24 = smov 8  }
  0x77   : > { %7111 = dma.hbm_to_vmem [thread:$0]  (!%p7982_p5), %s8952_s3, 1536, %s7986_s27, [#allocation11], %s8921_s20, %s8921_s20, %s8923_s24  }
  0x78   : > { %s8953_s11 = sld [smem:[#allocation53_spill]] }
  0x7e   : > { %s7307_s9 = scalar_lea.hbm %s8953_s11, 16 }
  0x7f   : > { %p7308_p13 = scmp.ne.s32.totalorder %s8953_s11, %s7307_s9  ;;  %p7314_p4 = scmp.lt.u32.totalorder %s7307_s9, %s8953_s11 }
  0x81   : > { %p7310_p0 = pnand %p7308_p13, %p7998_p7 }
  0x83   : > { %p7311_p1 = pneg %p7310_p0 }
  0x85   : > { %p7316_p6 = pnand %p7314_p4, %p7311_p1 }
  0x87   : > { %7319 = shalt.err (!%p7316_p6)
}
  0x88   : > { %s7320_s5 = scalar_lea.vmem %s712_s28, 16  ;;  %s7327_s27 = scalar_lea.vmem %s712_s28, 32 }
  0x89   : > { %p7321_p8 = scmp.ne.s32.totalorder %s712_s28, %s7320_s5  ;;  %p7328_p11 = scmp.lt.s32.totalorder %s712_s28, %s712_s28 }
  0x8a   : > { %p7329_p12 = scmp.lt.s32.totalorder %s7327_s27, %s7320_s5 }
  0x8b   : > { %p7323_p9 = pnand %p7321_p8, %p7998_p7 }
  0x8c   : > { %p7330_p2 = por %p7329_p12, %p7328_p11 }
  0x8d   : > { %p7324_p10 = pneg %p7323_p9 }
  0x8f   : > { %p7331_p3 = pnand %p7330_p2, %p7324_p10 }
  0x91   : > { %7334 = shalt.err (!%p7331_p3)
}
  0x92   : > { %7117 = dma.hbm_to_vmem [thread:$0]  (!%p7982_p5), %s8953_s11, 16, %s712_s28, [#allocation14]  }
  0x93   : > { %s7809_s0 = smov [#allocation16]   ;;  %s7810_s9 = smov [#allocation19]  }
  0x94   : > { %s735_s29 = sshll.u32 %s7809_s0, 4  ;;  %s759_s6 = sshll.u32 %s7810_s9, 4  ;;  %s736_s29 = int_to_ptr.vmem [resolvable:$true] %s735_s29  ;;  %s760_s6 = int_to_ptr.vmem [resolvable:$true] %s759_s6 }
  0x95   : > { %s8954_s13 = sld [smem:[#allocation54_spill]] }
  0x9b   : > { %s7335_s20 = scalar_lea.hbm %s8954_s13, 16 }
  0x9c   : > { %p7336_p2 = scmp.ne.s32.totalorder %s8954_s13, %s7335_s20  ;;  %p7342_p0 = scmp.lt.u32.totalorder %s7335_s20, %s8954_s13 }
  0x9e   : > { %p7338_p3 = pnand %p7336_p2, %p7998_p7 }
  0xa0   : > { %p7339_p13 = pneg %p7338_p3 }
  0xa2   : > { %p7344_p1 = pnand %p7342_p0, %p7339_p13 }
  0xa4   : > { %7347 = shalt.err (!%p7344_p1)
}
  0xa5   : > { %s7348_s28 = scalar_lea.vmem %s736_s29, 16  ;;  %s7355_s8 = scalar_lea.vmem %s736_s29, 32 }
  0xa6   : > { %p7349_p4 = scmp.ne.s32.totalorder %s736_s29, %s7348_s28  ;;  %p7356_p9 = scmp.lt.s32.totalorder %s736_s29, %s736_s29 }
  0xa7   : > { %p7357_p10 = scmp.lt.s32.totalorder %s7355_s8, %s7348_s28 }
  0xa8   : > { %p7351_p6 = pnand %p7349_p4, %p7998_p7 }
  0xa9   : > { %p7358_p11 = por %p7357_p10, %p7356_p9 }
  0xaa   : > { %p7352_p8 = pneg %p7351_p6 }
  0xac   : > { %p7359_p12 = pnand %p7358_p11, %p7352_p8 }
  0xae   : > { %7362 = shalt.err (!%p7359_p12)
}
  0xaf   : > { %7123 = dma.hbm_to_vmem [thread:$0]  (!%p7982_p5), %s8954_s13, 16, %s736_s29, [#allocation17]  }
  0xb0   : > { %s8955_s15 = sld [smem:[#allocation55_spill]] }
  0xb6   : > { %s7363_s10 = scalar_lea.hbm %s8955_s15, 16 }
  0xb7   : > { %p7364_p2 = scmp.ne.s32.totalorder %s8955_s15, %s7363_s10  ;;  %p7370_p0 = scmp.lt.u32.totalorder %s7363_s10, %s8955_s15 }
  0xb9   : > { %p7366_p3 = pnand %p7364_p2, %p7998_p7 }
  0xbb   : > { %p7367_p13 = pneg %p7366_p3 }
  0xbd   : > { %p7372_p1 = pnand %p7370_p0, %p7367_p13 }
  0xbf   : > { %7375 = shalt.err (!%p7372_p1)
}
  0xc0   : > { %s7376_s28 = scalar_lea.vmem %s760_s6, 16  ;;  %s7383_s29 = scalar_lea.vmem %s760_s6, 32 }
  0xc1   : > { %p7377_p4 = scmp.ne.s32.totalorder %s760_s6, %s7376_s28  ;;  %p7384_p9 = scmp.lt.s32.totalorder %s760_s6, %s760_s6 }
  0xc2   : > { %p7385_p10 = scmp.lt.s32.totalorder %s7383_s29, %s7376_s28 }
  0xc3   : > { %p7379_p6 = pnand %p7377_p4, %p7998_p7 }
  0xc4   : > { %p7386_p11 = por %p7385_p10, %p7384_p9 }
  0xc5   : > { %p7380_p8 = pneg %p7379_p6 }
  0xc7   : > { %p7387_p12 = pnand %p7386_p11, %p7380_p8 }
  0xc9   : > { %7390 = shalt.err (!%p7387_p12)
}
  0xca   : > { %7129 = dma.hbm_to_vmem [thread:$0]  (!%p7982_p5), %s8955_s15, 16, %s760_s6, [#allocation20]  }
  0xcb   : > { %s7811_s9 = smov [#allocation22]   ;;  %s7812_s24 = smov [#allocation25]  }
  0xcc   : > { %s783_s20 = sshll.u32 %s7811_s9, 4  ;;  %s807_s10 = sshll.u32 %s7812_s24, 4  ;;  %s784_s20 = int_to_ptr.vmem [resolvable:$true] %s783_s20  ;;  %s808_s10 = int_to_ptr.vmem [resolvable:$true] %s807_s10 }
  0xcd   : > { %s8956_s17 = sld [smem:[#allocation56_spill]] }
  0xd3   : > { %s7391_s27 = scalar_lea.hbm %s8956_s17, 16 }
  0xd4   : > { %p7392_p2 = scmp.ne.s32.totalorder %s8956_s17, %s7391_s27  ;;  %p7398_p0 = scmp.lt.u32.totalorder %s7391_s27, %s8956_s17 }
  0xd6   : > { %p7394_p3 = pnand %p7392_p2, %p7998_p7 }
  0xd8   : > { %p7395_p13 = pneg %p7394_p3 }
  0xda   : > { %p7400_p1 = pnand %p7398_p0, %p7395_p13 }
  0xdc   : > { %7403 = shalt.err (!%p7400_p1)
}
  0xdd   : > { %s7404_s6 = scalar_lea.vmem %s784_s20, 16  ;;  %s7411_s0 = scalar_lea.vmem %s784_s20, 32 }
  0xde   : > { %p7405_p4 = scmp.ne.s32.totalorder %s784_s20, %s7404_s6  ;;  %p7412_p9 = scmp.lt.s32.totalorder %s784_s20, %s784_s20 }
  0xdf   : > { %p7413_p10 = scmp.lt.s32.totalorder %s7411_s0, %s7404_s6 }
  0xe0   : > { %p7407_p6 = pnand %p7405_p4, %p7998_p7 }
  0xe1   : > { %p7414_p11 = por %p7413_p10, %p7412_p9 }
  0xe2   : > { %p7408_p8 = pneg %p7407_p6 }
  0xe4   : > { %p7415_p12 = pnand %p7414_p11, %p7408_p8 }
  0xe6   : > { %7418 = shalt.err (!%p7415_p12)
}
  0xe7   : > { %7135 = dma.hbm_to_vmem [thread:$0]  (!%p7982_p5), %s8956_s17, 16, %s784_s20, [#allocation23]  }
  0xe8   : > { %s8957_s19 = sld [smem:[#allocation57_spill]] }
  0xee   : > { %s7419_s27 = scalar_lea.hbm %s8957_s19, 16 }
  0xef   : > { %p7420_p2 = scmp.ne.s32.totalorder %s8957_s19, %s7419_s27  ;;  %p7426_p0 = scmp.lt.u32.totalorder %s7419_s27, %s8957_s19 }
  0xf1   : > { %p7422_p3 = pnand %p7420_p2, %p7998_p7 }
  0xf3   : > { %p7423_p13 = pneg %p7422_p3 }
  0xf5   : > { %p7428_p1 = pnand %p7426_p0, %p7423_p13 }
  0xf7   : > { %7431 = shalt.err (!%p7428_p1)
}
  0xf8   : > { %s7432_s6 = scalar_lea.vmem %s808_s10, 16  ;;  %s7439_s20 = scalar_lea.vmem %s808_s10, 32 }
  0xf9   : > { %p7433_p4 = scmp.ne.s32.totalorder %s808_s10, %s7432_s6  ;;  %p7440_p9 = scmp.lt.s32.totalorder %s808_s10, %s808_s10 }
  0xfa   : > { %p7441_p10 = scmp.lt.s32.totalorder %s7439_s20, %s7432_s6 }
  0xfb   : > { %p7435_p6 = pnand %p7433_p4, %p7998_p7 }
  0xfc   : > { %p7442_p11 = por %p7441_p10, %p7440_p9 }
  0xfd   : > { %p7436_p8 = pneg %p7435_p6 }
  0xff   : > { %p7443_p12 = pnand %p7442_p11, %p7436_p8 }
 0x101   : > { %7446 = shalt.err (!%p7443_p12)
}
 0x102   : > { %7141 = dma.hbm_to_vmem [thread:$0]  (!%p7982_p5), %s8957_s19, 16, %s808_s10, [#allocation26]  }
 0x103   : > { %s7813_s24 = smov [#allocation28]   ;;  %s7814_s5 = smov [#allocation2]  }
 0x104   : > { %s831_s26 = sshll.u32 %s7813_s24, 4  ;;  %s621_s27 = sshll.u32 %s7814_s5, 4  ;;  %s832_s26 = int_to_ptr.vmem [resolvable:$true] %s831_s26  ;;  %s622_s27 = int_to_ptr.vmem [resolvable:$true] %s621_s27 }
 0x105   : > { %s7447_s29 = scalar_lea.hbm %s8902_s22, 1536 }
 0x106   : > { %p7448_p2 = scmp.ne.s32.totalorder %s8902_s22, %s7447_s29  ;;  %p7454_p0 = scmp.lt.u32.totalorder %s7447_s29, %s8902_s22 }
 0x108   : > { %p7450_p3 = pnand %p7448_p2, %p7998_p7 }
 0x10a   : > { %p7451_p13 = pneg %p7450_p3 }
 0x10c   : > { %p7456_p1 = pnand %p7454_p0, %p7451_p13 }
 0x10e   : > { %7459 = shalt.err (!%p7456_p1)
}
 0x10f   : > { %s7460_s10 = scalar_lea.vmem %s832_s26, 1536  ;;  %p7468_p9 = scmp.lt.s32.totalorder %s832_s26, %s832_s26 }
 0x110   : > { %p7461_p4 = scmp.ne.s32.totalorder %s832_s26, %s7460_s10  ;;  %p7469_p10 = scmp.lt.s32.totalorder %s7460_s10, %s7460_s10 }
 0x112   : > { %p7463_p6 = pnand %p7461_p4, %p7998_p7  ;;  %p7470_p11 = por %p7469_p10, %p7468_p9 }
 0x114   : > { %p7464_p8 = pneg %p7463_p6 }
 0x116   : > { %p7471_p12 = pnand %p7470_p11, %p7464_p8 }
 0x118   : > { %7474 = shalt.err (!%p7471_p12)
}
 0x119   : > { %s8958_s9 = smov 8   ;;  %s8959_s24 = smov 128  }
 0x11a   : > { %7147 = dma.hbm_to_vmem [thread:$0]  (!%p7982_p5), %s8902_s22, 1536, %s832_s26, [#allocation29], %s8959_s24, %s8959_s24, %s8958_s9  }
 0x11b   : > { %s8960_s8 = sld [smem:[#allocation44_spill]] }
 0x121   : > { %s7475_s6 = scalar_lea.hbm %s8960_s8, 192 }
 0x122   : > { %p7476_p2 = scmp.ne.s32.totalorder %s8960_s8, %s7475_s6  ;;  %p7482_p0 = scmp.lt.u32.totalorder %s7475_s6, %s8960_s8 }
 0x124   : > { %p7478_p3 = pnand %p7476_p2, %p7998_p7 }
 0x126   : > { %p7479_p13 = pneg %p7478_p3 }
 0x128   : > { %p7484_p1 = pnand %p7482_p0, %p7479_p13 }
 0x12a   : > { %7487 = shalt.err (!%p7484_p1)
}
 0x12b   : > { %s7488_s5 = scalar_lea.vmem %s622_s27, 192  ;;  %p7496_p9 = scmp.lt.s32.totalorder %s622_s27, %s622_s27 }
 0x12c   : > { %p7489_p4 = scmp.ne.s32.totalorder %s622_s27, %s7488_s5  ;;  %p7497_p10 = scmp.lt.s32.totalorder %s7488_s5, %s7488_s5 }
 0x12e   : > { %p7491_p6 = pnand %p7489_p4, %p7998_p7  ;;  %p7498_p11 = por %p7497_p10, %p7496_p9 }
 0x130   : > { %p7492_p8 = pneg %p7491_p6 }
 0x132   : > { %p7499_p12 = pnand %p7498_p11, %p7492_p8 }
 0x134   : > { %7502 = shalt.err (!%p7499_p12)
}
 0x135   : > { %s7815_s26 = smov 64   ;;  %s7816_s2 = smov 4  }
 0x136   : > { %7096 = dma.hbm_to_vmem [thread:$0]  (!%p7982_p5), %s8960_s8, 192, %s622_s27, [#allocation3], %s7815_s26, %s7815_s26, %s7816_s2  }
 0x137   : > { %s7817_s29 = smov [#allocation6]   ;;  %s7818_s20 = smov [#allocation9]  }
 0x138   : > { %s645_s6 = sshll.u32 %s7817_s29, 4  ;;  %s673_s0 = sshll.u32 %s7818_s20, 4  ;;  %s646_s6 = int_to_ptr.vmem [resolvable:$true] %s645_s6  ;;  %s674_s0 = int_to_ptr.vmem [resolvable:$true] %s673_s0 }
 0x139   : > { %s8961_s5 = sld [smem:[#allocation46_spill]] }
 0x13f   : > { %s7503_s11 = scalar_lea.hbm %s8961_s5, 1536 }
 0x140   : > { %p7504_p2 = scmp.ne.s32.totalorder %s8961_s5, %s7503_s11  ;;  %p7510_p0 = scmp.lt.u32.totalorder %s7503_s11, %s8961_s5 }
 0x142   : > { %p7506_p3 = pnand %p7504_p2, %p7998_p7 }
 0x144   : > { %p7507_p13 = pneg %p7506_p3 }
 0x146   : > { %p7512_p1 = pnand %p7510_p0, %p7507_p13 }
 0x148   : > { %7515 = shalt.err (!%p7512_p1)
}
 0x149   : > { %s7516_s27 = scalar_lea.vmem %s646_s6, 1536  ;;  %p7524_p9 = scmp.lt.s32.totalorder %s646_s6, %s646_s6 }
 0x14a   : > { %p7517_p4 = scmp.ne.s32.totalorder %s646_s6, %s7516_s27  ;;  %p7525_p10 = scmp.lt.s32.totalorder %s7516_s27, %s7516_s27 }
 0x14c   : > { %p7519_p6 = pnand %p7517_p4, %p7998_p7  ;;  %p7526_p11 = por %p7525_p10, %p7524_p9 }
 0x14e   : > { %p7520_p8 = pneg %p7519_p6 }
 0x150   : > { %p7527_p12 = pnand %p7526_p11, %p7520_p8 }
 0x152   : > { %7530 = shalt.err (!%p7527_p12)
}
 0x153   : > { %7102 = dma.hbm_to_vmem [thread:$0]  (!%p7982_p5), %s8961_s5, 1536, %s646_s6, [#allocation5], %s8959_s24, %s8959_s24, %s8958_s9  }
 0x154   : > { %s8962_s19 = sld [smem:[#allocation49_spill]] }
 0x15a   : > { %s7531_s4 = scalar_lea.hbm %s8962_s19, 16 }
 0x15b   : > { %p7532_p2 = scmp.ne.s32.totalorder %s8962_s19, %s7531_s4  ;;  %p7538_p0 = scmp.lt.u32.totalorder %s7531_s4, %s8962_s19 }
 0x15d   : > { %p7534_p3 = pnand %p7532_p2, %p7998_p7 }
 0x15f   : > { %p7535_p13 = pneg %p7534_p3 }
 0x161   : > { %p7540_p1 = pnand %p7538_p0, %p7535_p13 }
 0x163   : > { %7543 = shalt.err (!%p7540_p1)
}
 0x164   : > { %s7544_s29 = scalar_lea.vmem %s674_s0, 16  ;;  %s7551_s6 = scalar_lea.vmem %s674_s0, 32 }
 0x165   : > { %p7545_p4 = scmp.ne.s32.totalorder %s674_s0, %s7544_s29  ;;  %p7552_p9 = scmp.lt.s32.totalorder %s674_s0, %s674_s0 }
 0x166   : > { %p7553_p10 = scmp.lt.s32.totalorder %s7551_s6, %s7544_s29 }
 0x167   : > { %p7547_p6 = pnand %p7545_p4, %p7998_p7 }
 0x168   : > { %p7554_p11 = por %p7553_p10, %p7552_p9 }
 0x169   : > { %p7548_p8 = pneg %p7547_p6 }
 0x16b   : > { %p7555_p12 = pnand %p7554_p11, %p7548_p8 }
 0x16d   : > { %7558 = shalt.err (!%p7555_p12)
}
 0x16e   : > { %7108 = dma.hbm_to_vmem [thread:$0]  (!%p7982_p5), %s8962_s19, 16, %s674_s0, [#allocation8]  }
 0x16f   : > { %s7819_s27 = smov [#allocation12]   ;;  %s7820_s11 = smov [#allocation15]  }
 0x170   : > { %s697_s13 = sshll.u32 %s7819_s27, 4  ;;  %s721_s15 = sshll.u32 %s7820_s11, 4  ;;  %s698_s13 = int_to_ptr.vmem [resolvable:$true] %s697_s13  ;;  %s722_s15 = int_to_ptr.vmem [resolvable:$true] %s721_s15 }
 0x171   : > { %s8963_s26 = sld [smem:[#allocation51_spill]] }
 0x177   : > { %s7559_s2 = scalar_lea.hbm %s8963_s26, 16 }
 0x178   : > { %p7560_p2 = scmp.ne.s32.totalorder %s8963_s26, %s7559_s2  ;;  %p7566_p0 = scmp.lt.u32.totalorder %s7559_s2, %s8963_s26 }
 0x17a   : > { %p7562_p3 = pnand %p7560_p2, %p7998_p7 }
 0x17c   : > { %p7563_p13 = pneg %p7562_p3 }
 0x17e   : > { %p7568_p1 = pnand %p7566_p0, %p7563_p13 }
 0x180   : > { %7571 = shalt.err (!%p7568_p1)
}
 0x181   : > { %s7572_s0 = scalar_lea.vmem %s698_s13, 16  ;;  %s7579_s20 = scalar_lea.vmem %s698_s13, 32 }
 0x182   : > { %p7573_p4 = scmp.ne.s32.totalorder %s698_s13, %s7572_s0  ;;  %p7580_p9 = scmp.lt.s32.totalorder %s698_s13, %s698_s13 }
 0x183   : > { %p7581_p10 = scmp.lt.s32.totalorder %s7579_s20, %s7572_s0 }
 0x184   : > { %p7575_p6 = pnand %p7573_p4, %p7998_p7 }
 0x185   : > { %p7582_p11 = por %p7581_p10, %p7580_p9 }
 0x186   : > { %p7576_p8 = pneg %p7575_p6 }
 0x188   : > { %p7583_p12 = pnand %p7582_p11, %p7576_p8 }
 0x18a   : > { %7586 = shalt.err (!%p7583_p12)
}
 0x18b   : > { %7114 = dma.hbm_to_vmem [thread:$0]  (!%p7982_p5), %s8963_s26, 16, %s698_s13, [#allocation11]  }
 0x18c   : > { %s7587_s4 = scalar_lea.hbm %s8892_s12, 1536 }
 0x18d   : > { %p7588_p2 = scmp.ne.s32.totalorder %s8892_s12, %s7587_s4  ;;  %p7594_p0 = scmp.lt.u32.totalorder %s7587_s4, %s8892_s12 }
 0x18f   : > { %p7590_p3 = pnand %p7588_p2, %p7998_p7 }
 0x191   : > { %p7591_p13 = pneg %p7590_p3 }
 0x193   : > { %p7596_p1 = pnand %p7594_p0, %p7591_p13 }
 0x195   : > { %7599 = shalt.err (!%p7596_p1)
}
 0x196   : > { %s7600_s6 = scalar_lea.vmem %s722_s15, 1536  ;;  %p7608_p9 = scmp.lt.s32.totalorder %s722_s15, %s722_s15 }
 0x197   : > { %p7601_p4 = scmp.ne.s32.totalorder %s722_s15, %s7600_s6  ;;  %p7609_p10 = scmp.lt.s32.totalorder %s7600_s6, %s7600_s6 }
 0x199   : > { %p7603_p6 = pnand %p7601_p4, %p7998_p7  ;;  %p7610_p11 = por %p7609_p10, %p7608_p9 }
 0x19b   : > { %p7604_p8 = pneg %p7603_p6 }
 0x19d   : > { %p7611_p12 = pnand %p7610_p11, %p7604_p8 }
 0x19f   : > { %7614 = shalt.err (!%p7611_p12)
}
 0x1a0   : > { %7120 = dma.hbm_to_vmem [thread:$0]  (!%p7982_p5), %s8892_s12, 1536, %s722_s15, [#allocation14], %s8959_s24, %s8959_s24, %s8958_s9  }
 0x1a1   : > { %s7821_s20 = smov [#allocation18]   ;;  %s7822_s27 = smov [#allocation21]  }
 0x1a2   : > { %s745_s10 = sshll.u32 %s7821_s20, 4  ;;  %s769_s11 = sshll.u32 %s7822_s27, 4  ;;  %s746_s10 = int_to_ptr.vmem [resolvable:$true] %s745_s10  ;;  %s770_s11 = int_to_ptr.vmem [resolvable:$true] %s769_s11 }
 0x1a3   : > { %s7615_s2 = scalar_lea.hbm %s8894_s14, 512 }
 0x1a4   : > { %p7616_p2 = scmp.ne.s32.totalorder %s8894_s14, %s7615_s2  ;;  %p7622_p0 = scmp.lt.u32.totalorder %s7615_s2, %s8894_s14 }
 0x1a6   : > { %p7618_p3 = pnand %p7616_p2, %p7998_p7 }
 0x1a8   : > { %p7619_p13 = pneg %p7618_p3 }
 0x1aa   : > { %p7624_p1 = pnand %p7622_p0, %p7619_p13 }
 0x1ac   : > { %7627 = shalt.err (!%p7624_p1)
}
 0x1ad   : > { %s7628_s15 = scalar_lea.vmem %s746_s10, 512  ;;  %p7636_p9 = scmp.lt.s32.totalorder %s746_s10, %s746_s10 }
 0x1ae   : > { %p7629_p4 = scmp.ne.s32.totalorder %s746_s10, %s7628_s15  ;;  %p7637_p10 = scmp.lt.s32.totalorder %s7628_s15, %s7628_s15 }
 0x1b0   : > { %p7631_p6 = pnand %p7629_p4, %p7998_p7  ;;  %p7638_p11 = por %p7637_p10, %p7636_p9 }
 0x1b2   : > { %p7632_p8 = pneg %p7631_p6 }
 0x1b4   : > { %p7639_p12 = pnand %p7638_p11, %p7632_p8 }
 0x1b6   : > { %7642 = shalt.err (!%p7639_p12)
}
 0x1b7   : > { %7126 = dma.hbm_to_vmem [thread:$0]  (!%p7982_p5), %s8894_s14, 512, %s746_s10, [#allocation17], %s8959_s24, %s8959_s24, %s8958_s9  }
 0x1b8   : > { %s7643_s17 = scalar_lea.hbm %s8896_s16, 2048 }
 0x1b9   : > { %p7644_p2 = scmp.ne.s32.totalorder %s8896_s16, %s7643_s17  ;;  %p7650_p0 = scmp.lt.u32.totalorder %s7643_s17, %s8896_s16 }
 0x1bb   : > { %p7646_p3 = pnand %p7644_p2, %p7998_p7 }
 0x1bd   : > { %p7647_p13 = pneg %p7646_p3 }
 0x1bf   : > { %p7652_p1 = pnand %p7650_p0, %p7647_p13 }
 0x1c1   : > { %7655 = shalt.err (!%p7652_p1)
}
 0x1c2   : > { %s7656_s29 = scalar_lea.vmem %s770_s11, 2048  ;;  %p7664_p9 = scmp.lt.s32.totalorder %s770_s11, %s770_s11 }
 0x1c3   : > { %p7657_p4 = scmp.ne.s32.totalorder %s770_s11, %s7656_s29  ;;  %p7665_p10 = scmp.lt.s32.totalorder %s7656_s29, %s7656_s29 }
 0x1c5   : > { %p7659_p6 = pnand %p7657_p4, %p7998_p7  ;;  %p7666_p11 = por %p7665_p10, %p7664_p9 }
 0x1c7   : > { %p7660_p8 = pneg %p7659_p6 }
 0x1c9   : > { %p7667_p12 = pnand %p7666_p11, %p7660_p8 }
 0x1cb   : > { %7670 = shalt.err (!%p7667_p12)
}
 0x1cc   : > { %7132 = dma.hbm_to_vmem [thread:$0]  (!%p7982_p5), %s8896_s16, 2048, %s770_s11, [#allocation20], %s8959_s24, %s8959_s24, %s8958_s9  }
 0x1cd   : > { %s7823_s15 = smov [#allocation24]   ;;  %s7824_s0 = smov [#allocation27]  }
 0x1ce   : > { %s793_s13 = sshll.u32 %s7823_s15, 4  ;;  %s821_s20 = sshll.u32 %s7824_s0, 4  ;;  %s794_s13 = int_to_ptr.vmem [resolvable:$true] %s793_s13  ;;  %s822_s20 = int_to_ptr.vmem [resolvable:$true] %s821_s20 }
 0x1cf   : > { %s7671_s4 = scalar_lea.hbm %s8898_s18, 1536 }
 0x1d0   : > { %p7672_p2 = scmp.ne.s32.totalorder %s8898_s18, %s7671_s4  ;;  %p7678_p0 = scmp.lt.u32.totalorder %s7671_s4, %s8898_s18 }
 0x1d2   : > { %p7674_p3 = pnand %p7672_p2, %p7998_p7 }
 0x1d4   : > { %p7675_p13 = pneg %p7674_p3 }
 0x1d6   : > { %p7680_p1 = pnand %p7678_p0, %p7675_p13 }
 0x1d8   : > { %7683 = shalt.err (!%p7680_p1)
}
 0x1d9   : > { %s7684_s11 = scalar_lea.vmem %s794_s13, 1536  ;;  %p7692_p9 = scmp.lt.s32.totalorder %s794_s13, %s794_s13 }
 0x1da   : > { %p7685_p4 = scmp.ne.s32.totalorder %s794_s13, %s7684_s11  ;;  %p7693_p10 = scmp.lt.s32.totalorder %s7684_s11, %s7684_s11 }
 0x1dc   : > { %p7687_p6 = pnand %p7685_p4, %p7998_p7  ;;  %p7694_p11 = por %p7693_p10, %p7692_p9 }
 0x1de   : > { %p7688_p8 = pneg %p7687_p6 }
 0x1e0   : > { %p7695_p12 = pnand %p7694_p11, %p7688_p8 }
 0x1e2   : > { %7698 = shalt.err (!%p7695_p12)
}
 0x1e3   : > { %7138 = dma.hbm_to_vmem [thread:$0]  (!%p7982_p5), %s8898_s18, 1536, %s794_s13, [#allocation23], %s8959_s24, %s8959_s24, %s8958_s9  }
 0x1e4   : > { %s7699_s27 = scalar_lea.hbm %s8901_s21, 16 }
 0x1e5   : > { %p7700_p2 = scmp.ne.s32.totalorder %s8901_s21, %s7699_s27  ;;  %p7706_p0 = scmp.lt.u32.totalorder %s7699_s27, %s8901_s21 }
 0x1e7   : > { %p7702_p3 = pnand %p7700_p2, %p7998_p7 }
 0x1e9   : > { %p7703_p13 = pneg %p7702_p3 }
 0x1eb   : > { %p7708_p1 = pnand %p7706_p0, %p7703_p13 }
 0x1ed   : > { %7711 = shalt.err (!%p7708_p1)
}
 0x1ee   : > { %s7712_s28 = scalar_lea.vmem %s822_s20, 16  ;;  %s7719_s9 = scalar_lea.vmem %s822_s20, 32 }
 0x1ef   : > { %p7713_p4 = scmp.ne.s32.totalorder %s822_s20, %s7712_s28  ;;  %p7720_p9 = scmp.lt.s32.totalorder %s822_s20, %s822_s20 }
 0x1f0   : > { %p7721_p10 = scmp.lt.s32.totalorder %s7719_s9, %s7712_s28 }
 0x1f1   : > { %p7715_p6 = pnand %p7713_p4, %p7998_p7 }
 0x1f2   : > { %p7722_p11 = por %p7721_p10, %p7720_p9 }
 0x1f3   : > { %p7716_p8 = pneg %p7715_p6 }
 0x1f5   : > { %p7723_p12 = pnand %p7722_p11, %p7716_p8 }
 0x1f7   : > { %7726 = shalt.err (!%p7723_p12)
}
 0x1f8   : > { %7144 = dma.hbm_to_vmem [thread:$0]  (!%p7982_p5), %s8901_s21, 16, %s822_s20, [#allocation26]  }
 0x1f9   : > { %s7825_s29 = smov [#allocation30]   ;;  %s7727_s15 = scalar_lea.hbm %s8903_s23, 16 }
 0x1fa   : > { %s845_s11 = sshll.u32 %s7825_s29, 4  ;;  %p7728_p2 = scmp.ne.s32.totalorder %s8903_s23, %s7727_s15  ;;  %s846_s11 = int_to_ptr.vmem [resolvable:$true] %s845_s11 }
 0x1fb   : > { %p7734_p0 = scmp.lt.u32.totalorder %s7727_s15, %s8903_s23 }
 0x1fc   : > { %p7730_p3 = pnand %p7728_p2, %p7998_p7 }
 0x1fe   : > { %p7731_p13 = pneg %p7730_p3 }
 0x200   : > { %p7736_p1 = pnand %p7734_p0, %p7731_p13 }
 0x202   : > { %7739 = shalt.err (!%p7736_p1)
}
 0x203   : > { %s7740_s20 = scalar_lea.vmem %s846_s11, 16  ;;  %s7747_s2 = scalar_lea.vmem %s846_s11, 32 }
 0x204   : > { %p7741_p4 = scmp.ne.s32.totalorder %s846_s11, %s7740_s20  ;;  %p7748_p9 = scmp.lt.s32.totalorder %s846_s11, %s846_s11 }
 0x205   : > { %p7749_p10 = scmp.lt.s32.totalorder %s7747_s2, %s7740_s20 }
 0x206   : > { %p7743_p6 = pnand %p7741_p4, %p7998_p7 }
 0x207   : > { %p7750_p11 = por %p7749_p10, %p7748_p9 }
 0x208   : > { %p7744_p8 = pneg %p7743_p6 }
 0x20a   : > { %p7751_p12 = pnand %p7750_p11, %p7744_p8 }
 0x20c   : > { %7754 = shalt.err (!%p7751_p12)
}
 0x20d   : > { %7150 = dma.hbm_to_vmem [thread:$0]  (!%p7982_p5), %s8903_s23, 16, %s846_s11, [#allocation29]  }
 0x20e   : > { %p8964_p2 = scmp.ne.s32.totalorder %s8947_s7, 0 }
 0x20f   : > { %p8965_p3 = scmp.eq.s32.totalorder (!%p8964_p2), %s7965_s30, 0 }
 0x210   : > { %869 = sbr.rel (%p8964_p2) target bundleno = 7548 (0x1d7c), region = 120 }
 0x217   : > { %7760 = dma.done.wait (%p8965_p3), [#allocation3], 192   ;;  %p8966_p7 = pmov %p8965_p3 }
 0x218   : > { %p8967_p13 = pmov %p8965_p3 }
 0x219   : > { %7762 = vsyncadd (%p8966_p7), [#allocation3], 4294967104 }
 0x21a   : > { %7764 = dma.done.wait (%p8967_p13), [#allocation5], 1552   ;;  %p8968_p0 = pmov %p8965_p3 }
 0x21c   : > { %7766 = vsyncadd (%p8968_p0), [#allocation5], 4294965744  ;;  %p8969_p1 = pmov %p8968_p0 }
 0x21d   : > { %p8970_p5 = pmov %p8968_p0 }
 0x21e   : > { %7768 = dma.done.wait (%p8969_p1), [#allocation8], 32  }
 0x21f   : > { %7770 = vsyncadd (%p8970_p5), [#allocation8], 4294967264  ;;  %p8971_p4 = pmov %p8968_p0 }
 0x220   : > { %p8972_p6 = pmov %p8968_p0 }
 0x221   : > { %7772 = dma.done.wait (%p8971_p4), [#allocation11], 1552  }
 0x222   : > { %7774 = vsyncadd (%p8972_p6), [#allocation11], 4294965744  ;;  %p8973_p8 = pmov %p8968_p0 }
 0x223   : > { %p8974_p9 = pmov %p8968_p0 }
 0x224   : > { %7776 = dma.done.wait (%p8973_p8), [#allocation14], 1552  }
 0x225   : > { %7778 = vsyncadd (%p8974_p9), [#allocation14], 4294965744  ;;  %p8975_p10 = pmov %p8968_p0 }
 0x226   : > { %p8976_p11 = pmov %p8968_p0 }
 0x227   : > { %7780 = dma.done.wait (%p8975_p10), [#allocation17], 528  }
 0x228   : > { %7782 = vsyncadd (%p8976_p11), [#allocation17], 4294966768  ;;  %p8977_p12 = pmov %p8968_p0 }
 0x229   : > { %p8978_p2 = pmov %p8968_p0 }
 0x22a   : > { %7784 = dma.done.wait (%p8977_p12), [#allocation20], 2064  }
 0x22b   : > { %7786 = vsyncadd (%p8978_p2), [#allocation20], 4294965232  ;;  %p8979_p3 = pmov %p8968_p0 }
 0x22c   : > { %p8980_p7 = pmov %p8968_p0 }
 0x22d   : > { %7788 = dma.done.wait (%p8979_p3), [#allocation23], 1552  }
 0x22e   : > { %7790 = vsyncadd (%p8980_p7), [#allocation23], 4294965744  ;;  %p8981_p13 = pmov %p8968_p0 }
 0x230   : > { %7792 = dma.done.wait (%p8981_p13), [#allocation26], 32  }
 0x231   : > { %7794 = vsyncadd (%p8968_p0), [#allocation26], 4294967264  ;;  %p8982_p1 = pmov %p8968_p0 }
 0x232   : > { %p8983_p5 = pmov %p8968_p0 }
 0x233   : > { %7796 = dma.done.wait (%p8982_p1), [#allocation29], 1552  }
 0x234   : > { %7798 = vsyncadd (%p8983_p5), [#allocation29], 4294965744  ;;  %p1008_p4 = scmp.lt.s32.totalorder %s7965_s30, 1  ;;  %vm1032_vm0 = vcmask 1042432   ;;  %s8984_s9 = sld [smem:[#allocation42_spill]]  ;;  %vm1025_vm1 = vcmask 23552   ;;  %v1019_v5 = vlaneseq }
 0x235   : > { %v1120_v0 = vld [vmem:[#allocation2 + $0x4] sm:$0x7]  ;;  %v1024_v3 = vld [vmem:[#allocation2] sm:$0x7]  ;;  %v1369_v4 = vld [vmem:[#allocation2 + $0x8] sm:$0x7] }
 0x236   : > { %s8994_s30 = smov (!%p1008_p4, %s7965_s30), 1  ;;  %6348 = vmatprep.subr.msk.mxu1 %vm1032_vm0, %v1120_v0  ;;  %6343 = vmatprep.subr.msk.mxu0 %vm1032_vm0, %v1024_v3  ;;  %v8439_v6 = vshrl.u32 %v1019_v5, 7  ;;  %v8441_v7 = vand.u32 127, %v1019_v5  ;;  %vm1205_vm3 = vcmask 130048   ;;  %v7826_v8 = vmov 0.0   ;;  %s8985_s11 = sld [smem:[#allocation48_spill]] }
 0x237   : > { %s6124_s25 = sshll.u32 %s8994_s30, 4  ;;  %6349 = vmatpush3.msk.msra.mxu1 %vm1032_vm0, %v1120_v0  ;;  %6344 = vmatpush3.msk.msra.mxu0 %vm1032_vm0, %v1024_v3  ;;  %s8986_s15 = sld [smem:[#allocation43_spill]]  ;;  %vm1554_vm9 = vcmask 261120   ;;  %v7827_v54 = vmov 0.0|0.0   ;;  %vm7828_vm10 = vmmov 0  }
 0x238   : > { %6367 = vmatprep.subr.msk.mxu1 %vm1032_vm0, %v1369_v4  ;;  %vm1199_vm2 = vcmp.eq.s32.totalorder %v8441_v7, %v8439_v6  ;;  %v1021_v13 = vadd.s32 8, %v8439_v6  ;;  %v1111_v14 = vadd.s32 4294967295, %v8439_v6  ;;  %v1448_v27 = vadd.s32 1, %v8439_v6  ;;  %s8987_s29 = sld [smem:[#allocation52_spill]]  ;;  %s8989_s3 = sld [smem:[#allocation58_spill]] }
 0x239   : > { %v8446_v9 = vsel %vm1199_vm2, 1.0, %v7826_v8  ;;  %v1636_v55 = vmul.u32 2, %v8439_v6  ;;  %vm4177_vm2 = vcmask 1043456   ;;  %s8990_s6 = sld [smem:[#allocation59_spill]]  ;;  %s6001_s2 = sshll.u32 %s8994_s30, 2 }
 0x23a   : > { %s1012_s24 = scalar_lea.vmem %s8984_s9, %s6124_s25  ;;  %vm1200_vm4 = vcmp.eq.s32.totalorder %v8441_v7, %v1021_v13  ;;  %vm1113_vm5 = vcmp.eq.s32.totalorder %v8441_v7, %v1111_v14  ;;  %v1112_v26 = vadd.s32 4294967295, %v1021_v13  ;;  %vm1450_vm7 = vcmp.eq.s32.totalorder %v8441_v7, %v1448_v27  ;;  %s8991_s7 = sld [smem:[#allocation60_spill]] }
 0x23b   : > { %v1017_v1 = vld [vmem:[%s1012_s24] sm:$0xff]  ;;  %v1018_v2 = vld [vmem:[%s1012_s24 + $0x8] sm:$0xff]  ;;  %v6011_v22 = vsel %vm1200_vm4, 1.0, %v7826_v8  ;;  %v8462_v25 = vsel %vm1113_vm5, 1.0, %v7826_v8  ;;  %v8478_v31 = vsel %vm1450_vm7, 1.0, %v7826_v8  ;;  %v1449_v32 = vadd.s32 1, %v1021_v13 }
 0x23c   : > { %6350 = vmatprep.mubr.msk.f32.mxu1 %vm1025_vm1, %v1017_v1  ;;  %6345 = vmatprep.mubr.msk.f32.mxu0 %vm1025_vm1, %v1017_v1  ;;  %v1550_v10 = vld [vmem:[%s8985_s11] sm:$0xff]  ;;  %v1551_v11 = vld [vmem:[%s8985_s11 + $0x8] sm:$0xff]  ;;  %vm1114_vm6 = vcmp.eq.s32.totalorder %v8441_v7, %v1112_v26  ;;  %v6029_v35 = vld [vmem:[%s8985_s11 + $0x30] sm:$0xff]  ;;  %vm1721_vm11 = vcmp.eq.s32.totalorder %v8441_v7, %v1636_v55  ;;  %v1637_v60 = vadd.s32 4294967295, %v1636_v55  ;;  %v1950_v0 = vadd.s32 1, %v1636_v55 }
 0x23d   : > { %6351 = vmatmul.mubr.msk.f32.vlgmr.msra.gmra.mrb[0].mxu1 %vm1025_vm1, %v1018_v2  ;;  %6346 = vmatmul.mubr.msk.f32.vlgmr.msra.gmra.mrb[0].mxu0 %vm1025_vm1, %v1018_v2  ;;  %v6831_v12 = vpack.c.bf16 %v1551_v11, %v1550_v10  ;;  %v6027_v28 = vld [vmem:[%s8985_s11 + $0x20] sm:$0xff]  ;;  %v6028_v29 = vld [vmem:[%s8985_s11 + $0x28] sm:$0xff]  ;;  %v6006_v30 = vsel %vm1114_vm6, 1.0, %v7826_v8  ;;  %vm1451_vm8 = vcmp.eq.s32.totalorder %v8441_v7, %v1449_v32  ;;  %v6030_v36 = vld [vmem:[%s8985_s11 + $0x38] sm:$0xff]  ;;  %v8528_v63 = vsel %vm1721_vm11, 1.0, %v7826_v8 }
 0x23e   : > { %6368 = vmatpush3.msk.msra.mxu1 %vm1032_vm0, %v1369_v4  ;;  %6369 = vmatprep.mubr.msk.f32.mxu1 %vm1025_vm1, %v1017_v1  ;;  %v6839_v33 = vpack.c.bf16 %v6028_v29, %v6027_v28  ;;  %v6020_v34 = vsel %vm1451_vm8, 1.0, %v7826_v8  ;;  %v6843_v37 = vpack.c.bf16 %v6030_v36, %v6029_v35  ;;  %v1552_v38 = vld [vmem:[%s8985_s11 + $0x10] sm:$0xff]  ;;  %v1553_v39 = vld [vmem:[%s8985_s11 + $0x18] sm:$0xff]  ;;  %v6036_v41 = vld [vmem:[%s8985_s11 + $0x40] sm:$0xff]  ;;  %vm1638_vm12 = vcmp.eq.s32.totalorder %v8441_v7, %v1637_v60  ;;  %s8988_s10 = smov %s8987_s29 }
 0x23f   : > { %6357 = vmatprep.mubr.msk.f32.mxu0 %vm1205_vm3, %v8446_v9  ;;  %6832 = vmatprep.subr.bf16.mxu1 %v6831_v12  ;;  %v6835_v40 = vpack.c.bf16 %v1553_v39, %v1552_v38  ;;  %v6037_v42 = vld [vmem:[%s8985_s11 + $0x48] sm:$0xff]  ;;  %v6023_v44 = vld [vmem:[%s8986_s15] ss:$0 sm:$0xff]  ;;  %v6038_v49 = vld [vmem:[%s8985_s11 + $0x50] sm:$0xff]  ;;  %v8543_v4 = vsel %vm1638_vm12, 1.0, %v7826_v8  ;;  %vm1951_vm13 = vcmp.eq.s32.totalorder %v8441_v7, %v1950_v0  ;;  %vm2351_vm0 = vcmask 64512  }
 0x240   : > { %v6853_v43 = vpack.c.bf16 %v6037_v42, %v6036_v41  ;;  %v6039_v50 = vld [vmem:[%s8985_s11 + $0x58] sm:$0xff]  ;;  %v6044_v1 = vld [vmem:[%s8985_s11 + $0x60] sm:$0xff]  ;;  %v8558_v14 = vsel %vm1951_vm13, 1.0, %v7826_v8  ;;  %v2198_v38 = vld [vmem:[#allocation10 + $0x18] sm:$0xff]  ;;  %v2572_v0 = vadd.s32 3, %v8439_v6  ;;  %s1016_s1 = scalar_lea.vmem %s8991_s7, %s6001_s2  ;;  %vm5718_vm4 = vcmask 257024  }
 0x241   : > { %6370 = vmatmul.mubr.msk.f32.vlgmr.msra.gmra.mrb[2].mxu1 %vm1025_vm1, %v1018_v2  ;;  %v6857_v53 = vpack.c.bf16 %v6039_v50, %v6038_v49  ;;  %v6045_v2 = vld [vmem:[%s8985_s11 + $0x68] sm:$0xff]  ;;  %v6047_v13 = vld [vmem:[%s8985_s11 + $0x78] sm:$0xff]  ;;  %v2272_v49 = vadd.s32 4294967293, %v8439_v6  ;;  %v2659_v6 = vld [vmem:[%s8987_s29] sm:$0xff] }
 0x242   : > { %6834 = vmatpush3.bf16.msra.mxu1 %v6831_v12  ;;  %v6864_v10 = vpack.c.bf16 %v6045_v2, %v6044_v1  ;;  %v6046_v12 = vld [vmem:[%s8985_s11 + $0x70] sm:$0xff]  ;;  %v2196_v32 = vld [vmem:[#allocation10 + $0x8] sm:$0xff]  ;;  %v2279_v39 = vld [vmem:[#allocation10 + $0x30] sm:$0xff]  ;;  %vm2573_vm1 = vcmp.eq.s32.totalorder %v8441_v7, %v2572_v0 }
 0x243   : > { %6836 = vmatprep.subr.bf16.mxu1 %v6835_v40  ;;  %v2278_v35 = vld [vmem:[#allocation10 + $0x28] sm:$0xff]  ;;  %v2280_v41 = vld [vmem:[#allocation10 + $0x38] sm:$0xff]  ;;  %v2498_v50 = vld [vmem:[#allocation10 + $0x40] sm:$0xff]  ;;  %vm2273_vm15 = vcmp.eq.s32.totalorder %v8441_v7, %v2272_v49 }
 0x244   : > { %v6885_v42 = vpack.c.bf16 %v2280_v41, %v2279_v39  ;;  %v2896_v39 = vld [vmem:[#allocation15 + $0x38] sm:$0xff]  ;;  %v3111_v49 = vld [vmem:[#allocation15 + $0x48] sm:$0xff] }
 0x245   : > { %v6063_v41 = vld [vmem:[#allocation12] ss:$0 sm:$0xff] }
 0x246   : > { %6838 = vmatpush3.bf16.msra.mxu1 %v6835_v40 }
 0x247   : > { %6847 = vmatprep.subr.bf16.mxu1 %v7827_v54 }
 0x310   : > { %v6352_v15 = vpop.f32.mrb[0].mxu1  ;;  %v6347_v18 = vpop.f32.mrb[0].mxu0 }
 0x311   : > { %v1190_v16 = vpop.f32.mrb[1].mxu1  ;;  %v1102_v19 = vpop.f32.mrb[1].mxu0 }
 0x312   : > { %v6819_v17 = vpack.c.bf16 %v6352_v15, %v1190_v16  ;;  %v6823_v20 = vpack.c.bf16 %v6347_v18, %v1102_v19  ;;  %v6868_v15 = vpack.c.bf16 %v6047_v13, %v6046_v12 }
 0x314   : > { %6820 = vmatprep.subr.bf16.mxu0 %v6819_v17  ;;  %v6371_v21 = vpop.f32.mrb[2].mxu1 }
 0x315   : > { %6822 = vmatpush3.bf16.msra.mxu0 %v6819_v17  ;;  %v1439_v23 = vpop.f32.mrb[3].mxu1 }
 0x316   : > { %6824 = vmatprep.subr.bf16.mxu0 %v6823_v20  ;;  %v6827_v24 = vpack.c.bf16 %v6371_v21, %v1439_v23 }
 0x318   : > { %6358 = vmatmul.mubr.msk.f32.vlgmr.msra.gmra.mrb[2].mxu0 %vm1205_vm3, %v6011_v22 }
 0x319   : > { %6826 = vmatpush3.bf16.msra.mxu0 %v6823_v20  ;;  %6364 = vmatprep.mubr.msk.f32.mxu0 %vm1205_vm3, %v8462_v25 }
 0x31a   : > { %6828 = vmatprep.subr.bf16.mxu0 %v6827_v24 }
 0x320   : > { %6365 = vmatmul.mubr.msk.f32.vlgmr.msra.gmra.mrb[2].mxu0 %vm1205_vm3, %v6006_v30  ;;  %v2195_v30 = vld [vmem:[#allocation10] sm:$0xff] }
 0x321   : > { %6830 = vmatpush3.bf16.msra.mxu0 %v6827_v24  ;;  %6376 = vmatprep.mubr.msk.f32.mxu0 %vm1205_vm3, %v8478_v31  ;;  %v2108_v24 = vadd.s32 2, %v1636_v55 }
 0x322   : > { %6840 = vmatprep.subr.bf16.mxu0 %v6839_v33 }
 0x323   : > { %vm2109_vm14 = vcmp.eq.s32.totalorder %v8441_v7, %v2108_v24  ;;  %v2660_v7 = vld [vmem:[%s8988_s10 + $0x8] sm:$0xff] }
 0x324   : > { %v8569_v29 = vsel %vm2109_vm14, 1.0, %v7826_v8  ;;  %v6894_v13 = vpack.c.bf16 %v2660_v7, %v2659_v6  ;;  %v3269_v6 = vld [vmem:[#allocation18 + $0x18] sm:$0xff] }
 0x328   : > { %6377 = vmatmul.mubr.msk.f32.vlgmr.msra.gmra.mrb[2].mxu0 %vm1205_vm3, %v6020_v34  ;;  %v6876_v34 = vpack.c.bf16 %v2196_v32, %v2195_v30  ;;  %v2893_v30 = vld [vmem:[#allocation15 + $0x20] sm:$0xff] }
 0x329   : > { %6842 = vmatpush3.bf16.msra.mxu0 %v6839_v33  ;;  %v2277_v33 = vld [vmem:[#allocation10 + $0x20] sm:$0xff] }
 0x32a   : > { %6844 = vmatprep.subr.bf16.mxu0 %v6843_v37  ;;  %v6882_v36 = vpack.c.bf16 %v2278_v35, %v2277_v33  ;;  %v2894_v33 = vld [vmem:[#allocation15 + $0x28] sm:$0xff]  ;;  %v2817_v35 = vld [vmem:[#allocation15 + $0x10] sm:$0xff] }
 0x32d   : > { %6846 = vmatpush3.bf16.msra.mxu0 %v6843_v37  ;;  %v2197_v37 = vld [vmem:[#allocation10 + $0x10] sm:$0xff] }
 0x32e   : > { %6854 = vmatprep.subr.bf16.mxu0 %v6853_v43  ;;  %v6879_v40 = vpack.c.bf16 %v2198_v38, %v2197_v37  ;;  %v2895_v37 = vld [vmem:[#allocation15 + $0x30] sm:$0xff] }
 0x3fb   : > { %v6378_v45 = vpop.f32.mrb[2].mxu0 }
 0x3fc   : > { %v1547_v46 = vadd.f32 %v6378_v45, %v6023_v44  ;;  %v1528_v47 = vpop.f32.mrb[3].mxu0 }
 0x3fd   : > { %v1546_v48 = vadd.f32 %v6023_v44, %v1528_v47  ;;  %v6052_v44 = vld [vmem:[#allocation7] ss:$0 sm:$0xff] }
 0x3fe   : > { %v1549_v52 = vmax.f32 %v1547_v46, 0.0 }
 0x3ff   : > { %v1548_v51 = vmax.f32 %v1546_v48, 0.0 }
 0x401   : > { %6387 = vmatprep.mubr.msk.f32.mxu1 %vm1554_vm9, %v1548_v51  ;;  %6398 = vmatprep.mubr.msk.f32.mxu0 %vm1554_vm9, %v1548_v51 }
 0x402   : > { %6388 = vmatmul.mubr.msk.f32.vlgmr.msra.gmra.mrb[4].mxu1 %vm1554_vm9, %v1549_v52  ;;  %6399 = vmatmul.mubr.msk.f32.vlgmr.msra.gmra.mrb[4].mxu0 %vm1554_vm9, %v1549_v52 }
 0x403   : > { %6856 = vmatpush3.bf16.msra.mxu0 %v6853_v43  ;;  %6423 = vmatprep.mubr.msk.f32.mxu0 %vm1554_vm9, %v1548_v51 }
 0x404   : > { %6858 = vmatprep.subr.bf16.mxu0 %v6857_v53  ;;  %6405 = vmatprep.mubr.msk.f32.mxu1 %vm7828_vm10, %v7826_v8 }
 0x407   : > { %6860 = vmatpush3.bf16.msra.mxu0 %v6857_v53 }
 0x408   : > { %6872 = vmatprep.subr.bf16.mxu0 %v7827_v54 }
 0x40a   : > { %6424 = vmatmul.mubr.msk.f32.vlgmr.msra.gmra.mrb[6].mxu0 %vm1554_vm9, %v1549_v52 }
 0x40b   : > { %6448 = vmatprep.mubr.msk.f32.mxu0 %vm7828_vm10, %v7826_v8 }
 0x4d5   : > { %v6389_v56 = vpop.f32.mrb[4].mxu1  ;;  %v6400_v57 = vpop.f32.mrb[4].mxu0 }
 0x4d6   : > { %v1627_v58 = vpop.f32.mrb[5].mxu1  ;;  %v1712_v59 = vpop.f32.mrb[5].mxu0 }
 0x4d7   : > { %v6851_v61 = vpack.c.bf16 %v6389_v56, %v1627_v58  ;;  %v6848_v62 = vpack.c.bf16 %v6400_v57, %v1712_v59  ;;  %v8592_v56 = vsel %vm2273_vm15, 1.0, %v7826_v8  ;;  %v2500_v57 = vld [vmem:[#allocation10 + $0x50] sm:$0xff]  ;;  %v2501_v58 = vld [vmem:[#allocation10 + $0x58] sm:$0xff] }
 0x4d9   : > { %6849 = vmatpush3.bf16.msra.mxu1 %v6848_v62 }
 0x4da   : > { %6850 = vmatprep.subr.bf16.mxu1 %v7827_v54 }
 0x4dc   : > { %6406 = vmatmul.mubr.msk.f32.vlgmr.msra.gmra.mrb[6].mxu1 %vm1205_vm3, %v8528_v63 }
 0x4dd   : > { %v6425_v3 = vpop.f32.mrb[6].mxu0  ;;  %6852 = vmatpush3.bf16.msra.mxu1 %v6851_v61  ;;  %6412 = vmatprep.mubr.msk.f32.mxu1 %vm7828_vm10, %v7826_v8  ;;  %v6891_v61 = vpack.c.bf16 %v2501_v58, %v2500_v57 }
 0x4de   : > { %v1941_v5 = vpop.f32.mrb[7].mxu0  ;;  %6861 = vmatprep.subr.bf16.mxu1 %v7827_v54 }
 0x4df   : > { %v6862_v11 = vpack.c.bf16 %v6425_v3, %v1941_v5 }
 0x4e0   : > { %6413 = vmatmul.mubr.msk.f32.vlgmr.msra.gmra.mrb[8].mxu1 %vm1205_vm3, %v8543_v4 }
 0x4e1   : > { %6863 = vmatpush3.bf16.msra.mxu1 %v6862_v11  ;;  %6430 = vmatprep.mubr.msk.f32.mxu1 %vm7828_vm10, %v7826_v8 }
 0x4e2   : > { %6865 = vmatprep.subr.bf16.mxu1 %v6864_v10 }
 0x4e4   : > { %6431 = vmatmul.mubr.msk.f32.vlgmr.msra.gmra.mrb[10].mxu1 %vm1205_vm3, %v8558_v14 }
 0x4e5   : > { %6867 = vmatpush3.bf16.msra.mxu1 %v6864_v10  ;;  %6441 = vmatprep.mubr.msk.f32.mxu1 %vm1554_vm9, %v1548_v51  ;;  %v2499_v51 = vld [vmem:[#allocation10 + $0x48] sm:$0xff]  ;;  %v8612_v10 = vsel %vm2573_vm1, 1.0, %v7826_v8 }
 0x4e6   : > { %6869 = vmatprep.subr.bf16.mxu1 %v6868_v15 }
 0x4e9   : > { %6871 = vmatpush3.bf16.msra.mxu1 %v6868_v15  ;;  %v2661_v15 = vld [vmem:[%s8988_s10 + $0x10] sm:$0xff] }
 0x4ea   : > { %6881 = vmatprep.subr.bf16.mxu1 %v7827_v54 }
 0x4ec   : > { %6442 = vmatmul.mubr.msk.f32.vlgmr.msra.gmra.mrb[12].mxu1 %vm1554_vm9, %v1549_v52  ;;  %v6888_v52 = vpack.c.bf16 %v2499_v51, %v2498_v50 }
 0x4ed   : > { %6470 = vmatprep.mubr.msk.f32.mxu1 %vm7828_vm10, %v7826_v8  ;;  %6883 = vmatpush3.bf16.msra.mxu1 %v6882_v36  ;;  %v2818_v36 = vld [vmem:[#allocation15 + $0x18] sm:$0xff] }
 0x4ee   : > { %6884 = vmatprep.subr.bf16.mxu1 %v7827_v54  ;;  %v6903_v38 = vpack.c.bf16 %v2818_v36, %v2817_v35  ;;  %v3502_v35 = vld [vmem:[#allocation21 + $0x38] sm:$0xff] }
 0x4f1   : > { %6886 = vmatpush3.bf16.msra.mxu1 %v6885_v42 }
 0x4f2   : > { %6478 = vmatprep.subr.mxu1 %v7826_v8 }
 0x5af   : > { %v1793_v16 = vpop.f32.mrb[6].mxu1 }
 0x5b0   : > { %v6407_v17 = vpop.f32.mrb[7].mxu1 }
 0x5b3   : > { %v1866_v18 = vpop.f32.mrb[8].mxu1 }
 0x5b4   : > { %v1867_v19 = vadd.f32 %v1866_v18, %v1793_v16  ;;  %v6414_v20 = vpop.f32.mrb[9].mxu1  ;;  %v2662_v16 = vld [vmem:[%s8988_s10 + $0x18] sm:$0xff] }
 0x5b5   : > { %v6897_v17 = vpack.c.bf16 %v2662_v16, %v2661_v15  ;;  %v6071_v15 = vld [vmem:[#allocation13] ss:$0 sm:$0xff] }
 0x5b7   : > { %v2023_v21 = vpop.f32.mrb[10].mxu1 }
 0x5b8   : > { %v2027_v22 = vadd.f32 %v2023_v21, %v1867_v19  ;;  %v6432_v23 = vpop.f32.mrb[11].mxu1  ;;  %v6061_v19 = vld [vmem:[#allocation9] ss:$0 sm:$0xff] }
 0x5bf   : > { %v6443_v26 = vpop.f32.mrb[12].mxu1 }
 0x5c0   : > { %v2099_v27 = vpop.f32.mrb[13].mxu1 }
 0x5c1   : > { %v6873_v28 = vpack.c.bf16 %v6443_v26, %v2099_v27  ;;  %v2815_v27 = vld [vmem:[#allocation15] sm:$0xff] }
 0x5c3   : > { %6874 = vmatpush3.bf16.msra.mxu0 %v6873_v28  ;;  %v2816_v28 = vld [vmem:[#allocation15 + $0x8] sm:$0xff] }
 0x5c4   : > { %6875 = vmatprep.subr.bf16.mxu0 %v7827_v54  ;;  %v6900_v32 = vpack.c.bf16 %v2816_v28, %v2815_v27 }
 0x5c6   : > { %6449 = vmatmul.mubr.msk.f32.vlgmr.msra.gmra.mrb[8].mxu0 %vm1205_vm3, %v8569_v29  ;;  %vm4174_vm3 = vcmask 31744  }
 0x5c7   : > { %6459 = vmatprep.mubr.msk.f32.mxu0 %vm7828_vm10, %v7826_v8  ;;  %6877 = vmatpush3.bf16.msra.mxu0 %v6876_v34  ;;  %v6906_v34 = vpack.c.bf16 %v2894_v33, %v2893_v30  ;;  %v3423_v30 = vld [vmem:[#allocation21 + $0x10] sm:$0xff] }
 0x5c8   : > { %6878 = vmatprep.subr.bf16.mxu0 %v7827_v54  ;;  %v3501_v33 = vld [vmem:[#allocation21 + $0x30] sm:$0xff] }
 0x5c9   : > { %v6933_v36 = vpack.c.bf16 %v3502_v35, %v3501_v33 }
 0x5cb   : > { %6880 = vmatpush3.bf16.msra.mxu0 %v6879_v40  ;;  %v6909_v40 = vpack.c.bf16 %v2896_v39, %v2895_v37  ;;  %v6073_v37 = vld [vmem:[#allocation16] ss:$0 sm:$0xff] }
 0x5cc   : > { %6473 = vmatprep.subr.mxu0 %v7826_v8 }
 0x699   : > { %v2181_v43 = vpop.f32.mrb[8].mxu0 }
 0x69a   : > { %v2185_v45 = vadd.f32 %v2181_v43, %v2027_v22  ;;  %v6450_v46 = vpop.f32.mrb[9].mxu0 }
 0x69c   : > { %v8580_v47 = vadd.f32 %v6052_v44, %v2185_v45 }
 0x69e   : > { %v2194_v48 = vmax.f32 %v8580_v47, 0.0 }
 0x6a0   : > { %6460 = vmatmul.mubr.msk.f32.vlgmr.msra.gmra.mrb[10].mxu0 %vm1554_vm9, %v2194_v48  ;;  %6471 = vmatmul.mubr.msk.f32.vlgmr.msra.gmra.mrb[14].mxu1 %vm1554_vm9, %v2194_v48 }
 0x6a1   : > { %6475 = vmatprep.mubr.msk.f32.mxu0 %vm7828_vm10, %v7826_v8  ;;  %6480 = vmatprep.mubr.msk.f32.mxu1 %vm7828_vm10, %v7826_v8 }
 0x773   : > { %v2268_v53 = vpop.f32.mrb[10].mxu0  ;;  %v2347_v55 = vpop.f32.mrb[14].mxu1 }
 0x774   : > { %v6461_v59 = vpop.f32.mrb[11].mxu0  ;;  %v6472_v60 = vpop.f32.mrb[15].mxu1  ;;  %6474 = vmatpush3.msra.mxu0 %v2347_v55  ;;  %6479 = vmatpush3.msra.mxu1 %v2268_v53  ;;  %v3112_v53 = vld [vmem:[#allocation15 + $0x50] sm:$0xff] }
 0x775   : > { %6476 = vmatmul.mubr.msk.f32.vlgmr.msra.gmra.mrb[12].mxu0 %vm2351_vm0, %v8446_v9  ;;  %6887 = vmatprep.subr.bf16.mxu0 %v7827_v54 }
 0x776   : > { %6481 = vmatmul.mubr.msk.f32.vlgmr.msra.gmra.mrb[16].mxu1 %vm2351_vm0, %v8592_v56  ;;  %6889 = vmatpush3.bf16.msra.mxu0 %v6888_v52 }
 0x777   : > { %6890 = vmatprep.subr.bf16.mxu0 %v7827_v54  ;;  %6491 = vmatprep.mubr.msk.f32.mxu0 %vm7828_vm10, %v7826_v8 }
 0x778   : > { %6494 = vmatprep.subr.mxu1 %v7826_v8  ;;  %6496 = vmatprep.mubr.msk.f32.mxu1 %vm7828_vm10, %v7826_v8 }
 0x77a   : > { %6892 = vmatpush3.bf16.msra.mxu0 %v6891_v61 }
 0x77b   : > { %6510 = vmatprep.subr.mxu0 %v7826_v8 }
 0x77d   : > { %6492 = vmatmul.mubr.msk.f32.vlgmr.msra.gmra.mrb[14].mxu0 %vm1554_vm9, %v2194_v48  ;;  %v3110_v48 = vld [vmem:[#allocation15 + $0x40] sm:$0xff] }
 0x77e   : > { %6512 = vmatprep.mubr.msk.f32.mxu0 %vm7828_vm10, %v7826_v8  ;;  %v6912_v50 = vpack.c.bf16 %v3111_v49, %v3110_v48  ;;  %v3720_v49 = vld [vmem:[#allocation21 + $0x50] sm:$0xff] }
 0x848   : > { %v2420_v62 = vpop.f32.mrb[12].mxu0 }
 0x849   : > { %v6477_v1 = vpop.f32.mrb[13].mxu0  ;;  %v2493_v2 = vpop.f32.mrb[16].mxu1 }
 0x84a   : > { %v2494_v3 = vadd.f32 %v2493_v2, %v2420_v62  ;;  %v6482_v5 = vpop.f32.mrb[17].mxu1 }
 0x84b   : > { %v3267_v5 = vld [vmem:[#allocation18 + $0x8] sm:$0xff] }
 0x850   : > { %v2568_v11 = vpop.f32.mrb[14].mxu0 }
 0x851   : > { %v6493_v12 = vpop.f32.mrb[15].mxu0  ;;  %6495 = vmatpush3.msra.mxu1 %v2568_v11 }
 0x852   : > { %6497 = vmatmul.mubr.msk.f32.vlgmr.msra.gmra.mrb[18].mxu1 %vm2351_vm0, %v8612_v10  ;;  %6893 = vmatprep.subr.bf16.mxu1 %v7827_v54  ;;  %v3268_v12 = vld [vmem:[#allocation18 + $0x10] sm:$0xff] }
 0x853   : > { %6507 = vmatprep.mubr.msk.f32.mxu1 %vm7828_vm10, %v7826_v8  ;;  %6895 = vmatpush3.bf16.msra.mxu1 %v6894_v13  ;;  %v6921_v7 = vpack.c.bf16 %v3269_v6, %v3268_v12  ;;  %v4022_v12 = vld [vmem:[#allocation24] sm:$0xff]  ;;  %v4023_v6 = vld [vmem:[#allocation24 + $0x8] sm:$0xff] }
 0x854   : > { %6896 = vmatprep.subr.bf16.mxu1 %v7827_v54 }
 0x857   : > { %6898 = vmatpush3.bf16.msra.mxu1 %v6897_v17 }
 0x858   : > { %6905 = vmatprep.subr.bf16.mxu1 %v7827_v54 }
 0x925   : > { %v2645_v18 = vpop.f32.mrb[18].mxu1 }
 0x926   : > { %v2649_v20 = vadd.f32 %v2645_v18, %v2494_v3  ;;  %v6498_v21 = vpop.f32.mrb[19].mxu1  ;;  %v3266_v3 = vld [vmem:[#allocation18] sm:$0xff] }
 0x927   : > { %v6918_v11 = vpack.c.bf16 %v3267_v5, %v3266_v3  ;;  %v3500_v21 = vld [vmem:[#allocation21 + $0x28] sm:$0xff] }
 0x928   : > { %v2657_v22 = vadd.f32 %v6061_v19, %v2649_v20  ;;  %v3499_v20 = vld [vmem:[#allocation21 + $0x20] sm:$0xff] }
 0x92a   : > { %v2658_v23 = vmax.f32 %v2657_v22, 0.0  ;;  %v6930_v22 = vpack.c.bf16 %v3500_v21, %v3499_v20  ;;  %v4103_v20 = vld [vmem:[#allocation24 + $0x38] sm:$0xff] }
 0x92c   : > { %6508 = vmatmul.mubr.msk.f32.vlgmr.msra.gmra.mrb[20].mxu1 %vm1554_vm9, %v2658_v23  ;;  %v3421_v23 = vld [vmem:[#allocation21] sm:$0xff] }
 0x92d   : > { %6534 = vmatprep.mubr.msk.f32.mxu1 %vm7828_vm10, %v7826_v8  ;;  %6907 = vmatpush3.bf16.msra.mxu1 %v6906_v34 }
 0x92e   : > { %6908 = vmatprep.subr.bf16.mxu1 %v7827_v54 }
 0x931   : > { %6910 = vmatpush3.bf16.msra.mxu1 %v6909_v40 }
 0x932   : > { %6542 = vmatprep.subr.mxu1 %v7826_v8 }
 0x9ff   : > { %v2732_v24 = vpop.f32.mrb[20].mxu1 }
 0xa00   : > { %v6509_v26 = vpop.f32.mrb[21].mxu1  ;;  %6511 = vmatpush3.msra.mxu0 %v2732_v24  ;;  %v3422_v24 = vld [vmem:[#allocation21 + $0x8] sm:$0xff] }
 0xa01   : > { %6513 = vmatmul.mubr.msk.f32.vlgmr.msra.gmra.mrb[16].mxu0 %vm2351_vm0, %v8446_v9  ;;  %6899 = vmatprep.subr.bf16.mxu0 %v7827_v54  ;;  %v6924_v26 = vpack.c.bf16 %v3422_v24, %v3421_v23  ;;  %v6083_v23 = vld [vmem:[#allocation19] ss:$0 sm:$0xff] }
 0xa02   : > { %6523 = vmatprep.mubr.msk.f32.mxu0 %vm7828_vm10, %v7826_v8  ;;  %6901 = vmatpush3.bf16.msra.mxu0 %v6900_v32  ;;  %v3424_v32 = vld [vmem:[#allocation21 + $0x18] sm:$0xff] }
 0xa03   : > { %6902 = vmatprep.subr.bf16.mxu0 %v7827_v54  ;;  %v6927_v34 = vpack.c.bf16 %v3424_v32, %v3423_v30  ;;  %v4327_v30 = vld [vmem:[#allocation24 + $0x40] sm:$0xff]  ;;  %v4328_v32 = vld [vmem:[#allocation24 + $0x48] sm:$0xff] }
 0xa04   : > { %v6960_v33 = vpack.c.bf16 %v4328_v32, %v4327_v30 }
 0xa06   : > { %6904 = vmatpush3.bf16.msra.mxu0 %v6903_v38 }
 0xa07   : > { %6537 = vmatprep.subr.mxu0 %v7826_v8 }
 0xad4   : > { %v2809_v42 = vpop.f32.mrb[16].mxu0 }
 0xad5   : > { %v2810_v43 = vadd.f32 %v6063_v41, %v2809_v42  ;;  %v6514_v44 = vpop.f32.mrb[17].mxu0  ;;  %v3718_v42 = vld [vmem:[#allocation21 + $0x40] sm:$0xff] }
 0xad7   : > { %v8646_v45 = vadd.f32 %v2810_v43, %v8580_v47  ;;  %v3113_v47 = vld [vmem:[#allocation15 + $0x58] sm:$0xff]  ;;  %v3719_v43 = vld [vmem:[#allocation21 + $0x48] sm:$0xff] }
 0xad8   : > { %v6915_v58 = vpack.c.bf16 %v3113_v47, %v3112_v53  ;;  %v6936_v44 = vpack.c.bf16 %v3719_v43, %v3718_v42 }
 0xad9   : > { %v2814_v46 = vmax.f32 %v8646_v45, 0.0 }
 0xadb   : > { %6524 = vmatmul.mubr.msk.f32.vlgmr.msra.gmra.mrb[18].mxu0 %vm1554_vm9, %v2814_v46  ;;  %6535 = vmatmul.mubr.msk.f32.vlgmr.msra.gmra.mrb[22].mxu1 %vm1554_vm9, %v2814_v46 }
 0xadc   : > { %6539 = vmatprep.mubr.msk.f32.mxu0 %vm7828_vm10, %v7826_v8  ;;  %6544 = vmatprep.mubr.msk.f32.mxu1 %vm7828_vm10, %v7826_v8 }
 0xbae   : > { %v2888_v51 = vpop.f32.mrb[18].mxu0  ;;  %v2963_v52 = vpop.f32.mrb[22].mxu1 }
 0xbaf   : > { %v6525_v55 = vpop.f32.mrb[19].mxu0  ;;  %v6536_v57 = vpop.f32.mrb[23].mxu1  ;;  %6538 = vmatpush3.msra.mxu0 %v2963_v52  ;;  %6543 = vmatpush3.msra.mxu1 %v2888_v51 }
 0xbb0   : > { %6540 = vmatmul.mubr.msk.f32.vlgmr.msra.gmra.mrb[20].mxu0 %vm2351_vm0, %v8446_v9  ;;  %6911 = vmatprep.subr.bf16.mxu0 %v7827_v54  ;;  %v3866_v57 = vld [vmem:[#allocation21 + $0x60] sm:$0xff] }
 0xbb1   : > { %6545 = vmatmul.mubr.msk.f32.vlgmr.msra.gmra.mrb[24].mxu1 %vm2351_vm0, %v8462_v25  ;;  %6913 = vmatpush3.bf16.msra.mxu0 %v6912_v50  ;;  %v3721_v50 = vld [vmem:[#allocation21 + $0x58] sm:$0xff] }
 0xbb2   : > { %6914 = vmatprep.subr.bf16.mxu0 %v7827_v54  ;;  %6555 = vmatprep.mubr.msk.f32.mxu0 %vm7828_vm10, %v7826_v8 }
 0xbb3   : > { %6558 = vmatprep.subr.mxu1 %v7826_v8  ;;  %6560 = vmatprep.mubr.msk.f32.mxu1 %vm7828_vm10, %v7826_v8 }
 0xbb5   : > { %6916 = vmatpush3.bf16.msra.mxu0 %v6915_v58  ;;  %v3867_v58 = vld [vmem:[#allocation21 + $0x68] sm:$0xff] }
 0xbb6   : > { %6574 = vmatprep.subr.mxu0 %v7826_v8 }
 0xbb8   : > { %6556 = vmatmul.mubr.msk.f32.vlgmr.msra.gmra.mrb[22].mxu0 %vm1554_vm9, %v2814_v46 }
 0xbb9   : > { %6576 = vmatprep.mubr.msk.f32.mxu0 %vm7828_vm10, %v7826_v8 }
 0xc83   : > { %v3033_v59 = vpop.f32.mrb[20].mxu0 }
 0xc84   : > { %v6541_v60 = vpop.f32.mrb[21].mxu0  ;;  %v3105_v61 = vpop.f32.mrb[24].mxu1 }
 0xc85   : > { %v3106_v62 = vadd.f32 %v3105_v61, %v3033_v59  ;;  %v6546_v0 = vpop.f32.mrb[25].mxu1  ;;  %v6942_v59 = vpack.c.bf16 %v3867_v58, %v3866_v57  ;;  %v3868_v61 = vld [vmem:[#allocation21 + $0x70] sm:$0xff] }
 0xc8b   : > { %v3180_v1 = vpop.f32.mrb[22].mxu0 }
 0xc8c   : > { %v6557_v2 = vpop.f32.mrb[23].mxu0  ;;  %6559 = vmatpush3.msra.mxu1 %v3180_v1 }
 0xc8d   : > { %6561 = vmatmul.mubr.msk.f32.vlgmr.msra.gmra.mrb[26].mxu1 %vm2351_vm0, %v8478_v31  ;;  %6917 = vmatprep.subr.bf16.mxu1 %v7827_v54 }
 0xc8e   : > { %6571 = vmatprep.mubr.msk.f32.mxu1 %vm7828_vm10, %v7826_v8  ;;  %6919 = vmatpush3.bf16.msra.mxu1 %v6918_v11 }
 0xc8f   : > { %6920 = vmatprep.subr.bf16.mxu1 %v7827_v54 }
 0xc92   : > { %6922 = vmatpush3.bf16.msra.mxu1 %v6921_v7  ;;  %v4100_v7 = vld [vmem:[#allocation24 + $0x20] sm:$0xff] }
 0xc93   : > { %6929 = vmatprep.subr.bf16.mxu1 %v7827_v54 }
 0xd60   : > { %v3252_v13 = vpop.f32.mrb[26].mxu1 }
 0xd61   : > { %v3256_v16 = vadd.f32 %v3252_v13, %v3106_v62  ;;  %v6562_v17 = vpop.f32.mrb[27].mxu1  ;;  %v3869_v62 = vld [vmem:[#allocation21 + $0x78] sm:$0xff]  ;;  %v6948_v13 = vpack.c.bf16 %v4023_v6, %v4022_v12 }
 0xd62   : > { %v6945_v1 = vpack.c.bf16 %v3869_v62, %v3868_v61  ;;  %v4024_v17 = vld [vmem:[#allocation24 + $0x10] sm:$0xff]  ;;  %v4723_v62 = vld [vmem:[#allocation28 + $0x20] sm:$0xff]  ;;  %v4726_v12 = vld [vmem:[#allocation28 + $0x38] sm:$0xff] }
 0xd63   : > { %v3264_v18 = vadd.f32 %v6071_v15, %v3256_v16  ;;  %v4101_v15 = vld [vmem:[#allocation24 + $0x28] sm:$0xff] }
 0xd64   : > { %v6954_v16 = vpack.c.bf16 %v4101_v15, %v4100_v7  ;;  %v4646_v61 = vld [vmem:[#allocation28 + $0x8] sm:$0xff]  ;;  %v6095_v7 = vld [vmem:[#allocation25] ss:$0 sm:$0xff] }
 0xd65   : > { %v3265_v19 = vmax.f32 %v3264_v18, 0.0  ;;  %v4025_v18 = vld [vmem:[#allocation24 + $0x18] sm:$0xff] }
 0xd67   : > { %6572 = vmatmul.mubr.msk.f32.vlgmr.msra.gmra.mrb[28].mxu1 %vm1554_vm9, %v3265_v19  ;;  %v4102_v19 = vld [vmem:[#allocation24 + $0x30] sm:$0xff] }
 0xd68   : > { %6598 = vmatprep.mubr.msk.f32.mxu1 %vm7828_vm10, %v7826_v8  ;;  %6931 = vmatpush3.bf16.msra.mxu1 %v6930_v22  ;;  %v6957_v21 = vpack.c.bf16 %v4103_v20, %v4102_v19  ;;  %v4946_v19 = vld [vmem:[#allocation28 + $0x40] sm:$0xff] }
 0xd69   : > { %6932 = vmatprep.subr.bf16.mxu1 %v7827_v54 }
 0xd6c   : > { %6934 = vmatpush3.bf16.msra.mxu1 %v6933_v36  ;;  %v4329_v36 = vld [vmem:[#allocation24 + $0x50] sm:$0xff] }
 0xd6d   : > { %6606 = vmatprep.subr.mxu1 %v7826_v8 }
 0xe3a   : > { %v3339_v27 = vpop.f32.mrb[28].mxu1 }
 0xe3b   : > { %v6573_v28 = vpop.f32.mrb[29].mxu1  ;;  %6575 = vmatpush3.msra.mxu0 %v3339_v27 }
 0xe3c   : > { %6577 = vmatmul.mubr.msk.f32.vlgmr.msra.gmra.mrb[24].mxu0 %vm2351_vm0, %v8446_v9  ;;  %6923 = vmatprep.subr.bf16.mxu0 %v7827_v54 }
 0xe3d   : > { %6925 = vmatpush3.bf16.msra.mxu0 %v6924_v26  ;;  %6587 = vmatprep.mubr.msk.f32.mxu0 %vm7828_vm10, %v7826_v8 }
 0xe3e   : > { %6926 = vmatprep.subr.bf16.mxu0 %v7827_v54 }
 0xe41   : > { %6928 = vmatpush3.bf16.msra.mxu0 %v6927_v34 }
 0xe42   : > { %6601 = vmatprep.subr.mxu0 %v7826_v8 }
 0xf0f   : > { %v3416_v38 = vpop.f32.mrb[24].mxu0 }
 0xf10   : > { %v3417_v39 = vadd.f32 %v6073_v37, %v3416_v38  ;;  %v6578_v40 = vpop.f32.mrb[25].mxu0  ;;  %v4330_v37 = vld [vmem:[#allocation24 + $0x58] sm:$0xff] }
 0xf11   : > { %v6963_v40 = vpack.c.bf16 %v4330_v37, %v4329_v36 }
 0xf12   : > { %v3420_v41 = vadd.f32 %v3417_v39, %v8646_v45  ;;  %v6939_v45 = vpack.c.bf16 %v3721_v50, %v3720_v49  ;;  %v4486_v49 = vld [vmem:[%s8989_s3] sm:$0xff]  ;;  %v4487_v50 = vld [vmem:[%s8989_s3 + $0x8] sm:$0xff] }
 0xf14   : > { %6588 = vmatmul.mubr.msk.f32.vlgmr.msra.gmra.mrb[26].mxu0 %vm1554_vm9, %v3420_v41  ;;  %6599 = vmatmul.mubr.msk.f32.vlgmr.msra.gmra.mrb[30].mxu1 %vm1554_vm9, %v3420_v41 }
 0xf15   : > { %6603 = vmatprep.mubr.msk.f32.mxu0 %vm7828_vm10, %v7826_v8  ;;  %6608 = vmatprep.mubr.msk.f32.mxu1 %vm7828_vm10, %v7826_v8 }
 0xfe7   : > { %v3494_v46 = vpop.f32.mrb[26].mxu0  ;;  %v3569_v48 = vpop.f32.mrb[30].mxu1 }
 0xfe8   : > { %v6589_v51 = vpop.f32.mrb[27].mxu0  ;;  %v6600_v52 = vpop.f32.mrb[31].mxu1  ;;  %6602 = vmatpush3.msra.mxu0 %v3569_v48  ;;  %6607 = vmatpush3.msra.mxu1 %v3494_v46 }
 0xfe9   : > { %6604 = vmatmul.mubr.msk.f32.vlgmr.msra.gmra.mrb[28].mxu0 %vm2351_vm0, %v8528_v63  ;;  %6935 = vmatprep.subr.bf16.mxu0 %v7827_v54  ;;  %v6966_v51 = vpack.c.bf16 %v4487_v50, %v4486_v49  ;;  %v4489_v52 = vld [vmem:[%s8989_s3 + $0x18] sm:$0xff] }
 0xfea   : > { %6609 = vmatmul.mubr.msk.f32.vlgmr.msra.gmra.mrb[32].mxu1 %vm2351_vm0, %v8543_v4  ;;  %6937 = vmatpush3.bf16.msra.mxu0 %v6936_v44 }
 0xfeb   : > { %6938 = vmatprep.subr.bf16.mxu0 %v7827_v54  ;;  %6619 = vmatprep.mubr.msk.f32.mxu0 %vm7828_vm10, %v7826_v8 }
 0xfec   : > { %6622 = vmatprep.subr.mxu1 %v7826_v8  ;;  %6624 = vmatprep.mubr.msk.f32.mxu1 %vm7828_vm10, %v7826_v8 }
 0xfee   : > { %6940 = vmatpush3.bf16.msra.mxu0 %v6939_v45 }
 0xfef   : > { %6638 = vmatprep.subr.mxu0 %v7826_v8 }
 0xff1   : > { %6620 = vmatmul.mubr.msk.f32.vlgmr.msra.gmra.mrb[30].mxu0 %vm1554_vm9, %v3420_v41 }
 0xff2   : > { %6640 = vmatprep.mubr.msk.f32.mxu0 %vm7828_vm10, %v7826_v8 }
0x10bc   : > { %v3641_v63 = vpop.f32.mrb[28].mxu0 }
0x10bd   : > { %v6605_v4 = vpop.f32.mrb[29].mxu0  ;;  %v3713_v53 = vpop.f32.mrb[32].mxu1 }
0x10be   : > { %v3714_v47 = vadd.f32 %v3713_v53, %v3641_v63  ;;  %v6610_v55 = vpop.f32.mrb[33].mxu1  ;;  %v6093_v4 = vld [vmem:[#allocation22] ss:$0 sm:$0xff] }
0x10c4   : > { %v3788_v60 = vpop.f32.mrb[30].mxu0 }
0x10c5   : > { %v6621_v0 = vpop.f32.mrb[31].mxu0  ;;  %6623 = vmatpush3.msra.mxu1 %v3788_v60  ;;  %v4645_v60 = vld [vmem:[#allocation28] sm:$0xff] }
0x10c6   : > { %6625 = vmatmul.mubr.msk.f32.vlgmr.msra.gmra.mrb[34].mxu1 %vm2351_vm0, %v8558_v14  ;;  %6941 = vmatprep.subr.bf16.mxu1 %v7827_v54  ;;  %v6972_v0 = vpack.c.bf16 %v4646_v61, %v4645_v60  ;;  %v5344_v60 = vld [vmem:[#allocation6 + $0x38] sm:$0xff] }
0x10c7   : > { %6943 = vmatpush3.bf16.msra.mxu1 %v6942_v59  ;;  %6635 = vmatprep.mubr.msk.f32.mxu1 %vm7828_vm10, %v7826_v8 }
0x10c8   : > { %6944 = vmatprep.subr.bf16.mxu1 %v7827_v54 }
0x10cb   : > { %6946 = vmatpush3.bf16.msra.mxu1 %v6945_v1  ;;  %v4724_v1 = vld [vmem:[#allocation28 + $0x28] sm:$0xff] }
0x10cc   : > { %6953 = vmatprep.subr.bf16.mxu1 %v7827_v54 }
0x10ce   : > { %6636 = vmatmul.mubr.msk.f32.vlgmr.msra.gmra.mrb[36].mxu1 %vm1554_vm9, %v3420_v41 }
0x10cf   : > { %6662 = vmatprep.mubr.msk.f32.mxu1 %vm7828_vm10, %v7826_v8  ;;  %6955 = vmatpush3.bf16.msra.mxu1 %v6954_v16 }
0x10d0   : > { %6956 = vmatprep.subr.bf16.mxu1 %v7827_v54 }
0x10d3   : > { %6958 = vmatpush3.bf16.msra.mxu1 %v6957_v21 }
0x10d4   : > { %6670 = vmatprep.subr.mxu1 %v7826_v8 }
0x1199   : > { %v3860_v2 = vpop.f32.mrb[34].mxu1 }
0x119a   : > { %v3864_v3 = vadd.f32 %v3860_v2, %v3714_v47  ;;  %v6626_v14 = vpop.f32.mrb[35].mxu1  ;;  %v6978_v2 = vpack.c.bf16 %v4724_v1, %v4723_v62  ;;  %v6109_v62 = vld [vmem:[#allocation30] ss:$0 sm:$0xff] }
0x119b   : > { %v4648_v14 = vld [vmem:[#allocation28 + $0x18] sm:$0xff] }
0x11a1   : > { %v3936_v5 = vpop.f32.mrb[36].mxu1 }
0x11a2   : > { %v6637_v11 = vpop.f32.mrb[37].mxu1  ;;  %6639 = vmatpush3.msra.mxu0 %v3936_v5  ;;  %v4725_v5 = vld [vmem:[#allocation28 + $0x30] sm:$0xff] }
0x11a3   : > { %6641 = vmatmul.mubr.msk.f32.vlgmr.msra.gmra.mrb[32].mxu0 %vm2351_vm0, %v8569_v29  ;;  %6947 = vmatprep.subr.bf16.mxu0 %v7827_v54  ;;  %v6951_v29 = vpack.c.bf16 %v4025_v18, %v4024_v17  ;;  %v6981_v6 = vpack.c.bf16 %v4726_v12, %v4725_v5  ;;  %v5563_v5 = vld [vmem:[#allocation6 + $0x48] sm:$0xff] }
0x11a4   : > { %6651 = vmatprep.mubr.msk.f32.mxu0 %vm7828_vm10, %v7826_v8  ;;  %6949 = vmatpush3.bf16.msra.mxu0 %v6948_v13 }
0x11a5   : > { %6950 = vmatprep.subr.bf16.mxu0 %v7827_v54 }
0x11a8   : > { %6952 = vmatpush3.bf16.msra.mxu0 %v6951_v29  ;;  %v4947_v29 = vld [vmem:[#allocation28 + $0x48] sm:$0xff] }
0x11a9   : > { %6665 = vmatprep.subr.mxu0 %v7826_v8  ;;  %v6984_v20 = vpack.c.bf16 %v4947_v29, %v4946_v19 }
0x1276   : > { %v4008_v22 = vpop.f32.mrb[32].mxu0 }
0x1277   : > { %v4012_v24 = vadd.f32 %v4008_v22, %v3864_v3  ;;  %v6642_v26 = vpop.f32.mrb[33].mxu0  ;;  %v4647_v3 = vld [vmem:[#allocation28 + $0x10] sm:$0xff] }
0x1278   : > { %v6975_v11 = vpack.c.bf16 %v4648_v14, %v4647_v3  ;;  %v5562_v14 = vld [vmem:[#allocation6 + $0x40] sm:$0xff] }
0x1279   : > { %v8730_v27 = vadd.f32 %v6083_v23, %v4012_v24  ;;  %v4948_v23 = vld [vmem:[#allocation28 + $0x50] sm:$0xff]  ;;  %v4949_v24 = vld [vmem:[#allocation28 + $0x58] sm:$0xff] }
0x127b   : > { %v4021_v28 = vmax.f32 %v8730_v27, 0.0 }
0x127d   : > { %6652 = vmatmul.mubr.msk.f32.vlgmr.msra.gmra.mrb[34].mxu0 %vm1554_vm9, %v4021_v28  ;;  %6663 = vmatmul.mubr.msk.f32.vlgmr.msra.gmra.mrb[38].mxu1 %vm1554_vm9, %v4021_v28 }
0x127e   : > { %6667 = vmatprep.mubr.msk.f32.mxu0 %vm7828_vm10, %v7826_v8  ;;  %6672 = vmatprep.mubr.msk.f32.mxu1 %vm7828_vm10, %v7826_v8 }
0x1350   : > { %v4095_v34 = vpop.f32.mrb[34].mxu0  ;;  %v4170_v35 = vpop.f32.mrb[38].mxu1 }
0x1351   : > { %v6653_v38 = vpop.f32.mrb[35].mxu0  ;;  %v6664_v39 = vpop.f32.mrb[39].mxu1  ;;  %6666 = vmatpush3.msk.msra.mxu0 %vm4177_vm2, %v4170_v35  ;;  %6671 = vmatpush3.msk.msra.mxu1 %vm4177_vm2, %v4095_v34 }
0x1352   : > { %6668 = vmatmul.mubr.msk.f32.vlgmr.msra.gmra.mrb[36].mxu0 %vm4174_vm3, %v8446_v9  ;;  %6959 = vmatprep.subr.bf16.mxu0 %v7827_v54  ;;  %v5105_v38 = vld [vmem:[%s8990_s6] sm:$0xff]  ;;  %v5106_v39 = vld [vmem:[%s8990_s6 + $0x8] sm:$0xff] }
0x1353   : > { %6673 = vmatmul.mubr.msk.f32.vlgmr.msra.gmra.mrb[40].mxu1 %vm4174_vm3, %v8592_v56  ;;  %6961 = vmatpush3.bf16.msra.mxu0 %v6960_v33 }
0x1354   : > { %6962 = vmatprep.subr.bf16.mxu0 %v7827_v54  ;;  %6683 = vmatprep.mubr.msk.f32.mxu0 %vm7828_vm10, %v7826_v8 }
0x1355   : > { %6686 = vmatprep.subr.mxu1 %v7826_v8  ;;  %6688 = vmatprep.mubr.msk.f32.mxu1 %vm7828_vm10, %v7826_v8 }
0x1357   : > { %6964 = vmatpush3.bf16.msra.mxu0 %v6963_v40  ;;  %v6990_v40 = vpack.c.bf16 %v5106_v39, %v5105_v38 }
0x1358   : > { %6702 = vmatprep.subr.mxu0 %v7826_v8 }
0x135a   : > { %6684 = vmatmul.mubr.msk.f32.vlgmr.msra.gmra.mrb[38].mxu0 %vm1554_vm9, %v4021_v28  ;;  %v6987_v28 = vpack.c.bf16 %v4949_v24, %v4948_v23 }
0x135b   : > { %6704 = vmatprep.mubr.msk.f32.mxu0 %vm7828_vm10, %v7826_v8 }
0x1425   : > { %v4247_v56 = vpop.f32.mrb[36].mxu0 }
0x1426   : > { %v6669_v41 = vpop.f32.mrb[37].mxu0  ;;  %v4322_v42 = vpop.f32.mrb[40].mxu1 }
0x1427   : > { %v4323_v43 = vadd.f32 %v4322_v42, %v4247_v56  ;;  %v6674_v44 = vpop.f32.mrb[41].mxu1  ;;  %v5107_v56 = vld [vmem:[%s8990_s6 + $0x10] sm:$0xff]  ;;  %v5108_v41 = vld [vmem:[%s8990_s6 + $0x18] sm:$0xff] }
0x1428   : > { %v6993_v42 = vpack.c.bf16 %v5108_v41, %v5107_v56  ;;  %v6107_v44 = vld [vmem:[#allocation27] ss:$0 sm:$0xff] }
0x142d   : > { %v4397_v46 = vpop.f32.mrb[38].mxu0 }
0x142e   : > { %v6685_v48 = vpop.f32.mrb[39].mxu0  ;;  %6687 = vmatpush3.msk.msra.mxu1 %vm4177_vm2, %v4397_v46 }
0x142f   : > { %6689 = vmatmul.mubr.msk.f32.vlgmr.msra.gmra.mrb[42].mxu1 %vm4174_vm3, %v8612_v10  ;;  %6965 = vmatprep.subr.bf16.mxu1 %v7827_v54  ;;  %v4488_v10 = vld [vmem:[%s8989_s3 + $0x10] sm:$0xff] }
0x1430   : > { %6699 = vmatprep.mubr.msk.f32.mxu1 %vm7828_vm10, %v7826_v8  ;;  %6967 = vmatpush3.bf16.msra.mxu1 %v6966_v51  ;;  %v6969_v45 = vpack.c.bf16 %v4489_v52, %v4488_v10  ;;  %v5341_v51 = vld [vmem:[#allocation6 + $0x20] sm:$0xff]  ;;  %v5342_v10 = vld [vmem:[#allocation6 + $0x28] sm:$0xff] }
0x1431   : > { %6968 = vmatprep.subr.bf16.mxu1 %v7827_v54  ;;  %v7002_v52 = vpack.c.bf16 %v5342_v10, %v5341_v51 }
0x1434   : > { %6970 = vmatpush3.bf16.msra.mxu1 %v6969_v45  ;;  %v5263_v45 = vld [vmem:[#allocation6] sm:$0xff] }
0x1435   : > { %6977 = vmatprep.subr.bf16.mxu1 %v7827_v54 }
0x1502   : > { %v4472_v63 = vpop.f32.mrb[42].mxu1 }
0x1503   : > { %v4476_v53 = vadd.f32 %v4472_v63, %v4323_v43  ;;  %v6690_v47 = vpop.f32.mrb[43].mxu1  ;;  %v5264_v63 = vld [vmem:[#allocation6 + $0x8] sm:$0xff] }
0x1505   : > { %v4484_v55 = vadd.f32 %v6093_v4, %v4476_v53  ;;  %v6996_v4 = vpack.c.bf16 %v5264_v63, %v5263_v45 }
0x1507   : > { %v4485_v57 = vmax.f32 %v4484_v55, 0.0  ;;  %v5265_v55 = vld [vmem:[#allocation6 + $0x10] sm:$0xff] }
0x1509   : > { %6700 = vmatmul.mubr.msk.f32.vlgmr.msra.gmra.mrb[44].mxu1 %vm1554_vm9, %v4485_v57  ;;  %v5266_v57 = vld [vmem:[#allocation6 + $0x18] sm:$0xff] }
0x150a   : > { %6726 = vmatprep.mubr.msk.f32.mxu1 %vm7828_vm10, %v7826_v8  ;;  %6979 = vmatpush3.bf16.msra.mxu1 %v6978_v2 }
0x150b   : > { %6980 = vmatprep.subr.bf16.mxu1 %v7827_v54 }
0x150e   : > { %6982 = vmatpush3.bf16.msra.mxu1 %v6981_v6 }
0x150f   : > { %6734 = vmatprep.subr.mxu1 %v7826_v8 }
0x15dc   : > { %v4559_v58 = vpop.f32.mrb[44].mxu1 }
0x15dd   : > { %v6701_v59 = vpop.f32.mrb[45].mxu1  ;;  %6703 = vmatpush3.msk.msra.mxu0 %vm4177_vm2, %v4559_v58  ;;  %v5343_v58 = vld [vmem:[#allocation6 + $0x30] sm:$0xff] }
0x15de   : > { %6705 = vmatmul.mubr.msk.f32.vlgmr.msra.gmra.mrb[40].mxu0 %vm4174_vm3, %v8446_v9  ;;  %6971 = vmatprep.subr.bf16.mxu0 %v7827_v54  ;;  %v6999_v59 = vpack.c.bf16 %v5266_v57, %v5265_v55  ;;  %v7005_v61 = vpack.c.bf16 %v5344_v60, %v5343_v58 }
0x15df   : > { %6715 = vmatprep.mubr.msk.f32.mxu0 %vm7828_vm10, %v7826_v8  ;;  %6973 = vmatpush3.bf16.msra.mxu0 %v6972_v0 }
0x15e0   : > { %6974 = vmatprep.subr.bf16.mxu0 %v7827_v54 }
0x15e3   : > { %6976 = vmatpush3.bf16.msra.mxu0 %v6975_v11  ;;  %v7008_v11 = vpack.c.bf16 %v5563_v5, %v5562_v14 }
0x15e4   : > { %6729 = vmatprep.subr.mxu0 %v7826_v8 }
0x16b1   : > { %v4639_v13 = vpop.f32.mrb[40].mxu0 }
0x16b2   : > { %v4640_v15 = vadd.f32 %v6095_v7, %v4639_v13  ;;  %v6706_v16 = vpop.f32.mrb[41].mxu0  ;;  %v5564_v7 = vld [vmem:[#allocation6 + $0x50] sm:$0xff]  ;;  %v5565_v13 = vld [vmem:[#allocation6 + $0x58] sm:$0xff] }
0x16b4   : > { %v8790_v17 = vadd.f32 %v4640_v15, %v8730_v27 }
0x16b6   : > { %v4644_v18 = vmax.f32 %v8790_v17, 0.0 }
0x16b8   : > { %6716 = vmatmul.mubr.msk.f32.vlgmr.msra.gmra.mrb[42].mxu0 %vm1554_vm9, %v4644_v18  ;;  %6727 = vmatmul.mubr.msk.f32.vlgmr.msra.gmra.mrb[46].mxu1 %vm1554_vm9, %v4644_v18 }
0x16b9   : > { %6731 = vmatprep.mubr.msk.f32.mxu0 %vm7828_vm10, %v7826_v8  ;;  %6736 = vmatprep.mubr.msk.f32.mxu1 %vm7828_vm10, %v7826_v8 }
0x178b   : > { %v4718_v21 = vpop.f32.mrb[42].mxu0  ;;  %v4793_v22 = vpop.f32.mrb[46].mxu1 }
0x178c   : > { %v6717_v26 = vpop.f32.mrb[43].mxu0  ;;  %v6728_v27 = vpop.f32.mrb[47].mxu1  ;;  %6730 = vmatpush3.msk.msra.mxu0 %vm4177_vm2, %v4793_v22  ;;  %6735 = vmatpush3.msk.msra.mxu1 %vm4177_vm2, %v4718_v21  ;;  %v6121_v22 = vld [vmem:[#allocation4] ss:$0 sm:$0xff] }
0x178d   : > { %6732 = vmatmul.mubr.msk.f32.vlgmr.msra.gmra.mrb[44].mxu0 %vm4174_vm3, %v8446_v9  ;;  %6983 = vmatprep.subr.bf16.mxu0 %v7827_v54 }
0x178e   : > { %6737 = vmatmul.mubr.msk.f32.vlgmr.msra.gmra.mrb[48].mxu1 %vm4174_vm3, %v8462_v25  ;;  %6985 = vmatpush3.bf16.msra.mxu0 %v6984_v20 }
0x178f   : > { %6986 = vmatprep.subr.bf16.mxu0 %v7827_v54  ;;  %6747 = vmatprep.mubr.msk.f32.mxu0 %vm7828_vm10, %v7826_v8 }
0x1790   : > { %6750 = vmatprep.subr.mxu1 %v7826_v8  ;;  %6752 = vmatprep.mubr.msk.f32.mxu1 %vm7828_vm10, %v7826_v8 }
0x1792   : > { %6988 = vmatpush3.bf16.msra.mxu0 %v6987_v28 }
0x1793   : > { %6766 = vmatprep.subr.mxu0 %v7826_v8 }
0x1795   : > { %6748 = vmatmul.mubr.msk.f32.vlgmr.msra.gmra.mrb[46].mxu0 %vm1554_vm9, %v4644_v18 }
0x1796   : > { %6768 = vmatprep.mubr.msk.f32.mxu0 %vm7828_vm10, %v7826_v8 }
0x1860   : > { %v4866_v30 = vpop.f32.mrb[44].mxu0 }
0x1861   : > { %v6733_v32 = vpop.f32.mrb[45].mxu0  ;;  %v4941_v33 = vpop.f32.mrb[48].mxu1 }
0x1862   : > { %v4942_v34 = vadd.f32 %v4941_v33, %v4866_v30  ;;  %v6738_v35 = vpop.f32.mrb[49].mxu1 }
0x1868   : > { %v5016_v36 = vpop.f32.mrb[46].mxu0 }
0x1869   : > { %v6749_v37 = vpop.f32.mrb[47].mxu0  ;;  %6751 = vmatpush3.msk.msra.mxu1 %vm4177_vm2, %v5016_v36 }
0x186a   : > { %6753 = vmatmul.mubr.msk.f32.vlgmr.msra.gmra.mrb[50].mxu1 %vm4174_vm3, %v8478_v31  ;;  %6989 = vmatprep.subr.bf16.mxu1 %v7827_v54 }
0x186b   : > { %6763 = vmatprep.mubr.msk.f32.mxu1 %vm7828_vm10, %v7826_v8  ;;  %6991 = vmatpush3.bf16.msra.mxu1 %v6990_v40 }
0x186c   : > { %6992 = vmatprep.subr.bf16.mxu1 %v7827_v54 }
0x186f   : > { %6994 = vmatpush3.bf16.msra.mxu1 %v6993_v42 }
0x1870   : > { %7001 = vmatprep.subr.bf16.mxu1 %v7827_v54 }
0x193d   : > { %v5091_v43 = vpop.f32.mrb[50].mxu1 }
0x193e   : > { %v5095_v46 = vadd.f32 %v5091_v43, %v4942_v34  ;;  %v6754_v48 = vpop.f32.mrb[51].mxu1 }
0x1940   : > { %v5103_v49 = vadd.f32 %v6107_v44, %v5095_v46 }
0x1942   : > { %v5104_v50 = vmax.f32 %v5103_v49, 0.0 }
0x1944   : > { %6764 = vmatmul.mubr.msk.f32.vlgmr.msra.gmra.mrb[52].mxu1 %vm1554_vm9, %v5104_v50 }
0x1945   : > { %6790 = vmatprep.mubr.msk.f32.mxu1 %vm7828_vm10, %v7826_v8  ;;  %7003 = vmatpush3.bf16.msra.mxu1 %v7002_v52 }
0x1946   : > { %7004 = vmatprep.subr.bf16.mxu1 %v7827_v54 }
0x1949   : > { %7006 = vmatpush3.bf16.msra.mxu1 %v7005_v61 }
0x194a   : > { %6798 = vmatprep.subr.mxu1 %v7826_v8 }
0x1a17   : > { %v5178_v53 = vpop.f32.mrb[52].mxu1 }
0x1a18   : > { %v6765_v47 = vpop.f32.mrb[53].mxu1  ;;  %6767 = vmatpush3.msk.msra.mxu0 %vm4177_vm2, %v5178_v53 }
0x1a19   : > { %6769 = vmatmul.mubr.msk.f32.vlgmr.msra.gmra.mrb[48].mxu0 %vm4174_vm3, %v8446_v9  ;;  %6995 = vmatprep.subr.bf16.mxu0 %v7827_v54 }
0x1a1a   : > { %6997 = vmatpush3.bf16.msra.mxu0 %v6996_v4  ;;  %6779 = vmatprep.mubr.msk.f32.mxu0 %vm7828_vm10, %v7826_v8 }
0x1a1b   : > { %6998 = vmatprep.subr.bf16.mxu0 %v7827_v54 }
0x1a1e   : > { %7000 = vmatpush3.bf16.msra.mxu0 %v6999_v59 }
0x1a1f   : > { %6793 = vmatprep.subr.mxu0 %v7826_v8 }
0x1aec   : > { %v5258_v0 = vpop.f32.mrb[48].mxu0 }
0x1aed   : > { %v5259_v1 = vadd.f32 %v6109_v62, %v5258_v0  ;;  %v6770_v2 = vpop.f32.mrb[49].mxu0 }
0x1aef   : > { %v5262_v3 = vadd.f32 %v5259_v1, %v8790_v17  ;;  %v7011_v17 = vpack.c.bf16 %v5565_v13, %v5564_v7 }
0x1af1   : > { %6780 = vmatmul.mubr.msk.f32.vlgmr.msra.gmra.mrb[50].mxu0 %vm1554_vm9, %v5262_v3  ;;  %6791 = vmatmul.mubr.msk.f32.vlgmr.msra.gmra.mrb[54].mxu1 %vm1554_vm9, %v5262_v3 }
0x1af2   : > { %6795 = vmatprep.mubr.msk.f32.mxu0 %vm7828_vm10, %v7826_v8  ;;  %6800 = vmatprep.mubr.msk.f32.mxu1 %vm7828_vm10, %v7826_v8 }
0x1bc4   : > { %v5336_v12 = vpop.f32.mrb[50].mxu0  ;;  %v5411_v6 = vpop.f32.mrb[54].mxu1 }
0x1bc5   : > { %v6781_v15 = vpop.f32.mrb[51].mxu0  ;;  %v6792_v16 = vpop.f32.mrb[55].mxu1  ;;  %6794 = vmatpush3.msk.msra.mxu0 %vm4177_vm2, %v5411_v6  ;;  %6799 = vmatpush3.msk.msra.mxu1 %vm4177_vm2, %v5336_v12 }
0x1bc6   : > { %6796 = vmatmul.mubr.msk.f32.vlgmr.msra.gmra.mrb[52].mxu0 %vm4174_vm3, %v8446_v9  ;;  %7007 = vmatprep.subr.bf16.mxu0 %v7827_v54 }
0x1bc7   : > { %6801 = vmatmul.mubr.msk.f32.vlgmr.msra.gmra.mrb[56].mxu1 %vm4174_vm3, %v8462_v25  ;;  %7009 = vmatpush3.bf16.msra.mxu0 %v7008_v11 }
0x1bc8   : > { %7010 = vmatprep.subr.bf16.mxu0 %v7827_v54  ;;  %6811 = vmatprep.mubr.msk.f32.mxu0 %vm7828_vm10, %v7826_v8 }
0x1bc9   : > { %6814 = vmatprep.subr.mxu1 %v7826_v8  ;;  %6816 = vmatprep.mubr.msk.f32.mxu1 %vm7828_vm10, %v7826_v8 }
0x1bcb   : > { %7012 = vmatpush3.bf16.msra.mxu0 %v7011_v17 }
0x1bce   : > { %6812 = vmatmul.mubr.msk.f32.vlgmr.msra.gmra.mrb[54].mxu0 %vm1554_vm9, %v5262_v3 }
0x1c99   : > { %v5484_v9 = vpop.f32.mrb[52].mxu0 }
0x1c9a   : > { %v6797_v18 = vpop.f32.mrb[53].mxu0  ;;  %v5557_v19 = vpop.f32.mrb[56].mxu1 }
0x1c9b   : > { %v5558_v25 = vadd.f32 %v5557_v19, %v5484_v9  ;;  %v6802_v29 = vpop.f32.mrb[57].mxu1 }
0x1ca1   : > { %v5632_v20 = vpop.f32.mrb[54].mxu0 }
0x1ca2   : > { %v6813_v21 = vpop.f32.mrb[55].mxu0  ;;  %6815 = vmatpush3.msk.msra.mxu1 %vm4177_vm2, %v5632_v20 }
0x1ca3   : > { %6817 = vmatmul.mubr.msk.f32.vlgmr.msra.gmra.mrb[58].mxu1 %vm4174_vm3, %v8478_v31 }
0x1d76   : > { %v5705_v54 = vpop.f32.mrb[58].mxu1 }
0x1d77   : > { %v5709_v23 = vadd.f32 %v5705_v54, %v5558_v25  ;;  %v6818_v8 = vpop.f32.mrb[59].mxu1 }
0x1d79   : > { %v5717_v24 = vadd.f32 %v6121_v22, %v5709_v23 }
0x1d7b   : > { %5719 = vst.msk [vmem:[%s1016_s1] sm:$0xf] %vm5718_vm4, %v5717_v24 }
0x1d7c PF: > { %s8992_s9 = sld [smem:[#allocation41_spill]] }
0x1d82   : > { %s45_s29 = sadd.s32 1, %s8992_s9  }
0x1d83   : > { %p42_p6 = scmp.ge.s32.totalorder %s45_s29, 4  }
0x1d85   :  { %44 = sbr.rel (!%p42_p6) target bundleno = 30 (0x1e), region = 245 }
0x1d8c   :  { %5739 = vsyncpa [#allocation3], 1 }
0x1d8d   :  { %5741 = vsyncpa [#allocation3 + $0x1], 1 }
0x1d8e   :  { %5742 = vsyncpa [#allocation5], 1 }
0x1d8f   :  { %5743 = vsyncpa [#allocation8], 1 }
0x1d90   :  { %5744 = vsyncpa [#allocation11], 1 }
0x1d91   :  { %5745 = vsyncpa [#allocation14], 1 }
0x1d92   :  { %5746 = vsyncpa [#allocation17], 1 }
0x1d93   :  { %5747 = vsyncpa [#allocation20], 1 }
0x1d94   :  { %5748 = vsyncpa [#allocation23], 1 }
0x1d95   :  { %5749 = vsyncpa [#allocation26], 1 }
0x1d96   :  { %5750 = vsyncpa [#allocation29], 1 }

// kernel: pose_vqvae_forward.5
= control target key start
LH: loop header
LB: loop body
LE: loop exit
PB: predicated region body
PF: predicated region fallthrough
CT: control target
= control target key end

     0   :  { %s8104_s0 = inlined_call_operand.vmem [shape: f32[2,4,32], index: 0, kind: input, shape index: {}]   ;;  %s8105_s1 = inlined_call_operand.vmem [shape: f32[1,32], index: 1, kind: input, shape index: {}]   ;;  %s8106_s2 = inlined_call_operand.vmem [shape: f32[3,32,32], index: 2, kind: input, shape index: {}]   ;;  %s8107_s3 = inlined_call_operand.vmem [shape: f32[1,32], index: 3, kind: input, shape index: {}]   ;;  %s8108_s4 = inlined_call_operand.vmem [shape: f32[3,32,32], index: 4, kind: input, shape index: {}]   ;;  %s8109_s5 = inlined_call_operand.vmem [shape: f32[1,3], index: 5, kind: input, shape index: {}]   ;;  %s8110_s6 = inlined_call_operand.vmem [shape: f32[3,32,3], index: 6, kind: input, shape index: {}]   ;;  %s8111_s7 = inlined_call_operand.vmem [shape: f32[1,32], index: 7, kind: input, shape index: {}]   ;;  %s8112_s8 = inlined_call_operand.vmem [shape: f32[3,32,32], index: 8, kind: input, shape index: {}]   ;;  %s8113_s9 = inlined_call_operand.vmem [shape: f32[1,32], index: 9, kind: input, shape index: {}]   ;;  %s8114_s10 = inlined_call_operand.vmem [shape: f32[3,32,32], index: 10, kind: input, shape index: {}]   ;;  %s8115_s11 = inlined_call_operand.vmem [shape: f32[1,32], index: 11, kind: input, shape index: {}]   ;;  %s8116_s12 = inlined_call_operand.vmem [shape: f32[1,32,32], index: 12, kind: input, shape index: {}]   ;;  %s8117_s13 = inlined_call_operand.vmem [shape: f32[1,32], index: 13, kind: input, shape index: {}]   ;;  %s8118_s14 = inlined_call_operand.vmem [shape: f32[3,32,32], index: 14, kind: input, shape index: {}]   ;;  %s8119_s15 = inlined_call_operand.vmem [shape: f32[1,32], index: 15, kind: input, shape index: {}]   ;;  %s8120_s16 = inlined_call_operand.vmem [shape: f32[1,32,32], index: 16, kind: input, shape index: {}]   ;;  %s8121_s17 = inlined_call_operand.vmem [shape: f32[1,32], index: 17, kind: input, shape index: {}]   ;;  %s8122_s18 = inlined_call_operand.vmem [shape: f32[3,32,32], index: 18, kind: input, shape index: {}]   ;;  %s8123_s19 = inlined_call_operand.vmem [shape: f32[1,32], index: 19, kind: input, shape index: {}]   ;;  %s8124_s20 = inlined_call_operand.vmem [shape: f32[3,32,32], index: 20, kind: input, shape index: {}]   ;;  %s8125_s21 = inlined_call_operand.vmem [shape: f32[1,32], index: 21, kind: input, shape index: {}]   ;;  %s8126_s22 = inlined_call_operand.vmem [shape: f32[1,32,32], index: 22, kind: input, shape index: {}]   ;;  %s8127_s23 = inlined_call_operand.vmem [shape: f32[1,32], index: 23, kind: input, shape index: {}]   ;;  %s8128_s24 = inlined_call_operand.vmem [shape: f32[3,32,32], index: 24, kind: input, shape index: {}]   ;;  %s8129_s25 = inlined_call_operand.vmem [shape: f32[1,32], index: 25, kind: input, shape index: {}]   ;;  %s8130_s26 = inlined_call_operand.vmem [shape: f32[1,32,32], index: 26, kind: input, shape index: {}]   ;;  %s8131_s27 = inlined_call_operand.vmem [shape: f32[2,16,3], index: 27, kind: output, shape index: {}]  }
   0x1   :  { %8138 = sst [smem:[#allocation2_spill]] %s8104_s0 }
   0x2   :  { %8139 = sst [smem:[#allocation3_spill]] %s8105_s1 }
   0x3   :  { %8140 = sst [smem:[#allocation4_spill]] %s8106_s2 }
   0x4   :  { %8141 = sst [smem:[#allocation5_spill]] %s8107_s3 }
   0x5   :  { %8142 = sst [smem:[#allocation6_spill]] %s8108_s4 }
   0x6   :  { %8143 = sst [smem:[#allocation7_spill]] %s8109_s5 }
   0x7   :  { %8144 = sst [smem:[#allocation8_spill]] %s8110_s6 }
   0x8   :  { %8145 = sst [smem:[#allocation9_spill]] %s8111_s7  ;;  %s7294_s7 = smov 0  }
   0x9   :  { %8146 = sst [smem:[#allocation10_spill]] %s8112_s8 }
   0xa   :  { %8147 = sst [smem:[#allocation11_spill]] %s8113_s9 }
   0xb   :  { %8148 = sst [smem:[#allocation12_spill]] %s8114_s10 }
   0xc   :  { %8149 = sst [smem:[#allocation13_spill]] %s8115_s11 }
   0xd LB: > { %s5906_s4 = sadd.s32 4294967295, %s7149_s7   ;;  %p5910_p0 = scmp.ge.s32.totalorder %s7149_s7, 1  ;;  %s7149_s7 = sphi %s7294_s7, %s37_s7  }
   0xe   : > { %p736_p1 = scmp.lt.s32.totalorder %s7149_s7, 3 }
  0x10   : > { %p737_p2 = pnand %p5910_p0, %p736_p1 }
  0x11   : > { %s8150_s9 = sld [smem:[#allocation4_spill]] (!%p737_p2)  ;;  %v7151_v3 = vmov (!%p737_p2), 0.0|0.0   ;;  %p807_p3 = scmp.lt.s32.totalorder (!%p737_p2), %s5906_s4, 1  ;;  %vm7152_vm0 = vmmov (!%p737_p2), 0   ;;  %v7153_v11 = vmov (!%p737_p2), 0.0   ;;  %vm825_vm1 = vcmask (!%p737_p2), 261120  }
  0x12   : > { %740 = sbr.rel (%p737_p2) target bundleno = 7452 (0x1d1c), region = 128  ;;  %6886 = vmatprep.subr.bf16.mxu1 (!%p737_p2), %v7151_v3  ;;  %6880 = vmatprep.subr.bf16.mxu0 (!%p737_p2), %v7151_v3  ;;  %s8151_s1 = sld [smem:[#allocation2_spill]] (!%p737_p2)  ;;  %v817_v15 = vlaneseq (!%p737_p2)  ;;  %vm985_vm4 = vcmask (!%p737_p2), 1043456   ;;  %vm981_vm5 = vcmask (!%p737_p2), 31744   ;;  %vm2779_vm12 = vcmask (!%p737_p2), 64512  }
  0x13   : > { %6375 = vmatprep.mubr.msk.f32.mxu1 (!%p737_p2), %vm7152_vm0, %v7153_v11  ;;  %6364 = vmatprep.mubr.msk.f32.mxu0 (!%p737_p2), %vm7152_vm0, %v7153_v11  ;;  %s8153_s30 = sld [smem:[#allocation3_spill]] (!%p737_p2)  ;;  %s8155_s29 = sld [smem:[#allocation13_spill]] (!%p737_p2) }
  0x14   : > { %v7348_v16 = vshrl.u32 (!%p737_p2), %v817_v15, 7  ;;  %v7350_v17 = vand.u32 (!%p737_p2), 127, %v817_v15  ;;  %s8154_s2 = sld [smem:[#allocation11_spill]] (!%p737_p2)  ;;  %s8156_s10 = sld [smem:[#allocation10_spill]] (!%p737_p2) }
  0x15   : > { %s8157_s11 = sld [smem:[#allocation9_spill]] (!%p737_p2)  ;;  %s8158_s8 = sld [smem:[#allocation6_spill]] (!%p737_p2) }
  0x16   : > { %v899_v18 = vadd.s32 (!%p737_p2), 4294967295, %v7348_v16  ;;  %vm978_vm2 = vcmp.eq.s32.totalorder (!%p737_p2), %v7350_v17, %v7348_v16  ;;  %v1210_v34 = vadd.s32 (!%p737_p2), 1, %v7348_v16  ;;  %v1378_v59 = vadd.s32 (!%p737_p2), 4294967293, %v7348_v16  ;;  %s8161_s3 = sld [smem:[#allocation7_spill]] (!%p737_p2) }
  0x17   : > { %v5916_v0 = vld [vmem:[%s8150_s9 + $0x20] sm:$0xff] (!%p737_p2)  ;;  %v5917_v1 = vld [vmem:[%s8150_s9 + $0x28] sm:$0xff] (!%p737_p2)  ;;  %v5918_v6 = vld [vmem:[%s8150_s9 + $0x30] sm:$0xff] (!%p737_p2)  ;;  %v7363_v21 = vsel (!%p737_p2), %vm978_vm2, 1.0, %v7153_v11 }
  0x18   : > { %v821_v2 = vld [vmem:[%s8150_s9] sm:$0xff] (!%p737_p2)  ;;  %v6887_v4 = vpack.c.bf16 (!%p737_p2), %v5917_v1, %v5916_v0  ;;  %v822_v5 = vld [vmem:[%s8150_s9 + $0x8] sm:$0xff] (!%p737_p2)  ;;  %v5919_v7 = vld [vmem:[%s8150_s9 + $0x38] sm:$0xff] (!%p737_p2)  ;;  %vm900_vm3 = vcmp.eq.s32.totalorder (!%p737_p2), %v7350_v17, %v899_v18  ;;  %vm1211_vm6 = vcmp.eq.s32.totalorder (!%p737_p2), %v7350_v17, %v1210_v34  ;;  %vm1379_vm7 = vcmp.eq.s32.totalorder (!%p737_p2), %v7350_v17, %v1378_v59 }
  0x19   : > { %v6881_v8 = vpack.c.bf16 %v822_v5, %v821_v2  ;;  %v823_v9 = vld [vmem:[%s8150_s9 + $0x10] sm:$0xff]  ;;  %v824_v10 = vld [vmem:[%s8150_s9 + $0x18] sm:$0xff]  ;;  %v6890_v12 = vpack.c.bf16 %v5919_v7, %v5918_v6  ;;  %s8163_s4 = smov (!%p807_p3, %s5906_s4), 1  ;;  %v5926_v19 = vld [vmem:[%s8150_s9 + $0x40] sm:$0xff]  ;;  %v7366_v23 = vsel %vm900_vm3, 1.0, %v7153_v11  ;;  %v7394_v37 = vsel %vm1211_vm6, 1.0, %v7153_v11 }
  0x1a   : > { %6888 = vmatpush3.bf16.msra.mxu1 %v6887_v4  ;;  %v6884_v13 = vpack.c.bf16 %v824_v10, %v823_v9  ;;  %s5911_s0 = sshll.u32 %s8163_s4, 2  ;;  %v5927_v20 = vld [vmem:[%s8150_s9 + $0x48] sm:$0xff]  ;;  %v5928_v27 = vld [vmem:[%s8150_s9 + $0x50] sm:$0xff]  ;;  %v5929_v28 = vld [vmem:[%s8150_s9 + $0x58] sm:$0xff]  ;;  %v7453_v1 = vsel %vm1379_vm7, 1.0, %v7153_v11  ;;  %v1681_v9 = vadd.s32 3, %v7348_v16 }
  0x1b   : > { %6882 = vmatpush3.bf16.msra.mxu0 %v6881_v8  ;;  %6889 = vmatprep.subr.bf16.mxu1 %v7151_v3  ;;  %s810_s6 = scalar_lea.vmem %s8151_s1, %s5911_s0  ;;  %v6893_v24 = vpack.c.bf16 %v5927_v20, %v5926_v19  ;;  %v6896_v30 = vpack.c.bf16 %v5929_v28, %v5928_v27  ;;  %s8152_s1 = sld [smem:[#allocation12_spill]]  ;;  %v5934_v53 = vld [vmem:[%s8153_s30] ss:$0 sm:$0xff] }
  0x1c   : > { %6883 = vmatprep.subr.bf16.mxu0 %v7151_v3  ;;  %v816_v14 = vld [vmem:[%s810_s6] sm:$0xf]  ;;  %vm1682_vm8 = vcmp.eq.s32.totalorder %v7350_v17, %v1681_v9  ;;  %s8160_s30 = sld [smem:[#allocation5_spill]] }
  0x1d   : > { %v7481_v15 = vsel %vm1682_vm8, 1.0, %v7153_v11  ;;  %v1771_v20 = vld [vmem:[%s8116_s12] sm:$0xff] }
  0x1e   : > { %6891 = vmatpush3.bf16.msra.mxu1 %v6890_v12 }
  0x1f   : > { %6885 = vmatpush3.bf16.msra.mxu0 %v6884_v13  ;;  %6383 = vmatprep.subr.mxu1 %v7153_v11 }
  0x20   : > { %6378 = vmatprep.subr.mxu0 %v7153_v11 }
  0x21   : > { %6376 = vmatmul.mubr.msk.f32.vlgmr.msra.gmra.mrb[0].mxu1 %vm825_vm1, %v816_v14  ;;  %v1301_v40 = vld [vmem:[%s8152_s1] sm:$0xff]  ;;  %v1302_v41 = vld [vmem:[%s8152_s1 + $0x8] sm:$0xff]  ;;  %v1303_v46 = vld [vmem:[%s8152_s1 + $0x10] sm:$0xff] }
  0x22   : > { %6365 = vmatmul.mubr.msk.f32.vlgmr.msra.gmra.mrb[0].mxu0 %vm825_vm1, %v816_v14  ;;  %6385 = vmatprep.mubr.msk.f32.mxu1 %vm7152_vm0, %v7153_v11  ;;  %v5937_v42 = vld [vmem:[%s8152_s1 + $0x20] sm:$0xff]  ;;  %v6899_v43 = vpack.c.bf16 %v1302_v41, %v1301_v40  ;;  %v5938_v44 = vld [vmem:[%s8152_s1 + $0x28] sm:$0xff]  ;;  %v1304_v47 = vld [vmem:[%s8152_s1 + $0x18] sm:$0xff] }
  0x23   : > { %6380 = vmatprep.mubr.msk.f32.mxu0 %vm7152_vm0, %v7153_v11  ;;  %v6905_v45 = vpack.c.bf16 %v5938_v44, %v5937_v42  ;;  %v5939_v48 = vld [vmem:[%s8152_s1 + $0x30] sm:$0xff]  ;;  %v6902_v49 = vpack.c.bf16 %v1304_v47, %v1303_v46  ;;  %v5940_v50 = vld [vmem:[%s8152_s1 + $0x38] sm:$0xff]  ;;  %v5946_v60 = vld [vmem:[%s8152_s1 + $0x40] sm:$0xff] }
  0x24   : > { %v6908_v51 = vpack.c.bf16 %v5940_v50, %v5939_v48  ;;  %v5947_v61 = vld [vmem:[%s8152_s1 + $0x48] sm:$0xff]  ;;  %v5948_v2 = vld [vmem:[%s8152_s1 + $0x50] sm:$0xff]  ;;  %v5949_v4 = vld [vmem:[%s8152_s1 + $0x58] sm:$0xff]  ;;  %s6106_s1 = sshll.u32 %s8163_s4, 4 }
  0x25   : > { %v6911_v62 = vpack.c.bf16 %v5947_v61, %v5946_v60  ;;  %v6914_v7 = vpack.c.bf16 %v5949_v4, %v5948_v2  ;;  %v5961_v41 = vld [vmem:[%s8118_s14 + $0x28] sm:$0xff]  ;;  %v1933_v44 = vld [vmem:[%s8118_s14 + $0x18] sm:$0xff]  ;;  %v5971_v60 = vld [vmem:[%s8118_s14 + $0x50] sm:$0xff]  ;;  %s815_s28 = scalar_lea.vmem %s8131_s27, %s6106_s1 }
  0x26   : > { %v5963_v47 = vld [vmem:[%s8118_s14 + $0x38] sm:$0xff] }
  0x27   : > { %v5972_v61 = vld [vmem:[%s8118_s14 + $0x58] sm:$0xff] }
  0xf4   : > { %v974_v22 = vpop.f32.mrb[0].mxu1 }
  0xf5   : > { %v895_v25 = vpop.f32.mrb[0].mxu0  ;;  %v6377_v26 = vpop.f32.mrb[1].mxu1  ;;  %6379 = vmatpush3.msk.msra.mxu0 %vm985_vm4, %v974_v22  ;;  %v1772_v22 = vld [vmem:[%s8116_s12 + $0x8] sm:$0xff] }
  0xf6   : > { %6381 = vmatmul.mubr.msk.f32.vlgmr.msra.gmra.mrb[2].mxu0 %vm981_vm5, %v7363_v21  ;;  %6384 = vmatpush3.msk.msra.mxu1 %vm985_vm4, %v895_v25  ;;  %v6366_v29 = vpop.f32.mrb[1].mxu0  ;;  %v1773_v25 = vld [vmem:[%s8116_s12 + $0x10] sm:$0xff]  ;;  %v1774_v26 = vld [vmem:[%s8116_s12 + $0x18] sm:$0xff] }
  0xf7   : > { %6892 = vmatprep.subr.bf16.mxu0 %v7151_v3  ;;  %6386 = vmatmul.mubr.msk.f32.vlgmr.msra.gmra.mrb[2].mxu1 %vm981_vm5, %v7366_v23  ;;  %v6920_v27 = vpack.c.bf16 %v1774_v26, %v1773_v25  ;;  %v5954_v29 = vld [vmem:[%s8154_s2] ss:$0 sm:$0xff] }
  0xf8   : > { %6894 = vmatpush3.bf16.msra.mxu0 %v6893_v24  ;;  %6396 = vmatprep.mubr.msk.f32.mxu0 %vm7152_vm0, %v7153_v11  ;;  %v6917_v24 = vpack.c.bf16 %v1772_v22, %v1771_v20  ;;  %v5976_v22 = vld [vmem:[%s8117_s13] ss:$0 sm:$0xff] }
  0xf9   : > { %6895 = vmatprep.subr.bf16.mxu0 %v7151_v3  ;;  %6399 = vmatprep.subr.mxu1 %v7153_v11 }
  0xfa   : > { %6401 = vmatprep.mubr.msk.f32.mxu1 %vm7152_vm0, %v7153_v11 }
  0xfc   : > { %6897 = vmatpush3.bf16.msra.mxu0 %v6896_v30 }
  0xfd   : > { %6904 = vmatprep.subr.bf16.mxu0 %v7151_v3 }
  0xff   : > { %6397 = vmatmul.mubr.msk.f32.vlgmr.msra.gmra.mrb[4].mxu0 %vm825_vm1, %v816_v14 }
 0x100   : > { %6423 = vmatprep.mubr.msk.f32.mxu0 %vm7152_vm0, %v7153_v11  ;;  %6906 = vmatpush3.bf16.msra.mxu0 %v6905_v45  ;;  %v5962_v45 = vld [vmem:[%s8118_s14 + $0x30] sm:$0xff] }
 0x101   : > { %6907 = vmatprep.subr.bf16.mxu0 %v7151_v3  ;;  %v6932_v48 = vpack.c.bf16 %v5963_v47, %v5962_v45 }
 0x104   : > { %6909 = vmatpush3.bf16.msra.mxu0 %v6908_v51 }
 0x105   : > { %6431 = vmatprep.subr.mxu0 %v7153_v11 }
 0x1c9   : > { %v1055_v31 = vpop.f32.mrb[2].mxu0 }
 0x1ca   : > { %v6382_v32 = vpop.f32.mrb[3].mxu0  ;;  %v1131_v33 = vpop.f32.mrb[2].mxu1 }
 0x1cb   : > { %v1132_v35 = vadd.f32 %v1131_v33, %v1055_v31  ;;  %v6387_v36 = vpop.f32.mrb[3].mxu1 }
 0x1cc   : > { %v1930_v36 = vld [vmem:[%s8118_s14] sm:$0xff] }
 0x1d2   : > { %v1206_v38 = vpop.f32.mrb[4].mxu0 }
 0x1d3   : > { %v6398_v39 = vpop.f32.mrb[5].mxu0  ;;  %6400 = vmatpush3.msk.msra.mxu1 %vm985_vm4, %v1206_v38  ;;  %v1931_v38 = vld [vmem:[%s8118_s14 + $0x8] sm:$0xff] }
 0x1d4   : > { %6402 = vmatmul.mubr.msk.f32.vlgmr.msra.gmra.mrb[4].mxu1 %vm981_vm5, %v7394_v37  ;;  %6898 = vmatprep.subr.bf16.mxu1 %v7151_v3  ;;  %v5960_v39 = vld [vmem:[%s8118_s14 + $0x20] sm:$0xff]  ;;  %v6923_v40 = vpack.c.bf16 %v1931_v38, %v1930_v36  ;;  %v7633_v36 = vmul.u32 2, %v7350_v17 }
 0x1d5   : > { %6412 = vmatprep.mubr.msk.f32.mxu1 %vm7152_vm0, %v7153_v11  ;;  %6900 = vmatpush3.bf16.msra.mxu1 %v6899_v43  ;;  %v6929_v42 = vpack.c.bf16 %v5961_v41, %v5960_v39  ;;  %v1932_v43 = vld [vmem:[%s8118_s14 + $0x10] sm:$0xff]  ;;  %v5978_v39 = vld [vmem:[%s8119_s15] ss:$0 sm:$0xff] }
 0x1d6   : > { %6901 = vmatprep.subr.bf16.mxu1 %v7151_v3  ;;  %v6926_v46 = vpack.c.bf16 %v1933_v44, %v1932_v43  ;;  %v7636_v38 = vadd.s32 2, %v7633_v36  ;;  %vm2545_vm9 = vcmp.ge.s32.totalorder %v7348_v16, %v7633_v36  ;;  %v5985_v41 = vld [vmem:[%s8156_s10 + $0x20] sm:$0xff] }
 0x1d8   : > { %vm2547_vm10 = vcmp.lt.s32.totalorder %v7348_v16, %v7636_v38 }
 0x1d9   : > { %6903 = vmatpush3.bf16.msra.mxu1 %v6902_v49  ;;  %v5956_v49 = vld [vmem:[%s8155_s29] ss:$0 sm:$0xff]  ;;  %vm2548_vm11 = vmand %vm2545_vm9, %vm2547_vm10 }
 0x1da   : > { %6426 = vmatprep.subr.mxu1 %v7153_v11 }
 0x2a7   : > { %v1286_v52 = vpop.f32.mrb[4].mxu1 }
 0x2a8   : > { %v1290_v54 = vadd.f32 %v1286_v52, %v1132_v35  ;;  %v6403_v55 = vpop.f32.mrb[5].mxu1 }
 0x2a9   : > { %v5969_v55 = vld [vmem:[%s8118_s14 + $0x40] sm:$0xff] }
 0x2aa   : > { %v7433_v56 = vadd.f32 %v5934_v53, %v1290_v54 }
 0x2ac   : > { %v1299_v57 = vmax.f32 %v7433_v56, 0.0  ;;  %v5970_v56 = vld [vmem:[%s8118_s14 + $0x48] sm:$0xff] }
 0x2ae   : > { %v1300_v58 = vmax.f32 %v1299_v57, 0.0 }
 0x2b0   : > { %6413 = vmatmul.mubr.msk.f32.vlgmr.msra.gmra.mrb[6].mxu1 %vm825_vm1, %v1300_v58  ;;  %6424 = vmatmul.mubr.msk.f32.vlgmr.msra.gmra.mrb[6].mxu0 %vm825_vm1, %v1300_v58 }
 0x2b1   : > { %6428 = vmatprep.mubr.msk.f32.mxu1 %vm7152_vm0, %v7153_v11  ;;  %6433 = vmatprep.mubr.msk.f32.mxu0 %vm7152_vm0, %v7153_v11 }
 0x383   : > { %v1374_v63 = vpop.f32.mrb[6].mxu1  ;;  %v1453_v0 = vpop.f32.mrb[6].mxu0 }
 0x384   : > { %v6414_v5 = vpop.f32.mrb[7].mxu1  ;;  %v6425_v6 = vpop.f32.mrb[7].mxu0  ;;  %6427 = vmatpush3.msk.msra.mxu1 %vm985_vm4, %v1453_v0  ;;  %6432 = vmatpush3.msk.msra.mxu0 %vm985_vm4, %v1374_v63  ;;  %v6938_v0 = vpack.c.bf16 %v5972_v61, %v5971_v60 }
 0x385   : > { %6429 = vmatmul.mubr.msk.f32.vlgmr.msra.gmra.mrb[8].mxu1 %vm981_vm5, %v7363_v21  ;;  %6910 = vmatprep.subr.bf16.mxu1 %v7151_v3 }
 0x386   : > { %6434 = vmatmul.mubr.msk.f32.vlgmr.msra.gmra.mrb[8].mxu0 %vm981_vm5, %v7453_v1  ;;  %6912 = vmatpush3.bf16.msra.mxu1 %v6911_v62 }
 0x387   : > { %6913 = vmatprep.subr.bf16.mxu1 %v7151_v3  ;;  %6444 = vmatprep.mubr.msk.f32.mxu1 %vm7152_vm0, %v7153_v11 }
 0x388   : > { %6447 = vmatprep.subr.mxu0 %v7153_v11  ;;  %6449 = vmatprep.mubr.msk.f32.mxu0 %vm7152_vm0, %v7153_v11 }
 0x38a   : > { %6915 = vmatpush3.bf16.msra.mxu1 %v6914_v7 }
 0x38b   : > { %6463 = vmatprep.subr.mxu1 %v7153_v11 }
 0x38d   : > { %6445 = vmatmul.mubr.msk.f32.vlgmr.msra.gmra.mrb[10].mxu1 %vm825_vm1, %v1300_v58 }
 0x38e   : > { %6465 = vmatprep.mubr.msk.f32.mxu1 %vm7152_vm0, %v7153_v11 }
 0x458   : > { %v1526_v8 = vpop.f32.mrb[8].mxu1 }
 0x459   : > { %v6430_v10 = vpop.f32.mrb[9].mxu1  ;;  %v1602_v12 = vpop.f32.mrb[8].mxu0 }
 0x45a   : > { %v1603_v13 = vadd.f32 %v1602_v12, %v1526_v8  ;;  %v6435_v14 = vpop.f32.mrb[9].mxu0  ;;  %v2386_v10 = vld [vmem:[%s8120_s16] sm:$0xff]  ;;  %v2387_v12 = vld [vmem:[%s8120_s16 + $0x8] sm:$0xff] }
 0x45b   : > { %v2388_v14 = vld [vmem:[%s8120_s16 + $0x10] sm:$0xff] }
 0x460   : > { %v1677_v18 = vpop.f32.mrb[10].mxu1 }
 0x461   : > { %v6446_v19 = vpop.f32.mrb[11].mxu1  ;;  %6448 = vmatpush3.msk.msra.mxu0 %vm985_vm4, %v1677_v18  ;;  %v2389_v18 = vld [vmem:[%s8120_s16 + $0x18] sm:$0xff] }
 0x462   : > { %6450 = vmatmul.mubr.msk.f32.vlgmr.msra.gmra.mrb[10].mxu0 %vm981_vm5, %v7481_v15  ;;  %6916 = vmatprep.subr.bf16.mxu0 %v7151_v3  ;;  %v6944_v19 = vpack.c.bf16 %v2389_v18, %v2388_v14  ;;  %v3083_v18 = vld [vmem:[%s8124_s20 + $0x10] sm:$0xff] }
 0x463   : > { %6460 = vmatprep.mubr.msk.f32.mxu0 %vm7152_vm0, %v7153_v11  ;;  %6918 = vmatpush3.bf16.msra.mxu0 %v6917_v24 }
 0x464   : > { %6919 = vmatprep.subr.bf16.mxu0 %v7151_v3 }
 0x467   : > { %6921 = vmatpush3.bf16.msra.mxu0 %v6920_v27 }
 0x468   : > { %6928 = vmatprep.subr.bf16.mxu0 %v7151_v3 }
 0x535   : > { %v1757_v28 = vpop.f32.mrb[10].mxu0 }
 0x536   : > { %v1761_v30 = vadd.f32 %v1757_v28, %v1603_v13  ;;  %v6451_v31 = vpop.f32.mrb[11].mxu0  ;;  %v6941_v13 = vpack.c.bf16 %v2387_v12, %v2386_v10  ;;  %v6000_v10 = vld [vmem:[%s8124_s20 + $0x20] sm:$0xff] }
 0x537   : > { %v2628_v31 = vld [vmem:[%s8156_s10 + $0x8] sm:$0xff] }
 0x538   : > { %v1769_v32 = vadd.f32 %v5954_v29, %v1761_v30  ;;  %v2627_v30 = vld [vmem:[%s8156_s10] sm:$0xff] }
 0x53a   : > { %v1770_v33 = vmax.f32 %v1769_v32, 0.0  ;;  %v6947_v32 = vpack.c.bf16 %v2628_v31, %v2627_v30 }
 0x53c   : > { %6461 = vmatmul.mubr.msk.f32.vlgmr.msra.gmra.mrb[12].mxu0 %vm825_vm1, %v1770_v33  ;;  %v2629_v33 = vld [vmem:[%s8156_s10 + $0x10] sm:$0xff] }
 0x53d   : > { %6487 = vmatprep.mubr.msk.f32.mxu0 %vm7152_vm0, %v7153_v11  ;;  %6930 = vmatpush3.bf16.msra.mxu0 %v6929_v42  ;;  %v5986_v42 = vld [vmem:[%s8156_s10 + $0x28] sm:$0xff] }
 0x53e   : > { %6931 = vmatprep.subr.bf16.mxu0 %v7151_v3  ;;  %v6953_v47 = vpack.c.bf16 %v5986_v42, %v5985_v41  ;;  %v6010_v41 = vld [vmem:[%s8124_s20 + $0x58] sm:$0xff] }
 0x541   : > { %6933 = vmatpush3.bf16.msra.mxu0 %v6932_v48  ;;  %v5987_v48 = vld [vmem:[%s8156_s10 + $0x30] sm:$0xff] }
 0x542   : > { %6495 = vmatprep.subr.mxu0 %v7153_v11 }
 0x60f   : > { %v1844_v34 = vpop.f32.mrb[12].mxu0 }
 0x610   : > { %v6462_v35 = vpop.f32.mrb[13].mxu0  ;;  %6464 = vmatpush3.msk.msra.mxu1 %vm985_vm4, %v1844_v34  ;;  %v2630_v34 = vld [vmem:[%s8156_s10 + $0x18] sm:$0xff] }
 0x611   : > { %6466 = vmatmul.mubr.msk.f32.vlgmr.msra.gmra.mrb[12].mxu1 %vm981_vm5, %v7363_v21  ;;  %6922 = vmatprep.subr.bf16.mxu1 %v7151_v3  ;;  %v6950_v35 = vpack.c.bf16 %v2630_v34, %v2629_v33  ;;  %v6008_v33 = vld [vmem:[%s8124_s20 + $0x48] sm:$0xff] }
 0x612   : > { %6476 = vmatprep.mubr.msk.f32.mxu1 %vm7152_vm0, %v7153_v11  ;;  %6924 = vmatpush3.bf16.msra.mxu1 %v6923_v40 }
 0x613   : > { %6925 = vmatprep.subr.bf16.mxu1 %v7151_v3 }
 0x616   : > { %6927 = vmatpush3.bf16.msra.mxu1 %v6926_v46  ;;  %v7653_v46 = vsel %vm2548_vm11, 1.0, %v7153_v11 }
 0x617   : > { %6490 = vmatprep.subr.mxu1 %v7153_v11 }
 0x6e4   : > { %v1924_v50 = vpop.f32.mrb[12].mxu1 }
 0x6e5   : > { %v1925_v51 = vadd.f32 %v5956_v49, %v1924_v50  ;;  %v6467_v52 = vpop.f32.mrb[13].mxu1  ;;  %v5988_v49 = vld [vmem:[%s8156_s10 + $0x38] sm:$0xff] }
 0x6e6   : > { %v6956_v50 = vpack.c.bf16 %v5988_v49, %v5987_v48 }
 0x6e7   : > { %v7548_v53 = vadd.f32 %v1925_v51, %v1299_v57  ;;  %v6935_v57 = vpack.c.bf16 %v5970_v56, %v5969_v55 }
 0x6e9   : > { %v1929_v54 = vmax.f32 %v7548_v53, 0.0 }
 0x6eb   : > { %6477 = vmatmul.mubr.msk.f32.vlgmr.msra.gmra.mrb[14].mxu1 %vm825_vm1, %v1929_v54  ;;  %6488 = vmatmul.mubr.msk.f32.vlgmr.msra.gmra.mrb[14].mxu0 %vm825_vm1, %v1929_v54 }
 0x6ec   : > { %6492 = vmatprep.mubr.msk.f32.mxu1 %vm7152_vm0, %v7153_v11  ;;  %6497 = vmatprep.mubr.msk.f32.mxu0 %vm7152_vm0, %v7153_v11 }
 0x7be   : > { %v2003_v58 = vpop.f32.mrb[14].mxu1  ;;  %v2078_v59 = vpop.f32.mrb[14].mxu0 }
 0x7bf   : > { %v6478_v62 = vpop.f32.mrb[15].mxu1  ;;  %v6489_v63 = vpop.f32.mrb[15].mxu0  ;;  %6491 = vmatpush3.msk.msra.mxu1 %vm985_vm4, %v2078_v59  ;;  %6496 = vmatpush3.msk.msra.mxu0 %vm985_vm4, %v2003_v58  ;;  %v5994_v58 = vld [vmem:[%s8156_s10 + $0x50] sm:$0xff]  ;;  %v5995_v59 = vld [vmem:[%s8156_s10 + $0x58] sm:$0xff] }
 0x7c0   : > { %6493 = vmatmul.mubr.msk.f32.vlgmr.msra.gmra.mrb[16].mxu1 %vm981_vm5, %v7363_v21  ;;  %6934 = vmatprep.subr.bf16.mxu1 %v7151_v3  ;;  %v6962_v62 = vpack.c.bf16 %v5995_v59, %v5994_v58  ;;  %v6013_v58 = vld [vmem:[%s8123_s19] ss:$0 sm:$0xff] }
 0x7c1   : > { %6498 = vmatmul.mubr.msk.f32.vlgmr.msra.gmra.mrb[16].mxu0 %vm981_vm5, %v7366_v23  ;;  %6936 = vmatpush3.bf16.msra.mxu1 %v6935_v57 }
 0x7c2   : > { %6937 = vmatprep.subr.bf16.mxu1 %v7151_v3  ;;  %6508 = vmatprep.mubr.msk.f32.mxu1 %vm7152_vm0, %v7153_v11 }
 0x7c3   : > { %6511 = vmatprep.subr.mxu0 %v7153_v11  ;;  %6513 = vmatprep.mubr.msk.f32.mxu0 %vm7152_vm0, %v7153_v11 }
 0x7c5   : > { %6939 = vmatpush3.bf16.msra.mxu1 %v6938_v0 }
 0x7c6   : > { %6527 = vmatprep.subr.mxu1 %v7153_v11 }
 0x7c8   : > { %6509 = vmatmul.mubr.msk.f32.vlgmr.msra.gmra.mrb[18].mxu1 %vm825_vm1, %v1929_v54  ;;  %v5993_v54 = vld [vmem:[%s8156_s10 + $0x48] sm:$0xff] }
 0x7c9   : > { %6529 = vmatprep.mubr.msk.f32.mxu1 %vm7152_vm0, %v7153_v11 }
 0x893   : > { %v2151_v2 = vpop.f32.mrb[16].mxu1 }
 0x894   : > { %v6494_v4 = vpop.f32.mrb[17].mxu1  ;;  %v2224_v5 = vpop.f32.mrb[16].mxu0 }
 0x895   : > { %v2225_v6 = vadd.f32 %v2224_v5, %v2151_v2  ;;  %v6499_v7 = vpop.f32.mrb[17].mxu0 }
 0x89b   : > { %v2299_v8 = vpop.f32.mrb[18].mxu1 }
 0x89c   : > { %v6510_v9 = vpop.f32.mrb[19].mxu1  ;;  %6512 = vmatpush3.msk.msra.mxu0 %vm985_vm4, %v2299_v8  ;;  %v3081_v8 = vld [vmem:[%s8124_s20] sm:$0xff] }
 0x89d   : > { %6514 = vmatmul.mubr.msk.f32.vlgmr.msra.gmra.mrb[18].mxu0 %vm981_vm5, %v7394_v37  ;;  %6940 = vmatprep.subr.bf16.mxu0 %v7151_v3  ;;  %v3082_v9 = vld [vmem:[%s8124_s20 + $0x8] sm:$0xff] }
 0x89e   : > { %6524 = vmatprep.mubr.msk.f32.mxu0 %vm7152_vm0, %v7153_v11  ;;  %6942 = vmatpush3.bf16.msra.mxu0 %v6941_v13  ;;  %v6965_v12 = vpack.c.bf16 %v3082_v9, %v3081_v8  ;;  %v6001_v13 = vld [vmem:[%s8124_s20 + $0x28] sm:$0xff]  ;;  %v3690_v9 = vld [vmem:[%s8128_s24 + $0x10] sm:$0xff] }
 0x89f   : > { %6943 = vmatprep.subr.bf16.mxu0 %v7151_v3  ;;  %v6971_v14 = vpack.c.bf16 %v6001_v13, %v6000_v10  ;;  %v3691_v10 = vld [vmem:[%s8128_s24 + $0x18] sm:$0xff] }
 0x8a0   : > { %v6992_v13 = vpack.c.bf16 %v3691_v10, %v3690_v9 }
 0x8a2   : > { %6945 = vmatpush3.bf16.msra.mxu0 %v6944_v19  ;;  %v3084_v19 = vld [vmem:[%s8124_s20 + $0x18] sm:$0xff] }
 0x8a3   : > { %6946 = vmatprep.subr.bf16.mxu0 %v7151_v3 }
 0x970   : > { %v2372_v20 = vpop.f32.mrb[18].mxu0 }
 0x971   : > { %v2376_v24 = vadd.f32 %v2372_v20, %v2225_v6  ;;  %v6515_v25 = vpop.f32.mrb[19].mxu0  ;;  %v6968_v20 = vpack.c.bf16 %v3084_v19, %v3083_v18  ;;  %v6015_v19 = vld [vmem:[%s8125_s21] ss:$0 sm:$0xff] }
 0x973   : > { %v2384_v26 = vadd.f32 %v5976_v22, %v2376_v24  ;;  %v6002_v22 = vld [vmem:[%s8124_s20 + $0x30] sm:$0xff]  ;;  %v6003_v24 = vld [vmem:[%s8124_s20 + $0x38] sm:$0xff] }
 0x974   : > { %v6974_v25 = vpack.c.bf16 %v6003_v24, %v6002_v22 }
 0x975   : > { %v2385_v27 = vmax.f32 %v2384_v26, 0.0 }
 0x977   : > { %6525 = vmatmul.mubr.msk.f32.vlgmr.msra.gmra.mrb[20].mxu0 %vm825_vm1, %v2385_v27  ;;  %v5998_v27 = vld [vmem:[%s8157_s11] ss:$0 sm:$0xff]  ;;  %s8159_s11 = sld [smem:[#allocation8_spill]] }
 0x978   : > { %6545 = vmatprep.mubr.msk.f32.mxu0 %vm7152_vm0, %v7153_v11  ;;  %6948 = vmatpush3.bf16.msra.mxu0 %v6947_v32  ;;  %v6007_v32 = vld [vmem:[%s8124_s20 + $0x40] sm:$0xff] }
 0x979   : > { %6949 = vmatprep.subr.bf16.mxu0 %v7151_v3  ;;  %v6977_v34 = vpack.c.bf16 %v6008_v33, %v6007_v32  ;;  %v6027_v32 = vld [vmem:[%s8128_s24 + $0x50] sm:$0xff]  ;;  %v6028_v33 = vld [vmem:[%s8128_s24 + $0x58] sm:$0xff] }
 0x97c   : > { %6951 = vmatpush3.bf16.msra.mxu0 %v6950_v35 }
 0x97d   : > { %6559 = vmatprep.subr.mxu0 %v7153_v11 }
 0xa4a   : > { %v2459_v28 = vpop.f32.mrb[20].mxu0 }
 0xa4b   : > { %v6526_v29 = vpop.f32.mrb[21].mxu0  ;;  %6528 = vmatpush3.msk.msra.mxu1 %vm985_vm4, %v2459_v28 }
 0xa4c   : > { %6530 = vmatmul.mubr.msk.f32.vlgmr.msra.gmra.mrb[20].mxu1 %vm981_vm5, %v7363_v21  ;;  %6532 = vmatprep.subr.mxu1 %v7153_v11 }
 0xa4d   : > { %6534 = vmatprep.mubr.msk.f32.mxu1 %vm7152_vm0, %v7153_v11 }
 0xb1f   : > { %v2539_v40 = vpop.f32.mrb[20].mxu1 }
 0xb20   : > { %v2540_v43 = vadd.f32 %v5978_v39, %v2539_v40  ;;  %v6531_v44 = vpop.f32.mrb[21].mxu1  ;;  %v6009_v40 = vld [vmem:[%s8124_s20 + $0x50] sm:$0xff] }
 0xb21   : > { %v6980_v44 = vpack.c.bf16 %v6010_v41, %v6009_v40 }
 0xb22   : > { %v2543_v45 = vadd.f32 %v2540_v43, %v7548_v53  ;;  %v5992_v53 = vld [vmem:[%s8156_s10 + $0x40] sm:$0xff] }
 0xb23   : > { %v6959_v55 = vpack.c.bf16 %v5993_v54, %v5992_v53  ;;  %v3533_v53 = vld [vmem:[%s8126_s22 + $0x8] sm:$0xff] }
 0xb24   : > { %6533 = vmatpush3.msk.msra.mxu1 %vm985_vm4, %v2543_v45 }
 0xb25   : > { %6535 = vmatmul.mubr.msk.f32.vlgmr.msra.gmra.mrb[22].mxu1 %vm981_vm5, %v7653_v46  ;;  %6952 = vmatprep.subr.bf16.mxu1 %v7151_v3 }
 0xb26   : > { %6954 = vmatpush3.bf16.msra.mxu1 %v6953_v47  ;;  %6556 = vmatprep.mubr.msk.f32.mxu1 %vm7152_vm0, %v7153_v11 }
 0xb27   : > { %6955 = vmatprep.subr.bf16.mxu1 %v7151_v3 }
 0xb2a   : > { %6957 = vmatpush3.bf16.msra.mxu1 %v6956_v50 }
 0xb2b   : > { %6564 = vmatprep.subr.mxu1 %v7153_v11 }
 0xbf8   : > { %v2623_v51 = vpop.f32.mrb[22].mxu1 }
 0xbf9   : > { %v6536_v52 = vpop.f32.mrb[23].mxu1  ;;  %6546 = vmatmul.mubr.msk.f32.vlgmr.msra.gmra.mrb[22].mxu0 %vm825_vm1, %v2623_v51  ;;  %6557 = vmatmul.mubr.msk.f32.vlgmr.msra.gmra.mrb[24].mxu1 %vm825_vm1, %v2623_v51 }
 0xbfa   : > { %6561 = vmatprep.mubr.msk.f32.mxu0 %vm7152_vm0, %v7153_v11  ;;  %6566 = vmatprep.mubr.msk.f32.mxu1 %vm7152_vm0, %v7153_v11  ;;  %v3532_v52 = vld [vmem:[%s8126_s22] sm:$0xff] }
 0xbfb   : > { %v6983_v54 = vpack.c.bf16 %v3533_v53, %v3532_v52 }
 0xccc   : > { %v2700_v56 = vpop.f32.mrb[22].mxu0  ;;  %v2775_v57 = vpop.f32.mrb[24].mxu1 }
 0xccd   : > { %v6547_v60 = vpop.f32.mrb[23].mxu0  ;;  %v6558_v61 = vpop.f32.mrb[25].mxu1  ;;  %6560 = vmatpush3.msra.mxu0 %v2775_v57  ;;  %6565 = vmatpush3.msra.mxu1 %v2700_v56 }
 0xcce   : > { %6562 = vmatmul.mubr.msk.f32.vlgmr.msra.gmra.mrb[24].mxu0 %vm2779_vm12, %v7363_v21  ;;  %6958 = vmatprep.subr.bf16.mxu0 %v7151_v3 }
 0xccf   : > { %6567 = vmatmul.mubr.msk.f32.vlgmr.msra.gmra.mrb[26].mxu1 %vm2779_vm12, %v7366_v23  ;;  %6960 = vmatpush3.bf16.msra.mxu0 %v6959_v55  ;;  %v3535_v55 = vld [vmem:[%s8126_s22 + $0x18] sm:$0xff] }
 0xcd0   : > { %6961 = vmatprep.subr.bf16.mxu0 %v7151_v3  ;;  %6577 = vmatprep.mubr.msk.f32.mxu0 %vm7152_vm0, %v7153_v11 }
 0xcd1   : > { %6580 = vmatprep.subr.mxu1 %v7153_v11  ;;  %6582 = vmatprep.mubr.msk.f32.mxu1 %vm7152_vm0, %v7153_v11 }
 0xcd3   : > { %6963 = vmatpush3.bf16.msra.mxu0 %v6962_v62 }
 0xcd4   : > { %6970 = vmatprep.subr.bf16.mxu0 %v7151_v3 }
 0xcd6   : > { %6578 = vmatmul.mubr.msk.f32.vlgmr.msra.gmra.mrb[26].mxu0 %vm825_vm1, %v2623_v51 }
 0xcd7   : > { %6604 = vmatprep.mubr.msk.f32.mxu0 %vm7152_vm0, %v7153_v11  ;;  %6972 = vmatpush3.bf16.msra.mxu0 %v6971_v14  ;;  %v6021_v14 = vld [vmem:[%s8128_s24 + $0x38] sm:$0xff] }
 0xcd8   : > { %6973 = vmatprep.subr.bf16.mxu0 %v7151_v3 }
 0xcdb   : > { %6975 = vmatpush3.bf16.msra.mxu0 %v6974_v25 }
 0xcdc   : > { %6612 = vmatprep.subr.mxu0 %v7153_v11 }
 0xda1   : > { %v2848_v63 = vpop.f32.mrb[24].mxu0 }
 0xda2   : > { %v6563_v0 = vpop.f32.mrb[25].mxu0  ;;  %v2920_v2 = vpop.f32.mrb[26].mxu1 }
 0xda3   : > { %v2921_v4 = vadd.f32 %v2920_v2, %v2848_v63  ;;  %v6568_v5 = vpop.f32.mrb[27].mxu1  ;;  %v3688_v2 = vld [vmem:[%s8128_s24] sm:$0xff] }
 0xda4   : > { %v6018_v5 = vld [vmem:[%s8128_s24 + $0x20] sm:$0xff] }
 0xda9   : > { %v2995_v6 = vpop.f32.mrb[26].mxu0 }
 0xdaa   : > { %v6579_v7 = vpop.f32.mrb[27].mxu0  ;;  %6581 = vmatpush3.msra.mxu1 %v2995_v6 }
 0xdab   : > { %6583 = vmatmul.mubr.msk.f32.vlgmr.msra.gmra.mrb[28].mxu1 %vm2779_vm12, %v7394_v37  ;;  %6964 = vmatprep.subr.bf16.mxu1 %v7151_v3  ;;  %v6019_v7 = vld [vmem:[%s8128_s24 + $0x28] sm:$0xff] }
 0xdac   : > { %6593 = vmatprep.mubr.msk.f32.mxu1 %vm7152_vm0, %v7153_v11  ;;  %6966 = vmatpush3.bf16.msra.mxu1 %v6965_v12  ;;  %v6995_v8 = vpack.c.bf16 %v6019_v7, %v6018_v5  ;;  %v6020_v12 = vld [vmem:[%s8128_s24 + $0x30] sm:$0xff]  ;;  %v6041_v5 = vld [vmem:[%s8122_s18 + $0x20] sm:$0xff] }
 0xdad   : > { %6967 = vmatprep.subr.bf16.mxu1 %v7151_v3  ;;  %v6998_v18 = vpack.c.bf16 %v6021_v14, %v6020_v12  ;;  %v6053_v14 = vld [vmem:[%s8122_s18 + $0x48] sm:$0xff] }
 0xdb0   : > { %6969 = vmatpush3.bf16.msra.mxu1 %v6968_v20 }
 0xdb1   : > { %6607 = vmatprep.subr.mxu1 %v7153_v11 }
 0xe7e   : > { %v3067_v26 = vpop.f32.mrb[28].mxu1 }
 0xe7f   : > { %v3071_v28 = vadd.f32 %v3067_v26, %v2921_v4  ;;  %v6584_v29 = vpop.f32.mrb[29].mxu1  ;;  %v3689_v4 = vld [vmem:[%s8128_s24 + $0x8] sm:$0xff] }
 0xe80   : > { %v6989_v6 = vpack.c.bf16 %v3689_v4, %v3688_v2  ;;  %v6033_v2 = vld [vmem:[%s8129_s25] ss:$0 sm:$0xff] }
 0xe81   : > { %v7738_v30 = vadd.f32 %v5998_v27, %v3071_v28  ;;  %v6025_v27 = vld [vmem:[%s8128_s24 + $0x40] sm:$0xff]  ;;  %v6026_v28 = vld [vmem:[%s8128_s24 + $0x48] sm:$0xff] }
 0xe82   : > { %v7001_v29 = vpack.c.bf16 %v6026_v28, %v6025_v27  ;;  %v4885_v27 = vld [vmem:[%s8158_s8 + $0x8] sm:$0xff] }
 0xe83   : > { %v3080_v31 = vmax.f32 %v7738_v30, 0.0 }
 0xe85   : > { %6594 = vmatmul.mubr.msk.f32.vlgmr.msra.gmra.mrb[30].mxu1 %vm825_vm1, %v3080_v31  ;;  %6605 = vmatmul.mubr.msk.f32.vlgmr.msra.gmra.mrb[28].mxu0 %vm825_vm1, %v3080_v31 }
 0xe86   : > { %6609 = vmatprep.mubr.msk.f32.mxu1 %vm7152_vm0, %v7153_v11  ;;  %6614 = vmatprep.mubr.msk.f32.mxu0 %vm7152_vm0, %v7153_v11 }
 0xf58   : > { %v3154_v35 = vpop.f32.mrb[30].mxu1  ;;  %v3229_v39 = vpop.f32.mrb[28].mxu0 }
 0xf59   : > { %v6595_v42 = vpop.f32.mrb[31].mxu1  ;;  %v6606_v43 = vpop.f32.mrb[29].mxu0  ;;  %6608 = vmatpush3.msra.mxu1 %v3229_v39  ;;  %6613 = vmatpush3.msra.mxu0 %v3154_v35  ;;  %v7004_v39 = vpack.c.bf16 %v6028_v33, %v6027_v32 }
 0xf5a   : > { %6610 = vmatmul.mubr.msk.f32.vlgmr.msra.gmra.mrb[32].mxu1 %vm2779_vm12, %v7363_v21  ;;  %6976 = vmatprep.subr.bf16.mxu1 %v7151_v3 }
 0xf5b   : > { %6615 = vmatmul.mubr.msk.f32.vlgmr.msra.gmra.mrb[30].mxu0 %vm2779_vm12, %v7453_v1  ;;  %6978 = vmatpush3.bf16.msra.mxu1 %v6977_v34 }
 0xf5c   : > { %6979 = vmatprep.subr.bf16.mxu1 %v7151_v3  ;;  %6625 = vmatprep.mubr.msk.f32.mxu1 %vm7152_vm0, %v7153_v11 }
 0xf5d   : > { %6628 = vmatprep.subr.mxu0 %v7153_v11  ;;  %6630 = vmatprep.mubr.msk.f32.mxu0 %vm7152_vm0, %v7153_v11 }
 0xf5f   : > { %6981 = vmatpush3.bf16.msra.mxu1 %v6980_v44 }
 0xf60   : > { %6644 = vmatprep.subr.mxu1 %v7153_v11 }
 0xf62   : > { %6626 = vmatmul.mubr.msk.f32.vlgmr.msra.gmra.mrb[34].mxu1 %vm825_vm1, %v3080_v31 }
 0xf63   : > { %6646 = vmatprep.mubr.msk.f32.mxu1 %vm7152_vm0, %v7153_v11 }
0x102d   : > { %v3299_v1 = vpop.f32.mrb[32].mxu1 }
0x102e   : > { %v6611_v45 = vpop.f32.mrb[33].mxu1  ;;  %v3371_v47 = vpop.f32.mrb[30].mxu0 }
0x102f   : > { %v3372_v48 = vadd.f32 %v3371_v47, %v3299_v1  ;;  %v6616_v49 = vpop.f32.mrb[31].mxu0  ;;  %v4135_v47 = vld [vmem:[%s8130_s26] sm:$0xff] }
0x1035   : > { %v3446_v50 = vpop.f32.mrb[34].mxu1 }
0x1036   : > { %v6627_v51 = vpop.f32.mrb[35].mxu1  ;;  %6629 = vmatpush3.msra.mxu0 %v3446_v50  ;;  %v4137_v50 = vld [vmem:[%s8130_s26 + $0x10] sm:$0xff] }
0x1037   : > { %6631 = vmatmul.mubr.msk.f32.vlgmr.msra.gmra.mrb[32].mxu0 %vm2779_vm12, %v7481_v15  ;;  %6982 = vmatprep.subr.bf16.mxu0 %v7151_v3  ;;  %v3534_v15 = vld [vmem:[%s8126_s22 + $0x10] sm:$0xff]  ;;  %v4138_v51 = vld [vmem:[%s8130_s26 + $0x18] sm:$0xff] }
0x1038   : > { %6641 = vmatprep.mubr.msk.f32.mxu0 %vm7152_vm0, %v7153_v11  ;;  %6984 = vmatpush3.bf16.msra.mxu0 %v6983_v54  ;;  %v6986_v56 = vpack.c.bf16 %v3535_v55, %v3534_v15  ;;  %v7010_v52 = vpack.c.bf16 %v4138_v51, %v4137_v50  ;;  %v6031_v54 = vld [vmem:[%s8127_s23] ss:$0 sm:$0xff]  ;;  %v6067_v50 = vld [vmem:[%s8158_s8 + $0x38] sm:$0xff] }
0x1039   : > { %6985 = vmatprep.subr.bf16.mxu0 %v7151_v3 }
0x103c   : > { %6987 = vmatpush3.bf16.msra.mxu0 %v6986_v56 }
0x103d   : > { %6994 = vmatprep.subr.bf16.mxu0 %v7151_v3 }
0x110a   : > { %v3518_v57 = vpop.f32.mrb[32].mxu0 }
0x110b   : > { %v3522_v59 = vadd.f32 %v3518_v57, %v3372_v48  ;;  %v6632_v60 = vpop.f32.mrb[33].mxu0  ;;  %v4136_v48 = vld [vmem:[%s8130_s26 + $0x8] sm:$0xff] }
0x110c   : > { %v7007_v49 = vpack.c.bf16 %v4136_v48, %v4135_v47  ;;  %v4377_v60 = vld [vmem:[%s8122_s18 + $0x8] sm:$0xff] }
0x110d   : > { %v3530_v61 = vadd.f32 %v6013_v58, %v3522_v59  ;;  %v4376_v59 = vld [vmem:[%s8122_s18] sm:$0xff] }
0x110f   : > { %v3531_v62 = vmax.f32 %v3530_v61, 0.0  ;;  %v7012_v61 = vpack.c.bf16 %v4377_v60, %v4376_v59 }
0x1111   : > { %6642 = vmatmul.mubr.msk.f32.vlgmr.msra.gmra.mrb[34].mxu0 %vm825_vm1, %v3531_v62  ;;  %v4378_v62 = vld [vmem:[%s8122_s18 + $0x10] sm:$0xff] }
0x1112   : > { %6668 = vmatprep.mubr.msk.f32.mxu0 %vm7152_vm0, %v7153_v11  ;;  %6996 = vmatpush3.bf16.msra.mxu0 %v6995_v8  ;;  %v6043_v8 = vld [vmem:[%s8122_s18 + $0x30] sm:$0xff] }
0x1113   : > { %6997 = vmatprep.subr.bf16.mxu0 %v7151_v3 }
0x1116   : > { %6999 = vmatpush3.bf16.msra.mxu0 %v6998_v18 }
0x1117   : > { %6676 = vmatprep.subr.mxu0 %v7153_v11 }
0x11e4   : > { %v3605_v63 = vpop.f32.mrb[34].mxu0 }
0x11e5   : > { %v6643_v0 = vpop.f32.mrb[35].mxu0  ;;  %6645 = vmatpush3.msra.mxu1 %v3605_v63  ;;  %v4379_v63 = vld [vmem:[%s8122_s18 + $0x18] sm:$0xff] }
0x11e6   : > { %6647 = vmatmul.mubr.msk.f32.vlgmr.msra.gmra.mrb[36].mxu1 %vm2779_vm12, %v7363_v21  ;;  %6988 = vmatprep.subr.bf16.mxu1 %v7151_v3  ;;  %v7016_v0 = vpack.c.bf16 %v4379_v63, %v4378_v62  ;;  %v5367_v62 = vld [vmem:[%s8159_s11] sm:$0xff]  ;;  %v5368_v63 = vld [vmem:[%s8159_s11 + $0x8] sm:$0xff] }
0x11e7   : > { %6657 = vmatprep.mubr.msk.f32.mxu1 %vm7152_vm0, %v7153_v11  ;;  %6990 = vmatpush3.bf16.msra.mxu1 %v6989_v6 }
0x11e8   : > { %6991 = vmatprep.subr.bf16.mxu1 %v7151_v3 }
0x11eb   : > { %6993 = vmatpush3.bf16.msra.mxu1 %v6992_v13  ;;  %v6052_v13 = vld [vmem:[%s8122_s18 + $0x40] sm:$0xff] }
0x11ec   : > { %6671 = vmatprep.subr.mxu1 %v7153_v11  ;;  %v7036_v18 = vpack.c.bf16 %v6053_v14, %v6052_v13  ;;  %v6088_v13 = vld [vmem:[%s8159_s11 + $0x38] sm:$0xff] }
0x12b9   : > { %v3682_v20 = vpop.f32.mrb[36].mxu1 }
0x12ba   : > { %v3683_v22 = vadd.f32 %v6015_v19, %v3682_v20  ;;  %v6648_v24 = vpop.f32.mrb[37].mxu1  ;;  %v6054_v19 = vld [vmem:[%s8122_s18 + $0x50] sm:$0xff]  ;;  %v6055_v20 = vld [vmem:[%s8122_s18 + $0x58] sm:$0xff] }
0x12bc   : > { %v7836_v25 = vadd.f32 %v3683_v22, %v7738_v30 }
0x12be   : > { %v3687_v26 = vmax.f32 %v7836_v25, 0.0 }
0x12c0   : > { %6658 = vmatmul.mubr.msk.f32.vlgmr.msra.gmra.mrb[38].mxu1 %vm825_vm1, %v3687_v26  ;;  %6669 = vmatmul.mubr.msk.f32.vlgmr.msra.gmra.mrb[36].mxu0 %vm825_vm1, %v3687_v26 }
0x12c1   : > { %6673 = vmatprep.mubr.msk.f32.mxu1 %vm7152_vm0, %v7153_v11  ;;  %6678 = vmatprep.mubr.msk.f32.mxu0 %vm7152_vm0, %v7153_v11 }
0x1393   : > { %v3761_v30 = vpop.f32.mrb[38].mxu1  ;;  %v3836_v31 = vpop.f32.mrb[36].mxu0 }
0x1394   : > { %v6659_v34 = vpop.f32.mrb[39].mxu1  ;;  %v6670_v35 = vpop.f32.mrb[37].mxu0  ;;  %6672 = vmatpush3.msra.mxu1 %v3836_v31  ;;  %6677 = vmatpush3.msra.mxu0 %v3761_v30 }
0x1395   : > { %6674 = vmatmul.mubr.msk.f32.vlgmr.msra.gmra.mrb[40].mxu1 %vm2779_vm12, %v7363_v21  ;;  %7000 = vmatprep.subr.bf16.mxu1 %v7151_v3 }
0x1396   : > { %6679 = vmatmul.mubr.msk.f32.vlgmr.msra.gmra.mrb[38].mxu0 %vm2779_vm12, %v7366_v23  ;;  %7002 = vmatpush3.bf16.msra.mxu1 %v7001_v29 }
0x1397   : > { %7003 = vmatprep.subr.bf16.mxu1 %v7151_v3  ;;  %6689 = vmatprep.mubr.msk.f32.mxu1 %vm7152_vm0, %v7153_v11 }
0x1398   : > { %6692 = vmatprep.subr.mxu0 %v7153_v11  ;;  %6694 = vmatprep.mubr.msk.f32.mxu0 %vm7152_vm0, %v7153_v11 }
0x139a   : > { %7005 = vmatpush3.bf16.msra.mxu1 %v7004_v39 }
0x139b   : > { %6708 = vmatprep.subr.mxu1 %v7153_v11 }
0x139d   : > { %6690 = vmatmul.mubr.msk.f32.vlgmr.msra.gmra.mrb[42].mxu1 %vm825_vm1, %v3687_v26  ;;  %v4884_v26 = vld [vmem:[%s8158_s8] sm:$0xff] }
0x139e   : > { %6710 = vmatprep.mubr.msk.f32.mxu1 %vm7152_vm0, %v7153_v11  ;;  %v7048_v28 = vpack.c.bf16 %v4885_v27, %v4884_v26  ;;  %v6082_v26 = vld [vmem:[%s8160_s30] ss:$0 sm:$0xff] }
0x1468   : > { %v3906_v40 = vpop.f32.mrb[40].mxu1 }
0x1469   : > { %v6675_v41 = vpop.f32.mrb[41].mxu1  ;;  %v3976_v42 = vpop.f32.mrb[38].mxu0 }
0x146a   : > { %v3977_v43 = vadd.f32 %v3976_v42, %v3906_v40  ;;  %v6680_v44 = vpop.f32.mrb[39].mxu0 }
0x146b   : > { %v6065_v44 = vld [vmem:[%s8158_s8 + $0x28] sm:$0xff] }
0x1470   : > { %v4051_v1 = vpop.f32.mrb[42].mxu1 }
0x1471   : > { %v6691_v45 = vpop.f32.mrb[43].mxu1  ;;  %6693 = vmatpush3.msra.mxu0 %v4051_v1 }
0x1472   : > { %6695 = vmatmul.mubr.msk.f32.vlgmr.msra.gmra.mrb[40].mxu0 %vm2779_vm12, %v7394_v37  ;;  %7006 = vmatprep.subr.bf16.mxu0 %v7151_v3 }
0x1473   : > { %6705 = vmatprep.mubr.msk.f32.mxu0 %vm7152_vm0, %v7153_v11  ;;  %7008 = vmatpush3.bf16.msra.mxu0 %v7007_v49  ;;  %vm4548_vm0 = vcmask 130048   ;;  %v6066_v49 = vld [vmem:[%s8158_s8 + $0x30] sm:$0xff] }
0x1474   : > { %7009 = vmatprep.subr.bf16.mxu0 %v7151_v3  ;;  %v7060_v51 = vpack.c.bf16 %v6067_v50, %v6066_v49 }
0x1477   : > { %7011 = vmatpush3.bf16.msra.mxu0 %v7010_v52 }
0x1478   : > { %7013 = vmatprep.subr.bf16.mxu0 %v7012_v61 }
0x1545   : > { %v4121_v53 = vpop.f32.mrb[40].mxu0 }
0x1546   : > { %v4125_v15 = vadd.f32 %v4121_v53, %v3977_v43  ;;  %v6696_v55 = vpop.f32.mrb[41].mxu0  ;;  %v6064_v43 = vld [vmem:[%s8158_s8 + $0x20] sm:$0xff] }
0x1547   : > { %v7056_v47 = vpack.c.bf16 %v6065_v44, %v6064_v43  ;;  %v6074_v53 = vld [vmem:[%s8158_s8 + $0x40] sm:$0xff] }
0x1548   : > { %v4133_v56 = vadd.f32 %v6031_v54, %v4125_v15  ;;  %v6075_v54 = vld [vmem:[%s8158_s8 + $0x48] sm:$0xff]  ;;  %v6061_v55 = vld [vmem:[%s8121_s17] ss:$0 sm:$0xff] }
0x1549   : > { %v7072_v15 = vpack.c.bf16 %v6075_v54, %v6074_v53 }
0x154a   : > { %v4134_v57 = vmax.f32 %v4133_v56, 0.0 }
0x154c   : > { %6706 = vmatmul.mubr.msk.f32.vlgmr.msra.gmra.mrb[42].mxu0 %vm825_vm1, %v4134_v57  ;;  %v6076_v57 = vld [vmem:[%s8158_s8 + $0x50] sm:$0xff] }
0x154d   : > { %7015 = vmatpush3.bf16.msra.mxu0 %v7012_v61 }
0x154e   : > { %7017 = vmatprep.subr.bf16.mxu0 %v7016_v0 }
0x1551   : > { %7019 = vmatpush3.bf16.msra.mxu0 %v7016_v0  ;;  %v7084_v0 = vpack.c.bf16 %v5368_v63, %v5367_v62 }
0x161f   : > { %v4208_v3 = vpop.f32.mrb[42].mxu0 }
0x1620   : > { %v6707_v58 = vpop.f32.mrb[43].mxu0  ;;  %6709 = vmatpush3.msra.mxu1 %v4208_v3  ;;  %v6077_v3 = vld [vmem:[%s8158_s8 + $0x58] sm:$0xff] }
0x1621   : > { %6711 = vmatmul.mubr.msk.f32.vlgmr.msra.gmra.mrb[44].mxu1 %vm2779_vm12, %v7363_v21  ;;  %v7076_v61 = vpack.c.bf16 %v6077_v3, %v6076_v57 }
0x1622   : > { %6715 = vmatprep.mubr.msk.f32.mxu1 %vm2779_vm12, %v7653_v46  ;;  %v7911_v46 = vadd.s32 8, %v7348_v16  ;;  %v6042_v16 = vld [vmem:[%s8122_s18 + $0x28] sm:$0xff] }
0x1623   : > { %v7020_v9 = vpack.c.bf16 %v6042_v16, %v6041_v5 }
0x1624   : > { %vm4291_vm13 = vcmp.ge.s32.totalorder %v7911_v46, %v7633_v36  ;;  %vm4292_vm14 = vcmp.lt.s32.totalorder %v7911_v46, %v7636_v38  ;;  %v6044_v36 = vld [vmem:[%s8122_s18 + $0x38] sm:$0xff]  ;;  %vm4545_vm2 = vcmp.eq.s32.totalorder %v7350_v17, %v7911_v46  ;;  %v4461_v39 = vadd.s32 4294967295, %v7911_v46 }
0x1625   : > { %vm4293_vm15 = vmand %vm4291_vm13, %vm4292_vm14  ;;  %v7024_v12 = vpack.c.bf16 %v6044_v36, %v6043_v8  ;;  %v7964_v35 = vsel %vm4545_vm2, 1.0, %v7153_v11  ;;  %v4789_v45 = vadd.s32 1, %v7911_v46 }
0x1626   : > { %v6035_v10 = vsel %vm4293_vm15, 1.0, %v7153_v11  ;;  %vm4462_vm3 = vcmp.eq.s32.totalorder %v7350_v17, %v4461_v39 }
0x1627   : > { %v7979_v1 = vsel %vm4462_vm3, 1.0, %v7153_v11  ;;  %vm4790_vm4 = vcmp.eq.s32.totalorder %v7350_v17, %v4789_v45  ;;  %v4886_v17 = vld [vmem:[%s8158_s8 + $0x10] sm:$0xff] }
0x1628   : > { %v7988_v48 = vsel %vm4790_vm4, 1.0, %v7153_v11  ;;  %v4887_v11 = vld [vmem:[%s8158_s8 + $0x18] sm:$0xff] }
0x1629   : > { %v7052_v52 = vpack.c.bf16 %v4887_v11, %v4886_v17 }
0x16f4   : > { %v4285_v4 = vpop.f32.mrb[44].mxu1 }
0x16f5   : > { %v4286_v6 = vadd.f32 %v6033_v2, %v4285_v4  ;;  %v6712_v7 = vpop.f32.mrb[45].mxu1 }
0x16f7   : > { %v4289_v38 = vadd.f32 %v4286_v6, %v7836_v25  ;;  %v7040_v25 = vpack.c.bf16 %v6055_v20, %v6054_v19  ;;  %v5370_v19 = vld [vmem:[%s8159_s11 + $0x18] sm:$0xff] }
0x16f9   : > { %6713 = vmatprep.subr.mxu1 %v4289_v38 }
0x16fa   : > { %6714 = vmatpush3.msra.mxu1 %v4289_v38  ;;  %v6085_v38 = vld [vmem:[%s8159_s11 + $0x20] sm:$0xff] }
0x16fb   : > { %6716 = vmatmul.mubr.msk.f32.vlgmr.msra.gmra.mrb[46].mxu1 %vm2779_vm12, %v6035_v10  ;;  %7021 = vmatprep.subr.bf16.mxu1 %v7020_v9 }
0x16fc   : > { %7023 = vmatpush3.bf16.msra.mxu1 %v7020_v9  ;;  %v6086_v9 = vld [vmem:[%s8159_s11 + $0x28] sm:$0xff] }
0x16fd   : > { %7025 = vmatprep.subr.bf16.mxu1 %v7024_v12  ;;  %v7092_v10 = vpack.c.bf16 %v6086_v9, %v6085_v38 }
0x1700   : > { %7027 = vmatpush3.bf16.msra.mxu1 %v7024_v12  ;;  %v6087_v12 = vld [vmem:[%s8159_s11 + $0x30] sm:$0xff] }
0x1701   : > { %7037 = vmatprep.subr.bf16.mxu1 %v7036_v18  ;;  %v7096_v14 = vpack.c.bf16 %v6088_v13, %v6087_v12 }
0x17ce   : > { %v6717_v22 = vpop.f32.mrb[46].mxu1 }
0x17cf   : > { %v4367_v24 = vpop.f32.mrb[47].mxu1 }
0x17d0   : > { %6726 = vmatprep.mubr.msk.f32.mxu0 %vm825_vm1, %v4367_v24  ;;  %6737 = vmatprep.mubr.msk.f32.mxu1 %vm825_vm1, %v4367_v24 }
0x17d1   : > { %6727 = vmatmul.mubr.msk.f32.vlgmr.msra.gmra.mrb[44].mxu0 %vm825_vm1, %v6717_v22  ;;  %6738 = vmatmul.mubr.msk.f32.vlgmr.msra.gmra.mrb[48].mxu1 %vm825_vm1, %v6717_v22 }
0x17d2   : > { %7039 = vmatpush3.bf16.msra.mxu1 %v7036_v18  ;;  %6762 = vmatprep.mubr.msk.f32.mxu1 %vm825_vm1, %v4367_v24  ;;  %v5369_v18 = vld [vmem:[%s8159_s11 + $0x10] sm:$0xff]  ;;  %v6096_v24 = vld [vmem:[%s8159_s11 + $0x48] sm:$0xff] }
0x17d3   : > { %7041 = vmatprep.subr.bf16.mxu1 %v7040_v25  ;;  %6744 = vmatprep.mubr.msk.f32.mxu0 %vm4548_vm0, %v7363_v21  ;;  %v7088_v20 = vpack.c.bf16 %v5370_v19, %v5369_v18 }
0x17d6   : > { %7043 = vmatpush3.bf16.msra.mxu1 %v7040_v25 }
0x17d7   : > { %7049 = vmatprep.subr.bf16.mxu1 %v7048_v28 }
0x17d9   : > { %6763 = vmatmul.mubr.msk.f32.vlgmr.msra.gmra.mrb[50].mxu1 %vm825_vm1, %v6717_v22  ;;  %v6095_v22 = vld [vmem:[%s8159_s11 + $0x40] sm:$0xff] }
0x17da   : > { %7051 = vmatpush3.bf16.msra.mxu1 %v7048_v28  ;;  %v7108_v25 = vpack.c.bf16 %v6096_v24, %v6095_v22 }
0x17db   : > { %7053 = vmatprep.subr.bf16.mxu1 %v7052_v52 }
0x17de   : > { %7055 = vmatpush3.bf16.msra.mxu1 %v7052_v52 }
0x18a4   : > { %v6728_v29 = vpop.f32.mrb[44].mxu0  ;;  %v6739_v30 = vpop.f32.mrb[48].mxu1 }
0x18a5   : > { %v4452_v31 = vpop.f32.mrb[45].mxu0  ;;  %v4536_v32 = vpop.f32.mrb[49].mxu1 }
0x18a6   : > { %v7032_v33 = vpack.c.bf16 %v6728_v29, %v4452_v31  ;;  %v7028_v34 = vpack.c.bf16 %v6739_v30, %v4536_v32  ;;  %v6097_v31 = vld [vmem:[%s8159_s11 + $0x50] sm:$0xff]  ;;  %v6098_v32 = vld [vmem:[%s8159_s11 + $0x58] sm:$0xff] }
0x18a7   : > { %v7112_v39 = vpack.c.bf16 %v6098_v32, %v6097_v31 }
0x18a8   : > { %7029 = vmatprep.subr.bf16.mxu0 %v7028_v34 }
0x18a9   : > { %7031 = vmatpush3.bf16.msra.mxu0 %v7028_v34 }
0x18aa   : > { %7033 = vmatprep.subr.bf16.mxu0 %v7032_v33 }
0x18ac   : > { %v6764_v40 = vpop.f32.mrb[50].mxu1  ;;  %6745 = vmatmul.mubr.msk.f32.vlgmr.msra.gmra.mrb[46].mxu0 %vm4548_vm0, %v7964_v35 }
0x18ad   : > { %v4780_v41 = vpop.f32.mrb[51].mxu1  ;;  %7035 = vmatpush3.bf16.msra.mxu0 %v7032_v33  ;;  %6751 = vmatprep.mubr.msk.f32.mxu0 %vm4548_vm0, %v7366_v23 }
0x18ae   : > { %v7044_v42 = vpack.c.bf16 %v6764_v40, %v4780_v41 }
0x18b0   : > { %7045 = vmatprep.subr.bf16.mxu0 %v7044_v42 }
0x18b4   : > { %6752 = vmatmul.mubr.msk.f32.vlgmr.msra.gmra.mrb[46].mxu0 %vm4548_vm0, %v7979_v1 }
0x18b5   : > { %7047 = vmatpush3.bf16.msra.mxu0 %v7044_v42  ;;  %6769 = vmatprep.mubr.msk.f32.mxu0 %vm4548_vm0, %v7394_v37 }
0x18b6   : > { %7057 = vmatprep.subr.bf16.mxu0 %v7056_v47 }
0x18bc   : > { %6770 = vmatmul.mubr.msk.f32.vlgmr.msra.gmra.mrb[46].mxu0 %vm4548_vm0, %v7988_v48 }
0x18bd   : > { %7059 = vmatpush3.bf16.msra.mxu0 %v7056_v47 }
0x18be   : > { %7061 = vmatprep.subr.bf16.mxu0 %v7060_v51 }
0x18c1   : > { %7063 = vmatpush3.bf16.msra.mxu0 %v7060_v51 }
0x18c2   : > { %7073 = vmatprep.subr.bf16.mxu0 %v7072_v15 }
0x198f   : > { %v6771_v56 = vpop.f32.mrb[46].mxu0 }
0x1990   : > { %v4864_v58 = vpop.f32.mrb[47].mxu0  ;;  %v4883_v60 = vadd.f32 %v6771_v56, %v6061_v55 }
0x1991   : > { %v4882_v59 = vadd.f32 %v6061_v55, %v4864_v58 }
0x1993   : > { %6780 = vmatprep.mubr.msk.f32.mxu1 %vm825_vm1, %v4882_v59  ;;  %6791 = vmatprep.mubr.msk.f32.mxu0 %vm825_vm1, %v4882_v59 }
0x1994   : > { %6781 = vmatmul.mubr.msk.f32.vlgmr.msra.gmra.mrb[52].mxu1 %vm825_vm1, %v4883_v60  ;;  %6792 = vmatmul.mubr.msk.f32.vlgmr.msra.gmra.mrb[48].mxu0 %vm825_vm1, %v4883_v60 }
0x1995   : > { %7075 = vmatpush3.bf16.msra.mxu0 %v7072_v15  ;;  %6816 = vmatprep.mubr.msk.f32.mxu0 %vm825_vm1, %v4882_v59 }
0x1996   : > { %7077 = vmatprep.subr.bf16.mxu0 %v7076_v61  ;;  %6798 = vmatprep.mubr.msk.f32.mxu1 %vm4548_vm0, %v7363_v21 }
0x1999   : > { %7079 = vmatpush3.bf16.msra.mxu0 %v7076_v61 }
0x199a   : > { %7085 = vmatprep.subr.bf16.mxu0 %v7084_v0 }
0x199c   : > { %6817 = vmatmul.mubr.msk.f32.vlgmr.msra.gmra.mrb[50].mxu0 %vm825_vm1, %v4883_v60 }
0x199d   : > { %7087 = vmatpush3.bf16.msra.mxu0 %v7084_v0 }
0x199e   : > { %7089 = vmatprep.subr.bf16.mxu0 %v7088_v20 }
0x19a1   : > { %7091 = vmatpush3.bf16.msra.mxu0 %v7088_v20 }
0x1a67   : > { %v6782_v46 = vpop.f32.mrb[52].mxu1  ;;  %v6793_v2 = vpop.f32.mrb[48].mxu0 }
0x1a68   : > { %v4960_v4 = vpop.f32.mrb[53].mxu1  ;;  %v5040_v5 = vpop.f32.mrb[49].mxu0 }
0x1a69   : > { %v7068_v16 = vpack.c.bf16 %v6782_v46, %v4960_v4  ;;  %v7064_v6 = vpack.c.bf16 %v6793_v2, %v5040_v5 }
0x1a6b   : > { %7065 = vmatprep.subr.bf16.mxu1 %v7064_v6 }
0x1a6c   : > { %7067 = vmatpush3.bf16.msra.mxu1 %v7064_v6 }
0x1a6d   : > { %7069 = vmatprep.subr.bf16.mxu1 %v7068_v16 }
0x1a6f   : > { %v6818_v7 = vpop.f32.mrb[50].mxu0  ;;  %6799 = vmatmul.mubr.msk.f32.vlgmr.msra.gmra.mrb[54].mxu1 %vm4548_vm0, %v7964_v35 }
0x1a70   : > { %v5270_v8 = vpop.f32.mrb[51].mxu0  ;;  %7071 = vmatpush3.bf16.msra.mxu1 %v7068_v16  ;;  %6805 = vmatprep.mubr.msk.f32.mxu1 %vm4548_vm0, %v7366_v23 }
0x1a71   : > { %v7080_v36 = vpack.c.bf16 %v6818_v7, %v5270_v8 }
0x1a73   : > { %7081 = vmatprep.subr.bf16.mxu1 %v7080_v36 }
0x1a77   : > { %6806 = vmatmul.mubr.msk.f32.vlgmr.msra.gmra.mrb[54].mxu1 %vm4548_vm0, %v7979_v1 }
0x1a78   : > { %7083 = vmatpush3.bf16.msra.mxu1 %v7080_v36  ;;  %6823 = vmatprep.mubr.msk.f32.mxu1 %vm4548_vm0, %v7394_v37 }
0x1a79   : > { %7093 = vmatprep.subr.bf16.mxu1 %v7092_v10 }
0x1a7f   : > { %6824 = vmatmul.mubr.msk.f32.vlgmr.msra.gmra.mrb[54].mxu1 %vm4548_vm0, %v7988_v48 }
0x1a80   : > { %7095 = vmatpush3.bf16.msra.mxu1 %v7092_v10 }
0x1a81   : > { %7097 = vmatprep.subr.bf16.mxu1 %v7096_v14 }
0x1a84   : > { %7099 = vmatpush3.bf16.msra.mxu1 %v7096_v14 }
0x1a85   : > { %7109 = vmatprep.subr.bf16.mxu1 %v7108_v25 }
0x1b52   : > { %v6825_v27 = vpop.f32.mrb[54].mxu1 }
0x1b53   : > { %v5364_v28 = vadd.f32 %v6825_v27, %v6082_v26  ;;  %v5345_v29 = vpop.f32.mrb[55].mxu1 }
0x1b54   : > { %v5363_v30 = vadd.f32 %v6082_v26, %v5345_v29 }
0x1b55   : > { %v5366_v34 = vmax.f32 %v5364_v28, 0.0 }
0x1b56   : > { %v5365_v33 = vmax.f32 %v5363_v30, 0.0 }
0x1b58   : > { %6834 = vmatprep.mubr.msk.f32.mxu0 %vm825_vm1, %v5365_v33  ;;  %6845 = vmatprep.mubr.msk.f32.mxu1 %vm825_vm1, %v5365_v33 }
0x1b59   : > { %6835 = vmatmul.mubr.msk.f32.vlgmr.msra.gmra.mrb[52].mxu0 %vm825_vm1, %v5366_v34  ;;  %6846 = vmatmul.mubr.msk.f32.vlgmr.msra.gmra.mrb[56].mxu1 %vm825_vm1, %v5366_v34 }
0x1b5a   : > { %7111 = vmatpush3.bf16.msra.mxu1 %v7108_v25  ;;  %6870 = vmatprep.mubr.msk.f32.mxu1 %vm825_vm1, %v5365_v33 }
0x1b5b   : > { %7113 = vmatprep.subr.bf16.mxu1 %v7112_v39  ;;  %6852 = vmatprep.mubr.msk.f32.mxu0 %vm4548_vm0, %v7363_v21 }
0x1b5e   : > { %7115 = vmatpush3.bf16.msra.mxu1 %v7112_v39 }
0x1b61   : > { %6871 = vmatmul.mubr.msk.f32.vlgmr.msra.gmra.mrb[58].mxu1 %vm825_vm1, %v5366_v34  ;;  %vm5848_vm1 = vcmask 23552  }
0x1c2c   : > { %v6836_v40 = vpop.f32.mrb[52].mxu0  ;;  %v6847_v41 = vpop.f32.mrb[56].mxu1 }
0x1c2d   : > { %v5443_v42 = vpop.f32.mrb[53].mxu0  ;;  %v5523_v43 = vpop.f32.mrb[57].mxu1 }
0x1c2e   : > { %v7104_v44 = vpack.c.bf16 %v6836_v40, %v5443_v42  ;;  %v7100_v45 = vpack.c.bf16 %v6847_v41, %v5523_v43 }
0x1c30   : > { %7101 = vmatprep.subr.bf16.mxu0 %v7100_v45 }
0x1c31   : > { %7103 = vmatpush3.bf16.msra.mxu0 %v7100_v45 }
0x1c32   : > { %7105 = vmatprep.subr.bf16.mxu0 %v7104_v44 }
0x1c34   : > { %v6872_v47 = vpop.f32.mrb[58].mxu1  ;;  %6853 = vmatmul.mubr.msk.f32.vlgmr.msra.gmra.mrb[54].mxu0 %vm4548_vm0, %v7964_v35  ;;  %v6103_v35 = vld [vmem:[%s8161_s3] ss:$0 sm:$0xff] }
0x1c35   : > { %v5753_v49 = vpop.f32.mrb[59].mxu1  ;;  %7107 = vmatpush3.bf16.msra.mxu0 %v7104_v44  ;;  %6859 = vmatprep.mubr.msk.f32.mxu0 %vm4548_vm0, %v7366_v23 }
0x1c36   : > { %v7116_v21 = vpack.c.bf16 %v6872_v47, %v5753_v49 }
0x1c38   : > { %7117 = vmatprep.subr.bf16.mxu0 %v7116_v21 }
0x1c3c   : > { %6860 = vmatmul.mubr.msk.f32.vlgmr.msra.gmra.mrb[54].mxu0 %vm4548_vm0, %v7979_v1 }
0x1c3d   : > { %7119 = vmatpush3.bf16.msra.mxu0 %v7116_v21  ;;  %6877 = vmatprep.mubr.msk.f32.mxu0 %vm4548_vm0, %v7394_v37 }
0x1c44   : > { %6878 = vmatmul.mubr.msk.f32.vlgmr.msra.gmra.mrb[54].mxu0 %vm4548_vm0, %v7988_v48 }
0x1d17   : > { %v6879_v23 = vpop.f32.mrb[54].mxu0 }
0x1d18   : > { %v5847_v50 = vadd.f32 %v6879_v23, %v6103_v35  ;;  %v5828_v1 = vpop.f32.mrb[55].mxu0 }
0x1d19   : > { %v5846_v51 = vadd.f32 %v6103_v35, %v5828_v1 }
0x1d1a   : > { %5850 = vst.msk [vmem:[%s815_s28 + $0x8] sm:$0xff] %vm5848_vm1, %v5847_v50 }
0x1d1b   : > { %5849 = vst.msk [vmem:[%s815_s28] sm:$0xff] %vm5848_vm1, %v5846_v51 }
0x1d1c PF: > { %s37_s7 = sadd.s32 1, %s7149_s7  }
0x1d1d   : > { %p34_p4 = scmp.ge.s32.totalorder %s37_s7, 4  }
0x1d1f   :  { %36 = sbr.rel (!%p34_p4) target bundleno = 13 (0xd), region = 176 }

</bundles_post_ra>
